<compile_context>
chip_gen: v7x
topology: tpu7x:2x2x1
jax: 0.10.0
libtpu: 0.0.40
codegen_flags: <defaults>
</compile_context>

<pallas_src>
import functools

import jax
import jax.numpy as jnp
from jax import lax
from jax.experimental import pallas as pl
from jax.experimental.pallas import tpu as pltpu


def _round_up(x, m):
    return ((x + m - 1) // m) * m


def _cpad(c):
    """Pad channel counts to a multiple of 16 (real channels: 4/16/32/64)."""
    return _round_up(c, 16)


# ----------------------------------------------------------------------------
# Pallas kernel: whole per-batch volume in VMEM (auto-pipelined) -> per output
# z-slice, tap-wise MXU matmuls on contiguous row windows accumulated in vregs
# -> +shift -> ReLU -> active-site mask -> store.
# ----------------------------------------------------------------------------
def _conv_bn_relu_kernel(flag_ref, x_ref, w_ref, shift_ref, m_ref, o_ref,
                         *, kd, kh, kw, sd, sh, sw, Wq, mc, nchunks, zblk):
    b = pl.program_id(0)
    zb = pl.program_id(1)
    active = flag_ref[b, zb] > 0

    @pl.when(active)
    def _compute():
        shift = shift_ref[...]                      # (1, Cout) f32, loop-invariant

        def depth_body(dz, carry):
            d = zb * zblk + dz                      # global output z index
            for c in range(nchunks):                # keep f32 acc within the vreg file
                row0 = c * mc
                acc = None
                for i in range(kd):
                    din = d * sd + i                # input z plane (global in block)
                    for j in range(kh):
                        for k in range(kw):
                            phase = (j % sh) * sw + (k % sw)
                            off = (j // sh) * Wq + (k // sw) + row0
                            t = (i * kh + j) * kw + k
                            # Contiguous row window (no (Ho,Wo) repack).
                            win = x_ref[0, phase, din, pl.ds(off, mc), :]
                            part = jnp.dot(win, w_ref[t],
                                           preferred_element_type=jnp.float32)
                            acc = part if acc is None else acc + part
                y = jnp.maximum(acc + shift, 0.0)
                y = y * m_ref[0, dz, pl.ds(row0, mc), :]
                o_ref[0, dz, pl.ds(row0, mc), :] = y.astype(o_ref.dtype)
            return carry

        lax.fori_loop(0, zblk, depth_body, 0)

    @pl.when(jnp.logical_not(active))
    def _zeros():
        o_ref[...] = jnp.zeros_like(o_ref)


def conv_bn_relu_pallas(flags, xph, w, shift, mflat, *, ksize, stride, dims):
    """flags: (N, nzb) i32, xph: (N, sh*sw, Dp, Mrow, Cin) bf16,
    w: (taps, Cin, Cout) bf16, shift: (1, Cout) f32, mflat: (N, Do, Mpad, 1) f32."""
    N, Do, Wq, Mpad, zblk = dims
    kd, kh, kw = ksize
    sd, sh, sw = stride
    _, phases, Dp, Mrow, Cin = xph.shape
    taps, _, Cout = w.shape
    nzb = Do // zblk

    # Chunk the flat row dimension so the f32 value accumulator stays in vregs.
    nchunks = max(1, (Mpad + 127) // 128)
    if Mpad % nchunks:
        nchunks = 1
    mc = Mpad // nchunks

    kernel = functools.partial(
        _conv_bn_relu_kernel, kd=kd, kh=kh, kw=kw, sd=sd, sh=sh, sw=sw,
        Wq=Wq, mc=mc, nchunks=nchunks, zblk=zblk)

    return pl.pallas_call(
        kernel,
        out_shape=jax.ShapeDtypeStruct((N, Do, Mpad, Cout), jnp.bfloat16),
        grid_spec=pltpu.PrefetchScalarGridSpec(
            num_scalar_prefetch=1,
            grid=(N, nzb),
            in_specs=[
                # Whole per-batch phase-decomposed input: DMA'd once per batch by the
                # BlockSpec pipeline, overlapped with compute of the previous batch.
                pl.BlockSpec((1, phases, Dp, Mrow, Cin),
                             lambda b, z, f: (b, 0, 0, 0, 0)),
                pl.BlockSpec((taps, Cin, Cout), lambda b, z, f: (0, 0, 0)),
                pl.BlockSpec((1, Cout), lambda b, z, f: (0, 0)),
                pl.BlockSpec((1, zblk, Mpad, 1), lambda b, z, f: (b, z, 0, 0)),
            ],
            out_specs=pl.BlockSpec((1, zblk, Mpad, Cout),
                                   lambda b, z, f: (b, z, 0, 0)),
        ),
        compiler_params=pltpu.CompilerParams(
            dimension_semantics=("parallel", "parallel")),
    )(flags, xph, w, shift, mflat)


# ----------------------------------------------------------------------------
# JAX glue: phase decomposition, mask bookkeeping, parameters.
# ----------------------------------------------------------------------------
def prepare_phased_input(x, ksize, stride, padding):
    """x: (N, D, H, W, C) bf16 -> (N, sh*sw, Dp, Mrow, C) volume whose per-tap windows
    are single contiguous row ranges of the flattened (Hq*Wq + tail) planes."""
    N, D, H, W, C = x.shape
    kd, kh, kw = ksize
    sd, sh, sw = stride
    pd, ph, pw = padding
    Dp = D + 2 * pd
    Do = (Dp - kd) // sd + 1
    Ho = (H + 2 * ph - kh) // sh + 1
    Wo = (W + 2 * pw - kw) // sw + 1
    Hq = Ho + (kh - 1) // sh
    Wq = Wo + (kw - 1) // sw
    Mpad = _round_up(Ho * Wq, 8)
    off_max = ((kh - 1) // sh) * Wq + (kw - 1) // sw
    Mrow = off_max + Mpad
    xpad = jnp.pad(x, ((0, 0), (pd, pd),
                       (ph, sh * Hq - H - ph), (pw, sw * Wq - W - pw), (0, 0)))
    xph = xpad.reshape(N, Dp, Hq, sh, Wq, sw, C).transpose(0, 3, 5, 1, 2, 4, 6)
    xph = xph.reshape(N, sh * sw, Dp, Hq * Wq, C)
    if Mrow > Hq * Wq:
        xph = jnp.pad(xph, ((0, 0), (0, 0), (0, 0), (0, Mrow - Hq * Wq), (0, 0)))
    return xph, (Do, Ho, Wo, Wq, Mpad)


def sparse_conv_layer(x, mask, layer):
    """One (Sparse/SubM)Conv3d + BN + ReLU layer on a dense volume + activity mask."""
    (w, shift), ksize, stride, padding, subm, _cout = layer
    N = x.shape[0]
    xph, (Do, Ho, Wo, Wq, Mpad) = prepare_phased_input(x, ksize, stride, padding)
    if subm:
        out_mask = mask                               # SubMConv3d preserves indices
    else:
        kd, kh, kw = ksize
        sd, sh, sw = stride
        pd, ph, pw = padding
        # Dilate the active-site mask with a max-pool (boolean dilation).
        out_mask = lax.reduce_window(
            mask, 0.0, lax.max, (1, kd, kh, kw, 1), (1, sd, sh, sw, 1),
            [(0, 0), (pd, pd), (ph, ph), (pw, pw), (0, 0)])

    zblk = Do                                         # whole depth per grid step
    nzb = Do // zblk
    flags = jnp.any(out_mask.reshape(N, nzb, -1) > 0, axis=2).astype(jnp.int32)

    # Mask over the flat padded (Ho*Wq -> Mpad) row grid; zero at garbage columns.
    mflat = jnp.pad(out_mask, ((0, 0), (0, 0), (0, 0), (0, Wq - Wo), (0, 0)))
    mflat = mflat.reshape(N, Do, Ho * Wq, 1)
    mflat = jnp.pad(mflat, ((0, 0), (0, 0), (0, Mpad - Ho * Wq), (0, 0)))
    mflat = mflat.astype(jnp.float32)

    y = conv_bn_relu_pallas(flags, xph, w, shift, mflat, ksize=ksize,
                            stride=stride, dims=(N, Do, Wq, Mpad, zblk))
    y = y[:, :, :Ho * Wq, :].reshape(N, Do, Ho, Wq, -1)[:, :, :, :Wo, :]
    return y, out_mask


def make_conv_params(key, cin, cout, ksize):
    kd, kh, kw = ksize
    taps = kd * kh * kw
    fan_out = cout * taps                             # kaiming fan_out, relu
    std = (2.0 / fan_out) ** 0.5
    w = jax.random.normal(key, (taps, cin, cout), jnp.float32) * std
    # BatchNorm (eval mode, eps=1e-3) folded in f32: W' = W*scale, shift = beta - mean*scale.
    gamma = jnp.ones((cout,), jnp.float32)
    beta = jnp.zeros((cout,), jnp.float32)
    mean = jnp.zeros((cout,), jnp.float32)
    var = jnp.ones((cout,), jnp.float32)
    scale = gamma / jnp.sqrt(var + 1e-3)
    shift = beta - mean * scale
    w = w * scale[None, None, :]
    cin_p, cout_p = _cpad(cin), _cpad(cout)
    w_pad = jnp.zeros((taps, cin_p, cout_p), jnp.float32).at[:, :cin, :cout].set(w)
    shift_pad = jnp.zeros((1, cout_p), jnp.float32).at[0, :cout].set(shift)
    return w_pad.astype(jnp.bfloat16), shift_pad


def build_sparse_cnn_params(key, cnn_c_in):
    keys = iter(jax.random.split(key, 16))
    k3 = (3, 3, 3)

    def subm(cin, cout):
        return (make_conv_params(next(keys), cin, cout, k3),
                k3, (1, 1, 1), (1, 1, 1), True, cout)

    def sconv(cin, cout, ks, st, pad):
        return (make_conv_params(next(keys), cin, cout, ks),
                ks, st, pad, False, cout)

    block1 = [subm(cnn_c_in, 16), subm(16, 16),
              sconv(16, 32, k3, (2, 2, 2), (1, 1, 1))]
    block2 = [subm(32, 32), subm(32, 32),
              sconv(32, 64, k3, (2, 2, 2), (1, 1, 1))]
    block3 = [subm(64, 64), subm(64, 64), subm(64, 64),
              sconv(64, 64, k3, (2, 2, 2), (0, 1, 1))]
    block4 = [subm(64, 64), subm(64, 64), subm(64, 64),
              sconv(64, 64, (3, 1, 1), (2, 1, 1), (0, 0, 0))]
    return [block1, block2, block3, block4]


def build_dense_input(voxel_features, coors, batch_size, grid_shape):
    Dz, Hy, Wx = grid_shape
    nvox, cin = voxel_features.shape
    cin_p = _cpad(cin)
    coors = coors.astype(jnp.int32)
    vf = jnp.zeros((nvox, cin_p), jnp.float32).at[:, :cin].set(voxel_features)
    x0 = jnp.zeros((batch_size, Dz, Hy, Wx, cin_p), jnp.bfloat16)
    m0 = jnp.zeros((batch_size, Dz, Hy, Wx, 1), jnp.float32)
    b, z, y, xx = coors[:, 0], coors[:, 1], coors[:, 2], coors[:, 3]
    x0 = x0.at[b, z, y, xx].set(vf.astype(jnp.bfloat16))
    m0 = m0.at[b, z, y, xx].set(1.0)
    return x0, m0


def to_global(stride, volume, mask, cout, voxel_size, voxel_offset):
    """Dense analog of SparseCNN.to_global (ZYX indices flipped to XYZ)."""
    _, D, H, W, _ = volume.shape
    zi, yi, xi = jnp.meshgrid(jnp.arange(D), jnp.arange(H), jnp.arange(W),
                              indexing="ij")
    idx_xyz = jnp.stack([xi, yi, zi], axis=-1).astype(jnp.float32)
    xyz = idx_xyz * (voxel_size * stride) + voxel_offset
    feat = volume[..., :cout].astype(jnp.float32)
    # TODO(synk): spconv returns only active-site (xyz, feature) pairs with a
    # data-dependent count; a dense grid plus the activity mask is returned here.
    return xyz, feat, mask


def sparse_cnn_forward(voxel_features, coors, batch_size, grid_shape, params,
                       voxel_size, grid_bounds, strides):
    cin = voxel_features.shape[1]
    x, m = build_dense_input(voxel_features, coors, batch_size, grid_shape)
    vols = [(x, m, cin)]
    for block in params:
        for layer in block:
            x, m = sparse_conv_layer(x, m, layer)
        vols.append((x, m, block[-1][-1]))

    vsz = jnp.asarray(voxel_size, jnp.float32)
    off = jnp.asarray(grid_bounds[:3], jnp.float32)
    multi_scale = [to_global(s, v, msk, c, vsz, off)
                   for s, (v, msk, c) in zip(strides, vols[:4])]
    x4, m4, c4 = vols[4]
    return multi_scale, (x4[..., :c4].astype(jnp.float32), m4)


# ----------------------------------------------------------------------------
if __name__ == "__main__":
    key = jax.random.PRNGKey(0)
    k_feat, k_coor, k_param = jax.random.split(key, 3)

    # Small synthetic problem: grid ZYX = (25, 16, 16), C_in = 4, batch = 2.
    grid_shape = (25, 16, 16)
    batch_size = 2
    cnn_c_in = 4
    num_voxels = 64
    voxel_size = (0.05, 0.05, 0.1)          # xyz
    grid_bounds = (0.0, -40.0, -3.0)        # xyz offset
    strides = (1, 2, 4, 8)

    voxel_features = jax.random.normal(k_feat, (num_voxels, cnn_c_in), jnp.float32)
    maxes = jnp.array([batch_size, grid_shape[0], grid_shape[1], grid_shape[2]],
                      jnp.int32)
    coors = (jax.random.uniform(k_coor, (num_voxels, 4)) * maxes).astype(jnp.int32)

    params = build_sparse_cnn_params(k_param, cnn_c_in)

    multi_scale, (x4, m4) = sparse_cnn_forward(
        voxel_features, coors, batch_size, grid_shape, params,
        voxel_size, grid_bounds, strides)

    jax.block_until_ready(x4)
    for xyz, feat, msk in multi_scale:
        jax.block_until_ready(feat)

    # sanity: expected shapes
    assert x4.shape == (2, 1, 2, 2, 64), x4.shape
    assert multi_scale[0][1].shape == (2, 25, 16, 16, 4)
    assert multi_scale[1][1].shape == (2, 13, 8, 8, 32)
    assert multi_scale[2][1].shape == (2, 7, 4, 4, 64)
    assert multi_scale[3][1].shape == (2, 3, 2, 2, 64)

    # numeric check: fused Pallas layer vs dense XLA conv reference (first layer).
    x0, m0 = build_dense_input(voxel_features, coors, batch_size, grid_shape)
    layer1 = params[0][0]
    (w1, shift1), ks1, st1, pd1, subm1, cout1 = layer1
    y1, _ = sparse_conv_layer(x0, m0, layer1)
    w_ref = w1[:, :cnn_c_in, :cout1].astype(jnp.float32).reshape(
        ks1 + (cnn_c_in, cout1))
    ref = lax.conv_general_dilated(
        x0[..., :cnn_c_in].astype(jnp.float32), w_ref,
        window_strides=(1, 1, 1), padding=((1, 1), (1, 1), (1, 1)),
        dimension_numbers=("NDHWC", "DHWIO", "NDHWC"),
        precision=lax.Precision.HIGHEST)
    ref = jnp.maximum(ref + shift1[0, :cout1], 0.0) * m0
    err = float(jnp.max(jnp.abs(y1[..., :cout1].astype(jnp.float32) - ref)))
    assert err < 1e-2, f"layer-1 mismatch vs reference: {err}"

    print("KERNEL_OK")
</pallas_src>

<mosaic_0001>
module attributes {stable_mosaic.version = 11 : i64} {
  func.func @_conv_bn_relu_kernel(%arg0: i32, %arg1: i32, %arg2: memref<2x1xi32, #tpu.memory_space<smem>>, %arg3: memref<1x1x27x326x16xbf16, #tpu.memory_space<vmem>>, %arg4: memref<27x16x16xbf16, #tpu.memory_space<vmem>>, %arg5: memref<1x16xf32, #tpu.memory_space<vmem>>, %arg6: memref<1x25x288x1xf32, #tpu.memory_space<vmem>>, %arg7: memref<1x25x288x16xbf16, #tpu.memory_space<vmem>>) attributes {dimension_semantics = [#tpu.dimension_semantics<parallel>, #tpu.dimension_semantics<parallel>], iteration_bounds = array<i64: 2, 1>, scalar_prefetch = 1 : i64, scratch_operands = 0 : i64, tpu.core_type = #tpu.core_type<tc>, window_params = [{transform_indices = @transform_0, window_bounds = array<i64: 1, 1, 27, 326, 16>}, {pipeline_mode = #tpu.pipeline_mode<synchronous>, transform_indices = @transform_1, window_bounds = array<i64: 27, 16, 16>}, {pipeline_mode = #tpu.pipeline_mode<synchronous>, transform_indices = @transform_2, window_bounds = array<i64: 1, 16>}, {transform_indices = @transform_3, window_bounds = array<i64: 1, 25, 288, 1>}, {transform_indices = @transform_4, window_bounds = array<i64: 1, 25, 288, 16>}]} {
    %0 = arith.index_cast %arg0 : i32 to index
    %1 = arith.index_cast %arg1 : i32 to index
    %2 = memref.load %arg2[%0, %1] : memref<2x1xi32, #tpu.memory_space<smem>>
    %c0_i32 = arith.constant 0 : i32
    %3 = arith.cmpi sgt, %2, %c0_i32 : i32
    %4 = arith.extui %3 : i1 to i32
    %c0_i32_0 = arith.constant 0 : i32
    %5 = arith.cmpi ne, %4, %c0_i32_0 : i32
    scf.if %5 {
      %c0 = arith.constant 0 : index
      %c0_2 = arith.constant 0 : index
      %9 = vector.load %arg5[%c0, %c0_2] : memref<1x16xf32, #tpu.memory_space<vmem>>, vector<1x16xf32>
      %c0_i32_3 = arith.constant 0 : i32
      %c25_i32 = arith.constant 25 : i32
      %10 = arith.addi %c0_i32_3, %c25_i32 : i32
      %c1_i32 = arith.constant 1 : i32
      scf.for %arg8 = %c0_i32_3 to %10 step %c1_i32  : i32 {
        %c25_i32_5 = arith.constant 25 : i32
        %11 = arith.muli %arg1, %c25_i32_5 : i32
        %12 = arith.addi %11, %arg8 : i32
        %c1_i32_6 = arith.constant 1 : i32
        %13 = arith.muli %12, %c1_i32_6 : i32
        %c0_i32_7 = arith.constant 0 : i32
        %14 = arith.addi %13, %c0_i32_7 : i32
        %c0_8 = arith.constant 0 : index
        %c0_9 = arith.constant 0 : index
        %15 = arith.index_cast %14 : i32 to index
        %c0_10 = arith.constant 0 : index
        %c0_11 = arith.constant 0 : index
        %16 = vector.load %arg3[%c0_8, %c0_9, %15, %c0_10, %c0_11] : memref<1x1x27x326x16xbf16, #tpu.memory_space<vmem>>, vector<1x1x1x96x16xbf16>
        %17 = vector.shape_cast %16 : vector<1x1x1x96x16xbf16> to vector<96x16xbf16>
        %c0_12 = arith.constant 0 : index
        %c0_13 = arith.constant 0 : index
        %c0_14 = arith.constant 0 : index
        %18 = vector.load %arg4[%c0_12, %c0_13, %c0_14] : memref<27x16x16xbf16, #tpu.memory_space<vmem>>, vector<1x16x16xbf16>
        %19 = vector.shape_cast %18 : vector<1x16x16xbf16> to vector<16x16xbf16>
        %cst = arith.constant dense<0.000000e+00> : vector<96x16xf32>
        %20 = tpu.matmul %17, %19, %cst {dimension_numbers = #tpu.dot_dimension_numbers<[1], [0], [0], [1], [0, 0, 1, 1], [], []>} : vector<96x16xbf16>, vector<16x16xbf16>, vector<96x16xf32> -> vector<96x16xf32>
        %c0_15 = arith.constant 0 : index
        %c0_16 = arith.constant 0 : index
        %21 = arith.index_cast %14 : i32 to index
        %c1 = arith.constant 1 : index
        %c0_17 = arith.constant 0 : index
        %22 = vector.load %arg3[%c0_15, %c0_16, %21, %c1, %c0_17] : memref<1x1x27x326x16xbf16, #tpu.memory_space<vmem>>, vector<1x1x1x96x16xbf16>
        %23 = vector.shape_cast %22 : vector<1x1x1x96x16xbf16> to vector<96x16xbf16>
        %c1_18 = arith.constant 1 : index
        %c0_19 = arith.constant 0 : index
        %c0_20 = arith.constant 0 : index
        %24 = vector.load %arg4[%c1_18, %c0_19, %c0_20] : memref<27x16x16xbf16, #tpu.memory_space<vmem>>, vector<1x16x16xbf16>
        %25 = vector.shape_cast %24 : vector<1x16x16xbf16> to vector<16x16xbf16>
        %cst_21 = arith.constant dense<0.000000e+00> : vector<96x16xf32>
        %26 = tpu.matmul %23, %25, %cst_21 {dimension_numbers = #tpu.dot_dimension_numbers<[1], [0], [0], [1], [0, 0, 1, 1], [], []>} : vector<96x16xbf16>, vector<16x16xbf16>, vector<96x16xf32> -> vector<96x16xf32>
        %27 = arith.addf %20, %26 : vector<96x16xf32>
        %c0_22 = arith.constant 0 : index
        %c0_23 = arith.constant 0 : index
        %28 = arith.index_cast %14 : i32 to index
        %c2 = arith.constant 2 : index
        %c0_24 = arith.constant 0 : index
        %29 = vector.load %arg3[%c0_22, %c0_23, %28, %c2, %c0_24] : memref<1x1x27x326x16xbf16, #tpu.memory_space<vmem>>, vector<1x1x1x96x16xbf16>
        %30 = vector.shape_cast %29 : vector<1x1x1x96x16xbf16> to vector<96x16xbf16>
        %c2_25 = arith.constant 2 : index
        %c0_26 = arith.constant 0 : index
        %c0_27 = arith.constant 0 : index
        %31 = vector.load %arg4[%c2_25, %c0_26, %c0_27] : memref<27x16x16xbf16, #tpu.memory_space<vmem>>, vector<1x16x16xbf16>
        %32 = vector.shape_cast %31 : vector<1x16x16xbf16> to vector<16x16xbf16>
        %cst_28 = arith.constant dense<0.000000e+00> : vector<96x16xf32>
        %33 = tpu.matmul %30, %32, %cst_28 {dimension_numbers = #tpu.dot_dimension_numbers<[1], [0], [0], [1], [0, 0, 1, 1], [], []>} : vector<96x16xbf16>, vector<16x16xbf16>, vector<96x16xf32> -> vector<96x16xf32>
        %34 = arith.addf %27, %33 : vector<96x16xf32>
        %c0_29 = arith.constant 0 : index
        %c0_30 = arith.constant 0 : index
        %35 = arith.index_cast %14 : i32 to index
        %c18 = arith.constant 18 : index
        %c0_31 = arith.constant 0 : index
        %36 = vector.load %arg3[%c0_29, %c0_30, %35, %c18, %c0_31] : memref<1x1x27x326x16xbf16, #tpu.memory_space<vmem>>, vector<1x1x1x96x16xbf16>
        %37 = vector.shape_cast %36 : vector<1x1x1x96x16xbf16> to vector<96x16xbf16>
        %c3 = arith.constant 3 : index
        %c0_32 = arith.constant 0 : index
        %c0_33 = arith.constant 0 : index
        %38 = vector.load %arg4[%c3, %c0_32, %c0_33] : memref<27x16x16xbf16, #tpu.memory_space<vmem>>, vector<1x16x16xbf16>
        %39 = vector.shape_cast %38 : vector<1x16x16xbf16> to vector<16x16xbf16>
        %cst_34 = arith.constant dense<0.000000e+00> : vector<96x16xf32>
        %40 = tpu.matmul %37, %39, %cst_34 {dimension_numbers = #tpu.dot_dimension_numbers<[1], [0], [0], [1], [0, 0, 1, 1], [], []>} : vector<96x16xbf16>, vector<16x16xbf16>, vector<96x16xf32> -> vector<96x16xf32>
        %41 = arith.addf %34, %40 : vector<96x16xf32>
        %c0_35 = arith.constant 0 : index
        %c0_36 = arith.constant 0 : index
        %42 = arith.index_cast %14 : i32 to index
        %c19 = arith.constant 19 : index
        %c0_37 = arith.constant 0 : index
        %43 = vector.load %arg3[%c0_35, %c0_36, %42, %c19, %c0_37] : memref<1x1x27x326x16xbf16, #tpu.memory_space<vmem>>, vector<1x1x1x96x16xbf16>
        %44 = vector.shape_cast %43 : vector<1x1x1x96x16xbf16> to vector<96x16xbf16>
        %c4 = arith.constant 4 : index
        %c0_38 = arith.constant 0 : index
        %c0_39 = arith.constant 0 : index
        %45 = vector.load %arg4[%c4, %c0_38, %c0_39] : memref<27x16x16xbf16, #tpu.memory_space<vmem>>, vector<1x16x16xbf16>
        %46 = vector.shape_cast %45 : vector<1x16x16xbf16> to vector<16x16xbf16>
        %cst_40 = arith.constant dense<0.000000e+00> : vector<96x16xf32>
        %47 = tpu.matmul %44, %46, %cst_40 {dimension_numbers = #tpu.dot_dimension_numbers<[1], [0], [0], [1], [0, 0, 1, 1], [], []>} : vector<96x16xbf16>, vector<16x16xbf16>, vector<96x16xf32> -> vector<96x16xf32>
        %48 = arith.addf %41, %47 : vector<96x16xf32>
        %c0_41 = arith.constant 0 : index
        %c0_42 = arith.constant 0 : index
        %49 = arith.index_cast %14 : i32 to index
        %c20 = arith.constant 20 : index
        %c0_43 = arith.constant 0 : index
        %50 = vector.load %arg3[%c0_41, %c0_42, %49, %c20, %c0_43] : memref<1x1x27x326x16xbf16, #tpu.memory_space<vmem>>, vector<1x1x1x96x16xbf16>
        %51 = vector.shape_cast %50 : vector<1x1x1x96x16xbf16> to vector<96x16xbf16>
        %c5 = arith.constant 5 : index
        %c0_44 = arith.constant 0 : index
        %c0_45 = arith.constant 0 : index
        %52 = vector.load %arg4[%c5, %c0_44, %c0_45] : memref<27x16x16xbf16, #tpu.memory_space<vmem>>, vector<1x16x16xbf16>
        %53 = vector.shape_cast %52 : vector<1x16x16xbf16> to vector<16x16xbf16>
        %cst_46 = arith.constant dense<0.000000e+00> : vector<96x16xf32>
        %54 = tpu.matmul %51, %53, %cst_46 {dimension_numbers = #tpu.dot_dimension_numbers<[1], [0], [0], [1], [0, 0, 1, 1], [], []>} : vector<96x16xbf16>, vector<16x16xbf16>, vector<96x16xf32> -> vector<96x16xf32>
        %55 = arith.addf %48, %54 : vector<96x16xf32>
        %c0_47 = arith.constant 0 : index
        %c0_48 = arith.constant 0 : index
        %56 = arith.index_cast %14 : i32 to index
        %c36 = arith.constant 36 : index
        %c0_49 = arith.constant 0 : index
        %57 = vector.load %arg3[%c0_47, %c0_48, %56, %c36, %c0_49] : memref<1x1x27x326x16xbf16, #tpu.memory_space<vmem>>, vector<1x1x1x96x16xbf16>
        %58 = vector.shape_cast %57 : vector<1x1x1x96x16xbf16> to vector<96x16xbf16>
        %c6 = arith.constant 6 : index
        %c0_50 = arith.constant 0 : index
        %c0_51 = arith.constant 0 : index
        %59 = vector.load %arg4[%c6, %c0_50, %c0_51] : memref<27x16x16xbf16, #tpu.memory_space<vmem>>, vector<1x16x16xbf16>
        %60 = vector.shape_cast %59 : vector<1x16x16xbf16> to vector<16x16xbf16>
        %cst_52 = arith.constant dense<0.000000e+00> : vector<96x16xf32>
        %61 = tpu.matmul %58, %60, %cst_52 {dimension_numbers = #tpu.dot_dimension_numbers<[1], [0], [0], [1], [0, 0, 1, 1], [], []>} : vector<96x16xbf16>, vector<16x16xbf16>, vector<96x16xf32> -> vector<96x16xf32>
        %62 = arith.addf %55, %61 : vector<96x16xf32>
        %c0_53 = arith.constant 0 : index
        %c0_54 = arith.constant 0 : index
        %63 = arith.index_cast %14 : i32 to index
        %c37 = arith.constant 37 : index
        %c0_55 = arith.constant 0 : index
        %64 = vector.load %arg3[%c0_53, %c0_54, %63, %c37, %c0_55] : memref<1x1x27x326x16xbf16, #tpu.memory_space<vmem>>, vector<1x1x1x96x16xbf16>
        %65 = vector.shape_cast %64 : vector<1x1x1x96x16xbf16> to vector<96x16xbf16>
        %c7 = arith.constant 7 : index
        %c0_56 = arith.constant 0 : index
        %c0_57 = arith.constant 0 : index
        %66 = vector.load %arg4[%c7, %c0_56, %c0_57] : memref<27x16x16xbf16, #tpu.memory_space<vmem>>, vector<1x16x16xbf16>
        %67 = vector.shape_cast %66 : vector<1x16x16xbf16> to vector<16x16xbf16>
        %cst_58 = arith.constant dense<0.000000e+00> : vector<96x16xf32>
        %68 = tpu.matmul %65, %67, %cst_58 {dimension_numbers = #tpu.dot_dimension_numbers<[1], [0], [0], [1], [0, 0, 1, 1], [], []>} : vector<96x16xbf16>, vector<16x16xbf16>, vector<96x16xf32> -> vector<96x16xf32>
        %69 = arith.addf %62, %68 : vector<96x16xf32>
        %c0_59 = arith.constant 0 : index
        %c0_60 = arith.constant 0 : index
        %70 = arith.index_cast %14 : i32 to index
        %c38 = arith.constant 38 : index
        %c0_61 = arith.constant 0 : index
        %71 = vector.load %arg3[%c0_59, %c0_60, %70, %c38, %c0_61] : memref<1x1x27x326x16xbf16, #tpu.memory_space<vmem>>, vector<1x1x1x96x16xbf16>
        %72 = vector.shape_cast %71 : vector<1x1x1x96x16xbf16> to vector<96x16xbf16>
        %c8 = arith.constant 8 : index
        %c0_62 = arith.constant 0 : index
        %c0_63 = arith.constant 0 : index
        %73 = vector.load %arg4[%c8, %c0_62, %c0_63] : memref<27x16x16xbf16, #tpu.memory_space<vmem>>, vector<1x16x16xbf16>
        %74 = vector.shape_cast %73 : vector<1x16x16xbf16> to vector<16x16xbf16>
        %cst_64 = arith.constant dense<0.000000e+00> : vector<96x16xf32>
        %75 = tpu.matmul %72, %74, %cst_64 {dimension_numbers = #tpu.dot_dimension_numbers<[1], [0], [0], [1], [0, 0, 1, 1], [], []>} : vector<96x16xbf16>, vector<16x16xbf16>, vector<96x16xf32> -> vector<96x16xf32>
        %76 = arith.addf %69, %75 : vector<96x16xf32>
        %c1_i32_65 = arith.constant 1 : i32
        %77 = arith.muli %12, %c1_i32_65 : i32
        %c1_i32_66 = arith.constant 1 : i32
        %78 = arith.addi %77, %c1_i32_66 : i32
        %c0_67 = arith.constant 0 : index
        %c0_68 = arith.constant 0 : index
        %79 = arith.index_cast %78 : i32 to index
        %c0_69 = arith.constant 0 : index
        %c0_70 = arith.constant 0 : index
        %80 = vector.load %arg3[%c0_67, %c0_68, %79, %c0_69, %c0_70] : memref<1x1x27x326x16xbf16, #tpu.memory_space<vmem>>, vector<1x1x1x96x16xbf16>
        %81 = vector.shape_cast %80 : vector<1x1x1x96x16xbf16> to vector<96x16xbf16>
        %c9 = arith.constant 9 : index
        %c0_71 = arith.constant 0 : index
        %c0_72 = arith.constant 0 : index
        %82 = vector.load %arg4[%c9, %c0_71, %c0_72] : memref<27x16x16xbf16, #tpu.memory_space<vmem>>, vector<1x16x16xbf16>
        %83 = vector.shape_cast %82 : vector<1x16x16xbf16> to vector<16x16xbf16>
        %cst_73 = arith.constant dense<0.000000e+00> : vector<96x16xf32>
        %84 = tpu.matmul %81, %83, %cst_73 {dimension_numbers = #tpu.dot_dimension_numbers<[1], [0], [0], [1], [0, 0, 1, 1], [], []>} : vector<96x16xbf16>, vector<16x16xbf16>, vector<96x16xf32> -> vector<96x16xf32>
        %85 = arith.addf %76, %84 : vector<96x16xf32>
        %c0_74 = arith.constant 0 : index
        %c0_75 = arith.constant 0 : index
        %86 = arith.index_cast %78 : i32 to index
        %c1_76 = arith.constant 1 : index
        %c0_77 = arith.constant 0 : index
        %87 = vector.load %arg3[%c0_74, %c0_75, %86, %c1_76, %c0_77] : memref<1x1x27x326x16xbf16, #tpu.memory_space<vmem>>, vector<1x1x1x96x16xbf16>
        %88 = vector.shape_cast %87 : vector<1x1x1x96x16xbf16> to vector<96x16xbf16>
        %c10 = arith.constant 10 : index
        %c0_78 = arith.constant 0 : index
        %c0_79 = arith.constant 0 : index
        %89 = vector.load %arg4[%c10, %c0_78, %c0_79] : memref<27x16x16xbf16, #tpu.memory_space<vmem>>, vector<1x16x16xbf16>
        %90 = vector.shape_cast %89 : vector<1x16x16xbf16> to vector<16x16xbf16>
        %cst_80 = arith.constant dense<0.000000e+00> : vector<96x16xf32>
        %91 = tpu.matmul %88, %90, %cst_80 {dimension_numbers = #tpu.dot_dimension_numbers<[1], [0], [0], [1], [0, 0, 1, 1], [], []>} : vector<96x16xbf16>, vector<16x16xbf16>, vector<96x16xf32> -> vector<96x16xf32>
        %92 = arith.addf %85, %91 : vector<96x16xf32>
        %c0_81 = arith.constant 0 : index
        %c0_82 = arith.constant 0 : index
        %93 = arith.index_cast %78 : i32 to index
        %c2_83 = arith.constant 2 : index
        %c0_84 = arith.constant 0 : index
        %94 = vector.load %arg3[%c0_81, %c0_82, %93, %c2_83, %c0_84] : memref<1x1x27x326x16xbf16, #tpu.memory_space<vmem>>, vector<1x1x1x96x16xbf16>
        %95 = vector.shape_cast %94 : vector<1x1x1x96x16xbf16> to vector<96x16xbf16>
        %c11 = arith.constant 11 : index
        %c0_85 = arith.constant 0 : index
        %c0_86 = arith.constant 0 : index
        %96 = vector.load %arg4[%c11, %c0_85, %c0_86] : memref<27x16x16xbf16, #tpu.memory_space<vmem>>, vector<1x16x16xbf16>
        %97 = vector.shape_cast %96 : vector<1x16x16xbf16> to vector<16x16xbf16>
        %cst_87 = arith.constant dense<0.000000e+00> : vector<96x16xf32>
        %98 = tpu.matmul %95, %97, %cst_87 {dimension_numbers = #tpu.dot_dimension_numbers<[1], [0], [0], [1], [0, 0, 1, 1], [], []>} : vector<96x16xbf16>, vector<16x16xbf16>, vector<96x16xf32> -> vector<96x16xf32>
        %99 = arith.addf %92, %98 : vector<96x16xf32>
        %c0_88 = arith.constant 0 : index
        %c0_89 = arith.constant 0 : index
        %100 = arith.index_cast %78 : i32 to index
        %c18_90 = arith.constant 18 : index
        %c0_91 = arith.constant 0 : index
        %101 = vector.load %arg3[%c0_88, %c0_89, %100, %c18_90, %c0_91] : memref<1x1x27x326x16xbf16, #tpu.memory_space<vmem>>, vector<1x1x1x96x16xbf16>
        %102 = vector.shape_cast %101 : vector<1x1x1x96x16xbf16> to vector<96x16xbf16>
        %c12 = arith.constant 12 : index
        %c0_92 = arith.constant 0 : index
        %c0_93 = arith.constant 0 : index
        %103 = vector.load %arg4[%c12, %c0_92, %c0_93] : memref<27x16x16xbf16, #tpu.memory_space<vmem>>, vector<1x16x16xbf16>
        %104 = vector.shape_cast %103 : vector<1x16x16xbf16> to vector<16x16xbf16>
        %cst_94 = arith.constant dense<0.000000e+00> : vector<96x16xf32>
        %105 = tpu.matmul %102, %104, %cst_94 {dimension_numbers = #tpu.dot_dimension_numbers<[1], [0], [0], [1], [0, 0, 1, 1], [], []>} : vector<96x16xbf16>, vector<16x16xbf16>, vector<96x16xf32> -> vector<96x16xf32>
        %106 = arith.addf %99, %105 : vector<96x16xf32>
        %c0_95 = arith.constant 0 : index
        %c0_96 = arith.constant 0 : index
        %107 = arith.index_cast %78 : i32 to index
        %c19_97 = arith.constant 19 : index
        %c0_98 = arith.constant 0 : index
        %108 = vector.load %arg3[%c0_95, %c0_96, %107, %c19_97, %c0_98] : memref<1x1x27x326x16xbf16, #tpu.memory_space<vmem>>, vector<1x1x1x96x16xbf16>
        %109 = vector.shape_cast %108 : vector<1x1x1x96x16xbf16> to vector<96x16xbf16>
        %c13 = arith.constant 13 : index
        %c0_99 = arith.constant 0 : index
        %c0_100 = arith.constant 0 : index
        %110 = vector.load %arg4[%c13, %c0_99, %c0_100] : memref<27x16x16xbf16, #tpu.memory_space<vmem>>, vector<1x16x16xbf16>
        %111 = vector.shape_cast %110 : vector<1x16x16xbf16> to vector<16x16xbf16>
        %cst_101 = arith.constant dense<0.000000e+00> : vector<96x16xf32>
        %112 = tpu.matmul %109, %111, %cst_101 {dimension_numbers = #tpu.dot_dimension_numbers<[1], [0], [0], [1], [0, 0, 1, 1], [], []>} : vector<96x16xbf16>, vector<16x16xbf16>, vector<96x16xf32> -> vector<96x16xf32>
        %113 = arith.addf %106, %112 : vector<96x16xf32>
        %c0_102 = arith.constant 0 : index
        %c0_103 = arith.constant 0 : index
        %114 = arith.index_cast %78 : i32 to index
        %c20_104 = arith.constant 20 : index
        %c0_105 = arith.constant 0 : index
        %115 = vector.load %arg3[%c0_102, %c0_103, %114, %c20_104, %c0_105] : memref<1x1x27x326x16xbf16, #tpu.memory_space<vmem>>, vector<1x1x1x96x16xbf16>
        %116 = vector.shape_cast %115 : vector<1x1x1x96x16xbf16> to vector<96x16xbf16>
        %c14 = arith.constant 14 : index
        %c0_106 = arith.constant 0 : index
        %c0_107 = arith.constant 0 : index
        %117 = vector.load %arg4[%c14, %c0_106, %c0_107] : memref<27x16x16xbf16, #tpu.memory_space<vmem>>, vector<1x16x16xbf16>
        %118 = vector.shape_cast %117 : vector<1x16x16xbf16> to vector<16x16xbf16>
        %cst_108 = arith.constant dense<0.000000e+00> : vector<96x16xf32>
        %119 = tpu.matmul %116, %118, %cst_108 {dimension_numbers = #tpu.dot_dimension_numbers<[1], [0], [0], [1], [0, 0, 1, 1], [], []>} : vector<96x16xbf16>, vector<16x16xbf16>, vector<96x16xf32> -> vector<96x16xf32>
        %120 = arith.addf %113, %119 : vector<96x16xf32>
        %c0_109 = arith.constant 0 : index
        %c0_110 = arith.constant 0 : index
        %121 = arith.index_cast %78 : i32 to index
        %c36_111 = arith.constant 36 : index
        %c0_112 = arith.constant 0 : index
        %122 = vector.load %arg3[%c0_109, %c0_110, %121, %c36_111, %c0_112] : memref<1x1x27x326x16xbf16, #tpu.memory_space<vmem>>, vector<1x1x1x96x16xbf16>
        %123 = vector.shape_cast %122 : vector<1x1x1x96x16xbf16> to vector<96x16xbf16>
        %c15 = arith.constant 15 : index
        %c0_113 = arith.constant 0 : index
        %c0_114 = arith.constant 0 : index
        %124 = vector.load %arg4[%c15, %c0_113, %c0_114] : memref<27x16x16xbf16, #tpu.memory_space<vmem>>, vector<1x16x16xbf16>
        %125 = vector.shape_cast %124 : vector<1x16x16xbf16> to vector<16x16xbf16>
        %cst_115 = arith.constant dense<0.000000e+00> : vector<96x16xf32>
        %126 = tpu.matmul %123, %125, %cst_115 {dimension_numbers = #tpu.dot_dimension_numbers<[1], [0], [0], [1], [0, 0, 1, 1], [], []>} : vector<96x16xbf16>, vector<16x16xbf16>, vector<96x16xf32> -> vector<96x16xf32>
        %127 = arith.addf %120, %126 : vector<96x16xf32>
        %c0_116 = arith.constant 0 : index
        %c0_117 = arith.constant 0 : index
        %128 = arith.index_cast %78 : i32 to index
        %c37_118 = arith.constant 37 : index
        %c0_119 = arith.constant 0 : index
        %129 = vector.load %arg3[%c0_116, %c0_117, %128, %c37_118, %c0_119] : memref<1x1x27x326x16xbf16, #tpu.memory_space<vmem>>, vector<1x1x1x96x16xbf16>
        %130 = vector.shape_cast %129 : vector<1x1x1x96x16xbf16> to vector<96x16xbf16>
        %c16 = arith.constant 16 : index
        %c0_120 = arith.constant 0 : index
        %c0_121 = arith.constant 0 : index
        %131 = vector.load %arg4[%c16, %c0_120, %c0_121] : memref<27x16x16xbf16, #tpu.memory_space<vmem>>, vector<1x16x16xbf16>
        %132 = vector.shape_cast %131 : vector<1x16x16xbf16> to vector<16x16xbf16>
        %cst_122 = arith.constant dense<0.000000e+00> : vector<96x16xf32>
        %133 = tpu.matmul %130, %132, %cst_122 {dimension_numbers = #tpu.dot_dimension_numbers<[1], [0], [0], [1], [0, 0, 1, 1], [], []>} : vector<96x16xbf16>, vector<16x16xbf16>, vector<96x16xf32> -> vector<96x16xf32>
        %134 = arith.addf %127, %133 : vector<96x16xf32>
        %c0_123 = arith.constant 0 : index
        %c0_124 = arith.constant 0 : index
        %135 = arith.index_cast %78 : i32 to index
        %c38_125 = arith.constant 38 : index
        %c0_126 = arith.constant 0 : index
        %136 = vector.load %arg3[%c0_123, %c0_124, %135, %c38_125, %c0_126] : memref<1x1x27x326x16xbf16, #tpu.memory_space<vmem>>, vector<1x1x1x96x16xbf16>
        %137 = vector.shape_cast %136 : vector<1x1x1x96x16xbf16> to vector<96x16xbf16>
        %c17 = arith.constant 17 : index
        %c0_127 = arith.constant 0 : index
        %c0_128 = arith.constant 0 : index
        %138 = vector.load %arg4[%c17, %c0_127, %c0_128] : memref<27x16x16xbf16, #tpu.memory_space<vmem>>, vector<1x16x16xbf16>
        %139 = vector.shape_cast %138 : vector<1x16x16xbf16> to vector<16x16xbf16>
        %cst_129 = arith.constant dense<0.000000e+00> : vector<96x16xf32>
        %140 = tpu.matmul %137, %139, %cst_129 {dimension_numbers = #tpu.dot_dimension_numbers<[1], [0], [0], [1], [0, 0, 1, 1], [], []>} : vector<96x16xbf16>, vector<16x16xbf16>, vector<96x16xf32> -> vector<96x16xf32>
        %141 = arith.addf %134, %140 : vector<96x16xf32>
        %c1_i32_130 = arith.constant 1 : i32
        %142 = arith.muli %12, %c1_i32_130 : i32
        %c2_i32 = arith.constant 2 : i32
        %143 = arith.addi %142, %c2_i32 : i32
        %c0_131 = arith.constant 0 : index
        %c0_132 = arith.constant 0 : index
        %144 = arith.index_cast %143 : i32 to index
        %c0_133 = arith.constant 0 : index
        %c0_134 = arith.constant 0 : index
        %145 = vector.load %arg3[%c0_131, %c0_132, %144, %c0_133, %c0_134] : memref<1x1x27x326x16xbf16, #tpu.memory_space<vmem>>, vector<1x1x1x96x16xbf16>
        %146 = vector.shape_cast %145 : vector<1x1x1x96x16xbf16> to vector<96x16xbf16>
        %c18_135 = arith.constant 18 : index
        %c0_136 = arith.constant 0 : index
        %c0_137 = arith.constant 0 : index
        %147 = vector.load %arg4[%c18_135, %c0_136, %c0_137] : memref<27x16x16xbf16, #tpu.memory_space<vmem>>, vector<1x16x16xbf16>
        %148 = vector.shape_cast %147 : vector<1x16x16xbf16> to vector<16x16xbf16>
        %cst_138 = arith.constant dense<0.000000e+00> : vector<96x16xf32>
        %149 = tpu.matmul %146, %148, %cst_138 {dimension_numbers = #tpu.dot_dimension_numbers<[1], [0], [0], [1], [0, 0, 1, 1], [], []>} : vector<96x16xbf16>, vector<16x16xbf16>, vector<96x16xf32> -> vector<96x16xf32>
        %150 = arith.addf %141, %149 : vector<96x16xf32>
        %c0_139 = arith.constant 0 : index
        %c0_140 = arith.constant 0 : index
        %151 = arith.index_cast %143 : i32 to index
        %c1_141 = arith.constant 1 : index
        %c0_142 = arith.constant 0 : index
        %152 = vector.load %arg3[%c0_139, %c0_140, %151, %c1_141, %c0_142] : memref<1x1x27x326x16xbf16, #tpu.memory_space<vmem>>, vector<1x1x1x96x16xbf16>
        %153 = vector.shape_cast %152 : vector<1x1x1x96x16xbf16> to vector<96x16xbf16>
        %c19_143 = arith.constant 19 : index
        %c0_144 = arith.constant 0 : index
        %c0_145 = arith.constant 0 : index
        %154 = vector.load %arg4[%c19_143, %c0_144, %c0_145] : memref<27x16x16xbf16, #tpu.memory_space<vmem>>, vector<1x16x16xbf16>
        %155 = vector.shape_cast %154 : vector<1x16x16xbf16> to vector<16x16xbf16>
        %cst_146 = arith.constant dense<0.000000e+00> : vector<96x16xf32>
        %156 = tpu.matmul %153, %155, %cst_146 {dimension_numbers = #tpu.dot_dimension_numbers<[1], [0], [0], [1], [0, 0, 1, 1], [], []>} : vector<96x16xbf16>, vector<16x16xbf16>, vector<96x16xf32> -> vector<96x16xf32>
        %157 = arith.addf %150, %156 : vector<96x16xf32>
        %c0_147 = arith.constant 0 : index
        %c0_148 = arith.constant 0 : index
        %158 = arith.index_cast %143 : i32 to index
        %c2_149 = arith.constant 2 : index
        %c0_150 = arith.constant 0 : index
        %159 = vector.load %arg3[%c0_147, %c0_148, %158, %c2_149, %c0_150] : memref<1x1x27x326x16xbf16, #tpu.memory_space<vmem>>, vector<1x1x1x96x16xbf16>
        %160 = vector.shape_cast %159 : vector<1x1x1x96x16xbf16> to vector<96x16xbf16>
        %c20_151 = arith.constant 20 : index
        %c0_152 = arith.constant 0 : index
        %c0_153 = arith.constant 0 : index
        %161 = vector.load %arg4[%c20_151, %c0_152, %c0_153] : memref<27x16x16xbf16, #tpu.memory_space<vmem>>, vector<1x16x16xbf16>
        %162 = vector.shape_cast %161 : vector<1x16x16xbf16> to vector<16x16xbf16>
        %cst_154 = arith.constant dense<0.000000e+00> : vector<96x16xf32>
        %163 = tpu.matmul %160, %162, %cst_154 {dimension_numbers = #tpu.dot_dimension_numbers<[1], [0], [0], [1], [0, 0, 1, 1], [], []>} : vector<96x16xbf16>, vector<16x16xbf16>, vector<96x16xf32> -> vector<96x16xf32>
        %164 = arith.addf %157, %163 : vector<96x16xf32>
        %c0_155 = arith.constant 0 : index
        %c0_156 = arith.constant 0 : index
        %165 = arith.index_cast %143 : i32 to index
        %c18_157 = arith.constant 18 : index
        %c0_158 = arith.constant 0 : index
        %166 = vector.load %arg3[%c0_155, %c0_156, %165, %c18_157, %c0_158] : memref<1x1x27x326x16xbf16, #tpu.memory_space<vmem>>, vector<1x1x1x96x16xbf16>
        %167 = vector.shape_cast %166 : vector<1x1x1x96x16xbf16> to vector<96x16xbf16>
        %c21 = arith.constant 21 : index
        %c0_159 = arith.constant 0 : index
        %c0_160 = arith.constant 0 : index
        %168 = vector.load %arg4[%c21, %c0_159, %c0_160] : memref<27x16x16xbf16, #tpu.memory_space<vmem>>, vector<1x16x16xbf16>
        %169 = vector.shape_cast %168 : vector<1x16x16xbf16> to vector<16x16xbf16>
        %cst_161 = arith.constant dense<0.000000e+00> : vector<96x16xf32>
        %170 = tpu.matmul %167, %169, %cst_161 {dimension_numbers = #tpu.dot_dimension_numbers<[1], [0], [0], [1], [0, 0, 1, 1], [], []>} : vector<96x16xbf16>, vector<16x16xbf16>, vector<96x16xf32> -> vector<96x16xf32>
        %171 = arith.addf %164, %170 : vector<96x16xf32>
        %c0_162 = arith.constant 0 : index
        %c0_163 = arith.constant 0 : index
        %172 = arith.index_cast %143 : i32 to index
        %c19_164 = arith.constant 19 : index
        %c0_165 = arith.constant 0 : index
        %173 = vector.load %arg3[%c0_162, %c0_163, %172, %c19_164, %c0_165] : memref<1x1x27x326x16xbf16, #tpu.memory_space<vmem>>, vector<1x1x1x96x16xbf16>
        %174 = vector.shape_cast %173 : vector<1x1x1x96x16xbf16> to vector<96x16xbf16>
        %c22 = arith.constant 22 : index
        %c0_166 = arith.constant 0 : index
        %c0_167 = arith.constant 0 : index
        %175 = vector.load %arg4[%c22, %c0_166, %c0_167] : memref<27x16x16xbf16, #tpu.memory_space<vmem>>, vector<1x16x16xbf16>
        %176 = vector.shape_cast %175 : vector<1x16x16xbf16> to vector<16x16xbf16>
        %cst_168 = arith.constant dense<0.000000e+00> : vector<96x16xf32>
        %177 = tpu.matmul %174, %176, %cst_168 {dimension_numbers = #tpu.dot_dimension_numbers<[1], [0], [0], [1], [0, 0, 1, 1], [], []>} : vector<96x16xbf16>, vector<16x16xbf16>, vector<96x16xf32> -> vector<96x16xf32>
        %178 = arith.addf %171, %177 : vector<96x16xf32>
        %c0_169 = arith.constant 0 : index
        %c0_170 = arith.constant 0 : index
        %179 = arith.index_cast %143 : i32 to index
        %c20_171 = arith.constant 20 : index
        %c0_172 = arith.constant 0 : index
        %180 = vector.load %arg3[%c0_169, %c0_170, %179, %c20_171, %c0_172] : memref<1x1x27x326x16xbf16, #tpu.memory_space<vmem>>, vector<1x1x1x96x16xbf16>
        %181 = vector.shape_cast %180 : vector<1x1x1x96x16xbf16> to vector<96x16xbf16>
        %c23 = arith.constant 23 : index
        %c0_173 = arith.constant 0 : index
        %c0_174 = arith.constant 0 : index
        %182 = vector.load %arg4[%c23, %c0_173, %c0_174] : memref<27x16x16xbf16, #tpu.memory_space<vmem>>, vector<1x16x16xbf16>
        %183 = vector.shape_cast %182 : vector<1x16x16xbf16> to vector<16x16xbf16>
        %cst_175 = arith.constant dense<0.000000e+00> : vector<96x16xf32>
        %184 = tpu.matmul %181, %183, %cst_175 {dimension_numbers = #tpu.dot_dimension_numbers<[1], [0], [0], [1], [0, 0, 1, 1], [], []>} : vector<96x16xbf16>, vector<16x16xbf16>, vector<96x16xf32> -> vector<96x16xf32>
        %185 = arith.addf %178, %184 : vector<96x16xf32>
        %c0_176 = arith.constant 0 : index
        %c0_177 = arith.constant 0 : index
        %186 = arith.index_cast %143 : i32 to index
        %c36_178 = arith.constant 36 : index
        %c0_179 = arith.constant 0 : index
        %187 = vector.load %arg3[%c0_176, %c0_177, %186, %c36_178, %c0_179] : memref<1x1x27x326x16xbf16, #tpu.memory_space<vmem>>, vector<1x1x1x96x16xbf16>
        %188 = vector.shape_cast %187 : vector<1x1x1x96x16xbf16> to vector<96x16xbf16>
        %c24 = arith.constant 24 : index
        %c0_180 = arith.constant 0 : index
        %c0_181 = arith.constant 0 : index
        %189 = vector.load %arg4[%c24, %c0_180, %c0_181] : memref<27x16x16xbf16, #tpu.memory_space<vmem>>, vector<1x16x16xbf16>
        %190 = vector.shape_cast %189 : vector<1x16x16xbf16> to vector<16x16xbf16>
        %cst_182 = arith.constant dense<0.000000e+00> : vector<96x16xf32>
        %191 = tpu.matmul %188, %190, %cst_182 {dimension_numbers = #tpu.dot_dimension_numbers<[1], [0], [0], [1], [0, 0, 1, 1], [], []>} : vector<96x16xbf16>, vector<16x16xbf16>, vector<96x16xf32> -> vector<96x16xf32>
        %192 = arith.addf %185, %191 : vector<96x16xf32>
        %c0_183 = arith.constant 0 : index
        %c0_184 = arith.constant 0 : index
        %193 = arith.index_cast %143 : i32 to index
        %c37_185 = arith.constant 37 : index
        %c0_186 = arith.constant 0 : index
        %194 = vector.load %arg3[%c0_183, %c0_184, %193, %c37_185, %c0_186] : memref<1x1x27x326x16xbf16, #tpu.memory_space<vmem>>, vector<1x1x1x96x16xbf16>
        %195 = vector.shape_cast %194 : vector<1x1x1x96x16xbf16> to vector<96x16xbf16>
        %c25 = arith.constant 25 : index
        %c0_187 = arith.constant 0 : index
        %c0_188 = arith.constant 0 : index
        %196 = vector.load %arg4[%c25, %c0_187, %c0_188] : memref<27x16x16xbf16, #tpu.memory_space<vmem>>, vector<1x16x16xbf16>
        %197 = vector.shape_cast %196 : vector<1x16x16xbf16> to vector<16x16xbf16>
        %cst_189 = arith.constant dense<0.000000e+00> : vector<96x16xf32>
        %198 = tpu.matmul %195, %197, %cst_189 {dimension_numbers = #tpu.dot_dimension_numbers<[1], [0], [0], [1], [0, 0, 1, 1], [], []>} : vector<96x16xbf16>, vector<16x16xbf16>, vector<96x16xf32> -> vector<96x16xf32>
        %199 = arith.addf %192, %198 : vector<96x16xf32>
        %c0_190 = arith.constant 0 : index
        %c0_191 = arith.constant 0 : index
        %200 = arith.index_cast %143 : i32 to index
        %c38_192 = arith.constant 38 : index
        %c0_193 = arith.constant 0 : index
        %201 = vector.load %arg3[%c0_190, %c0_191, %200, %c38_192, %c0_193] : memref<1x1x27x326x16xbf16, #tpu.memory_space<vmem>>, vector<1x1x1x96x16xbf16>
        %202 = vector.shape_cast %201 : vector<1x1x1x96x16xbf16> to vector<96x16xbf16>
        %c26 = arith.constant 26 : index
        %c0_194 = arith.constant 0 : index
        %c0_195 = arith.constant 0 : index
        %203 = vector.load %arg4[%c26, %c0_194, %c0_195] : memref<27x16x16xbf16, #tpu.memory_space<vmem>>, vector<1x16x16xbf16>
        %204 = vector.shape_cast %203 : vector<1x16x16xbf16> to vector<16x16xbf16>
        %cst_196 = arith.constant dense<0.000000e+00> : vector<96x16xf32>
        %205 = tpu.matmul %202, %204, %cst_196 {dimension_numbers = #tpu.dot_dimension_numbers<[1], [0], [0], [1], [0, 0, 1, 1], [], []>} : vector<96x16xbf16>, vector<16x16xbf16>, vector<96x16xf32> -> vector<96x16xf32>
        %206 = arith.addf %199, %205 : vector<96x16xf32>
        %207 = vector.broadcast %9 : vector<1x16xf32> to vector<96x16xf32>
        %208 = arith.addf %206, %207 : vector<96x16xf32>
        %cst_197 = arith.constant 0.000000e+00 : f32
        %209 = vector.broadcast %cst_197 : f32 to vector<96x16xf32>
        %210 = arith.maximumf %208, %209 : vector<96x16xf32>
        %c0_198 = arith.constant 0 : index
        %211 = arith.index_cast %arg8 : i32 to index
        %c0_199 = arith.constant 0 : index
        %c0_200 = arith.constant 0 : index
        %212 = vector.load %arg6[%c0_198, %211, %c0_199, %c0_200] : memref<1x25x288x1xf32, #tpu.memory_space<vmem>>, vector<1x1x96x1xf32>
        %213 = vector.shape_cast %212 : vector<1x1x96x1xf32> to vector<96x1xf32>
        %214 = vector.broadcast %213 : vector<96x1xf32> to vector<96x16xf32>
        %215 = arith.mulf %210, %214 : vector<96x16xf32>
        %216 = arith.truncf %215 : vector<96x16xf32> to vector<96x16xbf16>
        %c0_201 = arith.constant 0 : index
        %217 = arith.index_cast %arg8 : i32 to index
        %c0_202 = arith.constant 0 : index
        %c0_203 = arith.constant 0 : index
        %218 = vector.load %arg7[%c0_201, %217, %c0_202, %c0_203] : memref<1x25x288x16xbf16, #tpu.memory_space<vmem>>, vector<1x1x96x16xbf16>
        %219 = vector.shape_cast %218 : vector<1x1x96x16xbf16> to vector<96x16xbf16>
        %220 = vector.shape_cast %216 : vector<96x16xbf16> to vector<1x1x96x16xbf16>
        tpu.vector_store %arg7[%c0_201, %217, %c0_202, %c0_203], %220 {strides = array<i32>} : memref<1x25x288x16xbf16, #tpu.memory_space<vmem>>, vector<1x1x96x16xbf16>,
        %c1_i32_204 = arith.constant 1 : i32
        %221 = arith.muli %12, %c1_i32_204 : i32
        %c0_i32_205 = arith.constant 0 : i32
        %222 = arith.addi %221, %c0_i32_205 : i32
        %c0_206 = arith.constant 0 : index
        %c0_207 = arith.constant 0 : index
        %223 = arith.index_cast %222 : i32 to index
        %c96 = arith.constant 96 : index
        %c0_208 = arith.constant 0 : index
        %224 = vector.load %arg3[%c0_206, %c0_207, %223, %c96, %c0_208] : memref<1x1x27x326x16xbf16, #tpu.memory_space<vmem>>, vector<1x1x1x96x16xbf16>
        %225 = vector.shape_cast %224 : vector<1x1x1x96x16xbf16> to vector<96x16xbf16>
        %c0_209 = arith.constant 0 : index
        %c0_210 = arith.constant 0 : index
        %c0_211 = arith.constant 0 : index
        %226 = vector.load %arg4[%c0_209, %c0_210, %c0_211] : memref<27x16x16xbf16, #tpu.memory_space<vmem>>, vector<1x16x16xbf16>
        %227 = vector.shape_cast %226 : vector<1x16x16xbf16> to vector<16x16xbf16>
        %cst_212 = arith.constant dense<0.000000e+00> : vector<96x16xf32>
        %228 = tpu.matmul %225, %227, %cst_212 {dimension_numbers = #tpu.dot_dimension_numbers<[1], [0], [0], [1], [0, 0, 1, 1], [], []>} : vector<96x16xbf16>, vector<16x16xbf16>, vector<96x16xf32> -> vector<96x16xf32>
        %c0_213 = arith.constant 0 : index
        %c0_214 = arith.constant 0 : index
        %229 = arith.index_cast %222 : i32 to index
        %c97 = arith.constant 97 : index
        %c0_215 = arith.constant 0 : index
        %230 = vector.load %arg3[%c0_213, %c0_214, %229, %c97, %c0_215] : memref<1x1x27x326x16xbf16, #tpu.memory_space<vmem>>, vector<1x1x1x96x16xbf16>
        %231 = vector.shape_cast %230 : vector<1x1x1x96x16xbf16> to vector<96x16xbf16>
        %c1_216 = arith.constant 1 : index
        %c0_217 = arith.constant 0 : index
        %c0_218 = arith.constant 0 : index
        %232 = vector.load %arg4[%c1_216, %c0_217, %c0_218] : memref<27x16x16xbf16, #tpu.memory_space<vmem>>, vector<1x16x16xbf16>
        %233 = vector.shape_cast %232 : vector<1x16x16xbf16> to vector<16x16xbf16>
        %cst_219 = arith.constant dense<0.000000e+00> : vector<96x16xf32>
        %234 = tpu.matmul %231, %233, %cst_219 {dimension_numbers = #tpu.dot_dimension_numbers<[1], [0], [0], [1], [0, 0, 1, 1], [], []>} : vector<96x16xbf16>, vector<16x16xbf16>, vector<96x16xf32> -> vector<96x16xf32>
        %235 = arith.addf %228, %234 : vector<96x16xf32>
        %c0_220 = arith.constant 0 : index
        %c0_221 = arith.constant 0 : index
        %236 = arith.index_cast %222 : i32 to index
        %c98 = arith.constant 98 : index
        %c0_222 = arith.constant 0 : index
        %237 = vector.load %arg3[%c0_220, %c0_221, %236, %c98, %c0_222] : memref<1x1x27x326x16xbf16, #tpu.memory_space<vmem>>, vector<1x1x1x96x16xbf16>
        %238 = vector.shape_cast %237 : vector<1x1x1x96x16xbf16> to vector<96x16xbf16>
        %c2_223 = arith.constant 2 : index
        %c0_224 = arith.constant 0 : index
        %c0_225 = arith.constant 0 : index
        %239 = vector.load %arg4[%c2_223, %c0_224, %c0_225] : memref<27x16x16xbf16, #tpu.memory_space<vmem>>, vector<1x16x16xbf16>
        %240 = vector.shape_cast %239 : vector<1x16x16xbf16> to vector<16x16xbf16>
        %cst_226 = arith.constant dense<0.000000e+00> : vector<96x16xf32>
        %241 = tpu.matmul %238, %240, %cst_226 {dimension_numbers = #tpu.dot_dimension_numbers<[1], [0], [0], [1], [0, 0, 1, 1], [], []>} : vector<96x16xbf16>, vector<16x16xbf16>, vector<96x16xf32> -> vector<96x16xf32>
        %242 = arith.addf %235, %241 : vector<96x16xf32>
        %c0_227 = arith.constant 0 : index
        %c0_228 = arith.constant 0 : index
        %243 = arith.index_cast %222 : i32 to index
        %c114 = arith.constant 114 : index
        %c0_229 = arith.constant 0 : index
        %244 = vector.load %arg3[%c0_227, %c0_228, %243, %c114, %c0_229] : memref<1x1x27x326x16xbf16, #tpu.memory_space<vmem>>, vector<1x1x1x96x16xbf16>
        %245 = vector.shape_cast %244 : vector<1x1x1x96x16xbf16> to vector<96x16xbf16>
        %c3_230 = arith.constant 3 : index
        %c0_231 = arith.constant 0 : index
        %c0_232 = arith.constant 0 : index
        %246 = vector.load %arg4[%c3_230, %c0_231, %c0_232] : memref<27x16x16xbf16, #tpu.memory_space<vmem>>, vector<1x16x16xbf16>
        %247 = vector.shape_cast %246 : vector<1x16x16xbf16> to vector<16x16xbf16>
        %cst_233 = arith.constant dense<0.000000e+00> : vector<96x16xf32>
        %248 = tpu.matmul %245, %247, %cst_233 {dimension_numbers = #tpu.dot_dimension_numbers<[1], [0], [0], [1], [0, 0, 1, 1], [], []>} : vector<96x16xbf16>, vector<16x16xbf16>, vector<96x16xf32> -> vector<96x16xf32>
        %249 = arith.addf %242, %248 : vector<96x16xf32>
        %c0_234 = arith.constant 0 : index
        %c0_235 = arith.constant 0 : index
        %250 = arith.index_cast %222 : i32 to index
        %c115 = arith.constant 115 : index
        %c0_236 = arith.constant 0 : index
        %251 = vector.load %arg3[%c0_234, %c0_235, %250, %c115, %c0_236] : memref<1x1x27x326x16xbf16, #tpu.memory_space<vmem>>, vector<1x1x1x96x16xbf16>
        %252 = vector.shape_cast %251 : vector<1x1x1x96x16xbf16> to vector<96x16xbf16>
        %c4_237 = arith.constant 4 : index
        %c0_238 = arith.constant 0 : index
        %c0_239 = arith.constant 0 : index
        %253 = vector.load %arg4[%c4_237, %c0_238, %c0_239] : memref<27x16x16xbf16, #tpu.memory_space<vmem>>, vector<1x16x16xbf16>
        %254 = vector.shape_cast %253 : vector<1x16x16xbf16> to vector<16x16xbf16>
        %cst_240 = arith.constant dense<0.000000e+00> : vector<96x16xf32>
        %255 = tpu.matmul %252, %254, %cst_240 {dimension_numbers = #tpu.dot_dimension_numbers<[1], [0], [0], [1], [0, 0, 1, 1], [], []>} : vector<96x16xbf16>, vector<16x16xbf16>, vector<96x16xf32> -> vector<96x16xf32>
        %256 = arith.addf %249, %255 : vector<96x16xf32>
        %c0_241 = arith.constant 0 : index
        %c0_242 = arith.constant 0 : index
        %257 = arith.index_cast %222 : i32 to index
        %c116 = arith.constant 116 : index
        %c0_243 = arith.constant 0 : index
        %258 = vector.load %arg3[%c0_241, %c0_242, %257, %c116, %c0_243] : memref<1x1x27x326x16xbf16, #tpu.memory_space<vmem>>, vector<1x1x1x96x16xbf16>
        %259 = vector.shape_cast %258 : vector<1x1x1x96x16xbf16> to vector<96x16xbf16>
        %c5_244 = arith.constant 5 : index
        %c0_245 = arith.constant 0 : index
        %c0_246 = arith.constant 0 : index
        %260 = vector.load %arg4[%c5_244, %c0_245, %c0_246] : memref<27x16x16xbf16, #tpu.memory_space<vmem>>, vector<1x16x16xbf16>
        %261 = vector.shape_cast %260 : vector<1x16x16xbf16> to vector<16x16xbf16>
        %cst_247 = arith.constant dense<0.000000e+00> : vector<96x16xf32>
        %262 = tpu.matmul %259, %261, %cst_247 {dimension_numbers = #tpu.dot_dimension_numbers<[1], [0], [0], [1], [0, 0, 1, 1], [], []>} : vector<96x16xbf16>, vector<16x16xbf16>, vector<96x16xf32> -> vector<96x16xf32>
        %263 = arith.addf %256, %262 : vector<96x16xf32>
        %c0_248 = arith.constant 0 : index
        %c0_249 = arith.constant 0 : index
        %264 = arith.index_cast %222 : i32 to index
        %c132 = arith.constant 132 : index
        %c0_250 = arith.constant 0 : index
        %265 = vector.load %arg3[%c0_248, %c0_249, %264, %c132, %c0_250] : memref<1x1x27x326x16xbf16, #tpu.memory_space<vmem>>, vector<1x1x1x96x16xbf16>
        %266 = vector.shape_cast %265 : vector<1x1x1x96x16xbf16> to vector<96x16xbf16>
        %c6_251 = arith.constant 6 : index
        %c0_252 = arith.constant 0 : index
        %c0_253 = arith.constant 0 : index
        %267 = vector.load %arg4[%c6_251, %c0_252, %c0_253] : memref<27x16x16xbf16, #tpu.memory_space<vmem>>, vector<1x16x16xbf16>
        %268 = vector.shape_cast %267 : vector<1x16x16xbf16> to vector<16x16xbf16>
        %cst_254 = arith.constant dense<0.000000e+00> : vector<96x16xf32>
        %269 = tpu.matmul %266, %268, %cst_254 {dimension_numbers = #tpu.dot_dimension_numbers<[1], [0], [0], [1], [0, 0, 1, 1], [], []>} : vector<96x16xbf16>, vector<16x16xbf16>, vector<96x16xf32> -> vector<96x16xf32>
        %270 = arith.addf %263, %269 : vector<96x16xf32>
        %c0_255 = arith.constant 0 : index
        %c0_256 = arith.constant 0 : index
        %271 = arith.index_cast %222 : i32 to index
        %c133 = arith.constant 133 : index
        %c0_257 = arith.constant 0 : index
        %272 = vector.load %arg3[%c0_255, %c0_256, %271, %c133, %c0_257] : memref<1x1x27x326x16xbf16, #tpu.memory_space<vmem>>, vector<1x1x1x96x16xbf16>
        %273 = vector.shape_cast %272 : vector<1x1x1x96x16xbf16> to vector<96x16xbf16>
        %c7_258 = arith.constant 7 : index
        %c0_259 = arith.constant 0 : index
        %c0_260 = arith.constant 0 : index
        %274 = vector.load %arg4[%c7_258, %c0_259, %c0_260] : memref<27x16x16xbf16, #tpu.memory_space<vmem>>, vector<1x16x16xbf16>
        %275 = vector.shape_cast %274 : vector<1x16x16xbf16> to vector<16x16xbf16>
        %cst_261 = arith.constant dense<0.000000e+00> : vector<96x16xf32>
        %276 = tpu.matmul %273, %275, %cst_261 {dimension_numbers = #tpu.dot_dimension_numbers<[1], [0], [0], [1], [0, 0, 1, 1], [], []>} : vector<96x16xbf16>, vector<16x16xbf16>, vector<96x16xf32> -> vector<96x16xf32>
        %277 = arith.addf %270, %276 : vector<96x16xf32>
        %c0_262 = arith.constant 0 : index
        %c0_263 = arith.constant 0 : index
        %278 = arith.index_cast %222 : i32 to index
        %c134 = arith.constant 134 : index
        %c0_264 = arith.constant 0 : index
        %279 = vector.load %arg3[%c0_262, %c0_263, %278, %c134, %c0_264] : memref<1x1x27x326x16xbf16, #tpu.memory_space<vmem>>, vector<1x1x1x96x16xbf16>
        %280 = vector.shape_cast %279 : vector<1x1x1x96x16xbf16> to vector<96x16xbf16>
        %c8_265 = arith.constant 8 : index
        %c0_266 = arith.constant 0 : index
        %c0_267 = arith.constant 0 : index
        %281 = vector.load %arg4[%c8_265, %c0_266, %c0_267] : memref<27x16x16xbf16, #tpu.memory_space<vmem>>, vector<1x16x16xbf16>
        %282 = vector.shape_cast %281 : vector<1x16x16xbf16> to vector<16x16xbf16>
        %cst_268 = arith.constant dense<0.000000e+00> : vector<96x16xf32>
        %283 = tpu.matmul %280, %282, %cst_268 {dimension_numbers = #tpu.dot_dimension_numbers<[1], [0], [0], [1], [0, 0, 1, 1], [], []>} : vector<96x16xbf16>, vector<16x16xbf16>, vector<96x16xf32> -> vector<96x16xf32>
        %284 = arith.addf %277, %283 : vector<96x16xf32>
        %c1_i32_269 = arith.constant 1 : i32
        %285 = arith.muli %12, %c1_i32_269 : i32
        %c1_i32_270 = arith.constant 1 : i32
        %286 = arith.addi %285, %c1_i32_270 : i32
        %c0_271 = arith.constant 0 : index
        %c0_272 = arith.constant 0 : index
        %287 = arith.index_cast %286 : i32 to index
        %c96_273 = arith.constant 96 : index
        %c0_274 = arith.constant 0 : index
        %288 = vector.load %arg3[%c0_271, %c0_272, %287, %c96_273, %c0_274] : memref<1x1x27x326x16xbf16, #tpu.memory_space<vmem>>, vector<1x1x1x96x16xbf16>
        %289 = vector.shape_cast %288 : vector<1x1x1x96x16xbf16> to vector<96x16xbf16>
        %c9_275 = arith.constant 9 : index
        %c0_276 = arith.constant 0 : index
        %c0_277 = arith.constant 0 : index
        %290 = vector.load %arg4[%c9_275, %c0_276, %c0_277] : memref<27x16x16xbf16, #tpu.memory_space<vmem>>, vector<1x16x16xbf16>
        %291 = vector.shape_cast %290 : vector<1x16x16xbf16> to vector<16x16xbf16>
        %cst_278 = arith.constant dense<0.000000e+00> : vector<96x16xf32>
        %292 = tpu.matmul %289, %291, %cst_278 {dimension_numbers = #tpu.dot_dimension_numbers<[1], [0], [0], [1], [0, 0, 1, 1], [], []>} : vector<96x16xbf16>, vector<16x16xbf16>, vector<96x16xf32> -> vector<96x16xf32>
        %293 = arith.addf %284, %292 : vector<96x16xf32>
        %c0_279 = arith.constant 0 : index
        %c0_280 = arith.constant 0 : index
        %294 = arith.index_cast %286 : i32 to index
        %c97_281 = arith.constant 97 : index
        %c0_282 = arith.constant 0 : index
        %295 = vector.load %arg3[%c0_279, %c0_280, %294, %c97_281, %c0_282] : memref<1x1x27x326x16xbf16, #tpu.memory_space<vmem>>, vector<1x1x1x96x16xbf16>
        %296 = vector.shape_cast %295 : vector<1x1x1x96x16xbf16> to vector<96x16xbf16>
        %c10_283 = arith.constant 10 : index
        %c0_284 = arith.constant 0 : index
        %c0_285 = arith.constant 0 : index
        %297 = vector.load %arg4[%c10_283, %c0_284, %c0_285] : memref<27x16x16xbf16, #tpu.memory_space<vmem>>, vector<1x16x16xbf16>
        %298 = vector.shape_cast %297 : vector<1x16x16xbf16> to vector<16x16xbf16>
        %cst_286 = arith.constant dense<0.000000e+00> : vector<96x16xf32>
        %299 = tpu.matmul %296, %298, %cst_286 {dimension_numbers = #tpu.dot_dimension_numbers<[1], [0], [0], [1], [0, 0, 1, 1], [], []>} : vector<96x16xbf16>, vector<16x16xbf16>, vector<96x16xf32> -> vector<96x16xf32>
        %300 = arith.addf %293, %299 : vector<96x16xf32>
        %c0_287 = arith.constant 0 : index
        %c0_288 = arith.constant 0 : index
        %301 = arith.index_cast %286 : i32 to index
        %c98_289 = arith.constant 98 : index
        %c0_290 = arith.constant 0 : index
        %302 = vector.load %arg3[%c0_287, %c0_288, %301, %c98_289, %c0_290] : memref<1x1x27x326x16xbf16, #tpu.memory_space<vmem>>, vector<1x1x1x96x16xbf16>
        %303 = vector.shape_cast %302 : vector<1x1x1x96x16xbf16> to vector<96x16xbf16>
        %c11_291 = arith.constant 11 : index
        %c0_292 = arith.constant 0 : index
        %c0_293 = arith.constant 0 : index
        %304 = vector.load %arg4[%c11_291, %c0_292, %c0_293] : memref<27x16x16xbf16, #tpu.memory_space<vmem>>, vector<1x16x16xbf16>
        %305 = vector.shape_cast %304 : vector<1x16x16xbf16> to vector<16x16xbf16>
        %cst_294 = arith.constant dense<0.000000e+00> : vector<96x16xf32>
        %306 = tpu.matmul %303, %305, %cst_294 {dimension_numbers = #tpu.dot_dimension_numbers<[1], [0], [0], [1], [0, 0, 1, 1], [], []>} : vector<96x16xbf16>, vector<16x16xbf16>, vector<96x16xf32> -> vector<96x16xf32>
        %307 = arith.addf %300, %306 : vector<96x16xf32>
        %c0_295 = arith.constant 0 : index
        %c0_296 = arith.constant 0 : index
        %308 = arith.index_cast %286 : i32 to index
        %c114_297 = arith.constant 114 : index
        %c0_298 = arith.constant 0 : index
        %309 = vector.load %arg3[%c0_295, %c0_296, %308, %c114_297, %c0_298] : memref<1x1x27x326x16xbf16, #tpu.memory_space<vmem>>, vector<1x1x1x96x16xbf16>
        %310 = vector.shape_cast %309 : vector<1x1x1x96x16xbf16> to vector<96x16xbf16>
        %c12_299 = arith.constant 12 : index
        %c0_300 = arith.constant 0 : index
        %c0_301 = arith.constant 0 : index
        %311 = vector.load %arg4[%c12_299, %c0_300, %c0_301] : memref<27x16x16xbf16, #tpu.memory_space<vmem>>, vector<1x16x16xbf16>
        %312 = vector.shape_cast %311 : vector<1x16x16xbf16> to vector<16x16xbf16>
        %cst_302 = arith.constant dense<0.000000e+00> : vector<96x16xf32>
        %313 = tpu.matmul %310, %312, %cst_302 {dimension_numbers = #tpu.dot_dimension_numbers<[1], [0], [0], [1], [0, 0, 1, 1], [], []>} : vector<96x16xbf16>, vector<16x16xbf16>, vector<96x16xf32> -> vector<96x16xf32>
        %314 = arith.addf %307, %313 : vector<96x16xf32>
        %c0_303 = arith.constant 0 : index
        %c0_304 = arith.constant 0 : index
        %315 = arith.index_cast %286 : i32 to index
        %c115_305 = arith.constant 115 : index
        %c0_306 = arith.constant 0 : index
        %316 = vector.load %arg3[%c0_303, %c0_304, %315, %c115_305, %c0_306] : memref<1x1x27x326x16xbf16, #tpu.memory_space<vmem>>, vector<1x1x1x96x16xbf16>
        %317 = vector.shape_cast %316 : vector<1x1x1x96x16xbf16> to vector<96x16xbf16>
        %c13_307 = arith.constant 13 : index
        %c0_308 = arith.constant 0 : index
        %c0_309 = arith.constant 0 : index
        %318 = vector.load %arg4[%c13_307, %c0_308, %c0_309] : memref<27x16x16xbf16, #tpu.memory_space<vmem>>, vector<1x16x16xbf16>
        %319 = vector.shape_cast %318 : vector<1x16x16xbf16> to vector<16x16xbf16>
        %cst_310 = arith.constant dense<0.000000e+00> : vector<96x16xf32>
        %320 = tpu.matmul %317, %319, %cst_310 {dimension_numbers = #tpu.dot_dimension_numbers<[1], [0], [0], [1], [0, 0, 1, 1], [], []>} : vector<96x16xbf16>, vector<16x16xbf16>, vector<96x16xf32> -> vector<96x16xf32>
        %321 = arith.addf %314, %320 : vector<96x16xf32>
        %c0_311 = arith.constant 0 : index
        %c0_312 = arith.constant 0 : index
        %322 = arith.index_cast %286 : i32 to index
        %c116_313 = arith.constant 116 : index
        %c0_314 = arith.constant 0 : index
        %323 = vector.load %arg3[%c0_311, %c0_312, %322, %c116_313, %c0_314] : memref<1x1x27x326x16xbf16, #tpu.memory_space<vmem>>, vector<1x1x1x96x16xbf16>
        %324 = vector.shape_cast %323 : vector<1x1x1x96x16xbf16> to vector<96x16xbf16>
        %c14_315 = arith.constant 14 : index
        %c0_316 = arith.constant 0 : index
        %c0_317 = arith.constant 0 : index
        %325 = vector.load %arg4[%c14_315, %c0_316, %c0_317] : memref<27x16x16xbf16, #tpu.memory_space<vmem>>, vector<1x16x16xbf16>
        %326 = vector.shape_cast %325 : vector<1x16x16xbf16> to vector<16x16xbf16>
        %cst_318 = arith.constant dense<0.000000e+00> : vector<96x16xf32>
        %327 = tpu.matmul %324, %326, %cst_318 {dimension_numbers = #tpu.dot_dimension_numbers<[1], [0], [0], [1], [0, 0, 1, 1], [], []>} : vector<96x16xbf16>, vector<16x16xbf16>, vector<96x16xf32> -> vector<96x16xf32>
        %328 = arith.addf %321, %327 : vector<96x16xf32>
        %c0_319 = arith.constant 0 : index
        %c0_320 = arith.constant 0 : index
        %329 = arith.index_cast %286 : i32 to index
        %c132_321 = arith.constant 132 : index
        %c0_322 = arith.constant 0 : index
        %330 = vector.load %arg3[%c0_319, %c0_320, %329, %c132_321, %c0_322] : memref<1x1x27x326x16xbf16, #tpu.memory_space<vmem>>, vector<1x1x1x96x16xbf16>
        %331 = vector.shape_cast %330 : vector<1x1x1x96x16xbf16> to vector<96x16xbf16>
        %c15_323 = arith.constant 15 : index
        %c0_324 = arith.constant 0 : index
        %c0_325 = arith.constant 0 : index
        %332 = vector.load %arg4[%c15_323, %c0_324, %c0_325] : memref<27x16x16xbf16, #tpu.memory_space<vmem>>, vector<1x16x16xbf16>
        %333 = vector.shape_cast %332 : vector<1x16x16xbf16> to vector<16x16xbf16>
        %cst_326 = arith.constant dense<0.000000e+00> : vector<96x16xf32>
        %334 = tpu.matmul %331, %333, %cst_326 {dimension_numbers = #tpu.dot_dimension_numbers<[1], [0], [0], [1], [0, 0, 1, 1], [], []>} : vector<96x16xbf16>, vector<16x16xbf16>, vector<96x16xf32> -> vector<96x16xf32>
        %335 = arith.addf %328, %334 : vector<96x16xf32>
        %c0_327 = arith.constant 0 : index
        %c0_328 = arith.constant 0 : index
        %336 = arith.index_cast %286 : i32 to index
        %c133_329 = arith.constant 133 : index
        %c0_330 = arith.constant 0 : index
        %337 = vector.load %arg3[%c0_327, %c0_328, %336, %c133_329, %c0_330] : memref<1x1x27x326x16xbf16, #tpu.memory_space<vmem>>, vector<1x1x1x96x16xbf16>
        %338 = vector.shape_cast %337 : vector<1x1x1x96x16xbf16> to vector<96x16xbf16>
        %c16_331 = arith.constant 16 : index
        %c0_332 = arith.constant 0 : index
        %c0_333 = arith.constant 0 : index
        %339 = vector.load %arg4[%c16_331, %c0_332, %c0_333] : memref<27x16x16xbf16, #tpu.memory_space<vmem>>, vector<1x16x16xbf16>
        %340 = vector.shape_cast %339 : vector<1x16x16xbf16> to vector<16x16xbf16>
        %cst_334 = arith.constant dense<0.000000e+00> : vector<96x16xf32>
        %341 = tpu.matmul %338, %340, %cst_334 {dimension_numbers = #tpu.dot_dimension_numbers<[1], [0], [0], [1], [0, 0, 1, 1], [], []>} : vector<96x16xbf16>, vector<16x16xbf16>, vector<96x16xf32> -> vector<96x16xf32>
        %342 = arith.addf %335, %341 : vector<96x16xf32>
        %c0_335 = arith.constant 0 : index
        %c0_336 = arith.constant 0 : index
        %343 = arith.index_cast %286 : i32 to index
        %c134_337 = arith.constant 134 : index
        %c0_338 = arith.constant 0 : index
        %344 = vector.load %arg3[%c0_335, %c0_336, %343, %c134_337, %c0_338] : memref<1x1x27x326x16xbf16, #tpu.memory_space<vmem>>, vector<1x1x1x96x16xbf16>
        %345 = vector.shape_cast %344 : vector<1x1x1x96x16xbf16> to vector<96x16xbf16>
        %c17_339 = arith.constant 17 : index
        %c0_340 = arith.constant 0 : index
        %c0_341 = arith.constant 0 : index
        %346 = vector.load %arg4[%c17_339, %c0_340, %c0_341] : memref<27x16x16xbf16, #tpu.memory_space<vmem>>, vector<1x16x16xbf16>
        %347 = vector.shape_cast %346 : vector<1x16x16xbf16> to vector<16x16xbf16>
        %cst_342 = arith.constant dense<0.000000e+00> : vector<96x16xf32>
        %348 = tpu.matmul %345, %347, %cst_342 {dimension_numbers = #tpu.dot_dimension_numbers<[1], [0], [0], [1], [0, 0, 1, 1], [], []>} : vector<96x16xbf16>, vector<16x16xbf16>, vector<96x16xf32> -> vector<96x16xf32>
        %349 = arith.addf %342, %348 : vector<96x16xf32>
        %c1_i32_343 = arith.constant 1 : i32
        %350 = arith.muli %12, %c1_i32_343 : i32
        %c2_i32_344 = arith.constant 2 : i32
        %351 = arith.addi %350, %c2_i32_344 : i32
        %c0_345 = arith.constant 0 : index
        %c0_346 = arith.constant 0 : index
        %352 = arith.index_cast %351 : i32 to index
        %c96_347 = arith.constant 96 : index
        %c0_348 = arith.constant 0 : index
        %353 = vector.load %arg3[%c0_345, %c0_346, %352, %c96_347, %c0_348] : memref<1x1x27x326x16xbf16, #tpu.memory_space<vmem>>, vector<1x1x1x96x16xbf16>
        %354 = vector.shape_cast %353 : vector<1x1x1x96x16xbf16> to vector<96x16xbf16>
        %c18_349 = arith.constant 18 : index
        %c0_350 = arith.constant 0 : index
        %c0_351 = arith.constant 0 : index
        %355 = vector.load %arg4[%c18_349, %c0_350, %c0_351] : memref<27x16x16xbf16, #tpu.memory_space<vmem>>, vector<1x16x16xbf16>
        %356 = vector.shape_cast %355 : vector<1x16x16xbf16> to vector<16x16xbf16>
        %cst_352 = arith.constant dense<0.000000e+00> : vector<96x16xf32>
        %357 = tpu.matmul %354, %356, %cst_352 {dimension_numbers = #tpu.dot_dimension_numbers<[1], [0], [0], [1], [0, 0, 1, 1], [], []>} : vector<96x16xbf16>, vector<16x16xbf16>, vector<96x16xf32> -> vector<96x16xf32>
        %358 = arith.addf %349, %357 : vector<96x16xf32>
        %c0_353 = arith.constant 0 : index
        %c0_354 = arith.constant 0 : index
        %359 = arith.index_cast %351 : i32 to index
        %c97_355 = arith.constant 97 : index
        %c0_356 = arith.constant 0 : index
        %360 = vector.load %arg3[%c0_353, %c0_354, %359, %c97_355, %c0_356] : memref<1x1x27x326x16xbf16, #tpu.memory_space<vmem>>, vector<1x1x1x96x16xbf16>
        %361 = vector.shape_cast %360 : vector<1x1x1x96x16xbf16> to vector<96x16xbf16>
        %c19_357 = arith.constant 19 : index
        %c0_358 = arith.constant 0 : index
        %c0_359 = arith.constant 0 : index
        %362 = vector.load %arg4[%c19_357, %c0_358, %c0_359] : memref<27x16x16xbf16, #tpu.memory_space<vmem>>, vector<1x16x16xbf16>
        %363 = vector.shape_cast %362 : vector<1x16x16xbf16> to vector<16x16xbf16>
        %cst_360 = arith.constant dense<0.000000e+00> : vector<96x16xf32>
        %364 = tpu.matmul %361, %363, %cst_360 {dimension_numbers = #tpu.dot_dimension_numbers<[1], [0], [0], [1], [0, 0, 1, 1], [], []>} : vector<96x16xbf16>, vector<16x16xbf16>, vector<96x16xf32> -> vector<96x16xf32>
        %365 = arith.addf %358, %364 : vector<96x16xf32>
        %c0_361 = arith.constant 0 : index
        %c0_362 = arith.constant 0 : index
        %366 = arith.index_cast %351 : i32 to index
        %c98_363 = arith.constant 98 : index
        %c0_364 = arith.constant 0 : index
        %367 = vector.load %arg3[%c0_361, %c0_362, %366, %c98_363, %c0_364] : memref<1x1x27x326x16xbf16, #tpu.memory_space<vmem>>, vector<1x1x1x96x16xbf16>
        %368 = vector.shape_cast %367 : vector<1x1x1x96x16xbf16> to vector<96x16xbf16>
        %c20_365 = arith.constant 20 : index
        %c0_366 = arith.constant 0 : index
        %c0_367 = arith.constant 0 : index
        %369 = vector.load %arg4[%c20_365, %c0_366, %c0_367] : memref<27x16x16xbf16, #tpu.memory_space<vmem>>, vector<1x16x16xbf16>
        %370 = vector.shape_cast %369 : vector<1x16x16xbf16> to vector<16x16xbf16>
        %cst_368 = arith.constant dense<0.000000e+00> : vector<96x16xf32>
        %371 = tpu.matmul %368, %370, %cst_368 {dimension_numbers = #tpu.dot_dimension_numbers<[1], [0], [0], [1], [0, 0, 1, 1], [], []>} : vector<96x16xbf16>, vector<16x16xbf16>, vector<96x16xf32> -> vector<96x16xf32>
        %372 = arith.addf %365, %371 : vector<96x16xf32>
        %c0_369 = arith.constant 0 : index
        %c0_370 = arith.constant 0 : index
        %373 = arith.index_cast %351 : i32 to index
        %c114_371 = arith.constant 114 : index
        %c0_372 = arith.constant 0 : index
        %374 = vector.load %arg3[%c0_369, %c0_370, %373, %c114_371, %c0_372] : memref<1x1x27x326x16xbf16, #tpu.memory_space<vmem>>, vector<1x1x1x96x16xbf16>
        %375 = vector.shape_cast %374 : vector<1x1x1x96x16xbf16> to vector<96x16xbf16>
        %c21_373 = arith.constant 21 : index
        %c0_374 = arith.constant 0 : index
        %c0_375 = arith.constant 0 : index
        %376 = vector.load %arg4[%c21_373, %c0_374, %c0_375] : memref<27x16x16xbf16, #tpu.memory_space<vmem>>, vector<1x16x16xbf16>
        %377 = vector.shape_cast %376 : vector<1x16x16xbf16> to vector<16x16xbf16>
        %cst_376 = arith.constant dense<0.000000e+00> : vector<96x16xf32>
        %378 = tpu.matmul %375, %377, %cst_376 {dimension_numbers = #tpu.dot_dimension_numbers<[1], [0], [0], [1], [0, 0, 1, 1], [], []>} : vector<96x16xbf16>, vector<16x16xbf16>, vector<96x16xf32> -> vector<96x16xf32>
        %379 = arith.addf %372, %378 : vector<96x16xf32>
        %c0_377 = arith.constant 0 : index
        %c0_378 = arith.constant 0 : index
        %380 = arith.index_cast %351 : i32 to index
        %c115_379 = arith.constant 115 : index
        %c0_380 = arith.constant 0 : index
        %381 = vector.load %arg3[%c0_377, %c0_378, %380, %c115_379, %c0_380] : memref<1x1x27x326x16xbf16, #tpu.memory_space<vmem>>, vector<1x1x1x96x16xbf16>
        %382 = vector.shape_cast %381 : vector<1x1x1x96x16xbf16> to vector<96x16xbf16>
        %c22_381 = arith.constant 22 : index
        %c0_382 = arith.constant 0 : index
        %c0_383 = arith.constant 0 : index
        %383 = vector.load %arg4[%c22_381, %c0_382, %c0_383] : memref<27x16x16xbf16, #tpu.memory_space<vmem>>, vector<1x16x16xbf16>
        %384 = vector.shape_cast %383 : vector<1x16x16xbf16> to vector<16x16xbf16>
        %cst_384 = arith.constant dense<0.000000e+00> : vector<96x16xf32>
        %385 = tpu.matmul %382, %384, %cst_384 {dimension_numbers = #tpu.dot_dimension_numbers<[1], [0], [0], [1], [0, 0, 1, 1], [], []>} : vector<96x16xbf16>, vector<16x16xbf16>, vector<96x16xf32> -> vector<96x16xf32>
        %386 = arith.addf %379, %385 : vector<96x16xf32>
        %c0_385 = arith.constant 0 : index
        %c0_386 = arith.constant 0 : index
        %387 = arith.index_cast %351 : i32 to index
        %c116_387 = arith.constant 116 : index
        %c0_388 = arith.constant 0 : index
        %388 = vector.load %arg3[%c0_385, %c0_386, %387, %c116_387, %c0_388] : memref<1x1x27x326x16xbf16, #tpu.memory_space<vmem>>, vector<1x1x1x96x16xbf16>
        %389 = vector.shape_cast %388 : vector<1x1x1x96x16xbf16> to vector<96x16xbf16>
        %c23_389 = arith.constant 23 : index
        %c0_390 = arith.constant 0 : index
        %c0_391 = arith.constant 0 : index
        %390 = vector.load %arg4[%c23_389, %c0_390, %c0_391] : memref<27x16x16xbf16, #tpu.memory_space<vmem>>, vector<1x16x16xbf16>
        %391 = vector.shape_cast %390 : vector<1x16x16xbf16> to vector<16x16xbf16>
        %cst_392 = arith.constant dense<0.000000e+00> : vector<96x16xf32>
        %392 = tpu.matmul %389, %391, %cst_392 {dimension_numbers = #tpu.dot_dimension_numbers<[1], [0], [0], [1], [0, 0, 1, 1], [], []>} : vector<96x16xbf16>, vector<16x16xbf16>, vector<96x16xf32> -> vector<96x16xf32>
        %393 = arith.addf %386, %392 : vector<96x16xf32>
        %c0_393 = arith.constant 0 : index
        %c0_394 = arith.constant 0 : index
        %394 = arith.index_cast %351 : i32 to index
        %c132_395 = arith.constant 132 : index
        %c0_396 = arith.constant 0 : index
        %395 = vector.load %arg3[%c0_393, %c0_394, %394, %c132_395, %c0_396] : memref<1x1x27x326x16xbf16, #tpu.memory_space<vmem>>, vector<1x1x1x96x16xbf16>
        %396 = vector.shape_cast %395 : vector<1x1x1x96x16xbf16> to vector<96x16xbf16>
        %c24_397 = arith.constant 24 : index
        %c0_398 = arith.constant 0 : index
        %c0_399 = arith.constant 0 : index
        %397 = vector.load %arg4[%c24_397, %c0_398, %c0_399] : memref<27x16x16xbf16, #tpu.memory_space<vmem>>, vector<1x16x16xbf16>
        %398 = vector.shape_cast %397 : vector<1x16x16xbf16> to vector<16x16xbf16>
        %cst_400 = arith.constant dense<0.000000e+00> : vector<96x16xf32>
        %399 = tpu.matmul %396, %398, %cst_400 {dimension_numbers = #tpu.dot_dimension_numbers<[1], [0], [0], [1], [0, 0, 1, 1], [], []>} : vector<96x16xbf16>, vector<16x16xbf16>, vector<96x16xf32> -> vector<96x16xf32>
        %400 = arith.addf %393, %399 : vector<96x16xf32>
        %c0_401 = arith.constant 0 : index
        %c0_402 = arith.constant 0 : index
        %401 = arith.index_cast %351 : i32 to index
        %c133_403 = arith.constant 133 : index
        %c0_404 = arith.constant 0 : index
        %402 = vector.load %arg3[%c0_401, %c0_402, %401, %c133_403, %c0_404] : memref<1x1x27x326x16xbf16, #tpu.memory_space<vmem>>, vector<1x1x1x96x16xbf16>
        %403 = vector.shape_cast %402 : vector<1x1x1x96x16xbf16> to vector<96x16xbf16>
        %c25_405 = arith.constant 25 : index
        %c0_406 = arith.constant 0 : index
        %c0_407 = arith.constant 0 : index
        %404 = vector.load %arg4[%c25_405, %c0_406, %c0_407] : memref<27x16x16xbf16, #tpu.memory_space<vmem>>, vector<1x16x16xbf16>
        %405 = vector.shape_cast %404 : vector<1x16x16xbf16> to vector<16x16xbf16>
        %cst_408 = arith.constant dense<0.000000e+00> : vector<96x16xf32>
        %406 = tpu.matmul %403, %405, %cst_408 {dimension_numbers = #tpu.dot_dimension_numbers<[1], [0], [0], [1], [0, 0, 1, 1], [], []>} : vector<96x16xbf16>, vector<16x16xbf16>, vector<96x16xf32> -> vector<96x16xf32>
        %407 = arith.addf %400, %406 : vector<96x16xf32>
        %c0_409 = arith.constant 0 : index
        %c0_410 = arith.constant 0 : index
        %408 = arith.index_cast %351 : i32 to index
        %c134_411 = arith.constant 134 : index
        %c0_412 = arith.constant 0 : index
        %409 = vector.load %arg3[%c0_409, %c0_410, %408, %c134_411, %c0_412] : memref<1x1x27x326x16xbf16, #tpu.memory_space<vmem>>, vector<1x1x1x96x16xbf16>
        %410 = vector.shape_cast %409 : vector<1x1x1x96x16xbf16> to vector<96x16xbf16>
        %c26_413 = arith.constant 26 : index
        %c0_414 = arith.constant 0 : index
        %c0_415 = arith.constant 0 : index
        %411 = vector.load %arg4[%c26_413, %c0_414, %c0_415] : memref<27x16x16xbf16, #tpu.memory_space<vmem>>, vector<1x16x16xbf16>
        %412 = vector.shape_cast %411 : vector<1x16x16xbf16> to vector<16x16xbf16>
        %cst_416 = arith.constant dense<0.000000e+00> : vector<96x16xf32>
        %413 = tpu.matmul %410, %412, %cst_416 {dimension_numbers = #tpu.dot_dimension_numbers<[1], [0], [0], [1], [0, 0, 1, 1], [], []>} : vector<96x16xbf16>, vector<16x16xbf16>, vector<96x16xf32> -> vector<96x16xf32>
        %414 = arith.addf %407, %413 : vector<96x16xf32>
        %415 = vector.broadcast %9 : vector<1x16xf32> to vector<96x16xf32>
        %416 = arith.addf %414, %415 : vector<96x16xf32>
        %cst_417 = arith.constant 0.000000e+00 : f32
        %417 = vector.broadcast %cst_417 : f32 to vector<96x16xf32>
        %418 = arith.maximumf %416, %417 : vector<96x16xf32>
        %c0_418 = arith.constant 0 : index
        %419 = arith.index_cast %arg8 : i32 to index
        %c96_419 = arith.constant 96 : index
        %c0_420 = arith.constant 0 : index
        %420 = vector.load %arg6[%c0_418, %419, %c96_419, %c0_420] : memref<1x25x288x1xf32, #tpu.memory_space<vmem>>, vector<1x1x96x1xf32>
        %421 = vector.shape_cast %420 : vector<1x1x96x1xf32> to vector<96x1xf32>
        %422 = vector.broadcast %421 : vector<96x1xf32> to vector<96x16xf32>
        %423 = arith.mulf %418, %422 : vector<96x16xf32>
        %424 = arith.truncf %423 : vector<96x16xf32> to vector<96x16xbf16>
        %c0_421 = arith.constant 0 : index
        %425 = arith.index_cast %arg8 : i32 to index
        %c96_422 = arith.constant 96 : index
        %c0_423 = arith.constant 0 : index
        %426 = vector.load %arg7[%c0_421, %425, %c96_422, %c0_423] : memref<1x25x288x16xbf16, #tpu.memory_space<vmem>>, vector<1x1x96x16xbf16>
        %427 = vector.shape_cast %426 : vector<1x1x96x16xbf16> to vector<96x16xbf16>
        %428 = vector.shape_cast %424 : vector<96x16xbf16> to vector<1x1x96x16xbf16>
        tpu.vector_store %arg7[%c0_421, %425, %c96_422, %c0_423], %428 {strides = array<i32>} : memref<1x25x288x16xbf16, #tpu.memory_space<vmem>>, vector<1x1x96x16xbf16>,
        %c1_i32_424 = arith.constant 1 : i32
        %429 = arith.muli %12, %c1_i32_424 : i32
        %c0_i32_425 = arith.constant 0 : i32
        %430 = arith.addi %429, %c0_i32_425 : i32
        %c0_426 = arith.constant 0 : index
        %c0_427 = arith.constant 0 : index
        %431 = arith.index_cast %430 : i32 to index
        %c192 = arith.constant 192 : index
        %c0_428 = arith.constant 0 : index
        %432 = vector.load %arg3[%c0_426, %c0_427, %431, %c192, %c0_428] : memref<1x1x27x326x16xbf16, #tpu.memory_space<vmem>>, vector<1x1x1x96x16xbf16>
        %433 = vector.shape_cast %432 : vector<1x1x1x96x16xbf16> to vector<96x16xbf16>
        %c0_429 = arith.constant 0 : index
        %c0_430 = arith.constant 0 : index
        %c0_431 = arith.constant 0 : index
        %434 = vector.load %arg4[%c0_429, %c0_430, %c0_431] : memref<27x16x16xbf16, #tpu.memory_space<vmem>>, vector<1x16x16xbf16>
        %435 = vector.shape_cast %434 : vector<1x16x16xbf16> to vector<16x16xbf16>
        %cst_432 = arith.constant dense<0.000000e+00> : vector<96x16xf32>
        %436 = tpu.matmul %433, %435, %cst_432 {dimension_numbers = #tpu.dot_dimension_numbers<[1], [0], [0], [1], [0, 0, 1, 1], [], []>} : vector<96x16xbf16>, vector<16x16xbf16>, vector<96x16xf32> -> vector<96x16xf32>
        %c0_433 = arith.constant 0 : index
        %c0_434 = arith.constant 0 : index
        %437 = arith.index_cast %430 : i32 to index
        %c193 = arith.constant 193 : index
        %c0_435 = arith.constant 0 : index
        %438 = vector.load %arg3[%c0_433, %c0_434, %437, %c193, %c0_435] : memref<1x1x27x326x16xbf16, #tpu.memory_space<vmem>>, vector<1x1x1x96x16xbf16>
        %439 = vector.shape_cast %438 : vector<1x1x1x96x16xbf16> to vector<96x16xbf16>
        %c1_436 = arith.constant 1 : index
        %c0_437 = arith.constant 0 : index
        %c0_438 = arith.constant 0 : index
        %440 = vector.load %arg4[%c1_436, %c0_437, %c0_438] : memref<27x16x16xbf16, #tpu.memory_space<vmem>>, vector<1x16x16xbf16>
        %441 = vector.shape_cast %440 : vector<1x16x16xbf16> to vector<16x16xbf16>
        %cst_439 = arith.constant dense<0.000000e+00> : vector<96x16xf32>
        %442 = tpu.matmul %439, %441, %cst_439 {dimension_numbers = #tpu.dot_dimension_numbers<[1], [0], [0], [1], [0, 0, 1, 1], [], []>} : vector<96x16xbf16>, vector<16x16xbf16>, vector<96x16xf32> -> vector<96x16xf32>
        %443 = arith.addf %436, %442 : vector<96x16xf32>
        %c0_440 = arith.constant 0 : index
        %c0_441 = arith.constant 0 : index
        %444 = arith.index_cast %430 : i32 to index
        %c194 = arith.constant 194 : index
        %c0_442 = arith.constant 0 : index
        %445 = vector.load %arg3[%c0_440, %c0_441, %444, %c194, %c0_442] : memref<1x1x27x326x16xbf16, #tpu.memory_space<vmem>>, vector<1x1x1x96x16xbf16>
        %446 = vector.shape_cast %445 : vector<1x1x1x96x16xbf16> to vector<96x16xbf16>
        %c2_443 = arith.constant 2 : index
        %c0_444 = arith.constant 0 : index
        %c0_445 = arith.constant 0 : index
        %447 = vector.load %arg4[%c2_443, %c0_444, %c0_445] : memref<27x16x16xbf16, #tpu.memory_space<vmem>>, vector<1x16x16xbf16>
        %448 = vector.shape_cast %447 : vector<1x16x16xbf16> to vector<16x16xbf16>
        %cst_446 = arith.constant dense<0.000000e+00> : vector<96x16xf32>
        %449 = tpu.matmul %446, %448, %cst_446 {dimension_numbers = #tpu.dot_dimension_numbers<[1], [0], [0], [1], [0, 0, 1, 1], [], []>} : vector<96x16xbf16>, vector<16x16xbf16>, vector<96x16xf32> -> vector<96x16xf32>
        %450 = arith.addf %443, %449 : vector<96x16xf32>
        %c0_447 = arith.constant 0 : index
        %c0_448 = arith.constant 0 : index
        %451 = arith.index_cast %430 : i32 to index
        %c210 = arith.constant 210 : index
        %c0_449 = arith.constant 0 : index
        %452 = vector.load %arg3[%c0_447, %c0_448, %451, %c210, %c0_449] : memref<1x1x27x326x16xbf16, #tpu.memory_space<vmem>>, vector<1x1x1x96x16xbf16>
        %453 = vector.shape_cast %452 : vector<1x1x1x96x16xbf16> to vector<96x16xbf16>
        %c3_450 = arith.constant 3 : index
        %c0_451 = arith.constant 0 : index
        %c0_452 = arith.constant 0 : index
        %454 = vector.load %arg4[%c3_450, %c0_451, %c0_452] : memref<27x16x16xbf16, #tpu.memory_space<vmem>>, vector<1x16x16xbf16>
        %455 = vector.shape_cast %454 : vector<1x16x16xbf16> to vector<16x16xbf16>
        %cst_453 = arith.constant dense<0.000000e+00> : vector<96x16xf32>
        %456 = tpu.matmul %453, %455, %cst_453 {dimension_numbers = #tpu.dot_dimension_numbers<[1], [0], [0], [1], [0, 0, 1, 1], [], []>} : vector<96x16xbf16>, vector<16x16xbf16>, vector<96x16xf32> -> vector<96x16xf32>
        %457 = arith.addf %450, %456 : vector<96x16xf32>
        %c0_454 = arith.constant 0 : index
        %c0_455 = arith.constant 0 : index
        %458 = arith.index_cast %430 : i32 to index
        %c211 = arith.constant 211 : index
        %c0_456 = arith.constant 0 : index
        %459 = vector.load %arg3[%c0_454, %c0_455, %458, %c211, %c0_456] : memref<1x1x27x326x16xbf16, #tpu.memory_space<vmem>>, vector<1x1x1x96x16xbf16>
        %460 = vector.shape_cast %459 : vector<1x1x1x96x16xbf16> to vector<96x16xbf16>
        %c4_457 = arith.constant 4 : index
        %c0_458 = arith.constant 0 : index
        %c0_459 = arith.constant 0 : index
        %461 = vector.load %arg4[%c4_457, %c0_458, %c0_459] : memref<27x16x16xbf16, #tpu.memory_space<vmem>>, vector<1x16x16xbf16>
        %462 = vector.shape_cast %461 : vector<1x16x16xbf16> to vector<16x16xbf16>
        %cst_460 = arith.constant dense<0.000000e+00> : vector<96x16xf32>
        %463 = tpu.matmul %460, %462, %cst_460 {dimension_numbers = #tpu.dot_dimension_numbers<[1], [0], [0], [1], [0, 0, 1, 1], [], []>} : vector<96x16xbf16>, vector<16x16xbf16>, vector<96x16xf32> -> vector<96x16xf32>
        %464 = arith.addf %457, %463 : vector<96x16xf32>
        %c0_461 = arith.constant 0 : index
        %c0_462 = arith.constant 0 : index
        %465 = arith.index_cast %430 : i32 to index
        %c212 = arith.constant 212 : index
        %c0_463 = arith.constant 0 : index
        %466 = vector.load %arg3[%c0_461, %c0_462, %465, %c212, %c0_463] : memref<1x1x27x326x16xbf16, #tpu.memory_space<vmem>>, vector<1x1x1x96x16xbf16>
        %467 = vector.shape_cast %466 : vector<1x1x1x96x16xbf16> to vector<96x16xbf16>
        %c5_464 = arith.constant 5 : index
        %c0_465 = arith.constant 0 : index
        %c0_466 = arith.constant 0 : index
        %468 = vector.load %arg4[%c5_464, %c0_465, %c0_466] : memref<27x16x16xbf16, #tpu.memory_space<vmem>>, vector<1x16x16xbf16>
        %469 = vector.shape_cast %468 : vector<1x16x16xbf16> to vector<16x16xbf16>
        %cst_467 = arith.constant dense<0.000000e+00> : vector<96x16xf32>
        %470 = tpu.matmul %467, %469, %cst_467 {dimension_numbers = #tpu.dot_dimension_numbers<[1], [0], [0], [1], [0, 0, 1, 1], [], []>} : vector<96x16xbf16>, vector<16x16xbf16>, vector<96x16xf32> -> vector<96x16xf32>
        %471 = arith.addf %464, %470 : vector<96x16xf32>
        %c0_468 = arith.constant 0 : index
        %c0_469 = arith.constant 0 : index
        %472 = arith.index_cast %430 : i32 to index
        %c228 = arith.constant 228 : index
        %c0_470 = arith.constant 0 : index
        %473 = vector.load %arg3[%c0_468, %c0_469, %472, %c228, %c0_470] : memref<1x1x27x326x16xbf16, #tpu.memory_space<vmem>>, vector<1x1x1x96x16xbf16>
        %474 = vector.shape_cast %473 : vector<1x1x1x96x16xbf16> to vector<96x16xbf16>
        %c6_471 = arith.constant 6 : index
        %c0_472 = arith.constant 0 : index
        %c0_473 = arith.constant 0 : index
        %475 = vector.load %arg4[%c6_471, %c0_472, %c0_473] : memref<27x16x16xbf16, #tpu.memory_space<vmem>>, vector<1x16x16xbf16>
        %476 = vector.shape_cast %475 : vector<1x16x16xbf16> to vector<16x16xbf16>
        %cst_474 = arith.constant dense<0.000000e+00> : vector<96x16xf32>
        %477 = tpu.matmul %474, %476, %cst_474 {dimension_numbers = #tpu.dot_dimension_numbers<[1], [0], [0], [1], [0, 0, 1, 1], [], []>} : vector<96x16xbf16>, vector<16x16xbf16>, vector<96x16xf32> -> vector<96x16xf32>
        %478 = arith.addf %471, %477 : vector<96x16xf32>
        %c0_475 = arith.constant 0 : index
        %c0_476 = arith.constant 0 : index
        %479 = arith.index_cast %430 : i32 to index
        %c229 = arith.constant 229 : index
        %c0_477 = arith.constant 0 : index
        %480 = vector.load %arg3[%c0_475, %c0_476, %479, %c229, %c0_477] : memref<1x1x27x326x16xbf16, #tpu.memory_space<vmem>>, vector<1x1x1x96x16xbf16>
        %481 = vector.shape_cast %480 : vector<1x1x1x96x16xbf16> to vector<96x16xbf16>
        %c7_478 = arith.constant 7 : index
        %c0_479 = arith.constant 0 : index
        %c0_480 = arith.constant 0 : index
        %482 = vector.load %arg4[%c7_478, %c0_479, %c0_480] : memref<27x16x16xbf16, #tpu.memory_space<vmem>>, vector<1x16x16xbf16>
        %483 = vector.shape_cast %482 : vector<1x16x16xbf16> to vector<16x16xbf16>
        %cst_481 = arith.constant dense<0.000000e+00> : vector<96x16xf32>
        %484 = tpu.matmul %481, %483, %cst_481 {dimension_numbers = #tpu.dot_dimension_numbers<[1], [0], [0], [1], [0, 0, 1, 1], [], []>} : vector<96x16xbf16>, vector<16x16xbf16>, vector<96x16xf32> -> vector<96x16xf32>
        %485 = arith.addf %478, %484 : vector<96x16xf32>
        %c0_482 = arith.constant 0 : index
        %c0_483 = arith.constant 0 : index
        %486 = arith.index_cast %430 : i32 to index
        %c230 = arith.constant 230 : index
        %c0_484 = arith.constant 0 : index
        %487 = vector.load %arg3[%c0_482, %c0_483, %486, %c230, %c0_484] : memref<1x1x27x326x16xbf16, #tpu.memory_space<vmem>>, vector<1x1x1x96x16xbf16>
        %488 = vector.shape_cast %487 : vector<1x1x1x96x16xbf16> to vector<96x16xbf16>
        %c8_485 = arith.constant 8 : index
        %c0_486 = arith.constant 0 : index
        %c0_487 = arith.constant 0 : index
        %489 = vector.load %arg4[%c8_485, %c0_486, %c0_487] : memref<27x16x16xbf16, #tpu.memory_space<vmem>>, vector<1x16x16xbf16>
        %490 = vector.shape_cast %489 : vector<1x16x16xbf16> to vector<16x16xbf16>
        %cst_488 = arith.constant dense<0.000000e+00> : vector<96x16xf32>
        %491 = tpu.matmul %488, %490, %cst_488 {dimension_numbers = #tpu.dot_dimension_numbers<[1], [0], [0], [1], [0, 0, 1, 1], [], []>} : vector<96x16xbf16>, vector<16x16xbf16>, vector<96x16xf32> -> vector<96x16xf32>
        %492 = arith.addf %485, %491 : vector<96x16xf32>
        %c1_i32_489 = arith.constant 1 : i32
        %493 = arith.muli %12, %c1_i32_489 : i32
        %c1_i32_490 = arith.constant 1 : i32
        %494 = arith.addi %493, %c1_i32_490 : i32
        %c0_491 = arith.constant 0 : index
        %c0_492 = arith.constant 0 : index
        %495 = arith.index_cast %494 : i32 to index
        %c192_493 = arith.constant 192 : index
        %c0_494 = arith.constant 0 : index
        %496 = vector.load %arg3[%c0_491, %c0_492, %495, %c192_493, %c0_494] : memref<1x1x27x326x16xbf16, #tpu.memory_space<vmem>>, vector<1x1x1x96x16xbf16>
        %497 = vector.shape_cast %496 : vector<1x1x1x96x16xbf16> to vector<96x16xbf16>
        %c9_495 = arith.constant 9 : index
        %c0_496 = arith.constant 0 : index
        %c0_497 = arith.constant 0 : index
        %498 = vector.load %arg4[%c9_495, %c0_496, %c0_497] : memref<27x16x16xbf16, #tpu.memory_space<vmem>>, vector<1x16x16xbf16>
        %499 = vector.shape_cast %498 : vector<1x16x16xbf16> to vector<16x16xbf16>
        %cst_498 = arith.constant dense<0.000000e+00> : vector<96x16xf32>
        %500 = tpu.matmul %497, %499, %cst_498 {dimension_numbers = #tpu.dot_dimension_numbers<[1], [0], [0], [1], [0, 0, 1, 1], [], []>} : vector<96x16xbf16>, vector<16x16xbf16>, vector<96x16xf32> -> vector<96x16xf32>
        %501 = arith.addf %492, %500 : vector<96x16xf32>
        %c0_499 = arith.constant 0 : index
        %c0_500 = arith.constant 0 : index
        %502 = arith.index_cast %494 : i32 to index
        %c193_501 = arith.constant 193 : index
        %c0_502 = arith.constant 0 : index
        %503 = vector.load %arg3[%c0_499, %c0_500, %502, %c193_501, %c0_502] : memref<1x1x27x326x16xbf16, #tpu.memory_space<vmem>>, vector<1x1x1x96x16xbf16>
        %504 = vector.shape_cast %503 : vector<1x1x1x96x16xbf16> to vector<96x16xbf16>
        %c10_503 = arith.constant 10 : index
        %c0_504 = arith.constant 0 : index
        %c0_505 = arith.constant 0 : index
        %505 = vector.load %arg4[%c10_503, %c0_504, %c0_505] : memref<27x16x16xbf16, #tpu.memory_space<vmem>>, vector<1x16x16xbf16>
        %506 = vector.shape_cast %505 : vector<1x16x16xbf16> to vector<16x16xbf16>
        %cst_506 = arith.constant dense<0.000000e+00> : vector<96x16xf32>
        %507 = tpu.matmul %504, %506, %cst_506 {dimension_numbers = #tpu.dot_dimension_numbers<[1], [0], [0], [1], [0, 0, 1, 1], [], []>} : vector<96x16xbf16>, vector<16x16xbf16>, vector<96x16xf32> -> vector<96x16xf32>
        %508 = arith.addf %501, %507 : vector<96x16xf32>
        %c0_507 = arith.constant 0 : index
        %c0_508 = arith.constant 0 : index
        %509 = arith.index_cast %494 : i32 to index
        %c194_509 = arith.constant 194 : index
        %c0_510 = arith.constant 0 : index
        %510 = vector.load %arg3[%c0_507, %c0_508, %509, %c194_509, %c0_510] : memref<1x1x27x326x16xbf16, #tpu.memory_space<vmem>>, vector<1x1x1x96x16xbf16>
        %511 = vector.shape_cast %510 : vector<1x1x1x96x16xbf16> to vector<96x16xbf16>
        %c11_511 = arith.constant 11 : index
        %c0_512 = arith.constant 0 : index
        %c0_513 = arith.constant 0 : index
        %512 = vector.load %arg4[%c11_511, %c0_512, %c0_513] : memref<27x16x16xbf16, #tpu.memory_space<vmem>>, vector<1x16x16xbf16>
        %513 = vector.shape_cast %512 : vector<1x16x16xbf16> to vector<16x16xbf16>
        %cst_514 = arith.constant dense<0.000000e+00> : vector<96x16xf32>
        %514 = tpu.matmul %511, %513, %cst_514 {dimension_numbers = #tpu.dot_dimension_numbers<[1], [0], [0], [1], [0, 0, 1, 1], [], []>} : vector<96x16xbf16>, vector<16x16xbf16>, vector<96x16xf32> -> vector<96x16xf32>
        %515 = arith.addf %508, %514 : vector<96x16xf32>
        %c0_515 = arith.constant 0 : index
        %c0_516 = arith.constant 0 : index
        %516 = arith.index_cast %494 : i32 to index
        %c210_517 = arith.constant 210 : index
        %c0_518 = arith.constant 0 : index
        %517 = vector.load %arg3[%c0_515, %c0_516, %516, %c210_517, %c0_518] : memref<1x1x27x326x16xbf16, #tpu.memory_space<vmem>>, vector<1x1x1x96x16xbf16>
        %518 = vector.shape_cast %517 : vector<1x1x1x96x16xbf16> to vector<96x16xbf16>
        %c12_519 = arith.constant 12 : index
        %c0_520 = arith.constant 0 : index
        %c0_521 = arith.constant 0 : index
        %519 = vector.load %arg4[%c12_519, %c0_520, %c0_521] : memref<27x16x16xbf16, #tpu.memory_space<vmem>>, vector<1x16x16xbf16>
        %520 = vector.shape_cast %519 : vector<1x16x16xbf16> to vector<16x16xbf16>
        %cst_522 = arith.constant dense<0.000000e+00> : vector<96x16xf32>
        %521 = tpu.matmul %518, %520, %cst_522 {dimension_numbers = #tpu.dot_dimension_numbers<[1], [0], [0], [1], [0, 0, 1, 1], [], []>} : vector<96x16xbf16>, vector<16x16xbf16>, vector<96x16xf32> -> vector<96x16xf32>
        %522 = arith.addf %515, %521 : vector<96x16xf32>
        %c0_523 = arith.constant 0 : index
        %c0_524 = arith.constant 0 : index
        %523 = arith.index_cast %494 : i32 to index
        %c211_525 = arith.constant 211 : index
        %c0_526 = arith.constant 0 : index
        %524 = vector.load %arg3[%c0_523, %c0_524, %523, %c211_525, %c0_526] : memref<1x1x27x326x16xbf16, #tpu.memory_space<vmem>>, vector<1x1x1x96x16xbf16>
        %525 = vector.shape_cast %524 : vector<1x1x1x96x16xbf16> to vector<96x16xbf16>
        %c13_527 = arith.constant 13 : index
        %c0_528 = arith.constant 0 : index
        %c0_529 = arith.constant 0 : index
        %526 = vector.load %arg4[%c13_527, %c0_528, %c0_529] : memref<27x16x16xbf16, #tpu.memory_space<vmem>>, vector<1x16x16xbf16>
        %527 = vector.shape_cast %526 : vector<1x16x16xbf16> to vector<16x16xbf16>
        %cst_530 = arith.constant dense<0.000000e+00> : vector<96x16xf32>
        %528 = tpu.matmul %525, %527, %cst_530 {dimension_numbers = #tpu.dot_dimension_numbers<[1], [0], [0], [1], [0, 0, 1, 1], [], []>} : vector<96x16xbf16>, vector<16x16xbf16>, vector<96x16xf32> -> vector<96x16xf32>
        %529 = arith.addf %522, %528 : vector<96x16xf32>
        %c0_531 = arith.constant 0 : index
        %c0_532 = arith.constant 0 : index
        %530 = arith.index_cast %494 : i32 to index
        %c212_533 = arith.constant 212 : index
        %c0_534 = arith.constant 0 : index
        %531 = vector.load %arg3[%c0_531, %c0_532, %530, %c212_533, %c0_534] : memref<1x1x27x326x16xbf16, #tpu.memory_space<vmem>>, vector<1x1x1x96x16xbf16>
        %532 = vector.shape_cast %531 : vector<1x1x1x96x16xbf16> to vector<96x16xbf16>
        %c14_535 = arith.constant 14 : index
        %c0_536 = arith.constant 0 : index
        %c0_537 = arith.constant 0 : index
        %533 = vector.load %arg4[%c14_535, %c0_536, %c0_537] : memref<27x16x16xbf16, #tpu.memory_space<vmem>>, vector<1x16x16xbf16>
        %534 = vector.shape_cast %533 : vector<1x16x16xbf16> to vector<16x16xbf16>
        %cst_538 = arith.constant dense<0.000000e+00> : vector<96x16xf32>
        %535 = tpu.matmul %532, %534, %cst_538 {dimension_numbers = #tpu.dot_dimension_numbers<[1], [0], [0], [1], [0, 0, 1, 1], [], []>} : vector<96x16xbf16>, vector<16x16xbf16>, vector<96x16xf32> -> vector<96x16xf32>
        %536 = arith.addf %529, %535 : vector<96x16xf32>
        %c0_539 = arith.constant 0 : index
        %c0_540 = arith.constant 0 : index
        %537 = arith.index_cast %494 : i32 to index
        %c228_541 = arith.constant 228 : index
        %c0_542 = arith.constant 0 : index
        %538 = vector.load %arg3[%c0_539, %c0_540, %537, %c228_541, %c0_542] : memref<1x1x27x326x16xbf16, #tpu.memory_space<vmem>>, vector<1x1x1x96x16xbf16>
        %539 = vector.shape_cast %538 : vector<1x1x1x96x16xbf16> to vector<96x16xbf16>
        %c15_543 = arith.constant 15 : index
        %c0_544 = arith.constant 0 : index
        %c0_545 = arith.constant 0 : index
        %540 = vector.load %arg4[%c15_543, %c0_544, %c0_545] : memref<27x16x16xbf16, #tpu.memory_space<vmem>>, vector<1x16x16xbf16>
        %541 = vector.shape_cast %540 : vector<1x16x16xbf16> to vector<16x16xbf16>
        %cst_546 = arith.constant dense<0.000000e+00> : vector<96x16xf32>
        %542 = tpu.matmul %539, %541, %cst_546 {dimension_numbers = #tpu.dot_dimension_numbers<[1], [0], [0], [1], [0, 0, 1, 1], [], []>} : vector<96x16xbf16>, vector<16x16xbf16>, vector<96x16xf32> -> vector<96x16xf32>
        %543 = arith.addf %536, %542 : vector<96x16xf32>
        %c0_547 = arith.constant 0 : index
        %c0_548 = arith.constant 0 : index
        %544 = arith.index_cast %494 : i32 to index
        %c229_549 = arith.constant 229 : index
        %c0_550 = arith.constant 0 : index
        %545 = vector.load %arg3[%c0_547, %c0_548, %544, %c229_549, %c0_550] : memref<1x1x27x326x16xbf16, #tpu.memory_space<vmem>>, vector<1x1x1x96x16xbf16>
        %546 = vector.shape_cast %545 : vector<1x1x1x96x16xbf16> to vector<96x16xbf16>
        %c16_551 = arith.constant 16 : index
        %c0_552 = arith.constant 0 : index
        %c0_553 = arith.constant 0 : index
        %547 = vector.load %arg4[%c16_551, %c0_552, %c0_553] : memref<27x16x16xbf16, #tpu.memory_space<vmem>>, vector<1x16x16xbf16>
        %548 = vector.shape_cast %547 : vector<1x16x16xbf16> to vector<16x16xbf16>
        %cst_554 = arith.constant dense<0.000000e+00> : vector<96x16xf32>
        %549 = tpu.matmul %546, %548, %cst_554 {dimension_numbers = #tpu.dot_dimension_numbers<[1], [0], [0], [1], [0, 0, 1, 1], [], []>} : vector<96x16xbf16>, vector<16x16xbf16>, vector<96x16xf32> -> vector<96x16xf32>
        %550 = arith.addf %543, %549 : vector<96x16xf32>
        %c0_555 = arith.constant 0 : index
        %c0_556 = arith.constant 0 : index
        %551 = arith.index_cast %494 : i32 to index
        %c230_557 = arith.constant 230 : index
        %c0_558 = arith.constant 0 : index
        %552 = vector.load %arg3[%c0_555, %c0_556, %551, %c230_557, %c0_558] : memref<1x1x27x326x16xbf16, #tpu.memory_space<vmem>>, vector<1x1x1x96x16xbf16>
        %553 = vector.shape_cast %552 : vector<1x1x1x96x16xbf16> to vector<96x16xbf16>
        %c17_559 = arith.constant 17 : index
        %c0_560 = arith.constant 0 : index
        %c0_561 = arith.constant 0 : index
        %554 = vector.load %arg4[%c17_559, %c0_560, %c0_561] : memref<27x16x16xbf16, #tpu.memory_space<vmem>>, vector<1x16x16xbf16>
        %555 = vector.shape_cast %554 : vector<1x16x16xbf16> to vector<16x16xbf16>
        %cst_562 = arith.constant dense<0.000000e+00> : vector<96x16xf32>
        %556 = tpu.matmul %553, %555, %cst_562 {dimension_numbers = #tpu.dot_dimension_numbers<[1], [0], [0], [1], [0, 0, 1, 1], [], []>} : vector<96x16xbf16>, vector<16x16xbf16>, vector<96x16xf32> -> vector<96x16xf32>
        %557 = arith.addf %550, %556 : vector<96x16xf32>
        %c1_i32_563 = arith.constant 1 : i32
        %558 = arith.muli %12, %c1_i32_563 : i32
        %c2_i32_564 = arith.constant 2 : i32
        %559 = arith.addi %558, %c2_i32_564 : i32
        %c0_565 = arith.constant 0 : index
        %c0_566 = arith.constant 0 : index
        %560 = arith.index_cast %559 : i32 to index
        %c192_567 = arith.constant 192 : index
        %c0_568 = arith.constant 0 : index
        %561 = vector.load %arg3[%c0_565, %c0_566, %560, %c192_567, %c0_568] : memref<1x1x27x326x16xbf16, #tpu.memory_space<vmem>>, vector<1x1x1x96x16xbf16>
        %562 = vector.shape_cast %561 : vector<1x1x1x96x16xbf16> to vector<96x16xbf16>
        %c18_569 = arith.constant 18 : index
        %c0_570 = arith.constant 0 : index
        %c0_571 = arith.constant 0 : index
        %563 = vector.load %arg4[%c18_569, %c0_570, %c0_571] : memref<27x16x16xbf16, #tpu.memory_space<vmem>>, vector<1x16x16xbf16>
        %564 = vector.shape_cast %563 : vector<1x16x16xbf16> to vector<16x16xbf16>
        %cst_572 = arith.constant dense<0.000000e+00> : vector<96x16xf32>
        %565 = tpu.matmul %562, %564, %cst_572 {dimension_numbers = #tpu.dot_dimension_numbers<[1], [0], [0], [1], [0, 0, 1, 1], [], []>} : vector<96x16xbf16>, vector<16x16xbf16>, vector<96x16xf32> -> vector<96x16xf32>
        %566 = arith.addf %557, %565 : vector<96x16xf32>
        %c0_573 = arith.constant 0 : index
        %c0_574 = arith.constant 0 : index
        %567 = arith.index_cast %559 : i32 to index
        %c193_575 = arith.constant 193 : index
        %c0_576 = arith.constant 0 : index
        %568 = vector.load %arg3[%c0_573, %c0_574, %567, %c193_575, %c0_576] : memref<1x1x27x326x16xbf16, #tpu.memory_space<vmem>>, vector<1x1x1x96x16xbf16>
        %569 = vector.shape_cast %568 : vector<1x1x1x96x16xbf16> to vector<96x16xbf16>
        %c19_577 = arith.constant 19 : index
        %c0_578 = arith.constant 0 : index
        %c0_579 = arith.constant 0 : index
        %570 = vector.load %arg4[%c19_577, %c0_578, %c0_579] : memref<27x16x16xbf16, #tpu.memory_space<vmem>>, vector<1x16x16xbf16>
        %571 = vector.shape_cast %570 : vector<1x16x16xbf16> to vector<16x16xbf16>
        %cst_580 = arith.constant dense<0.000000e+00> : vector<96x16xf32>
        %572 = tpu.matmul %569, %571, %cst_580 {dimension_numbers = #tpu.dot_dimension_numbers<[1], [0], [0], [1], [0, 0, 1, 1], [], []>} : vector<96x16xbf16>, vector<16x16xbf16>, vector<96x16xf32> -> vector<96x16xf32>
        %573 = arith.addf %566, %572 : vector<96x16xf32>
        %c0_581 = arith.constant 0 : index
        %c0_582 = arith.constant 0 : index
        %574 = arith.index_cast %559 : i32 to index
        %c194_583 = arith.constant 194 : index
        %c0_584 = arith.constant 0 : index
        %575 = vector.load %arg3[%c0_581, %c0_582, %574, %c194_583, %c0_584] : memref<1x1x27x326x16xbf16, #tpu.memory_space<vmem>>, vector<1x1x1x96x16xbf16>
        %576 = vector.shape_cast %575 : vector<1x1x1x96x16xbf16> to vector<96x16xbf16>
        %c20_585 = arith.constant 20 : index
        %c0_586 = arith.constant 0 : index
        %c0_587 = arith.constant 0 : index
        %577 = vector.load %arg4[%c20_585, %c0_586, %c0_587] : memref<27x16x16xbf16, #tpu.memory_space<vmem>>, vector<1x16x16xbf16>
        %578 = vector.shape_cast %577 : vector<1x16x16xbf16> to vector<16x16xbf16>
        %cst_588 = arith.constant dense<0.000000e+00> : vector<96x16xf32>
        %579 = tpu.matmul %576, %578, %cst_588 {dimension_numbers = #tpu.dot_dimension_numbers<[1], [0], [0], [1], [0, 0, 1, 1], [], []>} : vector<96x16xbf16>, vector<16x16xbf16>, vector<96x16xf32> -> vector<96x16xf32>
        %580 = arith.addf %573, %579 : vector<96x16xf32>
        %c0_589 = arith.constant 0 : index
        %c0_590 = arith.constant 0 : index
        %581 = arith.index_cast %559 : i32 to index
        %c210_591 = arith.constant 210 : index
        %c0_592 = arith.constant 0 : index
        %582 = vector.load %arg3[%c0_589, %c0_590, %581, %c210_591, %c0_592] : memref<1x1x27x326x16xbf16, #tpu.memory_space<vmem>>, vector<1x1x1x96x16xbf16>
        %583 = vector.shape_cast %582 : vector<1x1x1x96x16xbf16> to vector<96x16xbf16>
        %c21_593 = arith.constant 21 : index
        %c0_594 = arith.constant 0 : index
        %c0_595 = arith.constant 0 : index
        %584 = vector.load %arg4[%c21_593, %c0_594, %c0_595] : memref<27x16x16xbf16, #tpu.memory_space<vmem>>, vector<1x16x16xbf16>
        %585 = vector.shape_cast %584 : vector<1x16x16xbf16> to vector<16x16xbf16>
        %cst_596 = arith.constant dense<0.000000e+00> : vector<96x16xf32>
        %586 = tpu.matmul %583, %585, %cst_596 {dimension_numbers = #tpu.dot_dimension_numbers<[1], [0], [0], [1], [0, 0, 1, 1], [], []>} : vector<96x16xbf16>, vector<16x16xbf16>, vector<96x16xf32> -> vector<96x16xf32>
        %587 = arith.addf %580, %586 : vector<96x16xf32>
        %c0_597 = arith.constant 0 : index
        %c0_598 = arith.constant 0 : index
        %588 = arith.index_cast %559 : i32 to index
        %c211_599 = arith.constant 211 : index
        %c0_600 = arith.constant 0 : index
        %589 = vector.load %arg3[%c0_597, %c0_598, %588, %c211_599, %c0_600] : memref<1x1x27x326x16xbf16, #tpu.memory_space<vmem>>, vector<1x1x1x96x16xbf16>
        %590 = vector.shape_cast %589 : vector<1x1x1x96x16xbf16> to vector<96x16xbf16>
        %c22_601 = arith.constant 22 : index
        %c0_602 = arith.constant 0 : index
        %c0_603 = arith.constant 0 : index
        %591 = vector.load %arg4[%c22_601, %c0_602, %c0_603] : memref<27x16x16xbf16, #tpu.memory_space<vmem>>, vector<1x16x16xbf16>
        %592 = vector.shape_cast %591 : vector<1x16x16xbf16> to vector<16x16xbf16>
        %cst_604 = arith.constant dense<0.000000e+00> : vector<96x16xf32>
        %593 = tpu.matmul %590, %592, %cst_604 {dimension_numbers = #tpu.dot_dimension_numbers<[1], [0], [0], [1], [0, 0, 1, 1], [], []>} : vector<96x16xbf16>, vector<16x16xbf16>, vector<96x16xf32> -> vector<96x16xf32>
        %594 = arith.addf %587, %593 : vector<96x16xf32>
        %c0_605 = arith.constant 0 : index
        %c0_606 = arith.constant 0 : index
        %595 = arith.index_cast %559 : i32 to index
        %c212_607 = arith.constant 212 : index
        %c0_608 = arith.constant 0 : index
        %596 = vector.load %arg3[%c0_605, %c0_606, %595, %c212_607, %c0_608] : memref<1x1x27x326x16xbf16, #tpu.memory_space<vmem>>, vector<1x1x1x96x16xbf16>
        %597 = vector.shape_cast %596 : vector<1x1x1x96x16xbf16> to vector<96x16xbf16>
        %c23_609 = arith.constant 23 : index
        %c0_610 = arith.constant 0 : index
        %c0_611 = arith.constant 0 : index
        %598 = vector.load %arg4[%c23_609, %c0_610, %c0_611] : memref<27x16x16xbf16, #tpu.memory_space<vmem>>, vector<1x16x16xbf16>
        %599 = vector.shape_cast %598 : vector<1x16x16xbf16> to vector<16x16xbf16>
        %cst_612 = arith.constant dense<0.000000e+00> : vector<96x16xf32>
        %600 = tpu.matmul %597, %599, %cst_612 {dimension_numbers = #tpu.dot_dimension_numbers<[1], [0], [0], [1], [0, 0, 1, 1], [], []>} : vector<96x16xbf16>, vector<16x16xbf16>, vector<96x16xf32> -> vector<96x16xf32>
        %601 = arith.addf %594, %600 : vector<96x16xf32>
        %c0_613 = arith.constant 0 : index
        %c0_614 = arith.constant 0 : index
        %602 = arith.index_cast %559 : i32 to index
        %c228_615 = arith.constant 228 : index
        %c0_616 = arith.constant 0 : index
        %603 = vector.load %arg3[%c0_613, %c0_614, %602, %c228_615, %c0_616] : memref<1x1x27x326x16xbf16, #tpu.memory_space<vmem>>, vector<1x1x1x96x16xbf16>
        %604 = vector.shape_cast %603 : vector<1x1x1x96x16xbf16> to vector<96x16xbf16>
        %c24_617 = arith.constant 24 : index
        %c0_618 = arith.constant 0 : index
        %c0_619 = arith.constant 0 : index
        %605 = vector.load %arg4[%c24_617, %c0_618, %c0_619] : memref<27x16x16xbf16, #tpu.memory_space<vmem>>, vector<1x16x16xbf16>
        %606 = vector.shape_cast %605 : vector<1x16x16xbf16> to vector<16x16xbf16>
        %cst_620 = arith.constant dense<0.000000e+00> : vector<96x16xf32>
        %607 = tpu.matmul %604, %606, %cst_620 {dimension_numbers = #tpu.dot_dimension_numbers<[1], [0], [0], [1], [0, 0, 1, 1], [], []>} : vector<96x16xbf16>, vector<16x16xbf16>, vector<96x16xf32> -> vector<96x16xf32>
        %608 = arith.addf %601, %607 : vector<96x16xf32>
        %c0_621 = arith.constant 0 : index
        %c0_622 = arith.constant 0 : index
        %609 = arith.index_cast %559 : i32 to index
        %c229_623 = arith.constant 229 : index
        %c0_624 = arith.constant 0 : index
        %610 = vector.load %arg3[%c0_621, %c0_622, %609, %c229_623, %c0_624] : memref<1x1x27x326x16xbf16, #tpu.memory_space<vmem>>, vector<1x1x1x96x16xbf16>
        %611 = vector.shape_cast %610 : vector<1x1x1x96x16xbf16> to vector<96x16xbf16>
        %c25_625 = arith.constant 25 : index
        %c0_626 = arith.constant 0 : index
        %c0_627 = arith.constant 0 : index
        %612 = vector.load %arg4[%c25_625, %c0_626, %c0_627] : memref<27x16x16xbf16, #tpu.memory_space<vmem>>, vector<1x16x16xbf16>
        %613 = vector.shape_cast %612 : vector<1x16x16xbf16> to vector<16x16xbf16>
        %cst_628 = arith.constant dense<0.000000e+00> : vector<96x16xf32>
        %614 = tpu.matmul %611, %613, %cst_628 {dimension_numbers = #tpu.dot_dimension_numbers<[1], [0], [0], [1], [0, 0, 1, 1], [], []>} : vector<96x16xbf16>, vector<16x16xbf16>, vector<96x16xf32> -> vector<96x16xf32>
        %615 = arith.addf %608, %614 : vector<96x16xf32>
        %c0_629 = arith.constant 0 : index
        %c0_630 = arith.constant 0 : index
        %616 = arith.index_cast %559 : i32 to index
        %c230_631 = arith.constant 230 : index
        %c0_632 = arith.constant 0 : index
        %617 = vector.load %arg3[%c0_629, %c0_630, %616, %c230_631, %c0_632] : memref<1x1x27x326x16xbf16, #tpu.memory_space<vmem>>, vector<1x1x1x96x16xbf16>
        %618 = vector.shape_cast %617 : vector<1x1x1x96x16xbf16> to vector<96x16xbf16>
        %c26_633 = arith.constant 26 : index
        %c0_634 = arith.constant 0 : index
        %c0_635 = arith.constant 0 : index
        %619 = vector.load %arg4[%c26_633, %c0_634, %c0_635] : memref<27x16x16xbf16, #tpu.memory_space<vmem>>, vector<1x16x16xbf16>
        %620 = vector.shape_cast %619 : vector<1x16x16xbf16> to vector<16x16xbf16>
        %cst_636 = arith.constant dense<0.000000e+00> : vector<96x16xf32>
        %621 = tpu.matmul %618, %620, %cst_636 {dimension_numbers = #tpu.dot_dimension_numbers<[1], [0], [0], [1], [0, 0, 1, 1], [], []>} : vector<96x16xbf16>, vector<16x16xbf16>, vector<96x16xf32> -> vector<96x16xf32>
        %622 = arith.addf %615, %621 : vector<96x16xf32>
        %623 = vector.broadcast %9 : vector<1x16xf32> to vector<96x16xf32>
        %624 = arith.addf %622, %623 : vector<96x16xf32>
        %cst_637 = arith.constant 0.000000e+00 : f32
        %625 = vector.broadcast %cst_637 : f32 to vector<96x16xf32>
        %626 = arith.maximumf %624, %625 : vector<96x16xf32>
        %c0_638 = arith.constant 0 : index
        %627 = arith.index_cast %arg8 : i32 to index
        %c192_639 = arith.constant 192 : index
        %c0_640 = arith.constant 0 : index
        %628 = vector.load %arg6[%c0_638, %627, %c192_639, %c0_640] : memref<1x25x288x1xf32, #tpu.memory_space<vmem>>, vector<1x1x96x1xf32>
        %629 = vector.shape_cast %628 : vector<1x1x96x1xf32> to vector<96x1xf32>
        %630 = vector.broadcast %629 : vector<96x1xf32> to vector<96x16xf32>
        %631 = arith.mulf %626, %630 : vector<96x16xf32>
        %632 = arith.truncf %631 : vector<96x16xf32> to vector<96x16xbf16>
        %c0_641 = arith.constant 0 : index
        %633 = arith.index_cast %arg8 : i32 to index
        %c192_642 = arith.constant 192 : index
        %c0_643 = arith.constant 0 : index
        %634 = vector.load %arg7[%c0_641, %633, %c192_642, %c0_643] : memref<1x25x288x16xbf16, #tpu.memory_space<vmem>>, vector<1x1x96x16xbf16>
        %635 = vector.shape_cast %634 : vector<1x1x96x16xbf16> to vector<96x16xbf16>
        %636 = vector.shape_cast %632 : vector<96x16xbf16> to vector<1x1x96x16xbf16>
        tpu.vector_store %arg7[%c0_641, %633, %c192_642, %c0_643], %636 {strides = array<i32>} : memref<1x25x288x16xbf16, #tpu.memory_space<vmem>>, vector<1x1x96x16xbf16>,
      }
      %c25_i32_4 = arith.constant 25 : i32
    } else {
    }
    %true = arith.constant true
    %6 = arith.xori %3, %true : i1
    %7 = arith.extui %6 : i1 to i32
    %c0_i32_1 = arith.constant 0 : i32
    %8 = arith.cmpi ne, %7, %c0_i32_1 : i32
    scf.if %8 {
      %cst = arith.constant 0.000000e+00 : bf16
      %9 = vector.broadcast %cst : bf16 to vector<1x25x288x16xbf16>
      %c0 = arith.constant 0 : index
      %c0_2 = arith.constant 0 : index
      %c0_3 = arith.constant 0 : index
      %c0_4 = arith.constant 0 : index
      %10 = vector.load %arg7[%c0, %c0_2, %c0_3, %c0_4] : memref<1x25x288x16xbf16, #tpu.memory_space<vmem>>, vector<1x25x288x16xbf16>
      tpu.vector_store %arg7[%c0, %c0_2, %c0_3, %c0_4], %9 {strides = array<i32>} : memref<1x25x288x16xbf16, #tpu.memory_space<vmem>>, vector<1x25x288x16xbf16>,
    } else {
    }
    return
  }
  func.func @transform_0(%arg0: i32, %arg1: i32, %arg2: memref<2x1xi32, #tpu.memory_space<smem>>) -> (i32, i32, i32, i32, i32) {
    %c0_i32 = arith.constant 0 : i32
    %c0_i32_0 = arith.constant 0 : i32
    %c0_i32_1 = arith.constant 0 : i32
    %c0_i32_2 = arith.constant 0 : i32
    %c0_i32_3 = arith.constant 0 : i32
    return %arg0, %c0_i32, %c0_i32_0, %c0_i32_1, %c0_i32_2 : i32, i32, i32, i32, i32
  }
  func.func @transform_1(%arg0: i32, %arg1: i32, %arg2: memref<2x1xi32, #tpu.memory_space<smem>>) -> (i32, i32, i32) {
    %c0_i32 = arith.constant 0 : i32
    %c0_i32_0 = arith.constant 0 : i32
    %c0_i32_1 = arith.constant 0 : i32
    %c0_i32_2 = arith.constant 0 : i32
    return %c0_i32, %c0_i32_0, %c0_i32_1 : i32, i32, i32
  }
  func.func @transform_2(%arg0: i32, %arg1: i32, %arg2: memref<2x1xi32, #tpu.memory_space<smem>>) -> (i32, i32) {
    %c0_i32 = arith.constant 0 : i32
    %c0_i32_0 = arith.constant 0 : i32
    %c0_i32_1 = arith.constant 0 : i32
    return %c0_i32, %c0_i32_0 : i32, i32
  }
  func.func @transform_3(%arg0: i32, %arg1: i32, %arg2: memref<2x1xi32, #tpu.memory_space<smem>>) -> (i32, i32, i32, i32) {
    %c0_i32 = arith.constant 0 : i32
    %c0_i32_0 = arith.constant 0 : i32
    %c0_i32_1 = arith.constant 0 : i32
    return %arg0, %arg1, %c0_i32, %c0_i32_0 : i32, i32, i32, i32
  }
  func.func @transform_4(%arg0: i32, %arg1: i32, %arg2: memref<2x1xi32, #tpu.memory_space<smem>>) -> (i32, i32, i32, i32) {
    %c0_i32 = arith.constant 0 : i32
    %c0_i32_0 = arith.constant 0 : i32
    %c0_i32_1 = arith.constant 0 : i32
    return %arg0, %arg1, %c0_i32, %c0_i32_0 : i32, i32, i32, i32
  }
}

</mosaic_0001>

<bundles_post_ra>
// kernel: tpu_custom_call.1
= control target key start
LH: loop header
LB: loop body
LE: loop exit
PB: predicated region body
PF: predicated region fallthrough
CT: control target
= control target key end

     0   :  { %s25588_s0 = inlined_call_operand.vmem [shape: s32[2,1], index: 0, kind: input, shape index: {}]   ;;  %s25589_s1 = inlined_call_operand.vmem [shape: bf16[2,1,27,326,16], index: 1, kind: input, shape index: {}]   ;;  %s25590_s2 = inlined_call_operand.vmem [shape: bf16[27,16,16], index: 2, kind: input, shape index: {}]   ;;  %s25591_s3 = inlined_call_operand.vmem [shape: f32[1,16], index: 3, kind: input, shape index: {}]   ;;  %s25592_s4 = inlined_call_operand.vmem [shape: f32[2,25,288,1], index: 4, kind: input, shape index: {}]   ;;  %s25593_s5 = inlined_call_operand.vmem [shape: bf16[2,25,288,16], index: 5, kind: output, shape index: {}]  }
   0x1   :  { %s10_s20 = sshll.u32 %s25588_s0, 4  ;;  %s11_s20 = int_to_ptr.vmem [resolvable:$true] %s10_s20 }
   0x2   :  { %s19733_s21 = scalar_lea.vmem %s11_s20, 32  ;;  %p19738_p1 = scmp.lt.s32.totalorder %s11_s20, %s11_s20 }
   0x3   :  { %p19734_p0 = scmp.ne.s32.totalorder %s11_s20, %s19733_s21  ;;  %p19739_p2 = scmp.lt.s32.totalorder %s19733_s21, %s19733_s21 }
   0x5   :  { %p19740_p3 = por %p19739_p2, %p19738_p1 }
   0x7   :  { %p19741_p4 = pnand %p19740_p3, %p19734_p0 }
   0x9   :  { %19744 = shalt.err (!%p19741_p4)  }
   0xa   :  { %s19779_s22 = smov [#allocation3]  }
   0xb   :  { %13 = dma.vmem_to_smem %s11_s20, 32, %s19779_s22, [#allocation2] }
   0xc   :  { %19761 = dma.done.wait [#allocation2], 32 }
   0xd   :  { %19762 = vsyncadd [#allocation2], 4294967264 }
   0xe   :  { %15 = sfence }
   0xf   :  { %s19815_s23 = smov 0   ;;  %s19817_s24 = smov 0  }
  0x10   :  { %s19819_s25 = smov 0  }
  0x11 LB: > { %s33_s0 = sadd.s32 1, %s19769_s24  ;;  %p15283_p5 = scmp.ge.s32.totalorder %s19773_s25, 1  ;;  %s19773_s25 = sphi %s19819_s25, %s21_s25   ;;  %s19769_s24 = sphi %s19817_s24, %s25595_s24   ;;  %s19765_s23 = sphi %s19815_s23, %s25594_s23  }
  0x12   : > { %p35_p6 = scmp.ge.s32.totalorder %s33_s0, 2  ;;  %p201_p7 = scmp.lt.s32.totalorder %s19773_s25, 3 }
  0x14   : > { %s25597_s0 = smov (%p35_p6, %s33_s0), 0  ;;  %p202_p8 = pnand %p15283_p5, %p201_p7 }
  0x15   : > { %p242_p9 = scmp.lt.s32.totalorder (!%p202_p8), %s19765_s23, 1  ;;  %s15287_s26 = sshll.u32 (!%p202_p8), %s19765_s23, 7 }
  0x16   : > { %205 = sbr.rel (%p202_p8) target bundleno = 1699 (0x6a3), region = 36  ;;  %s19833_s27 = sld [smem:[#allocation3 + %s15287_s26]] (!%p202_p8) }
  0x1c   : > { %p15288_p10 = scmp.le.s32.totalorder (!%p202_p8), %s19833_s27, 0 }
  0x1d   : > { %s25599_s23 = smov (!%p242_p9, %s19765_s23), 1  ;;  %v19854_v0 = vld [vmem:[%s25591_s3] ss:$0 sm:$0xff] (!%p15288_p10)  ;;  %s19856_s17 = smov (!%p15288_p10), 0  }
  0x1e   : > { %s19337_s28 = smul.u32 4428, %s25599_s23 }
  0x1f   : > { %s19338_s29 = smul.u32 7200, %s25599_s23 }
  0x20   : > { %s19838_s7 = scalar_lea.vmem %s25589_s1, %s19337_s28  ;;  %s19339_s8 = smul.u32 3600, %s25599_s23 }
  0x21   : > { %s19843_s11 = scalar_lea.vmem %s25592_s4, %s19338_s29  ;;  %281 = sbr.rel (%p15288_p10) target bundleno = 1247 (0x4df), region = 40 }
  0x22   : > { %s19848_s14 = scalar_lea.vmem %s25593_s5, %s19339_s8 }
  0x28 LB: >> { %v19377_v1 = vld [vmem:[%s25590_s2 + $0x8] sm:$0xff]   ;;  %s16660_s22 = smul.u32 164, %s19777_s17  ;;  %v19381_v3 = vld [vmem:[%s25590_s2] sm:$0xff]   ;;  %vm345_vm0 = vsmask.f32 7424  ;;  %v19877_v4 = vld [vmem:[%s25590_s2 + $0x70] sm:$0xff]   ;;  %s19777_s17 = sphi %s19856_s17, %s288_s17  }
  0x29   : >> { %v19378_v2 = vld [vmem:[%s25590_s2 + $0x68] sm:$0xff]   ;;  %17265 = vmatprep.subr.bf16.mxu1 %v19377_v1  ;;  %vm404_vm1 = vcmask 130048   ;;  %vm927_vm2 = vsmask.f32 6400  ;;  %vm1114_vm3 = vcmask 1045504   ;;  %v19391_v57 = vld [vmem:[%s25590_s2 + $0x78] sm:$0xff]  }
  0x2a   : >> { %17266 = vmatpush3.bf16.msra.mxu1 %v19377_v1  ;;  %17447 = vmatprep.subr.bf16.mxu0 %v19378_v2  ;;  %s19872_s28 = scalar_lea.vmem %s19838_s7, %s16660_s22  ;;  %vm610_vm4 = vcmask 1046528   ;;  %vm1431_vm5 = vsmask.f32 5376  ;;  %vm1618_vm6 = vcmask 1044480   ;;  %s4829_s22 = smul.u32 288, %s19777_s17  ;;  %vm4966_vm7 = vcmask 125952  }
  0x2b   : >> { %17448 = vmatpush3.bf16.msra.mxu0 %v19378_v2  ;;  %17279 = vmatprep.subr.bf16.mxu1 %v19381_v3  ;;  %v294_v5 = vld [vmem:[%s19872_s28] sm:$0xf]  ;;  %v19881_v6 = vld [vmem:[%s19872_s28 + $0x4] sm:$0xf]  ;;  %v19887_v8 = vld [vmem:[%s19872_s28 + $0x8] sm:$0xff]   ;;  %s16673_s19 = smul.u32 144, %s19777_s17 }
  0x2c   : >> { %v19884_v7 = vcombine.low %v294_v5, %v19881_v6  ;;  %v15462_v9 = vld [vmem:[%s19872_s28 + $0xac] sm:$0xe]  ;;  %17461 = vmatprep.subr.bf16.mxu0 %v19877_v4  ;;  %v15463_v10 = vld [vmem:[%s19872_s28 + $0xb0] sm:$0xf]  ;;  %v354_v13 = vshll.u32 %v19887_v8, 16  ;;  %v358_v14 = vshrl.u32 %v19887_v8, 16  ;;  %s20695_s23 = scalar_lea.vmem %s19843_s11, %s4829_s22 }
  0x2d   : >> { %v19897_v15 = vld [vmem:[%s19872_s28 + $0xb4] sm:$0xff]   ;;  %v19902_v17 = vcombine.low %v15462_v9, %v15463_v10  ;;  %v19910_v25 = vld [vmem:[%s19872_s28 + $0xbc] sm:$0xff]   ;;  %v15502_v40 = vld [vmem:[%s19872_s28 + $0xac] sm:$0xc]  ;;  %s21458_s22 = scalar_lea.vmem %s19848_s14, %s16673_s19  ;;  %s288_s17 = sadd.s32 1, %s19777_s17  }
  0x2e   : >> { %v347_v11 = vshrl.u32 %v19884_v7, 16  ;;  %v349_v12 = vshll.u32 %v19884_v7, 16  ;;  %v19900_v16 = vld [vmem:[%s19872_s28 + $0x10] sm:$0xff]   ;;  %v356_v19 = vrot.slane %v354_v13, 1  ;;  %v2465_v20 = vshrl.u32 %v19897_v15, 16  ;;  %v19913_v30 = vld [vmem:[%s19872_s28 + $0x18] sm:$0xff]  }
  0x2f   : >> { %v2468_v21 = vshll.u32 %v19897_v15, 16  ;;  %v2457_v22 = vshrl.u32 %v19902_v17, 16  ;;  %v2460_v23 = vshll.u32 %v19902_v17, 16  ;;  %v362_v24 = vshll.u32 %v19900_v16, 16  ;;  %v19916_v31 = vld [vmem:[%s19872_s28 + $0x20] sm:$0xff]   ;;  %v19930_v49 = vld [vmem:[%s19872_s28 + $0x28] sm:$0xff]  }
  0x30   : >> { %v351_v18 = vrot.slane %v349_v12, 1  ;;  %v360_v27 = vor.u32 %v358_v14, %v356_v19  ;;  %v2467_v28 = vrot.slane %v2465_v20, 1  ;;  %v2474_v35 = vshrl.u32 %v19910_v25, 16  ;;  %v19942_v58 = vld [vmem:[%s19872_s28 + $0x30] ss:$0 sps:$4 sm:$0x11]  }
  0x31   : >> { %v2470_v29 = vrot.slane %v2468_v21, 2  ;;  %v2459_v32 = vrot.slane %v2457_v22, 1  ;;  %v2462_v33 = vrot.slane %v2460_v23, 2  ;;  %v364_v34 = vrot.slane %v362_v24, 1  ;;  %v19393_v13 = vld [vmem:[%s19872_s28 + $0xc4] sm:$0xff]   ;;  %v19394_v21 = vld [vmem:[%s19872_s28 + $0xcc] sm:$0xff]  }
  0x32   : >> { %v352_v26 = vor.u32 %v351_v18, %v347_v11  ;;  %v2477_v38 = vshll.u32 %v19910_v25, 16  ;;  %v366_v39 = vshrl.u32 %v19900_v16, 16  ;;  %v2476_v43 = vrot.slane %v2474_v35, 1  ;;  %v19395_v11 = vld [vmem:[%s25590_s2 + $0x10] sm:$0xff]   ;;  %v19401_v24 = vld [vmem:[%s25590_s2 + $0x80] sm:$0xff]   ;;  %v19405_v35 = vld [vmem:[%s25590_s2 + $0x18] sm:$0xff]  }
  0x33   : >> { %v2471_v37 = vor.u32 %v2470_v29, %v2467_v28  ;;  %v2463_v41 = vor.u32 %v2462_v33, %v2459_v32  ;;  %v365_v42 = vsel %vm345_vm0, %v360_v27, %v364_v34  ;;  %v370_v44 = vshll.u32 %v19913_v30, 16  ;;  %v19396_v22 = vld [vmem:[%s19872_s28 + $0xd4] sm:$0xff]   ;;  %v19397_v32 = vld [vmem:[%s19872_s28 + $0xdc] ss:$0 sps:$4 sm:$0x33]   ;;  %p285_p11 = scmp.ge.s32.totalorder %s288_s17, 25  }
  0x34   : >> { %v357_v36 = vsel %vm345_vm0, %v352_v26, %v356_v19  ;;  %v2479_v45 = vrot.slane %v2477_v38, 2  ;;  %v368_v46 = vor.u32 %v366_v39, %v364_v34  ;;  %v374_v47 = vshrl.u32 %v19913_v30, 16  ;;  %v15513_v27 = vld [vmem:[%s19872_s28 + $0xb4] sm:$0xc]  ;;  %v19979_v28 = vld [vmem:[%s19872_s28 + $0xb8] sm:$0xf] }
  0x35   : >> { %17267 = vmatprep.mubr.msk.bf16.mxu1 %vm404_vm1, %v357_v36  ;;  %v378_v48 = vshll.u32 %v19916_v31, 16  ;;  %v2472_v50 = vsel %vm927_vm2, %v2463_v41, %v2471_v37  ;;  %v372_v51 = vrot.slane %v370_v44, 1  ;;  %v15505_v52 = vcombine.low %v15502_v40, %v15463_v10  ;;  %v19985_v34 = vld [vmem:[%s19872_s28 + $0xbc] sm:$0xff]   ;;  %v20001_v41 = vld [vmem:[%s19872_s28 + $0xc4] sm:$0xff]   ;;  %v20006_v44 = vld [vmem:[%s19872_s28 + $0xcc] sm:$0xff]  }
  0x36   : >> { %17268 = vmatmul.mubr.msk.bf16.vlgmr.msra.gmra.mrb[0].mxu1 %vm404_vm1, %v365_v42  ;;  %v2643_v53 = vrot.slane %v19897_v15, 2  ;;  %17449 = vmatprep.mubr.msk.bf16.mxu0 %vm404_vm1, %v2472_v50  ;;  %v19935_v54 = vor.u32 %v2479_v45, %v2476_v43  ;;  %v382_v56 = vshrl.u32 %v19916_v31, 16  ;;  %v386_v62 = vshll.u32 %v19930_v49, 16  ;;  %v603_v39 = vld [vmem:[%s19872_s28] sm:$0xe] }
  0x37   : >> { %17280 = vmatpush3.bf16.msra.mxu1 %v19381_v3  ;;  %v380_v55 = vrot.slane %v378_v48, 1  ;;  %v373_v59 = vsel %vm345_vm0, %v368_v46, %v372_v51  ;;  %v376_v60 = vor.u32 %v374_v47, %v372_v51  ;;  %v2642_v61 = vrot.slane %v15505_v52, 2  ;;  %v20018_v48 = vld [vmem:[%s19872_s28 + $0xd4] sm:$0xff]  }
  0x38   : >> { %v2481_v63 = vsel %vm927_vm2, %v2471_v37, %v19935_v54  ;;  %17271 = vmatprep.mubr.msk.bf16.mxu1 %vm404_vm1, %v373_v59  ;;  %v390_v2 = vshrl.u32 %v19930_v49, 16  ;;  %v388_v9 = vrot.slane %v386_v62, 1  ;;  %v394_v10 = vshll.u32 %v19942_v58, 16  ;;  %17293 = vmatprep.subr.bf16.mxu1 %v19395_v11 }
  0x39   : >> { %v384_v1 = vor.u32 %v382_v56, %v380_v55  ;;  %17450 = vmatmul.mubr.msk.bf16.vlgmr.msra.gmra.mrb[0].mxu0 %vm404_vm1, %v2481_v63  ;;  %v381_v3 = vsel %vm345_vm0, %v376_v60, %v380_v55  ;;  %v2644_v5 = vsel %vm1114_vm3, %v2642_v61, %v2643_v53  ;;  %v2647_v18 = vrot.slane %v19393_v13, 2  ;;  %v20029_v55 = vld [vmem:[%s25590_s2 + $0x88] sm:$0xff]  }
  0x3a   : >> { %17462 = vmatpush3.bf16.msra.mxu0 %v19877_v4  ;;  %17463 = vmatprep.mubr.msk.bf16.mxu0 %vm404_vm1, %v2644_v5  ;;  %v392_v14 = vor.u32 %v390_v2, %v388_v9  ;;  %v396_v15 = vrot.slane %v394_v10, 1  ;;  %v2645_v4 = vrot.slane %v19910_v25, 2  ;;  %v2649_v25 = vrot.slane %v19394_v21, 2  ;;  %v19407_v2 = vld [vmem:[%s19872_s28 + $0xe4] ss:$0 sps:$4 sm:$0x33]  }
  0x3b   : >> { %v389_v12 = vsel %vm345_vm0, %v384_v1, %v388_v9  ;;  %17475 = vmatprep.subr.bf16.mxu0 %v19391_v57  ;;  %v2651_v26 = vrot.slane %v19396_v22, 2  ;;  %v15528_v33 = vcombine.low %v15513_v27, %v19979_v28  ;;  %v2653_v36 = vrot.slane %v19397_v32, 2 }
  0x3c   : >> { %v397_v19 = vsel %vm345_vm0, %v392_v14, %v396_v15  ;;  %v2646_v20 = vsel %vm1114_vm3, %v2643_v53, %v2645_v4  ;;  %v2648_v23 = vsel %vm1114_vm3, %v2645_v4, %v2647_v18  ;;  %v2650_v29 = vsel %vm1114_vm3, %v2647_v18, %v2649_v25  ;;  %v20024_v53 = vld [vmem:[%s19872_s28 + $0xdc] sm:$0xff]   ;;  %v20060_v4 = vld [vmem:[%s19872_s28 + $0xc] sm:$0xf] }
  0x3d   : >> { %v2821_v37 = vrot.slane %v15528_v33, 2  ;;  %v2822_v38 = vrot.slane %v19985_v34, 2  ;;  %v2654_v40 = vsel %vm1114_vm3, %v2651_v26, %v2653_v36  ;;  %v15315_v42 = vcombine.low %v603_v39, %v19881_v6 }
  0x3e   : >> { %17272 = vmatmul.mubr.msk.bf16.gmra.mrb[4].mxu1 %vm404_vm1, %v381_v3  ;;  %v2824_v45 = vrot.slane %v20001_v41, 2  ;;  %v612_v6 = vrot.slane %v19887_v8, 1  ;;  %v2826_v47 = vrot.slane %v20006_v44, 2  ;;  %v614_v56 = vrot.slane %v19900_v16, 1 }
  0x3f   : >> { %17275 = vmatprep.mubr.msk.bf16.mxu1 %vm404_vm1, %v389_v12  ;;  %v2823_v43 = vsel %vm1114_vm3, %v2821_v37, %v2822_v38  ;;  %v611_v46 = vrot.slane %v15315_v42, 1  ;;  %v2962_v59 = vshll.u32 %v15528_v33, 16  ;;  %v2830_v60 = vrot.slane %v20024_v53, 2 }
  0x40   : >> { %v2825_v50 = vsel %vm1114_vm3, %v2822_v38, %v2824_v45  ;;  %v2827_v52 = vsel %vm1114_vm3, %v2824_v45, %v2826_v47  ;;  %v616_v61 = vrot.slane %v19913_v30, 1  ;;  %v2967_v62 = vshrl.u32 %v19985_v34, 16 }
  0x41   : >> { %v613_v51 = vsel %vm610_vm4, %v611_v46, %v612_v6  ;;  %v2970_v63 = vshll.u32 %v19985_v34, 16  ;;  %v615_v1 = vsel %vm610_vm4, %v612_v6, %v614_v56  ;;  %v618_v3 = vrot.slane %v19916_v31, 1  ;;  %v20090_v46 = vld [vmem:[%s19872_s28 + $0xe4] ss:$0 sps:$4 sm:$0x77]  }
  0x42   : >> { %v2964_v9 = vrot.slane %v2962_v59, 3  ;;  %v2969_v12 = vrot.slane %v2967_v62, 2  ;;  %v2976_v14 = vshrl.u32 %v20001_v41, 16  ;;  %v2979_v15 = vshll.u32 %v20001_v41, 16 }
  0x43   : >> { %v2972_v13 = vrot.slane %v2970_v63, 3  ;;  %v2832_v18 = vrot.slane %v19407_v2, 2  ;;  %v2985_v22 = vshrl.u32 %v20006_v44, 16  ;;  %v622_v37 = vrot.slane %v19942_v58, 1 }
  0x44   : >> { %v2994_v38 = vshrl.u32 %v20018_v48, 16  ;;  %v2997_v39 = vshll.u32 %v20018_v48, 16  ;;  %v3006_v45 = vshll.u32 %v20024_v53, 16  ;;  %v3012_v63 = vshrl.u32 %v20090_v46, 16 }
  0x45   : >> { %17464 = vmatmul.mubr.msk.bf16.vlgmr.msra.gmra.mrb[0].mxu0 %vm404_vm1, %v2646_v20  ;;  %v2973_v21 = vor.u32 %v2972_v13, %v2969_v12  ;;  %v2833_v32 = vsel %vm1114_vm3, %v2830_v60, %v2832_v18  ;;  %v20132_v18 = vld [vmem:[%s25590_s2 + $0x28] sm:$0xff]  }
  0x46   : >> { %17276 = vmatmul.mubr.msk.bf16.gmra.mrb[8].mxu1 %vm404_vm1, %v397_v19  ;;  %17476 = vmatpush3.bf16.msra.mxu0 %v19391_v57  ;;  %v2959_v57 = vshrl.u32 %v15528_v33, 16  ;;  %v620_v19 = vrot.slane %v19930_v49, 1  ;;  %v3014_v12 = vrot.slane %v3012_v63, 2 }
  0x47   : >> { %17281 = vmatprep.mubr.msk.bf16.mxu1 %vm404_vm1, %v19884_v7  ;;  %17467 = vmatprep.mubr.msk.bf16.mxu0 %vm404_vm1, %v2648_v23  ;;  %v2652_v7 = vsel %vm1114_vm3, %v2649_v25, %v2651_v26  ;;  %v2988_v23 = vshll.u32 %v20006_v44, 16  ;;  %v2981_v25 = vrot.slane %v2979_v15, 3  ;;  %v619_v26 = vsel %vm610_vm4, %v616_v61, %v618_v3 }
  0x48   : >> { %17489 = vmatprep.subr.bf16.mxu0 %v19401_v24  ;;  %v2961_v5 = vrot.slane %v2959_v57, 2  ;;  %v20099_v57 = vld [vmem:[%s19872_s28 + $0x20] sm:$0xff]  }
  0x4a   : >> { %v2965_v20 = vor.u32 %v2964_v9, %v2961_v5  ;;  %v20117_v5 = vld [vmem:[%s19872_s28 + $0x28] sm:$0xff]   ;;  %v15553_v9 = vld [vmem:[%s19872_s28 + $0xb4] sm:$0x8] }
  0x4b   : >> { %v964_v63 = vshrl.u32 %v20117_v5, 16 }
  0x4c   : >> { %v2974_v33 = vsel %vm1431_vm5, %v2965_v20, %v2973_v21  ;;  %v797_v20 = vrot.slane %v20117_v5, 1 }
  0x4d   : >> { %17468 = vmatmul.mubr.msk.bf16.gmra.mrb[4].mxu0 %vm404_vm1, %v2650_v29  ;;  %v20073_v29 = vld [vmem:[%s19872_s28 + $0x10] sm:$0xff]  }
  0x4e   : >> { %17282 = vmatmul.mubr.msk.bf16.vlgmr.msra.gmra.mrb[0].mxu1 %vm404_vm1, %v19887_v8  ;;  %17471 = vmatprep.mubr.msk.bf16.mxu0 %vm404_vm1, %v2652_v7  ;;  %v2828_v8 = vrot.slane %v20018_v48, 2  ;;  %v2987_v7 = vrot.slane %v2985_v22, 2  ;;  %v791_v42 = vrot.slane %v20073_v29, 1 }
  0x4f   : >> { %17294 = vmatpush3.bf16.msra.mxu1 %v19395_v11  ;;  %17285 = vmatprep.mubr.msk.bf16.mxu1 %vm404_vm1, %v19900_v16  ;;  %v617_v11 = vsel %vm610_vm4, %v614_v56, %v616_v61  ;;  %v20105_v61 = vld [vmem:[%s25590_s2 + $0x90] sm:$0xff]  }
  0x50   : >> { %17307 = vmatprep.subr.bf16.mxu1 %v19405_v35  ;;  %v2829_v16 = vsel %vm1114_vm3, %v2826_v47, %v2828_v8  ;;  %v2831_v10 = vsel %vm1114_vm3, %v2828_v8, %v2830_v60  ;;  %v623_v47 = vsel %vm610_vm4, %v620_v19, %v622_v37  ;;  %v3008_v60 = vrot.slane %v3006_v45, 3 }
  0x55   : >> { %17472 = vmatmul.mubr.msk.bf16.gmra.mrb[8].mxu0 %vm404_vm1, %v2654_v40 }
  0x56   : >> { %17286 = vmatmul.mubr.msk.bf16.gmra.mrb[4].mxu1 %vm404_vm1, %v19913_v30  ;;  %17477 = vmatprep.mubr.msk.bf16.mxu0 %vm404_vm1, %v2823_v43  ;;  %v20050_v30 = vld [vmem:[%s25590_s2 + $0x20] sm:$0xff]   ;;  %v3003_v43 = vshrl.u32 %v20024_v53, 16 }
  0x57   : >> { %17289 = vmatprep.mubr.msk.bf16.mxu1 %vm404_vm1, %v19916_v31  ;;  %v741_v31 = vld [vmem:[%s19872_s28 + $0x8] sm:$0xe] }
  0x58   : >> { %v20070_v27 = vcombine.low %v741_v31, %v20060_v4  ;;  %v3005_v56 = vrot.slane %v3003_v43, 2  ;;  %v15556_v31 = vcombine.low %v15553_v9, %v19979_v28  ;;  %v3153_v9 = vrot.slane %v20024_v53, 3  ;;  %v19428_v53 = vld [vmem:[%s25590_s2 + $0x30] sm:$0xff]  }
  0x5a   : >> { %v790_v40 = vrot.slane %v20070_v27, 1  ;;  %v929_v28 = vshrl.u32 %v20070_v27, 16  ;;  %v932_v22 = vshll.u32 %v20070_v27, 16 }
  0x5c   : >> { %v792_v8 = vsel %vm610_vm4, %v790_v40, %v791_v42  ;;  %v3147_v40 = vrot.slane %v20001_v41, 3  ;;  %v20168_v41 = vld [vmem:[%s25590_s2 + $0x98] sm:$0xff]  }
  0x5d   : >> { %17478 = vmatmul.mubr.msk.bf16.vlgmr.msra.gmra.mrb[0].mxu0 %vm404_vm1, %v2825_v50  ;;  %v20095_v50 = vld [vmem:[%s19872_s28 + $0x18] sm:$0xff]  }
  0x5e   : >> { %17290 = vmatmul.mubr.msk.bf16.gmra.mrb[8].mxu1 %vm404_vm1, %v19930_v49  ;;  %17490 = vmatpush3.bf16.msra.mxu0 %v19401_v24  ;;  %v2978_v24 = vrot.slane %v2976_v14, 2  ;;  %v621_v49 = vsel %vm610_vm4, %v618_v3, %v620_v19  ;;  %v793_v62 = vrot.slane %v20095_v50, 1  ;;  %v795_v3 = vrot.slane %v20099_v57, 1 }
  0x5f   : >> { %17295 = vmatprep.mubr.msk.bf16.mxu1 %vm404_vm1, %v613_v51  ;;  %17481 = vmatprep.mubr.msk.bf16.mxu0 %vm404_vm1, %v2827_v52  ;;  %v2996_v51 = vrot.slane %v2994_v38, 2  ;;  %v2999_v52 = vrot.slane %v2997_v39, 3  ;;  %v946_v38 = vshrl.u32 %v20095_v50, 16  ;;  %v949_v39 = vshll.u32 %v20095_v50, 16 }
  0x60   : >> { %17503 = vmatprep.subr.bf16.mxu0 %v20029_v55  ;;  %v2982_v36 = vor.u32 %v2981_v25, %v2978_v24  ;;  %v796_v15 = vsel %vm610_vm4, %v793_v62, %v795_v3  ;;  %v940_v24 = vshll.u32 %v20073_v29, 16  ;;  %v3144_v25 = vrot.slane %v15556_v31, 3 }
  0x61   : >> { %v3000_v2 = vor.u32 %v2999_v52, %v2996_v51  ;;  %v948_v51 = vrot.slane %v946_v38, 1  ;;  %v951_v52 = vrot.slane %v949_v39, 2 }
  0x62   : >> { %v2983_v6 = vsel %vm1431_vm5, %v2973_v21, %v2982_v36 }
  0x65   : >> { %17482 = vmatmul.mubr.msk.bf16.gmra.mrb[4].mxu0 %vm404_vm1, %v2829_v16  ;;  %v3009_v16 = vor.u32 %v3008_v60, %v3005_v56 }
  0x66   : >> { %17296 = vmatmul.mubr.msk.bf16.vlgmr.msra.gmra.mrb[0].mxu1 %vm404_vm1, %v615_v1  ;;  %17485 = vmatprep.mubr.msk.bf16.mxu0 %vm404_vm1, %v2831_v10  ;;  %v3015_v1 = vshll.u32 %v20090_v46, 16  ;;  %v20122_v10 = vld [vmem:[%s19872_s28 + $0x30] sm:$0xff]  }
  0x67   : >> { %17308 = vmatpush3.bf16.msra.mxu1 %v19405_v35  ;;  %17299 = vmatprep.mubr.msk.bf16.mxu1 %vm404_vm1, %v617_v11  ;;  %v2990_v35 = vrot.slane %v2988_v23, 3  ;;  %v794_v11 = vsel %vm610_vm4, %v791_v42, %v793_v62  ;;  %v799_v21 = vrot.slane %v20122_v10, 1  ;;  %v937_v23 = vshrl.u32 %v20073_v29, 16 }
  0x68   : >> { %17321 = vmatprep.subr.bf16.mxu1 %v20050_v30  ;;  %v3017_v13 = vrot.slane %v3015_v1, 3  ;;  %v3149_v42 = vrot.slane %v20006_v44, 3  ;;  %v952_v62 = vor.u32 %v951_v52, %v948_v51  ;;  %v967_v1 = vshll.u32 %v20117_v5, 16  ;;  %v19429_v51 = vld [vmem:[%s19872_s28 + $0x168] sm:$0xff]  }
  0x69   : >> { %v2991_v58 = vor.u32 %v2990_v35, %v2987_v7  ;;  %v931_v7 = vrot.slane %v929_v28, 1  ;;  %v934_v35 = vrot.slane %v932_v22, 2  ;;  %v939_v27 = vrot.slane %v937_v23, 1 }
  0x6a   : >> { %v3018_v19 = vor.u32 %v3017_v13, %v3014_v12  ;;  %v3150_v44 = vsel %vm1618_vm6, %v3147_v40, %v3149_v42  ;;  %v966_v13 = vrot.slane %v964_v63, 1  ;;  %v3155_v22 = vrot.slane %v20090_v46, 3 }
  0x6b   : >> { %v2992_v59 = vsel %vm1431_vm5, %v2982_v36, %v2991_v58  ;;  %v3001_v14 = vsel %vm1431_vm5, %v2991_v58, %v3000_v2  ;;  %v942_v36 = vrot.slane %v940_v24, 2  ;;  %v935_v43 = vor.u32 %v934_v35, %v931_v7  ;;  %v1107_v24 = vld [vmem:[%s19872_s28 + $0x8] sm:$0xc] }
  0x6c   : >> { %v955_v58 = vshrl.u32 %v20099_v57, 16  ;;  %v15351_v46 = vcombine.low %v1107_v24, %v20060_v4  ;;  %v1116_v35 = vrot.slane %v20073_v29, 2  ;;  %v20228_v29 = vld [vmem:[%s19872_s28 + $0x150] sm:$0xff]  }
  0x6d   : >> { %17486 = vmatmul.mubr.msk.bf16.gmra.mrb[8].mxu0 %vm404_vm1, %v2833_v32  ;;  %v3019_v32 = vsel %vm1431_vm5, %v3009_v16, %v3018_v19  ;;  %v943_v45 = vor.u32 %v942_v36, %v939_v27  ;;  %v15591_v27 = vld [vmem:[%s19872_s28 + $0x148] sm:$0xf]  ;;  %v20214_v36 = vld [vmem:[%s19872_s28 + $0x14c] sm:$0xf] }
  0x6e   : >> { %17300 = vmatmul.mubr.msk.bf16.gmra.mrb[4].mxu1 %vm404_vm1, %v619_v26  ;;  %17491 = vmatprep.mubr.msk.bf16.mxu0 %vm404_vm1, %v2974_v33  ;;  %v19419_v26 = vld [vmem:[%s19872_s28 + $0x38] ss:$0 sps:$4 sm:$0x11]   ;;  %v800_v33 = vsel %vm610_vm4, %v797_v20, %v799_v21  ;;  %v1115_v7 = vrot.slane %v15351_v46, 2  ;;  %v15606_v39 = vcombine.low %v15591_v27, %v20214_v36  ;;  %v20310_v46 = vld [vmem:[%s25590_s2 + $0xa8] sm:$0xff]  }
  0x6f   : >> { %17303 = vmatprep.mubr.msk.bf16.mxu1 %vm404_vm1, %v621_v49  ;;  %v798_v49 = vsel %vm610_vm4, %v795_v3, %v797_v20  ;;  %v944_v56 = vsel %vm927_vm2, %v935_v43, %v943_v45  ;;  %v976_v3 = vshll.u32 %v20122_v10, 16  ;;  %v953_v12 = vsel %vm927_vm2, %v943_v45, %v952_v62 }
  0x70   : >> { %v1117_v38 = vsel %vm1114_vm3, %v1115_v7, %v1116_v35  ;;  %v1120_v43 = vrot.slane %v20099_v57, 2  ;;  %v3492_v45 = vshll.u32 %v15606_v39, 16  ;;  %v3490_v52 = vshrl.u32 %v15606_v39, 16  ;;  %v15620_v39 = vld [vmem:[%s19872_s28 + $0x148] sm:$0xe] }
  0x75   : >> { %17492 = vmatmul.mubr.msk.bf16.vlgmr.msra.gmra.mrb[0].mxu0 %vm404_vm1, %v2983_v6  ;;  %v958_v6 = vshll.u32 %v20099_v57, 16  ;;  %v20245_v57 = vld [vmem:[%s25590_s2 + $0x38] sm:$0xff]  }
  0x76   : >> { %17304 = vmatmul.mubr.msk.bf16.gmra.mrb[8].mxu1 %vm404_vm1, %v623_v47  ;;  %17504 = vmatpush3.bf16.msra.mxu0 %v20029_v55  ;;  %v3010_v55 = vsel %vm1431_vm5, %v3000_v2, %v3009_v16  ;;  %v3151_v2 = vrot.slane %v20018_v48, 3  ;;  %v973_v16 = vshrl.u32 %v20122_v10, 16  ;;  %v978_v48 = vrot.slane %v976_v3, 2 }
  0x77   : >> { %17309 = vmatprep.mubr.msk.bf16.mxu1 %vm404_vm1, %v792_v8  ;;  %17495 = vmatprep.mubr.msk.bf16.mxu0 %vm404_vm1, %v2992_v59  ;;  %v957_v59 = vrot.slane %v955_v58, 1  ;;  %v960_v60 = vrot.slane %v958_v6, 2  ;;  %v19426_v58 = vld [vmem:[%s19872_s28 + $0x160] sm:$0xff]   ;;  %v3497_v6 = vshll.u32 %v20228_v29, 16 }
  0x78   : >> { %17517 = vmatprep.subr.bf16.mxu0 %v20105_v61  ;;  %v3154_v31 = vsel %vm1618_vm6, %v3151_v2, %v3153_v9 }
  0x7d   : >> { %17496 = vmatmul.mubr.msk.bf16.gmra.mrb[4].mxu0 %vm404_vm1, %v3001_v14  ;;  %v969_v14 = vrot.slane %v967_v1, 2  ;;  %v20261_v1 = vld [vmem:[%s19872_s28 + $0x14] sm:$0xf] }
  0x7e   : >> { %17310 = vmatmul.mubr.msk.bf16.vlgmr.msra.gmra.mrb[0].mxu1 %vm404_vm1, %v794_v11  ;;  %17499 = vmatprep.mubr.msk.bf16.mxu0 %vm404_vm1, %v3010_v55  ;;  %v961_v11 = vor.u32 %v960_v60, %v957_v59  ;;  %v20185_v55 = vld [vmem:[%s19872_s28 + $0x38] ss:$0 sps:$4 sm:$0x33]   ;;  %v3499_v59 = vrot.slane %v3497_v6, 1  ;;  %v1124_v60 = vrot.slane %v20122_v10, 2 }
  0x7f   : >> { %17322 = vmatpush3.bf16.msra.mxu1 %v20050_v30  ;;  %17313 = vmatprep.mubr.msk.bf16.mxu1 %vm404_vm1, %v796_v15  ;;  %v3145_v30 = vrot.slane %v19985_v34, 3  ;;  %v801_v34 = vrot.slane %v19419_v26, 1  ;;  %v975_v15 = vrot.slane %v973_v16, 1  ;;  %v970_v20 = vor.u32 %v969_v14, %v966_v13  ;;  %v20277_v13 = vld [vmem:[%s19872_s28 + $0x18] sm:$0xff]  }
  0x80   : >> { %17335 = vmatprep.subr.bf16.mxu1 %v20132_v18  ;;  %v962_v19 = vsel %vm927_vm2, %v952_v62, %v961_v11  ;;  %v985_v28 = vshll.u32 %v20185_v55, 16  ;;  %v1245_v62 = vld [vmem:[%s19872_s28 + $0x10] sm:$0xc]  ;;  %v20330_v6 = vld [vmem:[%s19872_s28 + $0x38] sm:$0xff]  }
  0x81   : >> { %v3146_v37 = vsel %vm1618_vm6, %v3144_v25, %v3145_v30  ;;  %v802_v47 = vsel %vm610_vm4, %v799_v21, %v801_v34  ;;  %v3148_v8 = vsel %vm1618_vm6, %v3145_v30, %v3147_v40  ;;  %v982_v21 = vshrl.u32 %v20185_v55, 16  ;;  %v19421_v25 = vld [vmem:[%s19872_s28 + $0x148] sm:$0xff]   ;;  %v19425_v34 = vld [vmem:[%s19872_s28 + $0x158] sm:$0xff]   ;;  %v20224_v40 = vld [vmem:[%s25590_s2 + $0xa0] sm:$0xff]  }
  0x82   : >> { %v979_v23 = vor.u32 %v978_v48, %v975_v15  ;;  %v987_v26 = vrot.slane %v985_v28, 2  ;;  %v1126_v48 = vrot.slane %v20185_v55, 2  ;;  %v1295_v28 = vrot.slane %v20277_v13, 2  ;;  %v20294_v55 = vld [vmem:[%s19872_s28 + $0x20] sm:$0xff]  }
  0x83   : >> { %v984_v30 = vrot.slane %v982_v21, 1 }
  0x85   : >> { %17500 = vmatmul.mubr.msk.bf16.gmra.mrb[8].mxu0 %vm404_vm1, %v3019_v32  ;;  %v3156_v32 = vsel %vm1618_vm6, %v3153_v9, %v3155_v22  ;;  %v3501_v9 = vshrl.u32 %v20228_v29, 16  ;;  %v20291_v22 = vld [vmem:[%s19872_s28 + $0x170] sm:$0xff]  }
  0x86   : >> { %17314 = vmatmul.mubr.msk.bf16.gmra.mrb[4].mxu1 %vm404_vm1, %v798_v49  ;;  %17505 = vmatprep.mubr.msk.bf16.mxu0 %vm404_vm1, %v3146_v37  ;;  %v980_v49 = vsel %vm927_vm2, %v970_v20, %v979_v23  ;;  %v19422_v37 = vld [vmem:[%s19872_s28 + $0x150] sm:$0xff]   ;;  %v3533_v27 = vshrl.u32 %v20291_v22, 16 }
  0x87   : >> { %17317 = vmatprep.mubr.msk.bf16.mxu1 %vm404_vm1, %v800_v33  ;;  %v988_v33 = vor.u32 %v987_v26, %v984_v30  ;;  %v1127_v30 = vsel %vm1114_vm3, %v1124_v60, %v1126_v48 }
  0x89   : >> { %v989_v4 = vsel %vm927_vm2, %v979_v23, %v988_v33 }
  0x8d   : >> { %17506 = vmatmul.mubr.msk.bf16.vlgmr.msra.gmra.mrb[0].mxu0 %vm404_vm1, %v3148_v8  ;;  %v3494_v8 = vrot.slane %v3492_v45, 1 }
  0x8e   : >> { %17318 = vmatmul.mubr.msk.bf16.gmra.mrb[8].mxu1 %vm404_vm1, %v802_v47  ;;  %17518 = vmatpush3.bf16.msra.mxu0 %v20105_v61  ;;  %v3152_v61 = vsel %vm1618_vm6, %v3149_v42, %v3151_v2  ;;  %v1118_v42 = vrot.slane %v20095_v50, 2  ;;  %v19430_v2 = vld [vmem:[%s19872_s28 + $0x170] sm:$0xff]  }
  0x8f   : >> { %17323 = vmatprep.mubr.msk.bf16.mxu1 %vm404_vm1, %v944_v56  ;;  %17509 = vmatprep.mubr.msk.bf16.mxu0 %vm404_vm1, %v3150_v44  ;;  %v20249_v56 = vld [vmem:[%s19872_s28 + $0x158] sm:$0xff]   ;;  %v1122_v44 = vrot.slane %v20117_v5, 2  ;;  %v3495_v63 = vor.u32 %v3494_v8, %v3490_v52  ;;  %v20338_v52 = vld [vmem:[%s25590_s2 + $0x40] sm:$0xff]   ;;  %v15623_v8 = vcombine.low %v15620_v39, %v20214_v36  ;;  %v15631_v39 = vld [vmem:[%s19872_s28 + $0x150] sm:$0xe] }
  0x90   : >> { %17531 = vmatprep.subr.bf16.mxu0 %v20168_v41  ;;  %v1119_v47 = vsel %vm1114_vm3, %v1116_v35, %v1118_v42  ;;  %v1121_v50 = vsel %vm1114_vm3, %v1118_v42, %v1120_v43  ;;  %v3505_v16 = vshll.u32 %v20249_v56, 16  ;;  %v1297_v35 = vrot.slane %v20294_v55, 2 }
  0x91   : >> { %v1123_v5 = vsel %vm1114_vm3, %v1120_v43, %v1122_v44  ;;  %v1125_v10 = vsel %vm1114_vm3, %v1122_v44, %v1124_v60  ;;  %v3500_v14 = vsel %vm345_vm0, %v3495_v63, %v3499_v59  ;;  %v20324_v43 = vld [vmem:[%s19872_s28 + $0x30] sm:$0xff]   ;;  %v3665_v36 = vrot.slane %v15623_v8, 1 }
  0x92   : >> { %v3507_v15 = vrot.slane %v3505_v16, 1  ;;  %v1301_v63 = vrot.slane %v20324_v43, 2  ;;  %v1303_v16 = vrot.slane %v20330_v6, 2 }
  0x95   : >> { %17510 = vmatmul.mubr.msk.bf16.gmra.mrb[4].mxu0 %vm404_vm1, %v3152_v61  ;;  %v3509_v61 = vshrl.u32 %v20249_v56, 16 }
  0x96   : >> { %17324 = vmatmul.mubr.msk.bf16.vlgmr.msra.gmra.mrb[0].mxu1 %vm404_vm1, %v953_v12  ;;  %17513 = vmatprep.mubr.msk.bf16.mxu0 %vm404_vm1, %v3154_v31  ;;  %v20274_v12 = vcombine.low %v1245_v62, %v20261_v1 }
  0x97   : >> { %17336 = vmatpush3.bf16.msra.mxu1 %v20132_v18  ;;  %17327 = vmatprep.mubr.msk.bf16.mxu1 %vm404_vm1, %v962_v19  ;;  %v971_v18 = vsel %vm927_vm2, %v961_v11, %v970_v20  ;;  %v20271_v11 = vld [vmem:[%s19872_s28 + $0x168] sm:$0xff]   ;;  %v3511_v23 = vor.u32 %v3509_v61, %v3507_v15 }
  0x98   : >> { %17349 = vmatprep.subr.bf16.mxu1 %v19428_v53  ;;  %v3521_v20 = vshll.u32 %v20271_v11, 16  ;;  %v1294_v21 = vrot.slane %v20274_v12, 2  ;;  %v3525_v24 = vshrl.u32 %v20271_v11, 16  ;;  %v1433_v45 = vshrl.u32 %v20274_v12, 16 }
  0x9a   : >> { %v3523_v7 = vrot.slane %v3521_v20, 1 }
  0x9c   : >> { %v3527_v42 = vor.u32 %v3525_v24, %v3523_v7 }
  0x9d   : >> { %17514 = vmatmul.mubr.msk.bf16.gmra.mrb[8].mxu0 %vm404_vm1, %v3156_v32  ;;  %v1296_v32 = vsel %vm1114_vm3, %v1294_v21, %v1295_v28 }
  0x9e   : >> { %17328 = vmatmul.mubr.msk.bf16.gmra.mrb[4].mxu1 %vm404_vm1, %v971_v18  ;;  %17519 = vmatprep.mubr.msk.bf16.mxu0 %vm404_vm1, %v19421_v25  ;;  %v20298_v25 = vld [vmem:[%s19872_s28 + $0x178] ss:$0 sps:$4 sm:$0x11]   ;;  %v20301_v18 = vld [vmem:[%s19872_s28 + $0x28] sm:$0xff]  }
  0x9f   : >> { %17331 = vmatprep.mubr.msk.bf16.mxu1 %vm404_vm1, %v980_v49  ;;  %v3529_v49 = vshll.u32 %v20291_v22, 16  ;;  %v1462_v61 = vshll.u32 %v20301_v18, 16 }
  0xa5   : >> { %17520 = vmatmul.mubr.msk.bf16.vlgmr.msra.gmra.mrb[0].mxu0 %vm404_vm1, %v19422_v37  ;;  %v1299_v37 = vrot.slane %v20301_v18, 2 }
  0xa6   : >> { %17332 = vmatmul.mubr.msk.bf16.gmra.mrb[8].mxu1 %vm404_vm1, %v989_v4  ;;  %17532 = vmatpush3.bf16.msra.mxu0 %v20168_v41  ;;  %v20252_v41 = vld [vmem:[%s19872_s28 + $0x160] sm:$0xff]  }
  0xa7   : >> { %17337 = vmatprep.mubr.msk.bf16.mxu1 %vm404_vm1, %v1117_v38  ;;  %17523 = vmatprep.mubr.msk.bf16.mxu0 %vm404_vm1, %v19425_v34  ;;  %v3513_v3 = vshll.u32 %v20252_v41, 16  ;;  %v3517_v19 = vshrl.u32 %v20252_v41, 16  ;;  %v3531_v34 = vrot.slane %v3529_v49, 1  ;;  %v3537_v38 = vshll.u32 %v20298_v25, 16 }
  0xa8   : >> { %17545 = vmatprep.subr.bf16.mxu0 %v20224_v40  ;;  %v3670_v21 = vrot.slane %v20252_v41, 1  ;;  %v1464_v49 = vrot.slane %v1462_v61, 3 }
  0xa9   : >> { %v3515_v31 = vrot.slane %v3513_v3, 1  ;;  %v3532_v44 = vsel %vm345_vm0, %v3527_v42, %v3531_v34  ;;  %v3535_v60 = vor.u32 %v3533_v27, %v3531_v34  ;;  %v3539_v62 = vrot.slane %v3537_v38, 1  ;;  %v20379_v27 = vld [vmem:[%s19872_s28 + $0x40] ss:$0 sps:$4 sm:$0x77]  }
  0xaa   : >> { %v1435_v3 = vrot.slane %v1433_v45, 2  ;;  %v1480_v34 = vshll.u32 %v20330_v6, 16  ;;  %v3672_v42 = vrot.slane %v20271_v11, 1  ;;  %v3674_v45 = vrot.slane %v20291_v22, 1  ;;  %v20406_v22 = vld [vmem:[%s25590_s2 + $0x48] sm:$0xff]  }
  0xab   : >> { %v3516_v33 = vsel %vm345_vm0, %v3511_v23, %v3515_v31  ;;  %v3519_v4 = vor.u32 %v3517_v19, %v3515_v31  ;;  %v3540_v48 = vsel %vm345_vm0, %v3535_v60, %v3539_v62  ;;  %v1304_v31 = vsel %vm1114_vm3, %v1301_v63, %v1303_v16 }
  0xac   : >> { %v3673_v62 = vsel %vm610_vm4, %v3670_v21, %v3672_v42 }
  0xad   : >> { %17524 = vmatmul.mubr.msk.bf16.gmra.mrb[4].mxu0 %vm404_vm1, %v19426_v58  ;;  %v1436_v58 = vshll.u32 %v20274_v12, 16 }
  0xae   : >> { %17338 = vmatmul.mubr.msk.bf16.vlgmr.msra.gmra.mrb[0].mxu1 %vm404_vm1, %v1119_v47  ;;  %17527 = vmatprep.mubr.msk.bf16.mxu0 %vm404_vm1, %v19429_v51  ;;  %v1444_v47 = vshll.u32 %v20277_v13, 16  ;;  %v1298_v51 = vsel %vm1114_vm3, %v1295_v28, %v1297_v35 }
  0xaf   : >> { %17350 = vmatpush3.bf16.msra.mxu1 %v19428_v53  ;;  %17341 = vmatprep.mubr.msk.bf16.mxu1 %vm404_vm1, %v1121_v50  ;;  %v3503_v53 = vor.u32 %v3501_v9, %v3499_v59  ;;  %v3524_v50 = vsel %vm345_vm0, %v3519_v4, %v3523_v7  ;;  %v1300_v59 = vsel %vm1114_vm3, %v1297_v35, %v1299_v37  ;;  %v19448_v9 = vld [vmem:[%s19872_s28 + $0x40] ss:$0 sps:$4 sm:$0x33]   ;;  %v20374_v7 = vld [vmem:[%s25590_s2 + $0xb0] sm:$0xff]   ;;  %v1477_v4 = vshrl.u32 %v20330_v6, 16 }
  0xb0   : >> { %17363 = vmatprep.subr.bf16.mxu1 %v20245_v57  ;;  %v1305_v20 = vrot.slane %v19448_v9, 2 }
  0xb1   : >> { %v3508_v26 = vsel %vm345_vm0, %v3503_v53, %v3507_v15  ;;  %v1302_v15 = vsel %vm1114_vm3, %v1299_v37, %v1301_v63  ;;  %v3668_v53 = vrot.slane %v20249_v56, 1  ;;  %v1479_v8 = vrot.slane %v1477_v4, 2  ;;  %v19460_v4 = vld [vmem:[%s19872_s28 + $0x180] ss:$0 sps:$4 sm:$0x11]  }
  0xb2   : >> { %v1306_v56 = vsel %vm1114_vm3, %v1303_v16, %v1305_v20  ;;  %v3675_v63 = vsel %vm610_vm4, %v3672_v42, %v3674_v45 }
  0xb3   : >> { %v3671_v37 = vsel %vm610_vm4, %v3668_v53, %v3670_v21 }
  0xb5   : >> { %17528 = vmatmul.mubr.msk.bf16.gmra.mrb[8].mxu0 %vm404_vm1, %v19430_v2  ;;  %v3666_v2 = vrot.slane %v20228_v29, 1  ;;  %v1459_v29 = vshrl.u32 %v20301_v18, 16 }
  0xb6   : >> { %17342 = vmatmul.mubr.msk.bf16.gmra.mrb[4].mxu1 %vm404_vm1, %v1123_v5  ;;  %17533 = vmatprep.mubr.msk.bf16.mxu0 %vm404_vm1, %v3500_v14  ;;  %v1450_v5 = vshrl.u32 %v20294_v55, 16  ;;  %v1453_v14 = vshll.u32 %v20294_v55, 16 }
  0xb7   : >> { %17345 = vmatprep.mubr.msk.bf16.mxu1 %vm404_vm1, %v1125_v10  ;;  %v1438_v10 = vrot.slane %v1436_v58, 3  ;;  %v3667_v19 = vsel %vm610_vm4, %v3665_v36, %v3666_v2  ;;  %v3669_v41 = vsel %vm610_vm4, %v3666_v2, %v3668_v53  ;;  %v20393_v58 = vld [vmem:[%s19872_s28 + $0x154] sm:$0xf]  ;;  %v3676_v36 = vrot.slane %v20298_v25, 1 }
  0xb8   : >> { %v1452_v24 = vrot.slane %v1450_v5, 2  ;;  %v15646_v11 = vcombine.low %v15631_v39, %v20393_v58  ;;  %v20436_v53 = vld [vmem:[%s19872_s28 + $0x170] sm:$0xff]  }
  0xb9   : >> { %v1439_v28 = vor.u32 %v1438_v10, %v1435_v3  ;;  %v1611_v10 = vld [vmem:[%s19872_s28 + $0x10] sm:$0x8] }
  0xba   : >> { %v3844_v3 = vrot.slane %v15646_v11, 1 }
  0xbd   : >> { %17534 = vmatmul.mubr.msk.bf16.vlgmr.msra.gmra.mrb[0].mxu0 %vm404_vm1, %v3508_v26  ;;  %v1461_v26 = vrot.slane %v1459_v29, 2  ;;  %v3677_v29 = vsel %vm610_vm4, %v3674_v45, %v3676_v36 }
  0xbe   : >> { %17346 = vmatmul.mubr.msk.bf16.gmra.mrb[8].mxu1 %vm404_vm1, %v1127_v30  ;;  %17546 = vmatpush3.bf16.msra.mxu0 %v20224_v40  ;;  %v1441_v40 = vshrl.u32 %v20277_v13, 16  ;;  %v1455_v30 = vrot.slane %v1453_v14, 3 }
  0xbf   : >> { %17351 = vmatprep.mubr.msk.bf16.mxu1 %vm404_vm1, %v1296_v32  ;;  %17537 = vmatprep.mubr.msk.bf16.mxu0 %vm404_vm1, %v3516_v33  ;;  %v1468_v32 = vshrl.u32 %v20324_v43, 16  ;;  %v1471_v33 = vshll.u32 %v20324_v43, 16 }
  0xc0   : >> { %17559 = vmatprep.subr.bf16.mxu0 %v20310_v46  ;;  %v1443_v12 = vrot.slane %v1441_v40, 2  ;;  %v1456_v38 = vor.u32 %v1455_v30, %v1452_v24  ;;  %v1465_v40 = vor.u32 %v1464_v49, %v1461_v26  ;;  %v20450_v26 = vld [vmem:[%s25590_s2 + $0xb8] sm:$0xff]   ;;  %v3851_v49 = vrot.slane %v20436_v53, 1 }
  0xc2   : >> { %v1466_v2 = vsel %vm1431_vm5, %v1456_v38, %v1465_v40 }
  0xc5   : >> { %17538 = vmatmul.mubr.msk.bf16.gmra.mrb[4].mxu0 %vm404_vm1, %v3524_v50  ;;  %v20396_v50 = vld [vmem:[%s19872_s28 + $0x158] sm:$0xff]  }
  0xc6   : >> { %17352 = vmatmul.mubr.msk.bf16.vlgmr.msra.gmra.mrb[0].mxu1 %vm404_vm1, %v1298_v51  ;;  %17541 = vmatprep.mubr.msk.bf16.mxu0 %vm404_vm1, %v3532_v44  ;;  %v1473_v51 = vrot.slane %v1471_v33, 3  ;;  %v1482_v44 = vrot.slane %v1480_v34, 3  ;;  %v3845_v5 = vrot.slane %v20396_v50, 1 }
  0xc7   : >> { %17364 = vmatpush3.bf16.msra.mxu1 %v20245_v57  ;;  %17355 = vmatprep.mubr.msk.bf16.mxu1 %vm404_vm1, %v1300_v59  ;;  %v1446_v57 = vrot.slane %v1444_v47, 3  ;;  %v1470_v47 = vrot.slane %v1468_v32, 2  ;;  %v1486_v59 = vshrl.u32 %v20379_v27, 16 }
  0xc8   : >> { %17377 = vmatprep.subr.bf16.mxu1 %v20338_v52  ;;  %v1483_v9 = vor.u32 %v1482_v44, %v1479_v8  ;;  %v1626_v8 = vrot.slane %v20324_v43, 3 }
  0xc9   : >> { %v1447_v23 = vor.u32 %v1446_v57, %v1443_v12  ;;  %v1474_v16 = vor.u32 %v1473_v51, %v1470_v47  ;;  %v20420_v12 = vld [vmem:[%s19872_s28 + $0x160] sm:$0xff]   ;;  %v1488_v57 = vrot.slane %v1486_v59, 2  ;;  %v20473_v47 = vld [vmem:[%s25590_s2 + $0x50] sm:$0xff]   ;;  %v3855_v51 = vrot.slane %v19460_v4, 1 }
  0xca   : >> { %v3999_v44 = vshrl.u32 %v20420_v12, 16  ;;  %v4002_v59 = vshll.u32 %v20420_v12, 16  ;;  %v20532_v4 = vld [vmem:[%s19872_s28 + $0xbc] sm:$0xff]  }
  0xcb   : >> { %v1448_v35 = vsel %vm1431_vm5, %v1439_v28, %v1447_v23  ;;  %v1457_v60 = vsel %vm1431_vm5, %v1447_v23, %v1456_v38  ;;  %v1475_v25 = vsel %vm1431_vm5, %v1465_v40, %v1474_v16  ;;  %v1484_v61 = vsel %vm1431_vm5, %v1474_v16, %v1483_v9  ;;  %v20442_v28 = vld [vmem:[%s19872_s28 + $0x178] sm:$0xff]  }
  0xcc   : >> { %v3853_v33 = vrot.slane %v20442_v28, 1  ;;  %v4004_v36 = vrot.slane %v4002_v59, 2  ;;  %v1988_v59 = vshll.u32 %v20532_v4, 16 }
  0xcd   : >> { %17542 = vmatmul.mubr.msk.bf16.gmra.mrb[8].mxu0 %vm404_vm1, %v3540_v48  ;;  %v3846_v48 = vsel %vm610_vm4, %v3844_v3, %v3845_v5 }
  0xce   : >> { %17356 = vmatmul.mubr.msk.bf16.gmra.mrb[4].mxu1 %vm404_vm1, %v1302_v15  ;;  %17547 = vmatprep.mubr.msk.bf16.mxu0 %vm404_vm1, %v3667_v19  ;;  %v15387_v15 = vcombine.low %v1611_v10, %v20261_v1  ;;  %v1620_v1 = vrot.slane %v20277_v13, 3  ;;  %v1622_v13 = vrot.slane %v20294_v55, 3  ;;  %v3993_v55 = vshll.u32 %v20396_v50, 16 }
  0xcf   : >> { %17359 = vmatprep.mubr.msk.bf16.mxu1 %vm404_vm1, %v1304_v31  ;;  %v3847_v31 = vrot.slane %v20420_v12, 1  ;;  %v3854_v45 = vsel %vm610_vm4, %v3851_v49, %v3853_v33  ;;  %v3856_v43 = vsel %vm610_vm4, %v3853_v33, %v3855_v51  ;;  %v4020_v10 = vshll.u32 %v20436_v53, 16  ;;  %v20518_v33 = vld [vmem:[%s19872_s28 + $0xac] sm:$0xff]   ;;  %v20544_v51 = vld [vmem:[%s19872_s28 + $0xc4] sm:$0xff]  }
  0xd0   : >> { %v1619_v21 = vrot.slane %v15387_v15, 3  ;;  %v1623_v34 = vsel %vm1618_vm6, %v1620_v1, %v1622_v13  ;;  %v3995_v40 = vrot.slane %v3993_v55, 2  ;;  %v15671_v15 = vld [vmem:[%s19872_s28 + $0x150] sm:$0xc]  ;;  %v20529_v55 = vld [vmem:[%s19872_s28 + $0xb4] sm:$0xff]  }
  0xd1   : >> { %v3848_v24 = vsel %vm610_vm4, %v3845_v5, %v3847_v31 }
  0xd2   : >> { %v1621_v30 = vsel %vm1618_vm6, %v1619_v21, %v1620_v1  ;;  %v4022_v1 = vrot.slane %v4020_v10, 2  ;;  %v19467_v10 = vld [vmem:[%s19872_s28 + $0xbc] sm:$0xff]  }
  0xd5   : >> { %17548 = vmatmul.mubr.msk.bf16.vlgmr.msra.gmra.mrb[0].mxu0 %vm404_vm1, %v3669_v41  ;;  %v3982_v41 = vshrl.u32 %v15646_v11, 16 }
  0xd6   : >> { %17360 = vmatmul.mubr.msk.bf16.gmra.mrb[8].mxu1 %vm404_vm1, %v1306_v56  ;;  %17560 = vmatpush3.bf16.msra.mxu0 %v20310_v46  ;;  %v1489_v46 = vshll.u32 %v20379_v27, 16  ;;  %v1624_v56 = vrot.slane %v20301_v18, 3 }
  0xd7   : >> { %17365 = vmatprep.mubr.msk.bf16.mxu1 %vm404_vm1, %v1448_v35  ;;  %17551 = vmatprep.mubr.msk.bf16.mxu0 %vm404_vm1, %v3671_v37  ;;  %v3985_v35 = vshll.u32 %v15646_v11, 16  ;;  %v3990_v37 = vshrl.u32 %v20396_v50, 16  ;;  %v3984_v38 = vrot.slane %v3982_v41, 1 }
  0xd8   : >> { %17573 = vmatprep.subr.bf16.mxu0 %v20374_v7  ;;  %v1491_v14 = vrot.slane %v1489_v46, 3  ;;  %v1628_v46 = vrot.slane %v20330_v6, 3 }
  0xd9   : >> { %v3987_v39 = vrot.slane %v3985_v35, 2  ;;  %v3992_v42 = vrot.slane %v3990_v37, 1  ;;  %v20524_v35 = vld [vmem:[%s25590_s2 + $0xc0] sm:$0xff]  }
  0xda   : >> { %v1492_v19 = vor.u32 %v1491_v14, %v1488_v57  ;;  %v1629_v16 = vsel %vm1618_vm6, %v1626_v8, %v1628_v46  ;;  %v20495_v57 = vld [vmem:[%s19872_s28 + $0x180] ss:$0 sps:$4 sm:$0x33]   ;;  %v1630_v14 = vrot.slane %v20379_v27, 3 }
  0xdb   : >> { %v3988_v11 = vor.u32 %v3987_v39, %v3984_v38  ;;  %v4035_v27 = vshrl.u32 %v20495_v57, 16  ;;  %v4170_v38 = vrot.slane %v20420_v12, 2  ;;  %v19464_v39 = vld [vmem:[%s19872_s28 + $0xac] sm:$0xff]   ;;  %v4174_v12 = vrot.slane %v20436_v53, 2 }
  0xdc   : >> { %v1493_v23 = vsel %vm1431_vm5, %v1483_v9, %v1492_v19  ;;  %v4017_v9 = vshrl.u32 %v20436_v53, 16  ;;  %v19462_v19 = vld [vmem:[%s19872_s28 + $0xa4] sm:$0xff]  }
  0xdd   : >> { %17552 = vmatmul.mubr.msk.bf16.gmra.mrb[4].mxu0 %vm404_vm1, %v3673_v62  ;;  %v3996_v62 = vor.u32 %v3995_v40, %v3992_v42  ;;  %v4037_v37 = vrot.slane %v4035_v27, 1  ;;  %v1972_v40 = vshll.u32 %v20518_v33, 16 }
  0xde   : >> { %17366 = vmatmul.mubr.msk.bf16.vlgmr.msra.gmra.mrb[0].mxu1 %vm404_vm1, %v1457_v60  ;;  %17555 = vmatprep.mubr.msk.bf16.mxu0 %vm404_vm1, %v3675_v63  ;;  %v1627_v63 = vsel %vm1618_vm6, %v1624_v56, %v1626_v8  ;;  %v4019_v21 = vrot.slane %v4017_v9, 1 }
  0xdf   : >> { %17378 = vmatpush3.bf16.msra.mxu1 %v20338_v52  ;;  %17369 = vmatprep.mubr.msk.bf16.mxu1 %vm404_vm1, %v1466_v2  ;;  %v20424_v52 = vld [vmem:[%s19872_s28 + $0x168] sm:$0xff]   ;;  %v4001_v2 = vrot.slane %v3999_v44, 1  ;;  %v3997_v3 = vsel %vm927_vm2, %v3988_v11, %v3996_v62 }
  0xe0   : >> { %17391 = vmatprep.subr.bf16.mxu1 %v20406_v22  ;;  %v3849_v20 = vrot.slane %v20424_v52, 1  ;;  %v4008_v60 = vshrl.u32 %v20424_v52, 16 }
  0xe2   : >> { %v3850_v32 = vsel %vm610_vm4, %v3847_v31, %v3849_v20  ;;  %v3852_v18 = vsel %vm610_vm4, %v3849_v20, %v3851_v49  ;;  %v4010_v6 = vrot.slane %v4008_v60, 1  ;;  %v20507_v20 = vld [vmem:[%s19872_s28 + $0xa8] sm:$0xf]  ;;  %v15674_v49 = vcombine.low %v15671_v15, %v20393_v58  ;;  %v19466_v60 = vld [vmem:[%s19872_s28 + $0xb4] sm:$0xff]   ;;  %v20574_v15 = vld [vmem:[%s19872_s28 + $0xcc] sm:$0xff]  }
  0xe3   : >> { %v4168_v58 = vrot.slane %v20396_v50, 2 }
  0xe4   : >> { %v4167_v42 = vrot.slane %v15674_v49, 2 }
  0xe5   : >> { %17556 = vmatmul.mubr.msk.bf16.gmra.mrb[8].mxu0 %vm404_vm1, %v3677_v29  ;;  %v4029_v29 = vshll.u32 %v20442_v28, 16 }
  0xe6   : >> { %17370 = vmatmul.mubr.msk.bf16.gmra.mrb[4].mxu1 %vm404_vm1, %v1475_v25  ;;  %17561 = vmatprep.mubr.msk.bf16.mxu0 %vm404_vm1, %v3846_v48  ;;  %v4026_v25 = vshrl.u32 %v20442_v28, 16  ;;  %v15422_v48 = vld [vmem:[%s19872_s28 + $0xa4] sm:$0xf] }
  0xe7   : >> { %17373 = vmatprep.mubr.msk.bf16.mxu1 %vm404_vm1, %v1484_v61  ;;  %v4005_v61 = vor.u32 %v4004_v36, %v4001_v2  ;;  %v4031_v41 = vrot.slane %v4029_v29, 2  ;;  %v19474_v2 = vld [vmem:[%s25590_s2 + $0x58] sm:$0xff]   ;;  %v4176_v36 = vrot.slane %v20442_v28, 2  ;;  %v19469_v29 = vld [vmem:[%s19872_s28 + $0xc4] sm:$0xff]   ;;  %v2143_v28 = vrot.slane %v20529_v55, 1 }
  0xed   : >> { %17562 = vmatmul.mubr.msk.bf16.vlgmr.msra.gmra.mrb[0].mxu0 %vm404_vm1, %v3848_v24  ;;  %v1631_v24 = vsel %vm1618_vm6, %v1628_v46, %v1630_v14  ;;  %v1992_v14 = vshrl.u32 %v20532_v4, 16 }
  0xee   : >> { %17374 = vmatmul.mubr.msk.bf16.gmra.mrb[8].mxu1 %vm404_vm1, %v1493_v23  ;;  %17574 = vmatpush3.bf16.msra.mxu0 %v20374_v7  ;;  %v1625_v7 = vsel %vm1618_vm6, %v1622_v13, %v1624_v56  ;;  %v4038_v23 = vshll.u32 %v20495_v57, 16  ;;  %v20515_v13 = vcombine.low %v15422_v48, %v20507_v20  ;;  %v20577_v48 = vld [vmem:[%s19872_s28 + $0xd4] ss:$0 sps:$4 sm:$0x11]  }
  0xef   : >> { %17379 = vmatprep.mubr.msk.bf16.mxu1 %vm404_vm1, %v1621_v30  ;;  %17565 = vmatprep.mubr.msk.bf16.mxu0 %vm404_vm1, %v3850_v32  ;;  %v4006_v30 = vsel %vm927_vm2, %v3996_v62, %v4005_v61  ;;  %v4028_v32 = vrot.slane %v4026_v25, 1  ;;  %v1974_v62 = vrot.slane %v1972_v40, 1  ;;  %v2012_v27 = vshll.u32 %v20577_v48, 16 }
  0xf0   : >> { %17587 = vmatprep.subr.bf16.mxu0 %v20450_v26  ;;  %v1965_v44 = vshrl.u32 %v20515_v13, 16  ;;  %v4177_v40 = vsel %vm1114_vm3, %v4174_v12, %v4176_v36 }
  0xf1   : >> { %v4032_v8 = vor.u32 %v4031_v41, %v4028_v32  ;;  %v4171_v32 = vsel %vm1114_vm3, %v4168_v58, %v4170_v38  ;;  %v20607_v41 = vld [vmem:[%s19872_s28 + $0x15c] sm:$0xf] }
  0xf5   : >> { %17566 = vmatmul.mubr.msk.bf16.gmra.mrb[4].mxu0 %vm404_vm1, %v3852_v18  ;;  %v4040_v18 = vrot.slane %v4038_v23, 2  ;;  %v19471_v23 = vld [vmem:[%s19872_s28 + $0xcc] sm:$0xff]  }
  0xf6   : >> { %17380 = vmatmul.mubr.msk.bf16.vlgmr.msra.gmra.mrb[0].mxu1 %vm404_vm1, %v1623_v34  ;;  %17569 = vmatprep.mubr.msk.bf16.mxu0 %vm404_vm1, %v3854_v45  ;;  %v4023_v34 = vor.u32 %v4022_v1, %v4019_v21  ;;  %v4172_v45 = vrot.slane %v20424_v52, 2  ;;  %v2000_v21 = vshrl.u32 %v20544_v51, 16  ;;  %v2004_v1 = vshll.u32 %v20574_v15, 16 }
  0xf7   : >> { %17392 = vmatpush3.bf16.msra.mxu1 %v20406_v22  ;;  %17383 = vmatprep.mubr.msk.bf16.mxu1 %vm404_vm1, %v1625_v7  ;;  %v4011_v22 = vshll.u32 %v20424_v52, 16  ;;  %v1967_v7 = vshll.u32 %v20515_v13, 16  ;;  %v4041_v9 = vor.u32 %v4040_v18, %v4037_v37 }
  0xf8   : >> { %17405 = vmatprep.subr.bf16.mxu1 %v20473_v47  ;;  %v4173_v13 = vsel %vm1114_vm3, %v4170_v38, %v4172_v45 }
  0xf9   : >> { %v4013_v5 = vrot.slane %v4011_v22, 2  ;;  %v1969_v11 = vrot.slane %v1967_v7, 1  ;;  %v1976_v22 = vshrl.u32 %v20518_v33, 16  ;;  %v20634_v7 = vld [vmem:[%s19872_s28 + $0x178] sm:$0xff]  }
  0xfb   : >> { %v4014_v31 = vor.u32 %v4013_v5, %v4010_v6  ;;  %v4178_v6 = vrot.slane %v20495_v57, 2  ;;  %v1990_v5 = vrot.slane %v1988_v59, 1  ;;  %v1978_v37 = vor.u32 %v1976_v22, %v1974_v62 }
  0xfc   : >> { %v2008_v59 = vshrl.u32 %v20574_v15, 16 }
  0xfd   : >> { %17570 = vmatmul.mubr.msk.bf16.gmra.mrb[8].mxu0 %vm404_vm1, %v3856_v43  ;;  %v4015_v56 = vsel %vm927_vm2, %v4005_v61, %v4014_v31  ;;  %v4024_v46 = vsel %vm927_vm2, %v4014_v31, %v4023_v34  ;;  %v1996_v43 = vshll.u32 %v20544_v51, 16  ;;  %v20571_v61 = vld [vmem:[%s19872_s28 + $0x160] sm:$0xff]   ;;  %v4169_v31 = vsel %vm1114_vm3, %v4167_v42, %v4168_v58  ;;  %v20614_v58 = vld [vmem:[%s19872_s28 + $0x168] sm:$0xff]  }
  0xfe   : >> { %17384 = vmatmul.mubr.msk.bf16.gmra.mrb[4].mxu1 %vm404_vm1, %v1627_v63  ;;  %17575 = vmatprep.mubr.msk.bf16.mxu0 %vm404_vm1, %v3997_v3  ;;  %v4033_v63 = vsel %vm927_vm2, %v4023_v34, %v4032_v8  ;;  %v1984_v3 = vshrl.u32 %v20529_v55, 16  ;;  %v20618_v34 = vld [vmem:[%s19872_s28 + $0x170] sm:$0xff]   ;;  %v20626_v42 = vld [vmem:[%s25590_s2 + $0x60] sm:$0xff]  }
  0xff   : >> { %17387 = vmatprep.mubr.msk.bf16.mxu1 %vm404_vm1, %v1629_v16  ;;  %v1998_v25 = vrot.slane %v1996_v43, 1  ;;  %v4179_v43 = vsel %vm1114_vm3, %v4176_v36, %v4178_v6  ;;  %v2145_v36 = vrot.slane %v20532_v4, 1 }
 0x101   : >> { %v2002_v53 = vor.u32 %v2000_v21, %v1998_v25  ;;  %v19780_v21 = vmov 0  }
 0x102   : >> { %19376 = vset.pattern.permute.xlu1 %v19780_v21  ;;  %19375 = vset.pattern.permute.xlu0 %v19780_v21 }
 0x105   : >> { %17576 = vmatmul.mubr.msk.bf16.vlgmr.msra.gmra.mrb[0].mxu0 %vm404_vm1, %v4006_v30  ;;  %v20595_v30 = vld [vmem:[%s25590_s2 + $0xc8] sm:$0xff]  }
 0x106   : >> { %17388 = vmatmul.mubr.msk.bf16.gmra.mrb[8].mxu1 %vm404_vm1, %v1631_v24  ;;  %17588 = vmatpush3.bf16.msra.mxu0 %v20450_v26  ;;  %v1980_v26 = vshll.u32 %v20529_v55, 16  ;;  %v1970_v24 = vor.u32 %v1969_v11, %v1965_v44  ;;  %v1994_v44 = vor.u32 %v1992_v14, %v1990_v5  ;;  %v4353_v11 = vrot.slane %v20634_v7, 2 }
 0x107   : >> { %17393 = vmatprep.mubr.msk.bf16.mxu1 %vm404_vm1, %v19462_v19  ;;  %17579 = vmatprep.mubr.msk.bf16.mxu0 %vm404_vm1, %v4015_v56  ;;  %v4347_v19 = vrot.slane %v20571_v61, 2  ;;  %v15682_v56 = vld [vmem:[%s19872_s28 + $0x158] sm:$0xc] }
 0x108   : >> { %17601 = vmatprep.subr.bf16.mxu0 %v20524_v35  ;;  %v1982_v16 = vrot.slane %v1980_v26, 1  ;;  %v1975_v49 = vsel %vm345_vm0, %v1970_v24, %v1974_v62  ;;  %v15697_v38 = vcombine.low %v15682_v56, %v20607_v41  ;;  %v2006_v26 = vrot.slane %v2004_v1, 1  ;;  %v20653_v62 = vld [vmem:[%s19872_s28 + $0x180] sm:$0xff]  }
 0x109   : >> { %v1999_v22 = vsel %vm345_vm0, %v1994_v44, %v1998_v25  ;;  %v4355_v57 = vrot.slane %v20653_v62, 2  ;;  %v4831_v56 = vld [vmem:[%s20695_s23] sm:$0xff] }
 0x10a   : >> { %v1986_v50 = vor.u32 %v1984_v3, %v1982_v16  ;;  %v1983_v18 = vsel %vm345_vm0, %v1978_v37, %v1982_v16  ;;  %v4346_v52 = vrot.slane %v15697_v38, 2  ;;  %v2141_v16 = vrot.slane %v20518_v33, 1  ;;  %v4834_v37 = vld [vmem:[%s20695_s23 + $0x18] sm:$0xff]  ;;  %4845 = vperm.xlu0 %19375, %v4831_v56  }
 0x10b   : >> { %v2010_v3 = vor.u32 %v2008_v59, %v2006_v26  ;;  %v4484_v6 = vshrl.u32 %v15697_v38, 16  ;;  %v4487_v33 = vshll.u32 %v15697_v38, 16  ;;  %v2149_v38 = vrot.slane %v20574_v15, 1 }
 0x10c   : >> { %v2144_v1 = vsel %vm610_vm4, %v2141_v16, %v2143_v28  ;;  %v4519_v59 = vshrl.u32 %v20634_v7, 16 }
 0x10d   : >> { %17580 = vmatmul.mubr.msk.bf16.gmra.mrb[4].mxu0 %vm404_vm1, %v4024_v46  ;;  %v4351_v46 = vrot.slane %v20618_v34, 2  ;;  %v4486_v25 = vrot.slane %v4484_v6, 2  ;;  %v4531_v6 = vshll.u32 %v20653_v62, 16 }
 0x10e   : >> { %17394 = vmatmul.mubr.msk.bf16.vlgmr.msra.gmra.mrb[0].mxu1 %vm404_vm1, %v19464_v39  ;;  %17583 = vmatprep.mubr.msk.bf16.mxu0 %vm404_vm1, %v4033_v63  ;;  %v15451_v39 = vld [vmem:[%s19872_s28 + $0xa4] sm:$0xe]  ;;  %v2007_v63 = vsel %vm345_vm0, %v2002_v53, %v2006_v26 }
 0x10f   : >> { %17406 = vmatpush3.bf16.msra.mxu1 %v20473_v47  ;;  %17397 = vmatprep.mubr.msk.bf16.mxu1 %vm404_vm1, %v19466_v60  ;;  %v4042_v47 = vsel %vm927_vm2, %v4032_v8, %v4041_v9  ;;  %v1991_v8 = vsel %vm345_vm0, %v1986_v50, %v1990_v5  ;;  %v15454_v60 = vcombine.low %v15451_v39, %v20507_v20  ;;  %v4492_v5 = vshrl.u32 %v20571_v61, 16 }
 0x110   : >> { %17419 = vmatprep.subr.bf16.mxu1 %v19474_v2  ;;  %v4348_v20 = vsel %vm1114_vm3, %v4346_v52, %v4347_v19  ;;  %v4354_v24 = vsel %vm1114_vm3, %v4351_v46, %v4353_v11  ;;  %v4501_v50 = vshrl.u32 %v20614_v58, 16 }
 0x112   : >> { %v4503_v52 = vrot.slane %v4501_v50, 2  ;;  %v4842_v50 = vld [vmem:[%s20695_s23 + $0x58] sm:$0xff] }
 0x115   : >> { %17584 = vmatmul.mubr.msk.bf16.gmra.mrb[8].mxu0 %vm404_vm1, %v4042_v47  ;;  %v4495_v47 = vshll.u32 %v20571_v61, 16 }
 0x116   : >> { %17398 = vmatmul.mubr.msk.bf16.gmra.mrb[4].mxu1 %vm404_vm1, %v19467_v10  ;;  %17589 = vmatprep.mubr.msk.bf16.mxu0 %vm404_vm1, %v4169_v31  ;;  %v20678_v10 = vld [vmem:[%s25590_s2 + $0xd0] sm:$0xff]   ;;  %v4494_v31 = vrot.slane %v4492_v5, 2  ;;  %v4838_v5 = vld [vmem:[%s20695_s23 + $0x38] sm:$0xff] }
 0x117   : >> { %17401 = vmatprep.mubr.msk.bf16.mxu1 %vm404_vm1, %v19469_v29  ;;  %v4489_v29 = vrot.slane %v4487_v33, 3 }
 0x119   : >> { %v4490_v39 = vor.u32 %v4489_v29, %v4486_v25  ;;  %v4533_v29 = vrot.slane %v4531_v6, 3  ;;  %v20800_v6 = vld [vmem:[%s19872_s28 + $0x34] sm:$0xf] }
 0x11d   : >> { %17590 = vmatmul.mubr.msk.bf16.vlgmr.msra.gmra.mrb[0].mxu0 %vm404_vm1, %v4171_v32  ;;  %v2146_v32 = vsel %vm610_vm4, %v2143_v28, %v2145_v36  ;;  %v4836_v28 = vld [vmem:[%s20695_s23 + $0x28] sm:$0xff] }
 0x11e   : >> { %17402 = vmatmul.mubr.msk.bf16.gmra.mrb[8].mxu1 %vm404_vm1, %v19471_v23  ;;  %17602 = vmatpush3.bf16.msra.mxu0 %v20524_v35  ;;  %v4175_v35 = vsel %vm1114_vm3, %v4172_v45, %v4174_v12  ;;  %v4349_v45 = vrot.slane %v20614_v58, 2  ;;  %v2014_v12 = vrot.slane %v2012_v27, 1  ;;  %v4497_v27 = vrot.slane %v4495_v47, 3  ;;  %v4833_v23 = vld [vmem:[%s20695_s23 + $0x10] sm:$0xff]  ;;  %v20752_v47 = vld [vmem:[%s25590_s2 + $0x8] sm:$0xff]  }
 0x11f   : >> { %17407 = vmatprep.mubr.msk.bf16.mxu1 %vm404_vm1, %v1975_v49  ;;  %17593 = vmatprep.mubr.msk.bf16.mxu0 %vm404_vm1, %v4173_v13  ;;  %v2147_v13 = vrot.slane %v20544_v51, 1  ;;  %v20718_v51 = vld [vmem:[%s25590_s2 + $0x68] sm:$0xff]  }
 0x120   : >> { %17615 = vmatprep.subr.bf16.mxu0 %v20595_v30  ;;  %v2015_v9 = vsel %vm345_vm0, %v2010_v3, %v2014_v12  ;;  %v4350_v55 = vsel %vm1114_vm3, %v4347_v19, %v4349_v45  ;;  %v4352_v14 = vsel %vm1114_vm3, %v4349_v45, %v4351_v46  ;;  %v19489_v19 = vld [vmem:[%s19872_s28 + $0x188] ss:$0 sps:$4 sm:$0x33]   ;;  %4855 = vperm.xlu1 %19376, %v4833_v23  }
 0x121   : >> { %v4357_v49 = vrot.slane %v19489_v19, 2  ;;  %v2148_v15 = vsel %vm610_vm4, %v2145_v36, %v2147_v13  ;;  %v2150_v26 = vsel %vm610_vm4, %v2147_v13, %v2149_v38  ;;  %v4521_v36 = vrot.slane %v4519_v59, 2  ;;  %v19728_v19 = vld [vmem:[%s19872_s28 + $0xbc] sm:$0xff]   ;;  %v4841_v13 = vld [vmem:[%s20695_s23 + $0x50] sm:$0xff] }
 0x122   : >> { %v2322_v21 = vrot.slane %v19728_v19, 1  ;;  %v4670_v59 = vrot.slane %v20571_v61, 3 }
 0x123   : >> { %v4358_v44 = vsel %vm1114_vm3, %v4355_v57, %v4357_v49  ;;  %v15722_v49 = vld [vmem:[%s19872_s28 + $0x158] sm:$0x8] }
 0x124   : >> { %4860 = vperm.xlu1 %19376, %v4834_v37  }
 0x125   : >> { %17594 = vmatmul.mubr.msk.bf16.gmra.mrb[4].mxu0 %vm404_vm1, %v4175_v35  ;;  %v4498_v35 = vor.u32 %v4497_v27, %v4494_v31  ;;  %v4840_v27 = vld [vmem:[%s20695_s23 + $0x48] sm:$0xff] }
 0x126   : >> { %17408 = vmatmul.mubr.msk.bf16.vlgmr.msra.gmra.mrb[0].mxu1 %vm404_vm1, %v1983_v18  ;;  %17597 = vmatprep.mubr.msk.bf16.mxu0 %vm404_vm1, %v4177_v40  ;;  %v4504_v18 = vshll.u32 %v20614_v58, 16  ;;  %v4513_v40 = vshll.u32 %v20618_v34, 16 }
 0x127   : >> { %17420 = vmatpush3.bf16.msra.mxu1 %v19474_v2  ;;  %17411 = vmatprep.mubr.msk.bf16.mxu1 %vm404_vm1, %v1991_v8  ;;  %v2140_v2 = vrot.slane %v15454_v60, 1  ;;  %v4832_v8 = vld [vmem:[%s20695_s23 + $0x8] sm:$0xff]  ;;  %v4499_v53 = vsel %vm1431_vm5, %v4490_v39, %v4498_v35  ;;  %v4522_v60 = vshll.u32 %v20634_v7, 16 }
 0x128   : >> { %17433 = vmatprep.subr.bf16.mxu1 %v20626_v42  ;;  %v4506_v45 = vrot.slane %v4504_v18, 3  ;;  %v4515_v46 = vrot.slane %v4513_v40, 3  ;;  %4850 = vperm.xlu0 %19375, %v4832_v8   ;;  %v19730_v40 = vld [vmem:[%s19872_s28 + $0xcc] sm:$0xff]  }
 0x129   : >> { %v2142_v4 = vsel %vm610_vm4, %v2140_v2, %v2141_v16  ;;  %v2319_v16 = vrot.slane %v19902_v17, 1  ;;  %4870 = vperm.xlu1 %19376, %v4836_v28   ;;  %v4524_v33 = vrot.slane %v4522_v60, 3  ;;  %v2326_v8 = vrot.slane %v19730_v40, 1 }
 0x12a   : >> { %v4507_v2 = vor.u32 %v4506_v45, %v4503_v52 }
 0x12b   : >> { %v4525_v23 = vor.u32 %v4524_v33, %v4521_v36  ;;  %v4979_v36 = vld [vmem:[%s19872_s28 + $0x30] sm:$0xf]  ;;  %v20804_v33 = vld [vmem:[%s19872_s28 + $0x64] sm:$0xf] }
 0x12d   : >> { %17598 = vmatmul.mubr.msk.bf16.gmra.mrb[8].mxu0 %vm404_vm1, %v4179_v43  ;;  %v20734_v43 = vld [vmem:[%s19872_s28 + $0x188] ss:$0 sps:$4 sm:$0x77]   ;;  %4880 = vperm.xlu1 %19376, %v4838_v5  }
 0x12e   : >> { %17412 = vmatmul.mubr.msk.bf16.gmra.mrb[4].mxu1 %vm404_vm1, %v1999_v22  ;;  %17603 = vmatprep.mubr.msk.bf16.mxu0 %vm404_vm1, %v4348_v20  ;;  %v4528_v22 = vshrl.u32 %v20653_v62, 16  ;;  %v19727_v20 = vld [vmem:[%s19872_s28 + $0xb4] sm:$0xff]   ;;  %v4537_v17 = vshrl.u32 %v20734_v43, 16  ;;  %v4540_v31 = vshll.u32 %v20734_v43, 16 }
 0x12f   : >> { %17415 = vmatprep.mubr.msk.bf16.mxu1 %vm404_vm1, %v2007_v63  ;;  %v4835_v63 = vld [vmem:[%s20695_s23 + $0x20] sm:$0xff]  ;;  %v2320_v3 = vrot.slane %v19727_v20, 1  ;;  %v4674_v20 = vrot.slane %v20618_v34, 3 }
 0x130   : >> { %4865 = vperm.xlu0 %19375, %v4835_v63   ;;  %v4542_v37 = vrot.slane %v4540_v31, 3  ;;  %v2492_v63 = vshrl.u32 %v19730_v40, 16  ;;  %v20820_v31 = vld [vmem:[%s25590_s2] sm:$0xff]  }
 0x131   : >> { %4890 = vperm.xlu1 %19376, %v4840_v27   ;;  %v2323_v18 = vsel %vm610_vm4, %v2320_v3, %v2322_v21 }
 0x135   : >> { %17604 = vmatmul.mubr.msk.bf16.vlgmr.msra.gmra.mrb[0].mxu0 %vm404_vm1, %v4350_v55  ;;  %v4530_v55 = vrot.slane %v4528_v22, 2  ;;  %4900 = vperm.xlu1 %19376, %v4842_v50  }
 0x136   : >> { %17416 = vmatmul.mubr.msk.bf16.gmra.mrb[8].mxu1 %vm404_vm1, %v2015_v9  ;;  %17616 = vmatpush3.bf16.msra.mxu0 %v20595_v30  ;;  %v4356_v30 = vsel %vm1114_vm3, %v4353_v11, %v4355_v57  ;;  %v2151_v11 = vrot.slane %v20577_v48, 1  ;;  %v4837_v48 = vld [vmem:[%s20695_s23 + $0x30] sm:$0xff] }
 0x137   : >> { %17421 = vmatprep.mubr.msk.bf16.mxu1 %vm404_vm1, %v2142_v4  ;;  %17607 = vmatprep.mubr.msk.bf16.mxu0 %vm404_vm1, %v4352_v14  ;;  %v4508_v4 = vsel %vm1431_vm5, %v4498_v35, %v4507_v2  ;;  %v2321_v14 = vsel %vm610_vm4, %v2319_v16, %v2320_v3  ;;  %v4534_v56 = vor.u32 %v4533_v29, %v4530_v55  ;;  %v4672_v16 = vrot.slane %v20614_v58, 3 }
 0x138   : >> { %17629 = vmatprep.subr.bf16.mxu0 %v20678_v10  ;;  %v2152_v9 = vsel %vm610_vm4, %v2149_v38, %v2151_v11  ;;  %4875 = vperm.xlu0 %19375, %v4837_v48   ;;  %v15725_v35 = vcombine.low %v15722_v49, %v20607_v41  ;;  %v19731_v41 = vld [vmem:[%s19872_s28 + $0xd4] sm:$0xff]   ;;  %v9611_v48 = vld [vmem:[%s19872_s28 + $0x60] sm:$0xf]  ;;  %v20835_v49 = vld [vmem:[%s19872_s28 + $0x68] sm:$0xff]  }
 0x139   : >> { %v4535_v38 = vsel %vm1431_vm5, %v4525_v23, %v4534_v56  ;;  %v2501_v28 = vshrl.u32 %v19731_v41, 16  ;;  %v20815_v29 = vcombine.low %v9611_v48, %v20804_v33 }
 0x13d   : >> { %17608 = vmatmul.mubr.msk.bf16.gmra.mrb[4].mxu0 %vm404_vm1, %v4354_v24  ;;  %v4539_v24 = vrot.slane %v4537_v17, 2  ;;  %v4673_v17 = vsel %vm1618_vm6, %v4670_v59, %v4672_v16 }
 0x13e   : >> { %17422 = vmatmul.mubr.msk.bf16.vlgmr.msra.gmra.mrb[0].mxu1 %vm404_vm1, %v2144_v1  ;;  %17611 = vmatprep.mubr.msk.bf16.mxu0 %vm404_vm1, %v4356_v30  ;;  %v4839_v1 = vld [vmem:[%s20695_s23 + $0x40] sm:$0xff] }
 0x13f   : >> { %17434 = vmatpush3.bf16.msra.mxu1 %v20626_v42  ;;  %17425 = vmatprep.mubr.msk.bf16.mxu1 %vm404_vm1, %v2146_v32  ;;  %v4510_v42 = vshrl.u32 %v20618_v34, 16  ;;  %v19729_v30 = vld [vmem:[%s19872_s28 + $0xc4] sm:$0xff]   ;;  %v20811_v34 = vcombine.low %v4979_v36, %v20800_v6 }
 0x140   : >> { %18399 = vmatprep.subr.bf16.mxu1 %v20718_v51  ;;  %v2324_v32 = vrot.slane %v19729_v30, 1  ;;  %4885 = vperm.xlu0 %19375, %v4839_v1   ;;  %v2483_v52 = vshrl.u32 %v19729_v30, 16  ;;  %v2486_v45 = vshll.u32 %v19729_v30, 16 }
 0x141   : >> { %v4512_v12 = vrot.slane %v4510_v42, 2  ;;  %v20776_v42 = vld [vmem:[%s25590_s2 + $0x8] sm:$0xff]   ;;  %v5032_v30 = vshll.u32 %v20811_v34, 16  ;;  %v5030_v50 = vshrl.u32 %v20811_v34, 16 }
 0x142   : >> { %v2325_v39 = vsel %vm610_vm4, %v2322_v21, %v2324_v32  ;;  %v2485_v60 = vrot.slane %v2483_v52, 1  ;;  %v2488_v11 = vrot.slane %v2486_v45, 2  ;;  %v19732_v21 = vld [vmem:[%s19872_s28 + $0xdc] ss:$0 sps:$4 sm:$0x33]   ;;  %v4680_v52 = vrot.slane %v20734_v43, 3 }
 0x143   : >> { %v4516_v57 = vor.u32 %v4515_v46, %v4512_v12  ;;  %v19494_v12 = vld [vmem:[%s19872_s28 + $0xdc] ss:$0 sps:$4 sm:$0x11]   ;;  %v2510_v1 = vshrl.u32 %v19732_v21, 16  ;;  %v2513_v27 = vshll.u32 %v19732_v21, 16 }
 0x144   : >> { %4895 = vperm.xlu0 %19375, %v4841_v13   ;;  %v2330_v61 = vrot.slane %v19494_v12, 1  ;;  %v2489_v3 = vor.u32 %v2488_v11, %v2485_v60  ;;  %v20863_v12 = vld [vmem:[%s19872_s28 + $0x78] sm:$0xff]  }
 0x145   : >> { %17612 = vmatmul.mubr.msk.bf16.gmra.mrb[8].mxu0 %vm404_vm1, %v4358_v44  ;;  %v4517_v25 = vsel %vm1431_vm5, %v4507_v2, %v4516_v57  ;;  %v4543_v44 = vor.u32 %v4542_v37, %v4539_v24  ;;  %v2495_v2 = vshll.u32 %v19730_v40, 16  ;;  %v20831_v24 = vld [vmem:[%s19872_s28 + $0x38] sm:$0xff]   ;;  %v2515_v37 = vrot.slane %v2513_v27, 2 }
 0x146   : >> { %17426 = vmatmul.mubr.msk.bf16.gmra.mrb[4].mxu1 %vm404_vm1, %v2148_v15  ;;  %17617 = vmatprep.mubr.msk.bf16.mxu0 %vm404_vm1, %v4499_v53  ;;  %v2328_v15 = vrot.slane %v19731_v41, 1  ;;  %v2327_v53 = vsel %vm610_vm4, %v2324_v32, %v2326_v8  ;;  %v2490_v58 = vsel %vm927_vm2, %v19935_v54, %v2489_v3  ;;  %v4676_v54 = vrot.slane %v20634_v7, 3 }
 0x147   : >> { %17429 = vmatprep.mubr.msk.bf16.mxu1 %vm404_vm1, %v2150_v26  ;;  %v4669_v26 = vrot.slane %v15725_v35, 3  ;;  %v2497_v55 = vrot.slane %v2495_v2, 2  ;;  %v9664_v7 = vshll.u32 %v20815_v29, 16  ;;  %v9669_v40 = vshll.u32 %v20835_v49, 16 }
 0x148   : >> { %v2329_v46 = vsel %vm610_vm4, %v2326_v8, %v2328_v15  ;;  %v2331_v5 = vsel %vm610_vm4, %v2328_v15, %v2330_v61  ;;  %v4677_v13 = vsel %vm1618_vm6, %v4674_v20, %v4676_v54  ;;  %v19501_v8 = vld [vmem:[%s25590_s2] sm:$0xff]   ;;  %v5041_v60 = vshrl.u32 %v20831_v24, 16 }
 0x149   : >> { %v4671_v22 = vsel %vm1618_vm6, %v4669_v26, %v4670_v59  ;;  %v9666_v35 = vrot.slane %v9664_v7, 1  ;;  %v20857_v15 = vld [vmem:[%s19872_s28 + $0x40] sm:$0xff]  }
 0x14a   : >> { %v5045_v43 = vshll.u32 %v20857_v15, 16 }
 0x14c   : >> { %v5047_v48 = vrot.slane %v5045_v43, 1 }
 0x14d   : >> { %17618 = vmatmul.mubr.msk.bf16.vlgmr.msra.gmra.mrb[0].mxu0 %vm404_vm1, %v4508_v4  ;;  %v4675_v4 = vsel %vm1618_vm6, %v4672_v16, %v4674_v20  ;;  %v9685_v16 = vshll.u32 %v20863_v12, 16  ;;  %v5049_v20 = vshrl.u32 %v20857_v15, 16 }
 0x14e   : >> { %17430 = vmatmul.mubr.msk.bf16.gmra.mrb[8].mxu1 %vm404_vm1, %v2152_v9  ;;  %17630 = vmatpush3.bf16.msra.mxu0 %v20678_v10  ;;  %v4526_v10 = vsel %vm1431_vm5, %v4516_v57, %v4525_v23  ;;  %v2504_v57 = vshll.u32 %v19731_v41, 16  ;;  %v2494_v9 = vrot.slane %v2492_v63, 1  ;;  %v4678_v23 = vrot.slane %v20653_v62, 3  ;;  %v20854_v41 = vld [vmem:[%s19872_s28 + $0x70] sm:$0xff]  }
 0x14f   : >> { %17435 = vmatprep.mubr.msk.bf16.mxu1 %vm404_vm1, %v2321_v14  ;;  %17621 = vmatprep.mubr.msk.bf16.mxu0 %vm404_vm1, %v4517_v25  ;;  %v2503_v14 = vrot.slane %v2501_v28, 1  ;;  %v9681_v2 = vshrl.u32 %v20854_v41, 16  ;;  %v20882_v28 = vld [vmem:[%s19872_s28 + $0x50] sm:$0xff]  }
 0x150   : >> { %18021 = vmatprep.subr.bf16.mxu0 %v20752_v47  ;;  %v2506_v25 = vrot.slane %v2504_v57, 2  ;;  %v2498_v19 = vor.u32 %v2497_v55, %v2494_v9  ;;  %v4679_v62 = vsel %vm1618_vm6, %v4676_v54, %v4678_v23  ;;  %v4681_v11 = vsel %vm1618_vm6, %v4678_v23, %v4680_v52  ;;  %v20891_v55 = vld [vmem:[%s19872_s28 + $0x58] sm:$0xff]  }
 0x151   : >> { %v5061_v54 = vshll.u32 %v20882_v28, 16  ;;  %v9689_v23 = vshrl.u32 %v20863_v12, 16 }
 0x152   : >> { %v2507_v32 = vor.u32 %v2506_v25, %v2503_v14  ;;  %v5051_v14 = vor.u32 %v5049_v20, %v5047_v48  ;;  %v19517_v20 = vld [vmem:[%s25590_s2 + $0x18] sm:$0xff]  }
 0x155   : >> { %17622 = vmatmul.mubr.msk.bf16.gmra.mrb[4].mxu0 %vm404_vm1, %v4526_v10  ;;  %v5037_v10 = vshll.u32 %v20831_v24, 16 }
 0x156   : >> { %17436 = vmatmul.mubr.msk.bf16.vlgmr.msra.gmra.mrb[0].mxu1 %vm404_vm1, %v2323_v18  ;;  %17625 = vmatprep.mubr.msk.bf16.mxu0 %vm404_vm1, %v4535_v38  ;;  %v5034_v18 = vrot.slane %v5032_v30, 1  ;;  %v2508_v38 = vsel %vm927_vm2, %v2498_v19, %v2507_v32  ;;  %v5065_v30 = vshrl.u32 %v20882_v28, 16 }
 0x157   : >> { %18400 = vmatpush3.bf16.msra.mxu1 %v20718_v51  ;;  %17439 = vmatprep.mubr.msk.bf16.mxu1 %vm404_vm1, %v2325_v39  ;;  %v4544_v51 = vsel %vm1431_vm5, %v4534_v56, %v4543_v44  ;;  %v2499_v56 = vsel %vm927_vm2, %v2489_v3, %v2498_v19  ;;  %v9662_v39 = vshrl.u32 %v20815_v29, 16  ;;  %v5039_v26 = vrot.slane %v5037_v10, 1 }
 0x158   : >> { %17643 = vmatprep.subr.bf16.mxu1 %v20776_v42  ;;  %v5035_v45 = vor.u32 %v5034_v18, %v5030_v50  ;;  %v19513_v50 = vld [vmem:[%s25590_s2 + $0x10] sm:$0xff]  }
 0x159   : >> { %v9667_v59 = vor.u32 %v9666_v35, %v9662_v39  ;;  %v5043_v36 = vor.u32 %v5041_v60, %v5039_v26  ;;  %v20922_v35 = vld [vmem:[%s19872_s28 + $0x90] ss:$0 sps:$4 sm:$0x11]  }
 0x15a   : >> { %v5040_v61 = vsel %vm345_vm0, %v5035_v45, %v5039_v26  ;;  %v5073_v26 = vshrl.u32 %v20891_v55, 16 }
 0x15b   : >> { %v5048_v19 = vsel %vm345_vm0, %v5043_v36, %v5047_v48  ;;  %v5292_v48 = vrot.slane %v20831_v24, 1 }
 0x15d   : >> { %17626 = vmatmul.mubr.msk.bf16.gmra.mrb[8].mxu0 %vm404_vm1, %v4544_v51 }
 0x15e   : >> { %17440 = vmatmul.mubr.msk.bf16.gmra.mrb[4].mxu1 %vm404_vm1, %v2327_v53  ;;  %17631 = vmatprep.mubr.msk.bf16.mxu0 %vm404_vm1, %v4671_v22  ;;  %v9671_v53 = vrot.slane %v9669_v40, 1  ;;  %v9673_v22 = vshrl.u32 %v20835_v49, 16 }
 0x15f   : >> { %17443 = vmatprep.mubr.msk.bf16.mxu1 %vm404_vm1, %v2329_v46  ;;  %v9677_v46 = vshll.u32 %v20854_v41, 16 }
 0x160   : >> { %v9672_v63 = vsel %vm345_vm0, %v9667_v59, %v9671_v53  ;;  %v9675_v9 = vor.u32 %v9673_v22, %v9671_v53 }
 0x161   : >> { %v9679_v57 = vrot.slane %v9677_v46, 1 }
 0x163   : >> { %v9680_v27 = vsel %vm345_vm0, %v9675_v9, %v9679_v57 }
 0x165   : >> { %17632 = vmatmul.mubr.msk.bf16.vlgmr.msra.gmra.mrb[0].mxu0 %vm404_vm1, %v4673_v17  ;;  %v9683_v17 = vor.u32 %v9681_v2, %v9679_v57 }
 0x166   : >> { %17444 = vmatmul.mubr.msk.bf16.gmra.mrb[8].mxu1 %vm404_vm1, %v2331_v5  ;;  %18022 = vmatpush3.bf16.msra.mxu0 %v20752_v47  ;;  %v2512_v47 = vrot.slane %v2510_v1, 1  ;;  %v20887_v5 = vld [vmem:[%s19872_s28 + $0x80] sm:$0xff]  }
 0x167   : >> { %17453 = vmatprep.mubr.msk.bf16.mxu1 %vm404_vm1, %v2490_v58  ;;  %17635 = vmatprep.mubr.msk.bf16.mxu0 %vm404_vm1, %v4675_v4  ;;  %v9687_v58 = vrot.slane %v9685_v16, 1  ;;  %v20894_v4 = vld [vmem:[%s19872_s28 + $0x88] sm:$0xff]   ;;  %v9693_v21 = vshll.u32 %v20887_v5, 16  ;;  %v19516_v16 = vld [vmem:[%s25590_s2 + $0x18] sm:$0xff]  }
 0x168   : >> { %18035 = vmatprep.subr.bf16.mxu0 %v20820_v31  ;;  %v2516_v44 = vor.u32 %v2515_v37, %v2512_v47  ;;  %v19512_v47 = vld [vmem:[%s25590_s2 + $0x10] sm:$0xff]   ;;  %v9705_v53 = vshrl.u32 %v20894_v4, 16 }
 0x169   : >> { %v9688_v7 = vsel %vm345_vm0, %v9683_v17, %v9687_v58  ;;  %v9695_v18 = vrot.slane %v9693_v21, 1  ;;  %v9691_v39 = vor.u32 %v9689_v23, %v9687_v58  ;;  %v5294_v58 = vrot.slane %v20857_v15, 1  ;;  %v5421_v23 = vld [vmem:[%s19872_s28 + $0x38] sm:$0xe] }
 0x16a   : >> { %v2517_v51 = vsel %vm927_vm2, %v2507_v32, %v2516_v44  ;;  %v5069_v32 = vshll.u32 %v20891_v55, 16  ;;  %v9930_v21 = vrot.slane %v20887_v5, 1 }
 0x16c   : >> { %v5071_v44 = vrot.slane %v5069_v32, 1  ;;  %v10053_v32 = vld [vmem:[%s19872_s28 + $0x68] sm:$0xe] }
 0x16d   : >> { %17636 = vmatmul.mubr.msk.bf16.gmra.mrb[4].mxu0 %vm404_vm1, %v4677_v13  ;;  %v9697_v13 = vshrl.u32 %v20887_v5, 16 }
 0x16e   : >> { %17454 = vmatmul.mubr.msk.bf16.vlgmr.msra.gmra.mrb[4].mxu1 %vm404_vm1, %v2499_v56  ;;  %17639 = vmatprep.mubr.msk.bf16.mxu0 %vm404_vm1, %v4679_v62  ;;  %v9701_v56 = vshll.u32 %v20894_v4, 16  ;;  %v5063_v62 = vrot.slane %v5061_v54, 1  ;;  %v5075_v43 = vor.u32 %v5073_v26, %v5071_v44  ;;  %v21054_v26 = vld [vmem:[%s19872_s28 + $0x80] sm:$0xff]  }
 0x16f   : >> { %17644 = vmatpush3.bf16.msra.mxu1 %v20776_v42  ;;  %17457 = vmatprep.mubr.msk.bf16.mxu1 %vm404_vm1, %v2508_v38  ;;  %v20866_v42 = vld [vmem:[%s19872_s28 + $0x48] sm:$0xff]   ;;  %v20917_v38 = vld [vmem:[%s19872_s28 + $0x60] ss:$0 sps:$4 sm:$0x11]   ;;  %v9699_v52 = vor.u32 %v9697_v13, %v9695_v18 }
 0x170   : >> { %17657 = vmatprep.subr.bf16.mxu1 %v19501_v8  ;;  %v5053_v3 = vshll.u32 %v20866_v42, 16  ;;  %v5057_v1 = vshrl.u32 %v20866_v42, 16  ;;  %v5067_v40 = vor.u32 %v5065_v30, %v5063_v62  ;;  %v9703_v45 = vrot.slane %v9701_v56, 1  ;;  %v21009_v30 = vld [vmem:[%s19872_s28 + $0x3c] sm:$0xf] }
 0x171   : >> { %v5077_v59 = vshll.u32 %v20917_v38, 16  ;;  %v21021_v13 = vcombine.low %v5421_v23, %v21009_v30 }
 0x172   : >> { %v5055_v25 = vrot.slane %v5053_v3, 1  ;;  %v5072_v46 = vsel %vm345_vm0, %v5067_v40, %v5071_v44  ;;  %v9704_v60 = vsel %vm345_vm0, %v9699_v52, %v9703_v45  ;;  %v9707_v22 = vor.u32 %v9705_v53, %v9703_v45  ;;  %v21045_v52 = vld [vmem:[%s19872_s28 + $0x48] sm:$0xff]  }
 0x174   : >> { %v5056_v37 = vsel %vm345_vm0, %v5051_v14, %v5055_v25  ;;  %v5059_v10 = vor.u32 %v5057_v1, %v5055_v25  ;;  %v5296_v14 = vrot.slane %v20866_v42, 1  ;;  %v5295_v25 = vsel %vm610_vm4, %v5292_v48, %v5294_v58 }
 0x175   : >> { %17640 = vmatmul.mubr.msk.bf16.gmra.mrb[8].mxu0 %vm404_vm1, %v4681_v11  ;;  %v5079_v11 = vrot.slane %v5077_v59, 1  ;;  %v5300_v1 = vrot.slane %v20891_v55, 1  ;;  %v21058_v59 = vld [vmem:[%s19872_s28 + $0x50] sm:$0xff]  }
 0x176   : >> { %17458 = vmatmul.mubr.msk.bf16.gmra.mrb[8].mxu1 %vm404_vm1, %v2517_v51  ;;  %18023 = vmatprep.mubr.msk.bf16.mxu0 %vm404_vm1, %v9672_v63  ;;  %v9709_v51 = vshll.u32 %v20922_v35, 16 }
 0x177   : >> { %17645 = vmatprep.mubr.msk.bf16.mxu1 %vm404_vm1, %v5040_v61  ;;  %v5080_v63 = vsel %vm345_vm0, %v5075_v43, %v5079_v11  ;;  %v21072_v11 = vld [vmem:[%s19872_s28 + $0x58] sm:$0xff]  }
 0x178   : >> { %v9711_v61 = vrot.slane %v9709_v51, 1  ;;  %v10106_v51 = vrot.slane %v21054_v26, 1 }
 0x17a   : >> { %v9712_v2 = vsel %vm345_vm0, %v9707_v22, %v9711_v61  ;;  %v21075_v22 = vld [vmem:[%s19872_s28 + $0x90] sm:$0xff]   ;;  %v21078_v61 = vld [vmem:[%s19872_s28 + $0x60] sm:$0xff]  }
 0x17d   : >> { %18024 = vmatmul.mubr.msk.bf16.vlgmr.msra.gmra.mrb[12].mxu0 %vm404_vm1, %v9680_v27  ;;  %v9932_v27 = vrot.slane %v20894_v4, 1 }
 0x17e   : >> { %17646 = vmatmul.mubr.msk.bf16.vlgmr.msra.gmra.mrb[12].mxu1 %vm404_vm1, %v5048_v19  ;;  %18036 = vmatpush3.bf16.msra.mxu0 %v20820_v31  ;;  %v9696_v31 = vsel %vm345_vm0, %v9691_v39, %v9695_v18  ;;  %v5469_v18 = vrot.slane %v21021_v13, 1 }
 0x17f   : >> { %17658 = vmatpush3.bf16.msra.mxu1 %v19501_v8  ;;  %18027 = vmatprep.mubr.msk.bf16.mxu0 %vm404_vm1, %v9688_v7  ;;  %v5064_v8 = vsel %vm345_vm0, %v5059_v10, %v5063_v62  ;;  %v9933_v56 = vsel %vm610_vm4, %v9930_v21, %v9932_v27  ;;  %v5302_v62 = vrot.slane %v20917_v38, 1  ;;  %v21049_v38 = vld [vmem:[%s19872_s28 + $0x78] sm:$0xff]  }
 0x180   : >> { %17649 = vmatprep.mubr.msk.bf16.mxu1 %vm404_vm1, %v5056_v37  ;;  %17671 = vmatprep.subr.bf16.mxu1 %v19512_v47  ;;  %v21031_v37 = vld [vmem:[%s19872_s28 + $0x70] sm:$0xff]   ;;  %v10104_v53 = vrot.slane %v21049_v38, 1 }
 0x181   : >> { %18049 = vmatprep.subr.bf16.mxu0 %v19513_v50  ;;  %v10102_v40 = vrot.slane %v21031_v37, 1  ;;  %v5303_v44 = vsel %vm610_vm4, %v5300_v1, %v5302_v62  ;;  %v10258_v62 = vshll.u32 %v21049_v38, 16 }
 0x185   : >> { %18028 = vmatmul.mubr.msk.bf16.gmra.mrb[16].mxu0 %vm404_vm1, %v9696_v31  ;;  %v5472_v31 = vrot.slane %v21045_v52, 1 }
 0x186   : >> { %17650 = vmatmul.mubr.msk.bf16.gmra.mrb[16].mxu1 %vm404_vm1, %v5064_v8  ;;  %18031 = vmatprep.mubr.msk.bf16.mxu0 %vm404_vm1, %v9704_v60  ;;  %v5474_v60 = vrot.slane %v21058_v59, 1 }
 0x187   : >> { %17653 = vmatprep.mubr.msk.bf16.mxu1 %vm404_vm1, %v5072_v46  ;;  %v21067_v46 = vld [vmem:[%s19872_s28 + $0x88] sm:$0xff]  }
 0x18d   : >> { %18032 = vmatmul.mubr.msk.bf16.gmra.mrb[20].mxu0 %vm404_vm1, %v9712_v2  ;;  %v10107_v2 = vsel %vm610_vm4, %v10104_v53, %v10106_v51 }
 0x18e   : >> { %17654 = vmatmul.mubr.msk.bf16.gmra.mrb[20].mxu1 %vm404_vm1, %v5080_v63  ;;  %18037 = vmatprep.mubr.msk.bf16.mxu0 %vm404_vm1, %v20815_v29  ;;  %v9917_v29 = vld [vmem:[%s19872_s28 + $0x60] sm:$0xe]  ;;  %v10105_v63 = vsel %vm610_vm4, %v10102_v40, %v10104_v53 }
 0x18f   : >> { %17659 = vmatprep.mubr.msk.bf16.mxu1 %vm404_vm1, %v20811_v34  ;;  %v5285_v34 = vld [vmem:[%s19872_s28 + $0x30] sm:$0xe]  ;;  %v16227_v57 = vcombine.low %v9917_v29, %v20804_v33  ;;  %v10108_v29 = vrot.slane %v21067_v46, 1 }
 0x190   : >> { %v15772_v3 = vcombine.low %v5285_v34, %v20800_v6  ;;  %v9924_v6 = vrot.slane %v20835_v49, 1  ;;  %v21092_v34 = vld [vmem:[%s25590_s2 + $0x28] sm:$0xff]  }
 0x191   : >> { %v9923_v9 = vrot.slane %v16227_v57, 1  ;;  %v10110_v57 = vrot.slane %v21075_v22, 1 }
 0x192   : >> { %v5291_v36 = vrot.slane %v15772_v3, 1  ;;  %v5476_v3 = vrot.slane %v21072_v11, 1 }
 0x193   : >> { %v9925_v17 = vsel %vm610_vm4, %v9923_v9, %v9924_v6  ;;  %v5609_v9 = vshll.u32 %v21021_v13, 16 }
 0x194   : >> { %v5293_v33 = vsel %vm610_vm4, %v5291_v36, %v5292_v48  ;;  %v5478_v36 = vrot.slane %v21078_v61, 1  ;;  %v5606_v48 = vshrl.u32 %v21021_v13, 16  ;;  %v5623_v13 = vshrl.u32 %v21045_v52, 16 }
 0x195   : >> { %18038 = vmatmul.mubr.msk.bf16.vlgmr.msra.gmra.mrb[12].mxu0 %vm404_vm1, %v20835_v49  ;;  %v9928_v49 = vrot.slane %v20863_v12, 1 }
 0x196   : >> { %17660 = vmatmul.mubr.msk.bf16.vlgmr.msra.gmra.mrb[12].mxu1 %vm404_vm1, %v20831_v24  ;;  %18050 = vmatpush3.bf16.msra.mxu0 %v19513_v50  ;;  %v9926_v24 = vrot.slane %v20854_v41, 1  ;;  %v9934_v50 = vrot.slane %v20922_v35, 1 }
 0x197   : >> { %17672 = vmatpush3.bf16.msra.mxu1 %v19512_v47  ;;  %18041 = vmatprep.mubr.msk.bf16.mxu0 %vm404_vm1, %v20854_v41  ;;  %v5297_v41 = vsel %vm610_vm4, %v5294_v58, %v5296_v14 }
 0x198   : >> { %17663 = vmatprep.mubr.msk.bf16.mxu1 %vm404_vm1, %v20857_v15  ;;  %17685 = vmatprep.subr.bf16.mxu1 %v19516_v16  ;;  %v9927_v54 = vsel %vm610_vm4, %v9924_v6, %v9926_v24  ;;  %v9929_v19 = vsel %vm610_vm4, %v9926_v24, %v9928_v49  ;;  %v20991_v15 = vld [vmem:[%s25590_s2 + $0x20] sm:$0xff]   ;;  %v9935_v45 = vsel %vm610_vm4, %v9932_v27, %v9934_v50  ;;  %v10246_v24 = vshrl.u32 %v21031_v37, 16 }
 0x199   : >> { %18063 = vmatprep.subr.bf16.mxu0 %v19517_v20 }
 0x19d   : >> { %18042 = vmatmul.mubr.msk.bf16.gmra.mrb[16].mxu0 %vm404_vm1, %v20863_v12  ;;  %v20998_v12 = vld [vmem:[%s25590_s2 + $0x20] sm:$0xff]  }
 0x19e   : >> { %17664 = vmatmul.mubr.msk.bf16.gmra.mrb[16].mxu1 %vm404_vm1, %v20866_v42  ;;  %18045 = vmatprep.mubr.msk.bf16.mxu0 %vm404_vm1, %v20887_v5  ;;  %v5298_v42 = vrot.slane %v20882_v28, 1  ;;  %v9931_v5 = vsel %vm610_vm4, %v9928_v49, %v9930_v21  ;;  %v10249_v49 = vshll.u32 %v21031_v37, 16 }
 0x19f   : >> { %17667 = vmatprep.mubr.msk.bf16.mxu1 %vm404_vm1, %v20882_v28  ;;  %v21014_v28 = vld [vmem:[%s19872_s28 + $0x6c] sm:$0xf] }
 0x1a0   : >> { %v5299_v7 = vsel %vm610_vm4, %v5296_v14, %v5298_v42  ;;  %v21028_v47 = vcombine.low %v10053_v32, %v21014_v28  ;;  %v10109_v14 = vsel %vm610_vm4, %v10106_v51, %v10108_v29  ;;  %v10248_v32 = vrot.slane %v10246_v24, 1 }
 0x1a1   : >> { %v5653_v24 = vshll.u32 %v21078_v61, 16 }
 0x1a2   : >> { %v10101_v39 = vrot.slane %v21028_v47, 1  ;;  %v10241_v58 = vshll.u32 %v21028_v47, 16 }
 0x1a4   : >> { %v10103_v8 = vsel %vm610_vm4, %v10101_v39, %v10102_v40  ;;  %v10243_v23 = vrot.slane %v10241_v58, 2  ;;  %v10264_v40 = vshrl.u32 %v21054_v26, 16  ;;  %v5650_v58 = vshrl.u32 %v21078_v61, 16 }
 0x1a5   : >> { %18046 = vmatmul.mubr.msk.bf16.gmra.mrb[20].mxu0 %vm404_vm1, %v20894_v4  ;;  %v21024_v4 = vld [vmem:[%s19872_s28 + $0x40] sm:$0xff]  }
 0x1a6   : >> { %17668 = vmatmul.mubr.msk.bf16.gmra.mrb[20].mxu1 %vm404_vm1, %v20891_v55  ;;  %18051 = vmatprep.mubr.msk.bf16.mxu0 %vm404_vm1, %v9925_v17  ;;  %v5301_v55 = vsel %vm610_vm4, %v5298_v42, %v5300_v1  ;;  %v5470_v10 = vrot.slane %v21024_v4, 1  ;;  %v5614_v6 = vshrl.u32 %v21024_v4, 16  ;;  %v10238_v17 = vshrl.u32 %v21028_v47, 16 }
 0x1a7   : >> { %17673 = vmatprep.mubr.msk.bf16.mxu1 %vm404_vm1, %v5293_v33  ;;  %v5617_v33 = vshll.u32 %v21024_v4, 16  ;;  %v5611_v42 = vrot.slane %v5609_v9, 2  ;;  %v10255_v47 = vshrl.u32 %v21049_v38, 16 }
 0x1a8   : >> { %v5471_v35 = vsel %vm610_vm4, %v5469_v18, %v5470_v10  ;;  %v5473_v43 = vsel %vm610_vm4, %v5470_v10, %v5472_v31  ;;  %v5616_v21 = vrot.slane %v5614_v6, 1  ;;  %v10240_v27 = vrot.slane %v10238_v17, 1 }
 0x1a9   : >> { %v5619_v1 = vrot.slane %v5617_v33, 2  ;;  %v5641_v6 = vshrl.u32 %v21072_v11, 16  ;;  %v5644_v33 = vshll.u32 %v21072_v11, 16 }
 0x1aa   : >> { %v10244_v10 = vor.u32 %v10243_v23, %v10240_v27  ;;  %v21153_v27 = vld [vmem:[%s19872_s28 + $0x98] ss:$0 sps:$4 sm:$0x33]   ;;  %v5652_v23 = vrot.slane %v5650_v58, 1  ;;  %v5795_v58 = vrot.slane %v21058_v59, 2 }
 0x1ab   : >> { %v5620_v18 = vor.u32 %v5619_v1, %v5616_v21  ;;  %v21149_v21 = vld [vmem:[%s19872_s28 + $0x68] ss:$0 sps:$4 sm:$0x33]  }
 0x1ad   : >> { %18052 = vmatmul.mubr.msk.bf16.vlgmr.msra.gmra.mrb[12].mxu0 %vm404_vm1, %v9927_v54  ;;  %v10111_v54 = vsel %vm610_vm4, %v10108_v29, %v10110_v57 }
 0x1ae   : >> { %17674 = vmatmul.mubr.msk.bf16.vlgmr.msra.gmra.mrb[12].mxu1 %vm404_vm1, %v5295_v25  ;;  %18064 = vmatpush3.bf16.msra.mxu0 %v19517_v20  ;;  %v5475_v20 = vsel %vm610_vm4, %v5472_v31, %v5474_v60  ;;  %v5477_v25 = vsel %vm610_vm4, %v5474_v60, %v5476_v3  ;;  %v5625_v31 = vrot.slane %v5623_v13, 1  ;;  %v10257_v60 = vrot.slane %v10255_v47, 1  ;;  %v19540_v13 = vld [vmem:[%s25590_s2 + $0x30] sm:$0xff]  }
 0x1af   : >> { %17686 = vmatpush3.bf16.msra.mxu1 %v19516_v16  ;;  %18055 = vmatprep.mubr.msk.bf16.mxu0 %vm404_vm1, %v9929_v19  ;;  %v21085_v16 = vld [vmem:[%s25590_s2 + $0x28] sm:$0xff]   ;;  %v19531_v19 = vld [vmem:[%s19872_s28 + $0x98] ss:$0 sps:$4 sm:$0x11]   ;;  %v19541_v47 = vld [vmem:[%s25590_s2 + $0x30] sm:$0xff]  }
 0x1b0   : >> { %17677 = vmatprep.mubr.msk.bf16.mxu1 %vm404_vm1, %v5297_v41  ;;  %17699 = vmatprep.subr.bf16.mxu1 %v20991_v15  ;;  %v19533_v41 = vld [vmem:[%s19872_s28 + $0x68] ss:$0 sps:$4 sm:$0x11]  }
 0x1b1   : >> { %18077 = vmatprep.subr.bf16.mxu0 %v20998_v12 }
 0x1b5   : >> { %18056 = vmatmul.mubr.msk.bf16.gmra.mrb[16].mxu0 %vm404_vm1, %v9931_v5  ;;  %v10112_v5 = vrot.slane %v19531_v19, 1 }
 0x1b6   : >> { %17678 = vmatmul.mubr.msk.bf16.gmra.mrb[16].mxu1 %vm404_vm1, %v5299_v7  ;;  %18059 = vmatprep.mubr.msk.bf16.mxu0 %vm404_vm1, %v9933_v56  ;;  %v10251_v7 = vrot.slane %v10249_v49, 2  ;;  %v5626_v56 = vshll.u32 %v21045_v52, 16 }
 0x1b7   : >> { %17681 = vmatprep.mubr.msk.bf16.mxu1 %vm404_vm1, %v5301_v55  ;;  %v5480_v55 = vrot.slane %v19533_v41, 1  ;;  %v10113_v51 = vsel %vm610_vm4, %v10110_v57, %v10112_v5  ;;  %v10276_v57 = vshll.u32 %v21067_v46, 16 }
 0x1b8   : >> { %v10252_v39 = vor.u32 %v10251_v7, %v10248_v32  ;;  %v5628_v53 = vrot.slane %v5626_v56, 2  ;;  %v5655_v32 = vrot.slane %v5653_v24, 2 }
 0x1b9   : >> { %v10278_v41 = vrot.slane %v10276_v57, 2 }
 0x1bd   : >> { %18060 = vmatmul.mubr.msk.bf16.gmra.mrb[20].mxu0 %vm404_vm1, %v9935_v45  ;;  %v5632_v45 = vshrl.u32 %v21058_v59, 16 }
 0x1be   : >> { %17682 = vmatmul.mubr.msk.bf16.gmra.mrb[20].mxu1 %vm404_vm1, %v5303_v44  ;;  %18065 = vmatprep.mubr.msk.bf16.mxu0 %vm404_vm1, %v10103_v8  ;;  %v10267_v44 = vshll.u32 %v21054_v26, 16  ;;  %v5481_v8 = vsel %vm610_vm4, %v5478_v36, %v5480_v55 }
 0x1bf   : >> { %17687 = vmatprep.mubr.msk.bf16.mxu1 %vm404_vm1, %v5471_v35  ;;  %v5635_v35 = vshll.u32 %v21058_v59, 16  ;;  %v5797_v59 = vrot.slane %v21072_v11, 2  ;;  %v21228_v11 = vld [vmem:[%s19872_s28 + $0x74] sm:$0xf] }
 0x1c0   : >> { %v10269_v29 = vrot.slane %v10267_v44, 2  ;;  %v5656_v44 = vor.u32 %v5655_v32, %v5652_v23 }
 0x1c1   : >> { %v5637_v9 = vrot.slane %v5635_v35, 2  ;;  %v5784_v35 = vld [vmem:[%s19872_s28 + $0x38] sm:$0xc] }
 0x1c5   : >> { %18066 = vmatmul.mubr.msk.bf16.vlgmr.msra.gmra.mrb[12].mxu0 %vm404_vm1, %v10105_v63 }
 0x1c6   : >> { %17688 = vmatmul.mubr.msk.bf16.vlgmr.msra.gmra.mrb[12].mxu1 %vm404_vm1, %v5473_v43  ;;  %18078 = vmatpush3.bf16.msra.mxu0 %v20998_v12  ;;  %v5608_v12 = vrot.slane %v5606_v48, 1  ;;  %v10260_v43 = vrot.slane %v10258_v62, 2  ;;  %v5634_v48 = vrot.slane %v5632_v45, 1 }
 0x1c7   : >> { %17700 = vmatpush3.bf16.msra.mxu1 %v20991_v15  ;;  %18069 = vmatprep.mubr.msk.bf16.mxu0 %vm404_vm1, %v10107_v2  ;;  %v5479_v15 = vsel %vm610_vm4, %v5476_v3, %v5478_v36  ;;  %v10253_v2 = vsel %vm927_vm2, %v10244_v10, %v10252_v39  ;;  %v10273_v3 = vshrl.u32 %v21067_v46, 16  ;;  %v5629_v36 = vor.u32 %v5628_v53, %v5625_v31 }
 0x1c8   : >> { %17691 = vmatprep.mubr.msk.bf16.mxu1 %vm404_vm1, %v5475_v20  ;;  %17713 = vmatprep.subr.bf16.mxu1 %v21085_v16  ;;  %v5612_v50 = vor.u32 %v5611_v42, %v5608_v12  ;;  %v10266_v20 = vrot.slane %v10264_v40, 1  ;;  %v10261_v17 = vor.u32 %v10260_v43, %v10257_v60  ;;  %v5638_v19 = vor.u32 %v5637_v9, %v5634_v48 }
 0x1c9   : >> { %18091 = vmatprep.subr.bf16.mxu0 %v21092_v34  ;;  %v5643_v12 = vrot.slane %v5641_v6, 1  ;;  %v5646_v42 = vrot.slane %v5644_v33, 2  ;;  %v5662_v10 = vshll.u32 %v21149_v21, 16  ;;  %v10294_v40 = vshll.u32 %v21153_v27, 16 }
 0x1ca   : >> { %v5621_v63 = vsel %vm927_vm2, %v5612_v50, %v5620_v18  ;;  %v10270_v49 = vor.u32 %v10269_v29, %v10266_v20  ;;  %v10262_v1 = vsel %vm927_vm2, %v10252_v39, %v10261_v17  ;;  %v5639_v56 = vsel %vm927_vm2, %v5629_v36, %v5638_v19 }
 0x1cb   : >> { %v5647_v50 = vor.u32 %v5646_v42, %v5643_v12  ;;  %v10291_v39 = vshrl.u32 %v21153_v27, 16  ;;  %v10296_v60 = vrot.slane %v10294_v40, 2  ;;  %v5791_v9 = vrot.slane %v21024_v4, 2  ;;  %v10552_v12 = vld [vmem:[%s19872_s28 + $0x70] sm:$0xc]  ;;  %v21268_v40 = vld [vmem:[%s19872_s28 + $0x88] sm:$0xff]  }
 0x1cc   : >> { %v10271_v7 = vsel %vm927_vm2, %v10261_v17, %v10270_v49  ;;  %v5793_v17 = vrot.slane %v21045_v52, 2  ;;  %v10425_v4 = vrot.slane %v21049_v38, 2  ;;  %v21205_v52 = vld [vmem:[%s25590_s2 + $0x38] sm:$0xff]   ;;  %v5798_v42 = vsel %vm1114_vm3, %v5795_v58, %v5797_v59 }
 0x1cd   : >> { %18070 = vmatmul.mubr.msk.bf16.gmra.mrb[16].mxu0 %vm404_vm1, %v10109_v14  ;;  %v10282_v14 = vshrl.u32 %v21075_v22, 16  ;;  %v5648_v31 = vsel %vm927_vm2, %v5638_v19, %v5647_v50  ;;  %v5657_v43 = vsel %vm927_vm2, %v5647_v50, %v5656_v44  ;;  %v10431_v19 = vrot.slane %v21075_v22, 2 }
 0x1ce   : >> { %17692 = vmatmul.mubr.msk.bf16.gmra.mrb[16].mxu1 %vm404_vm1, %v5477_v25  ;;  %18073 = vmatprep.mubr.msk.bf16.mxu0 %vm404_vm1, %v10111_v54  ;;  %v10285_v25 = vshll.u32 %v21075_v22, 16  ;;  %v10275_v54 = vrot.slane %v10273_v3, 1  ;;  %v5794_v24 = vsel %vm1114_vm3, %v5791_v9, %v5793_v17  ;;  %v5796_v38 = vsel %vm1114_vm3, %v5793_v17, %v5795_v58  ;;  %v21238_v22 = vld [vmem:[%s19872_s28 + $0x48] sm:$0xff]  }
 0x1cf   : >> { %17695 = vmatprep.mubr.msk.bf16.mxu1 %vm404_vm1, %v5479_v15  ;;  %v5630_v15 = vsel %vm927_vm2, %v5620_v18, %v5629_v36  ;;  %v10284_v5 = vrot.slane %v10282_v14, 1  ;;  %v5659_v18 = vshrl.u32 %v21149_v21, 16  ;;  %v21242_v32 = vcombine.low %v10552_v12, %v21228_v11 }
 0x1d0   : >> { %v10287_v55 = vrot.slane %v10285_v25, 2  ;;  %v10279_v62 = vor.u32 %v10278_v41, %v10275_v54  ;;  %v10429_v25 = vrot.slane %v21067_v46, 2  ;;  %v5799_v54 = vrot.slane %v21078_v61, 2  ;;  %v21223_v41 = vld [vmem:[%s19872_s28 + $0x44] sm:$0xf] }
 0x1d1   : >> { %v5661_v53 = vrot.slane %v5659_v18, 1  ;;  %v21259_v18 = vld [vmem:[%s19872_s28 + $0x50] sm:$0xff]   ;;  %v10740_v17 = vshll.u32 %v21242_v32, 16 }
 0x1d2   : >> { %v10288_v45 = vor.u32 %v10287_v55, %v10284_v5  ;;  %v5800_v61 = vsel %vm1114_vm3, %v5797_v59, %v5799_v54  ;;  %v10432_v23 = vsel %vm1114_vm3, %v10429_v25, %v10431_v19  ;;  %v5801_v5 = vrot.slane %v21149_v21, 2  ;;  %v21263_v21 = vld [vmem:[%s19872_s28 + $0x80] sm:$0xff]  }
 0x1d3   : >> { %v10433_v55 = vrot.slane %v21153_v27, 2 }
 0x1d4   : >> { %v5802_v50 = vsel %vm1114_vm3, %v5799_v54, %v5801_v5  ;;  %v10757_v5 = vshll.u32 %v21263_v21, 16 }
 0x1d5   : >> { %18074 = vmatmul.mubr.msk.bf16.gmra.mrb[20].mxu0 %vm404_vm1, %v10113_v51  ;;  %v10293_v51 = vrot.slane %v10291_v39, 1 }
 0x1d6   : >> { %17696 = vmatmul.mubr.msk.bf16.gmra.mrb[20].mxu1 %vm404_vm1, %v5481_v8  ;;  %18079 = vmatprep.mubr.msk.bf16.mxu0 %vm404_vm1, %v10253_v2  ;;  %v10280_v8 = vsel %vm927_vm2, %v10270_v49, %v10279_v62  ;;  %v10289_v2 = vsel %vm927_vm2, %v10279_v62, %v10288_v45 }
 0x1d7   : >> { %17701 = vmatprep.mubr.msk.bf16.mxu1 %vm404_vm1, %v5621_v63  ;;  %v15808_v63 = vcombine.low %v5784_v35, %v21009_v30  ;;  %v10297_v3 = vor.u32 %v10296_v60, %v10293_v51  ;;  %v10423_v30 = vrot.slane %v21031_v37, 2  ;;  %v10427_v37 = vrot.slane %v21054_v26, 2  ;;  %v21212_v26 = vld [vmem:[%s25590_s2 + $0x38] sm:$0xff]   ;;  %v21292_v60 = vld [vmem:[%s19872_s28 + $0x68] sm:$0xff]  }
 0x1d8   : >> { %v10603_v35 = vrot.slane %v21263_v21, 2  ;;  %v21289_v51 = vld [vmem:[%s19872_s28 + $0x98] sm:$0xff]  }
 0x1d9   : >> { %v5790_v48 = vrot.slane %v15808_v63, 2  ;;  %v10426_v49 = vsel %vm1114_vm3, %v10423_v30, %v10425_v4  ;;  %v10428_v14 = vsel %vm1114_vm3, %v10425_v4, %v10427_v37  ;;  %v10430_v46 = vsel %vm1114_vm3, %v10427_v37, %v10429_v25 }
 0x1db   : >> { %v5792_v6 = vsel %vm1114_vm3, %v5790_v48, %v5791_v9  ;;  %v10609_v9 = vrot.slane %v21289_v51, 2 }
 0x1dd   : >> { %18080 = vmatmul.mubr.msk.bf16.vlgmr.msra.gmra.mrb[12].mxu0 %vm404_vm1, %v10262_v1 }
 0x1de   : >> { %17702 = vmatmul.mubr.msk.bf16.vlgmr.msra.gmra.mrb[12].mxu1 %vm404_vm1, %v5630_v15  ;;  %18092 = vmatpush3.bf16.msra.mxu0 %v21092_v34  ;;  %v5664_v34 = vrot.slane %v5662_v10, 2  ;;  %v5920_v15 = vld [vmem:[%s19872_s28 + $0x40] sm:$0xc]  ;;  %v10434_v10 = vsel %vm1114_vm3, %v10431_v19, %v10433_v55 }
 0x1df   : >> { %17714 = vmatpush3.bf16.msra.mxu1 %v21085_v16  ;;  %18083 = vmatprep.mubr.msk.bf16.mxu0 %vm404_vm1, %v10271_v7  ;;  %v10416_v16 = vld [vmem:[%s19872_s28 + $0x68] sm:$0xc]  ;;  %v21235_v1 = vcombine.low %v5920_v15, %v21223_v41  ;;  %v21245_v7 = vld [vmem:[%s19872_s28 + $0x78] sm:$0xff]   ;;  %v10742_v15 = vrot.slane %v10740_v17, 3  ;;  %v6149_v17 = vshrl.u32 %v21292_v60, 16 }
 0x1e0   : >> { %17705 = vmatprep.mubr.msk.bf16.mxu1 %vm404_vm1, %v5639_v56  ;;  %17727 = vmatprep.subr.bf16.mxu1 %v19540_v13  ;;  %v16263_v20 = vcombine.low %v10416_v16, %v21014_v28  ;;  %v5665_v29 = vor.u32 %v5664_v34, %v5661_v53  ;;  %v10298_v28 = vsel %vm927_vm2, %v10288_v45, %v10297_v3  ;;  %v5969_v56 = vrot.slane %v21238_v22, 2  ;;  %v21286_v34 = vld [vmem:[%s19872_s28 + $0x60] sm:$0xff]  }
 0x1e1   : >> { %18105 = vmatprep.subr.bf16.mxu0 %v19541_v47  ;;  %v10601_v62 = vrot.slane %v21245_v7, 2  ;;  %v5971_v45 = vrot.slane %v21259_v18, 2  ;;  %v10605_v16 = vrot.slane %v21268_v40, 2  ;;  %v5975_v48 = vrot.slane %v21286_v34, 2 }
 0x1e2   : >> { %v10422_v36 = vrot.slane %v16263_v20, 2  ;;  %v5666_v57 = vsel %vm927_vm2, %v5656_v44, %v5665_v29  ;;  %v21272_v44 = vld [vmem:[%s19872_s28 + $0x58] sm:$0xff]   ;;  %v21306_v29 = vld [vmem:[%s25590_s2 + $0x40] sm:$0xff]   ;;  %v10745_v4 = vshrl.u32 %v21245_v7, 16  ;;  %v10748_v37 = vshll.u32 %v21245_v7, 16 }
 0x1e3   : >> { %v5972_v53 = vsel %vm1114_vm3, %v5969_v56, %v5971_v45  ;;  %v10606_v63 = vsel %vm1114_vm3, %v10603_v35, %v10605_v16 }
 0x1e4   : >> { %v10424_v33 = vsel %vm1114_vm3, %v10422_v36, %v10423_v30  ;;  %v5977_v36 = vrot.slane %v21292_v60, 2  ;;  %v6105_v30 = vshrl.u32 %v21235_v1, 16  ;;  %v10747_v12 = vrot.slane %v10745_v4, 2 }
 0x1e5   : >> { %18084 = vmatmul.mubr.msk.bf16.gmra.mrb[16].mxu0 %vm404_vm1, %v10280_v8  ;;  %v21281_v8 = vld [vmem:[%s19872_s28 + $0x90] sm:$0xff]   ;;  %v6152_v4 = vshll.u32 %v21292_v60, 16 }
 0x1e6   : >> { %17706 = vmatmul.mubr.msk.bf16.gmra.mrb[16].mxu1 %vm404_vm1, %v5648_v31  ;;  %18087 = vmatprep.mubr.msk.bf16.mxu0 %vm404_vm1, %v10289_v2  ;;  %v5973_v31 = vrot.slane %v21272_v44, 2  ;;  %v21299_v2 = vld [vmem:[%s25590_s2 + $0x40] sm:$0xff]   ;;  %v10607_v3 = vrot.slane %v21281_v8, 2 }
 0x1e7   : >> { %17709 = vmatprep.mubr.msk.bf16.mxu1 %vm404_vm1, %v5657_v43  ;;  %v10604_v43 = vsel %vm1114_vm3, %v10601_v62, %v10603_v35 }
 0x1e8   : >> { %v5974_v20 = vsel %vm1114_vm3, %v5971_v45, %v5973_v31  ;;  %v10608_v58 = vsel %vm1114_vm3, %v10605_v16, %v10607_v3 }
 0x1ed   : >> { %18088 = vmatmul.mubr.msk.bf16.gmra.mrb[20].mxu0 %vm404_vm1, %v10298_v28  ;;  %v6113_v28 = vshrl.u32 %v21238_v22, 16 }
 0x1ee   : >> { %17710 = vmatmul.mubr.msk.bf16.gmra.mrb[20].mxu1 %vm404_vm1, %v5666_v57  ;;  %18093 = vmatprep.mubr.msk.bf16.mxu0 %vm404_vm1, %v10424_v33  ;;  %v6108_v57 = vshll.u32 %v21235_v1, 16  ;;  %v10737_v33 = vshrl.u32 %v21242_v32, 16 }
 0x1ef   : >> { %17715 = vmatprep.mubr.msk.bf16.mxu1 %vm404_vm1, %v5792_v6  ;;  %v6116_v6 = vshll.u32 %v21238_v22, 16  ;;  %v6115_v25 = vrot.slane %v6113_v28, 2  ;;  %v6140_v28 = vshrl.u32 %v21286_v34, 16 }
 0x1f0   : >> { %v6110_v59 = vrot.slane %v6108_v57, 3  ;;  %v10739_v19 = vrot.slane %v10737_v33, 2 }
 0x1f1   : >> { %v6118_v54 = vrot.slane %v6116_v6, 3  ;;  %v6143_v6 = vshll.u32 %v21286_v34, 16 }
 0x1f5   : >> { %18094 = vmatmul.mubr.msk.bf16.vlgmr.msra.gmra.mrb[12].mxu0 %vm404_vm1, %v10426_v49  ;;  %v10610_v49 = vsel %vm1114_vm3, %v10607_v3, %v10609_v9 }
 0x1f6   : >> { %17716 = vmatmul.mubr.msk.bf16.vlgmr.msra.gmra.mrb[12].mxu1 %vm404_vm1, %v5794_v24  ;;  %18106 = vmatpush3.bf16.msra.mxu0 %v19541_v47  ;;  %v10600_v47 = vrot.slane %v21242_v32, 2  ;;  %v5976_v24 = vsel %vm1114_vm3, %v5973_v31, %v5975_v48  ;;  %v10754_v32 = vshrl.u32 %v21263_v21, 16 }
 0x1f7   : >> { %17728 = vmatpush3.bf16.msra.mxu1 %v19540_v13  ;;  %18097 = vmatprep.mubr.msk.bf16.mxu0 %vm404_vm1, %v10428_v14  ;;  %v5968_v13 = vrot.slane %v21235_v1, 2  ;;  %v19555_v14 = vld [vmem:[%s19872_s28 + $0xa0] ss:$0 sps:$4 sm:$0x33]   ;;  %v6122_v1 = vshrl.u32 %v21259_v18, 16 }
 0x1f8   : >> { %17719 = vmatprep.mubr.msk.bf16.mxu1 %vm404_vm1, %v5796_v38  ;;  %17741 = vmatprep.subr.bf16.mxu1 %v21205_v52  ;;  %v10602_v39 = vsel %vm1114_vm3, %v10600_v47, %v10601_v62  ;;  %v19557_v38 = vld [vmem:[%s19872_s28 + $0x70] ss:$0 sps:$4 sm:$0x33]   ;;  %v10763_v62 = vshrl.u32 %v21268_v40, 16  ;;  %v10756_v31 = vrot.slane %v10754_v32, 2  ;;  %v21380_v32 = vld [vmem:[%s25590_s2 + $0x48] sm:$0xff]  }
 0x1f9   : >> { %18119 = vmatprep.subr.bf16.mxu0 %v21212_v26  ;;  %v5970_v27 = vsel %vm1114_vm3, %v5968_v13, %v5969_v56  ;;  %v6119_v13 = vor.u32 %v6118_v54, %v6115_v25  ;;  %v10743_v56 = vor.u32 %v10742_v15, %v10739_v19  ;;  %v6124_v45 = vrot.slane %v6122_v1, 2  ;;  %v21363_v25 = vld [vmem:[%s19872_s28 + $0x70] ss:$0 sps:$4 sm:$0x77]   ;;  %v21373_v1 = vld [vmem:[%s25590_s2 + $0x48] sm:$0xff]  }
 0x1fa   : >> { %v21367_v19 = vld [vmem:[%s19872_s28 + $0xa0] ss:$0 sps:$4 sm:$0x77]   ;;  %v6151_v15 = vrot.slane %v6149_v17, 2 }
 0x1fd   : >> { %18098 = vmatmul.mubr.msk.bf16.gmra.mrb[16].mxu0 %vm404_vm1, %v10430_v46  ;;  %v10611_v46 = vrot.slane %v19555_v14, 2 }
 0x1fe   : >> { %17720 = vmatmul.mubr.msk.bf16.gmra.mrb[16].mxu1 %vm404_vm1, %v5798_v42  ;;  %18101 = vmatprep.mubr.msk.bf16.mxu0 %vm404_vm1, %v10432_v23  ;;  %v10750_v42 = vrot.slane %v10748_v37, 3  ;;  %v6125_v23 = vshll.u32 %v21259_v18, 16 }
 0x1ff   : >> { %17723 = vmatprep.mubr.msk.bf16.mxu1 %vm404_vm1, %v5800_v61  ;;  %v5979_v61 = vrot.slane %v19557_v38, 2  ;;  %v10612_v16 = vsel %vm1114_vm3, %v10609_v9, %v10611_v46  ;;  %v10775_v9 = vshll.u32 %v21281_v8, 16 }
 0x200   : >> { %v10751_v47 = vor.u32 %v10750_v42, %v10747_v12  ;;  %v6127_v35 = vrot.slane %v6125_v23, 3  ;;  %v6154_v12 = vrot.slane %v6152_v4, 3  ;;  %v10922_v4 = vrot.slane %v21245_v7, 3 }
 0x201   : >> { %v10777_v38 = vrot.slane %v10775_v9, 3  ;;  %v10924_v7 = vrot.slane %v21263_v21, 3 }
 0x205   : >> { %18102 = vmatmul.mubr.msk.bf16.gmra.mrb[20].mxu0 %vm404_vm1, %v10434_v10  ;;  %v6131_v10 = vshrl.u32 %v21272_v44, 16 }
 0x206   : >> { %17724 = vmatmul.mubr.msk.bf16.gmra.mrb[20].mxu1 %vm404_vm1, %v5802_v50  ;;  %18107 = vmatprep.mubr.msk.bf16.mxu0 %vm404_vm1, %v10602_v39  ;;  %v10766_v50 = vshll.u32 %v21268_v40, 16  ;;  %v5980_v39 = vsel %vm1114_vm3, %v5977_v36, %v5979_v61 }
 0x207   : >> { %17729 = vmatprep.mubr.msk.bf16.mxu1 %vm404_vm1, %v5970_v27  ;;  %v6134_v27 = vshll.u32 %v21272_v44, 16 }
 0x208   : >> { %v10768_v3 = vrot.slane %v10766_v50, 3  ;;  %v6155_v50 = vor.u32 %v6154_v12, %v6151_v15 }
 0x209   : >> { %v6136_v57 = vrot.slane %v6134_v27, 3  ;;  %v6283_v27 = vld [vmem:[%s19872_s28 + $0x40] sm:$0x8] }
 0x20d   : >> { %18108 = vmatmul.mubr.msk.bf16.vlgmr.msra.gmra.mrb[12].mxu0 %vm404_vm1, %v10604_v43 }
 0x20e   : >> { %17730 = vmatmul.mubr.msk.bf16.vlgmr.msra.gmra.mrb[12].mxu1 %vm404_vm1, %v5972_v53  ;;  %18120 = vmatpush3.bf16.msra.mxu0 %v21212_v26  ;;  %v6107_v26 = vrot.slane %v6105_v30, 2  ;;  %v10759_v53 = vrot.slane %v10757_v5, 3  ;;  %v6133_v30 = vrot.slane %v6131_v10, 2 }
 0x20f   : >> { %17742 = vmatpush3.bf16.msra.mxu1 %v21205_v52  ;;  %18111 = vmatprep.mubr.msk.bf16.mxu0 %vm404_vm1, %v10606_v63  ;;  %v5978_v52 = vsel %vm1114_vm3, %v5975_v48, %v5977_v36  ;;  %v10752_v63 = vsel %vm1431_vm5, %v10743_v56, %v10751_v47  ;;  %v10772_v48 = vshrl.u32 %v21281_v8, 16  ;;  %v6128_v36 = vor.u32 %v6127_v35, %v6124_v45  ;;  %v10915_v45 = vld [vmem:[%s19872_s28 + $0x70] sm:$0x8] }
 0x210   : >> { %17733 = vmatprep.mubr.msk.bf16.mxu1 %vm404_vm1, %v5974_v20  ;;  %17755 = vmatprep.subr.bf16.mxu1 %v21299_v2  ;;  %v6111_v55 = vor.u32 %v6110_v59, %v6107_v26  ;;  %v10765_v20 = vrot.slane %v10763_v62, 2  ;;  %v10760_v33 = vor.u32 %v10759_v53, %v10756_v31  ;;  %v6137_v14 = vor.u32 %v6136_v57, %v6133_v30 }
 0x211   : >> { %18133 = vmatprep.subr.bf16.mxu0 %v21306_v29  ;;  %v6142_v26 = vrot.slane %v6140_v28, 2  ;;  %v6145_v59 = vrot.slane %v6143_v6, 3  ;;  %v6161_v56 = vshll.u32 %v21363_v25, 16  ;;  %v10793_v62 = vshll.u32 %v21367_v19, 16 }
 0x212   : >> { %v6120_v43 = vsel %vm1431_vm5, %v6111_v55, %v6119_v13  ;;  %v10769_v37 = vor.u32 %v10768_v3, %v10765_v20  ;;  %v10761_v54 = vsel %vm1431_vm5, %v10751_v47, %v10760_v33  ;;  %v6138_v23 = vsel %vm1431_vm5, %v6128_v36, %v6137_v14 }
 0x213   : >> { %v6146_v55 = vor.u32 %v6145_v59, %v6142_v26  ;;  %v10790_v47 = vshrl.u32 %v21367_v19, 16  ;;  %v6163_v53 = vrot.slane %v6161_v56, 3  ;;  %v10795_v20 = vrot.slane %v10793_v62, 3  ;;  %v21444_v62 = vld [vmem:[%s25590_s2 + $0x50] sm:$0xff]  }
 0x214   : >> { %v10770_v42 = vsel %vm1431_vm5, %v10760_v33, %v10769_v37  ;;  %v16299_v57 = vcombine.low %v10915_v45, %v21228_v11  ;;  %v6290_v33 = vrot.slane %v21238_v22, 3  ;;  %v6292_v22 = vrot.slane %v21259_v18, 3 }
 0x215   : >> { %18112 = vmatmul.mubr.msk.bf16.gmra.mrb[16].mxu0 %vm404_vm1, %v10608_v58  ;;  %v10781_v58 = vshrl.u32 %v21289_v51, 16  ;;  %v6156_v3 = vsel %vm1431_vm5, %v6146_v55, %v6155_v50  ;;  %v6294_v59 = vrot.slane %v21272_v44, 3  ;;  %v21434_v44 = vld [vmem:[%s25590_s2 + $0x50] sm:$0xff]   ;;  %v10928_v56 = vrot.slane %v21281_v8, 3 }
 0x216   : >> { %17734 = vmatmul.mubr.msk.bf16.gmra.mrb[16].mxu1 %vm404_vm1, %v5976_v24  ;;  %18115 = vmatprep.mubr.msk.bf16.mxu0 %vm404_vm1, %v10610_v49  ;;  %v10784_v24 = vshll.u32 %v21289_v51, 16  ;;  %v10774_v49 = vrot.slane %v10772_v48, 2  ;;  %v15844_v48 = vcombine.low %v6283_v27, %v21223_v41  ;;  %v4856_v41 = vpop.permute.xlu1 %4855  ;;  %v10921_v17 = vrot.slane %v16299_v57, 3 }
 0x217   : >> { %17737 = vmatprep.mubr.msk.bf16.mxu1 %vm404_vm1, %v5978_v52  ;;  %v6129_v52 = vsel %vm1431_vm5, %v6119_v13, %v6128_v36  ;;  %v10783_v46 = vrot.slane %v10781_v58, 2  ;;  %v6158_v13 = vshrl.u32 %v21363_v25, 16  ;;  %v21402_v36 = vpop.permute.xlu0 %4845  ;;  %v6293_v12 = vsel %vm1618_vm6, %v6290_v33, %v6292_v22 }
 0x218   : >> { %v10786_v61 = vrot.slane %v10784_v24, 3  ;;  %v10778_v5 = vor.u32 %v10777_v38, %v10774_v49  ;;  %v6289_v6 = vrot.slane %v15844_v48, 3  ;;  %v10923_v49 = vsel %vm1618_vm6, %v10921_v17, %v10922_v4 }
 0x219   : >> { %v6160_v31 = vrot.slane %v6158_v13, 2  ;;  %v6298_v45 = vrot.slane %v21292_v60, 3 }
 0x21a   : >> { %v6291_v58 = vsel %vm1618_vm6, %v6289_v6, %v6290_v33 }
 0x21b   : >> { %v6164_v9 = vor.u32 %v6163_v53, %v6160_v31  ;;  %v21412_v24 = vpop.permute.xlu0 %4850 }
 0x21d   : >> { %18116 = vmatmul.mubr.msk.bf16.gmra.mrb[20].mxu0 %vm404_vm1, %v10612_v16  ;;  %v6147_v16 = vsel %vm1431_vm5, %v6137_v14, %v6146_v55  ;;  %v6165_v11 = vsel %vm1431_vm5, %v6155_v50, %v6164_v9  ;;  %v4861_v14 = vpop.permute.xlu1 %4860 }
 0x21e   : >> { %17738 = vmatmul.mubr.msk.bf16.gmra.mrb[20].mxu1 %vm404_vm1, %v5980_v39  ;;  %18121 = vmatprep.mubr.msk.bf16.mxu0 %vm404_vm1, %v10752_v63  ;;  %v10792_v63 = vrot.slane %v10790_v47, 2  ;;  %v6295_v47 = vsel %vm1618_vm6, %v6292_v22, %v6294_v59 }
 0x21f   : >> { %17743 = vmatprep.mubr.msk.bf16.mxu1 %vm404_vm1, %v6120_v43  ;;  %v21422_v26 = vpop.permute.xlu0 %4865 }
 0x220   : >> { %v10796_v28 = vor.u32 %v10795_v20, %v10792_v63 }
 0x225   : >> { %18122 = vmatmul.mubr.msk.bf16.vlgmr.msra.gmra.mrb[12].mxu0 %vm404_vm1, %v10761_v54 }
 0x226   : >> { %17744 = vmatmul.mubr.msk.bf16.vlgmr.msra.gmra.mrb[12].mxu1 %vm404_vm1, %v6129_v52  ;;  %18134 = vmatpush3.bf16.msra.mxu0 %v21306_v29  ;;  %v10779_v29 = vsel %vm1431_vm5, %v10769_v37, %v10778_v5  ;;  %v10926_v52 = vrot.slane %v21268_v40, 3 }
 0x227   : >> { %17756 = vmatpush3.bf16.msra.mxu1 %v21299_v2  ;;  %18125 = vmatprep.mubr.msk.bf16.mxu0 %vm404_vm1, %v10770_v42  ;;  %v10787_v2 = vor.u32 %v10786_v61, %v10783_v46  ;;  %v21426_v42 = vpop.permute.xlu1 %4870  ;;  %v10925_v61 = vsel %vm1618_vm6, %v10922_v4, %v10924_v7 }
 0x228   : >> { %17747 = vmatprep.mubr.msk.bf16.mxu1 %vm404_vm1, %v6138_v23  ;;  %17769 = vmatprep.subr.bf16.mxu1 %v21373_v1  ;;  %v10929_v63 = vsel %vm1618_vm6, %v10926_v52, %v10928_v56 }
 0x229   : >> { %v17437_v10 = vpop.f32.mrb[0].mxu1  ;;  %18147 = vmatprep.subr.bf16.mxu0 %v21380_v32  ;;  %v10788_v30 = vsel %vm1431_vm5, %v10778_v5, %v10787_v2  ;;  %v10797_v37 = vsel %vm1431_vm5, %v10787_v2, %v10796_v28  ;;  %v10927_v5 = vsel %vm1618_vm6, %v10924_v7, %v10926_v52  ;;  %v6296_v2 = vrot.slane %v21286_v34, 3 }
 0x22a   : >> { %v2390_v39 = vpop.f32.mrb[1].mxu1 }
 0x22b   : >> { %v17438_v35 = vpop.f32.mrb[2].mxu1  ;;  %v4881_v31 = vpop.permute.xlu1 %4880  ;;  %v6297_v9 = vsel %vm1618_vm6, %v6294_v59, %v6296_v2  ;;  %v6299_v17 = vsel %vm1618_vm6, %v6296_v2, %v6298_v45 }
 0x22c   : >> { %v2393_v43 = vpop.f32.mrb[3].mxu1 }
 0x22d   : >> { %18126 = vmatmul.mubr.msk.bf16.gmra.mrb[16].mxu0 %vm404_vm1, %v10779_v29 }
 0x22e   : >> { %17748 = vmatmul.mubr.msk.bf16.gmra.mrb[16].mxu1 %vm404_vm1, %v6147_v16  ;;  %18129 = vmatprep.mubr.msk.bf16.mxu0 %vm404_vm1, %v10788_v30 }
 0x22f   : >> { %17751 = vmatprep.mubr.msk.bf16.mxu1 %vm404_vm1, %v6156_v3 }
 0x235   : >> { %18130 = vmatmul.mubr.msk.bf16.gmra.mrb[20].mxu0 %vm404_vm1, %v10797_v37 }
 0x236   : >> { %17752 = vmatmul.mubr.msk.bf16.gmra.mrb[20].mxu1 %vm404_vm1, %v6165_v11  ;;  %18135 = vmatprep.mubr.msk.bf16.mxu0 %vm404_vm1, %v10923_v49 }
 0x237   : >> { %17757 = vmatprep.mubr.msk.bf16.mxu1 %vm404_vm1, %v6291_v58 }
 0x238   : >> { %v17633_v38 = vpop.f32.mrb[0].mxu0 }
 0x239   : >> { %v18401_v54 = vadd.f32 %v17633_v38, %v17437_v10  ;;  %v4740_v15 = vpop.f32.mrb[1].mxu0  ;;  %v6300_v38 = vrot.slane %v21363_v25, 3 }
 0x23a   : >> { %v18402_v46 = vadd.f32 %v4740_v15, %v2390_v39  ;;  %v17634_v18 = vpop.f32.mrb[2].mxu0  ;;  %v4876_v39 = vpop.permute.xlu0 %4875  ;;  %v10932_v15 = vrot.slane %v21367_v19, 3 }
 0x23b   : >> { %v4807_v21 = vadd.f32 %v18401_v54, %v19854_v0  ;;  %v18403_v23 = vadd.f32 %v17634_v18, %v17438_v35  ;;  %v4743_v40 = vpop.f32.mrb[3].mxu0  ;;  %v6301_v19 = vsel %vm1618_vm6, %v6298_v45, %v6300_v38  ;;  %v21542_v38 = vld [vmem:[%s25590_s2 + $0x58] sm:$0xff]  }
 0x23c   : >> { %v4805_v55 = vadd.f32 %v18402_v46, %v19854_v0  ;;  %v18404_v13 = vadd.f32 %v4743_v40, %v2393_v43 }
 0x23d   : >> { %v4819_v50 = vmax.f32 %v4807_v21, 0.0  ;;  %v4808_v10 = vadd.f32 %v18403_v23, %v19854_v0  ;;  %18136 = vmatmul.mubr.msk.bf16.vlgmr.msra.gmra.mrb[12].mxu0 %vm404_vm1, %v10925_v61  ;;  %v4891_v21 = vpop.permute.xlu1 %4890 }
 0x23e   : >> { %17758 = vmatmul.mubr.msk.bf16.vlgmr.msra.gmra.mrb[12].mxu1 %vm404_vm1, %v6293_v12  ;;  %v4817_v27 = vmax.f32 %v4805_v55, 0.0  ;;  %v4806_v8 = vadd.f32 %v18404_v13, %v19854_v0  ;;  %18148 = vmatpush3.bf16.msra.mxu0 %v21380_v32  ;;  %v4886_v12 = vpop.permute.xlu0 %4885 }
 0x23f   : >> { %17770 = vmatpush3.bf16.msra.mxu1 %v21373_v1  ;;  %18139 = vmatprep.mubr.msk.bf16.mxu0 %vm404_vm1, %v10927_v5  ;;  %v4820_v29 = vmax.f32 %v4808_v10, 0.0  ;;  %v4905_v35 = vmul.f32 %v4856_v41, %v4819_v50  ;;  %v10930_v1 = vrot.slane %v21289_v51, 3  ;;  %v19566_v10 = vld [vmem:[%s19872_s28 + $0xd4] sm:$0xff]  }
 0x240   : >> { %17761 = vmatprep.mubr.msk.bf16.mxu1 %vm404_vm1, %v6295_v47  ;;  %17783 = vmatprep.subr.bf16.mxu1 %v21434_v44  ;;  %v4818_v34 = vmax.f32 %v4806_v8, 0.0  ;;  %v4903_v32 = vmul.f32 %v21402_v36, %v4817_v27  ;;  %v17637_v53 = vpop.f32.mrb[4].mxu0 }
 0x241   : >> { %v17455_v16 = vpop.f32.mrb[4].mxu1  ;;  %18161 = vmatprep.subr.bf16.mxu0 %v21444_v62  ;;  %v16663_v20 = vpack.c.bf16 %v4905_v35, %v4905_v35  ;;  %v4906_v3 = vmul.f32 %v4861_v14, %v4820_v29  ;;  %v4756_v48 = vpop.f32.mrb[5].mxu0  ;;  %v19564_v35 = vld [vmem:[%s19872_s28 + $0x104] sm:$0xff]  }
 0x242   : >> { %v2592_v43 = vpop.f32.mrb[5].mxu1  ;;  %v18405_v30 = vadd.f32 %v17637_v53, %v17455_v16  ;;  %v16661_v28 = vpack.c.bf16 %v4903_v32, %v4903_v32  ;;  %v4904_v6 = vmul.f32 %v21412_v24, %v4818_v34  ;;  %v17638_v36 = vpop.f32.mrb[6].mxu0  ;;  %v10931_v24 = vsel %vm1618_vm6, %v10928_v56, %v10930_v1 }
 0x243   : >> { %v17456_v57 = vpop.f32.mrb[6].mxu1  ;;  %v18406_v33 = vadd.f32 %v4756_v48, %v2592_v43  ;;  %4969 = vst.msk [vmem:[%s21458_s22 + $0x8] sm:$0xf] %vm4966_vm7, %v16663_v20  ;;  %v16664_v4 = vpack.c.bf16 %v4906_v3, %v4906_v3  ;;  %v4759_v11 = vpop.f32.mrb[7].mxu0 }
 0x244   : >> { %v2595_v41 = vpop.f32.mrb[7].mxu1  ;;  %v4811_v37 = vadd.f32 %v18405_v30, %v19854_v0  ;;  %v18407_v58 = vadd.f32 %v17638_v36, %v17456_v57  ;;  %4967 = vst.msk [vmem:[%s21458_s22] sm:$0xf] %vm4966_vm7, %v16661_v28  ;;  %v16662_v49 = vpack.c.bf16 %v4904_v6, %v4904_v6  ;;  %v4896_v51 = vpop.permute.xlu0 %4895  ;;  %v15879_v30 = vld [vmem:[%s19872_s28 + $0xd4] sm:$0xf]  ;;  %v19569_v6 = vld [vmem:[%s19872_s28 + $0xdc] sm:$0xff]  }
 0x245   : >> { %v4809_v14 = vadd.f32 %v18406_v33, %v19854_v0  ;;  %v18408_v22 = vadd.f32 %v4759_v11, %v2595_v41  ;;  %4970 = vst.msk [vmem:[%s21458_s22 + $0xc] sm:$0xf] %vm4966_vm7, %v16664_v4  ;;  %18140 = vmatmul.mubr.msk.bf16.gmra.mrb[16].mxu0 %vm404_vm1, %v10929_v63  ;;  %v4901_v20 = vpop.permute.xlu1 %4900  ;;  %v21517_v57 = vld [vmem:[%s19872_s28 + $0xd8] sm:$0xf]  ;;  %v16334_v36 = vld [vmem:[%s19872_s28 + $0x104] sm:$0xf] }
 0x246   : >> { %17762 = vmatmul.mubr.msk.bf16.gmra.mrb[16].mxu1 %vm404_vm1, %v6297_v9  ;;  %v4823_v7 = vmax.f32 %v4811_v37, 0.0  ;;  %v4812_v52 = vadd.f32 %v18407_v58, %v19854_v0  ;;  %4968 = vst.msk [vmem:[%s21458_s22 + $0x4] sm:$0xf] %vm4966_vm7, %v16662_v49  ;;  %18143 = vmatprep.mubr.msk.bf16.mxu0 %vm404_vm1, %v10931_v24  ;;  %v21522_v33 = vld [vmem:[%s19872_s28 + $0x108] sm:$0xf]  ;;  %v19565_v4 = vld [vmem:[%s19872_s28 + $0x10c] sm:$0xff]   ;;  %v15894_v24 = vcombine.low %v15879_v30, %v21517_v57 }
 0x247   : >> { %17765 = vmatprep.mubr.msk.bf16.mxu1 %vm404_vm1, %v6299_v17  ;;  %v4821_v59 = vmax.f32 %v4809_v14, 0.0  ;;  %v4810_v54 = vadd.f32 %v18408_v22, %v19854_v0  ;;  %v19570_v58 = vld [vmem:[%s19872_s28 + $0x114] sm:$0xff]   ;;  %v19572_v14 = vld [vmem:[%s19872_s28 + $0xe4] sm:$0xff]   ;;  %v16349_v22 = vcombine.low %v16334_v36, %v21522_v33  ;;  %v21609_v30 = vld [vmem:[%s19872_s28 + $0x12c] sm:$0xff]  }
 0x248   : >> { %v4824_v46 = vmax.f32 %v4812_v52, 0.0  ;;  %v4909_v18 = vmul.f32 %v4876_v39, %v4823_v7  ;;  %v17641_v25 = vpop.f32.mrb[8].mxu0  ;;  %v10933_v39 = vsel %vm1618_vm6, %v10930_v1, %v10932_v15  ;;  %v21534_v7 = vld [vmem:[%s25590_s2 + $0x58] sm:$0xff]   ;;  %v21557_v15 = vld [vmem:[%s19872_s28 + $0x10c] sm:$0xff]  }
 0x249   : >> { %v17459_v61 = vpop.f32.mrb[8].mxu1  ;;  %v4907_v23 = vmul.f32 %v21422_v26, %v4821_v59  ;;  %v4822_v40 = vmax.f32 %v4810_v54, 0.0  ;;  %v4772_v55 = vpop.f32.mrb[9].mxu0  ;;  %v21553_v59 = vld [vmem:[%s19872_s28 + $0xdc] sm:$0xff]   ;;  %v6631_v54 = vshll.u32 %v15894_v24, 16 }
 0x24a   : >> { %v2608_v5 = vpop.f32.mrb[9].mxu1  ;;  %v16667_v13 = vpack.c.bf16 %v4909_v18, %v4909_v18  ;;  %v4910_v56 = vmul.f32 %v4881_v31, %v4824_v46  ;;  %v18409_v47 = vadd.f32 %v17641_v25, %v17459_v61  ;;  %v17642_v26 = vpop.f32.mrb[10].mxu0  ;;  %v19573_v46 = vld [vmem:[%s19872_s28 + $0xec] sm:$0xff]   ;;  %v19576_v18 = vld [vmem:[%s19872_s28 + $0xf4] sm:$0xff]   ;;  %v6629_v61 = vshrl.u32 %v15894_v24, 16 }
 0x24b   : >> { %v17460_v50 = vpop.f32.mrb[10].mxu1  ;;  %v16665_v2 = vpack.c.bf16 %v4907_v23, %v4907_v23  ;;  %v4908_v27 = vmul.f32 %v21426_v42, %v4822_v40  ;;  %v18410_v8 = vadd.f32 %v4772_v55, %v2608_v5  ;;  %v4775_v16 = vpop.f32.mrb[11].mxu0  ;;  %v6636_v23 = vshll.u32 %v21553_v59, 16  ;;  %v21571_v55 = vld [vmem:[%s19872_s28 + $0x114] sm:$0xff]  }
 0x24c   : >> { %v2611_v29 = vpop.f32.mrb[11].mxu1  ;;  %4973 = vst.msk [vmem:[%s21458_s22 + $0x18] sm:$0xf] %vm4966_vm7, %v16667_v13  ;;  %v16668_v60 = vpack.c.bf16 %v4910_v56, %v4910_v56  ;;  %v4815_v45 = vadd.f32 %v18409_v47, %v19854_v0  ;;  %v18411_v31 = vadd.f32 %v17642_v26, %v17460_v50  ;;  %v11261_v40 = vshrl.u32 %v16349_v22, 16  ;;  %v21574_v13 = vld [vmem:[%s19872_s28 + $0xe4] sm:$0xff]   ;;  %v19575_v26 = vld [vmem:[%s19872_s28 + $0x12c] sm:$0xff]  }
 0x24d   : >> { %4971 = vst.msk [vmem:[%s21458_s22 + $0x10] sm:$0xf] %vm4966_vm7, %v16665_v2  ;;  %v16666_v42 = vpack.c.bf16 %v4908_v27, %v4908_v27  ;;  %v4813_v34 = vadd.f32 %v18410_v8, %v19854_v0  ;;  %v18412_v32 = vadd.f32 %v4775_v16, %v2611_v29  ;;  %18144 = vmatmul.mubr.msk.bf16.gmra.mrb[20].mxu0 %vm404_vm1, %v10933_v39  ;;  %v11268_v5 = vshll.u32 %v21557_v15, 16  ;;  %v19577_v2 = vld [vmem:[%s19872_s28 + $0xfc] sm:$0xff]   ;;  %v21582_v27 = vld [vmem:[%s19872_s28 + $0xec] sm:$0xff]  }
 0x24e   : >> { %17766 = vmatmul.mubr.msk.bf16.gmra.mrb[20].mxu1 %vm404_vm1, %v6301_v19  ;;  %4974 = vst.msk [vmem:[%s21458_s22 + $0x1c] sm:$0xf] %vm4966_vm7, %v16668_v60  ;;  %v4827_v1 = vmax.f32 %v4815_v45, 0.0  ;;  %v4816_v53 = vadd.f32 %v18411_v31, %v19854_v0  ;;  %18149 = vmatprep.mubr.msk.bf16.mxu0 %vm404_vm1, %v19564_v35  ;;  %v6638_v47 = vrot.slane %v6636_v23, 1  ;;  %v11276_v8 = vshll.u32 %v21571_v55, 16 }
 0x24f   : >> { %17771 = vmatprep.mubr.msk.bf16.mxu1 %vm404_vm1, %v19566_v10  ;;  %4972 = vst.msk [vmem:[%s21458_s22 + $0x14] sm:$0xf] %vm4966_vm7, %v16666_v42  ;;  %v4825_v43 = vmax.f32 %v4813_v34, 0.0  ;;  %v4814_v63 = vadd.f32 %v18412_v32, %v19854_v0  ;;  %v11270_v19 = vrot.slane %v11268_v5, 1  ;;  %v21578_v10 = vld [vmem:[%s19872_s28 + $0x11c] sm:$0xff]   ;;  %v6640_v39 = vshrl.u32 %v21553_v59, 16 }
 0x250   : >> { %v4828_v3 = vmax.f32 %v4816_v53, 0.0  ;;  %v4913_v48 = vmul.f32 %v4896_v51, %v4827_v1  ;;  %v6644_v29 = vshll.u32 %v21574_v13, 16  ;;  %v11272_v35 = vshrl.u32 %v21557_v15, 16  ;;  %v21597_v32 = vld [vmem:[%s19872_s28 + $0xf4] sm:$0xff]  }
 0x251   : >> { %v4911_v9 = vmul.f32 %v4886_v12, %v4825_v43  ;;  %v4826_v28 = vmax.f32 %v4814_v63, 0.0  ;;  %v11263_v12 = vshll.u32 %v16349_v22, 16  ;;  %v11280_v45 = vshrl.u32 %v21571_v55, 16  ;;  %v21602_v43 = vld [vmem:[%s19872_s28 + $0x124] sm:$0xff]   ;;  %v15908_v5 = vld [vmem:[%s19872_s28 + $0xd4] sm:$0xe] }
 0x252   : >> { %v16671_v41 = vpack.c.bf16 %v4913_v48, %v4913_v48  ;;  %v4914_v17 = vmul.f32 %v4901_v20, %v4828_v3  ;;  %v11284_v31 = vshll.u32 %v21578_v10, 16  ;;  %v6648_v42 = vshrl.u32 %v21574_v13, 16  ;;  %v21606_v20 = vld [vmem:[%s19872_s28 + $0xfc] sm:$0xff]  }
 0x253   : >> { %v16669_v11 = vpack.c.bf16 %v4911_v9, %v4911_v9  ;;  %v4912_v37 = vmul.f32 %v4891_v21, %v4826_v28  ;;  %v6633_v21 = vrot.slane %v6631_v54, 1  ;;  %v11265_v25 = vrot.slane %v11263_v12, 1  ;;  %v21625_v22 = vld [vmem:[%s25590_s2 + $0x60] sm:$0xff]  }
 0x254   : >> { %4977 = vst.msk [vmem:[%s21458_s22 + $0x28] sm:$0xf] %vm4966_vm7, %v16671_v41  ;;  %v16672_v49 = vpack.c.bf16 %v4914_v17, %v4914_v17  ;;  %v6652_v34 = vshll.u32 %v21582_v27, 16  ;;  %v11278_v51 = vrot.slane %v11276_v8, 1  ;;  %v6642_v1 = vor.u32 %v6640_v39, %v6638_v47  ;;  %v19597_v12 = vld [vmem:[%s25590_s2 + $0x60] sm:$0xff]  }
 0x255   : >> { %4975 = vst.msk [vmem:[%s21458_s22 + $0x20] sm:$0xf] %vm4966_vm7, %v16669_v11  ;;  %v16670_v52 = vpack.c.bf16 %v4912_v37, %v4912_v37  ;;  %18150 = vmatmul.mubr.msk.bf16.vlgmr.msra.gmra.mrb[12].mxu0 %vm404_vm1, %v19565_v4  ;;  %v6634_v56 = vor.u32 %v6633_v21, %v6629_v61  ;;  %v11266_v50 = vor.u32 %v11265_v25, %v11261_v40  ;;  %v6646_v53 = vrot.slane %v6644_v29, 1  ;;  %v21640_v61 = vld [vmem:[%s19872_s28 + $0x134] ss:$0 sps:$4 sm:$0x11]  }
 0x256   : >> { %17772 = vmatmul.mubr.msk.bf16.vlgmr.msra.gmra.mrb[12].mxu1 %vm404_vm1, %v19569_v6  ;;  %4978 = vst.msk [vmem:[%s21458_s22 + $0x2c] sm:$0xf] %vm4966_vm7, %v16672_v49  ;;  %18162 = vmatpush3.bf16.msra.mxu0 %v21444_v62  ;;  %v19574_v62 = vld [vmem:[%s19872_s28 + $0x124] sm:$0xff]   ;;  %v11274_v63 = vor.u32 %v11272_v35, %v11270_v19  ;;  %v11282_v3 = vor.u32 %v11280_v45, %v11278_v51  ;;  %v11286_v48 = vrot.slane %v11284_v31, 1  ;;  %v6654_v28 = vrot.slane %v6652_v34, 1 }
 0x257   : >> { %17784 = vmatpush3.bf16.msra.mxu1 %v21434_v44  ;;  %4976 = vst.msk [vmem:[%s21458_s22 + $0x24] sm:$0xf] %vm4966_vm7, %v16670_v52  ;;  %18153 = vmatprep.mubr.msk.bf16.mxu0 %vm404_vm1, %v19570_v58  ;;  %v19571_v44 = vld [vmem:[%s19872_s28 + $0x11c] sm:$0xff]   ;;  %v6639_v16 = vsel %vm345_vm0, %v6634_v56, %v6638_v47  ;;  %v11271_v60 = vsel %vm345_vm0, %v11266_v50, %v11270_v19  ;;  %v6660_v6 = vshll.u32 %v21597_v32, 16  ;;  %v11288_v41 = vshrl.u32 %v21578_v10, 16 }
 0x258   : >> { %17775 = vmatprep.mubr.msk.bf16.mxu1 %vm404_vm1, %v19572_v14  ;;  %17797 = vmatprep.subr.bf16.mxu1 %v21534_v7  ;;  %v6650_v9 = vor.u32 %v6648_v42, %v6646_v53  ;;  %v6647_v36 = vsel %vm345_vm0, %v6642_v1, %v6646_v53  ;;  %v11292_v17 = vshll.u32 %v21602_v43, 16  ;;  %v6656_v4 = vshrl.u32 %v21582_v27, 16 }
 0x259   : >> { %18175 = vmatprep.subr.bf16.mxu0 %v21542_v38  ;;  %v11279_v11 = vsel %vm345_vm0, %v11274_v63, %v11278_v51  ;;  %v6664_v37 = vshrl.u32 %v21597_v32, 16  ;;  %v6668_v58 = vshll.u32 %v21606_v20, 16  ;;  %v11287_v24 = vsel %vm345_vm0, %v11282_v3, %v11286_v48 }
 0x25a   : >> { %v11296_v49 = vshrl.u32 %v21602_v43, 16  ;;  %v11300_v14 = vshll.u32 %v21609_v30, 16  ;;  %v6655_v52 = vsel %vm345_vm0, %v6650_v9, %v6654_v28  ;;  %v6662_v54 = vrot.slane %v6660_v6, 1 }
 0x25b   : >> { %v6670_v23 = vrot.slane %v6668_v58, 1  ;;  %v11304_v19 = vshrl.u32 %v21609_v30, 16  ;;  %v15911_v8 = vcombine.low %v15908_v5, %v21517_v57  ;;  %v6804_v42 = vrot.slane %v21553_v59, 1  ;;  %v21748_v5 = vld [vmem:[%s19872_s28 + $0xf4] sm:$0xff]  }
 0x25c   : >> { %v6666_v21 = vor.u32 %v6664_v37, %v6662_v54  ;;  %v11302_v25 = vrot.slane %v11300_v14, 1  ;;  %v11436_v34 = vrot.slane %v21557_v15, 1  ;;  %v6806_v63 = vrot.slane %v21574_v13, 1  ;;  %v21680_v13 = vld [vmem:[%s25590_s2 + $0x68] sm:$0xff]   ;;  %v21721_v14 = vld [vmem:[%s19872_s28 + $0x114] sm:$0xff]  }
 0x25d   : >> { %18154 = vmatmul.mubr.msk.bf16.gmra.mrb[16].mxu0 %vm404_vm1, %v19571_v44  ;;  %v11294_v44 = vrot.slane %v11292_v17, 1  ;;  %v6803_v31 = vrot.slane %v15911_v8, 1  ;;  %v11438_v59 = vrot.slane %v21571_v55, 1  ;;  %v11440_v15 = vrot.slane %v21578_v10, 1  ;;  %v21687_v10 = vld [vmem:[%s25590_s2 + $0x68] sm:$0xff]  }
 0x25e   : >> { %17776 = vmatmul.mubr.msk.bf16.gmra.mrb[16].mxu1 %vm404_vm1, %v19573_v46  ;;  %18157 = vmatprep.mubr.msk.bf16.mxu0 %vm404_vm1, %v19574_v62  ;;  %v11290_v46 = vor.u32 %v11288_v41, %v11286_v48  ;;  %v21635_v62 = vld [vmem:[%s19872_s28 + $0x104] ss:$0 sps:$4 sm:$0x11]   ;;  %v6808_v3 = vrot.slane %v21582_v27, 1  ;;  %v6807_v48 = vsel %vm610_vm4, %v6804_v42, %v6806_v63  ;;  %v6810_v27 = vrot.slane %v21597_v32, 1 }
 0x25f   : >> { %17779 = vmatprep.mubr.msk.bf16.mxu1 %vm404_vm1, %v19576_v18  ;;  %v6658_v18 = vor.u32 %v6656_v4, %v6654_v28  ;;  %v11298_v40 = vor.u32 %v11296_v49, %v11294_v44  ;;  %v6676_v50 = vshll.u32 %v21635_v62, 16  ;;  %v6805_v1 = vsel %vm610_vm4, %v6803_v31, %v6804_v42  ;;  %v15919_v17 = vld [vmem:[%s19872_s28 + $0xdc] sm:$0xe]  ;;  %v21699_v4 = vld [vmem:[%s19872_s28 + $0xe0] sm:$0xf]  ;;  %v21768_v8 = vld [vmem:[%s19872_s28 + $0x104] sm:$0xff]  }
 0x260   : >> { %v11295_v56 = vsel %vm345_vm0, %v11290_v46, %v11294_v44  ;;  %v11439_v9 = vsel %vm610_vm4, %v11436_v34, %v11438_v59  ;;  %v11441_v28 = vsel %vm610_vm4, %v11438_v59, %v11440_v15  ;;  %v6809_v55 = vsel %vm610_vm4, %v6806_v63, %v6808_v3  ;;  %v21704_v32 = vld [vmem:[%s19872_s28 + $0x110] sm:$0xf] }
 0x261   : >> { %v6663_v47 = vsel %vm345_vm0, %v6658_v18, %v6662_v54  ;;  %v11303_v39 = vsel %vm345_vm0, %v11298_v40, %v11302_v25  ;;  %v11442_v6 = vrot.slane %v21602_v43, 1  ;;  %v11444_v41 = vrot.slane %v21609_v30, 1  ;;  %v21714_v30 = vld [vmem:[%s19872_s28 + $0xe4] sm:$0xff]  }
 0x262   : >> { %v6811_v37 = vsel %vm610_vm4, %v6808_v3, %v6810_v27  ;;  %v21711_v58 = vcombine.low %v15919_v17, %v21699_v4  ;;  %v11614_v44 = vrot.slane %v21721_v14, 1  ;;  %v11758_v59 = vshrl.u32 %v21721_v14, 16 }
 0x263   : >> { %v11443_v43 = vsel %vm610_vm4, %v11440_v15, %v11442_v6  ;;  %v11761_v15 = vshll.u32 %v21721_v14, 16 }
 0x264   : >> { %v6981_v54 = vrot.slane %v21711_v58, 1 }
 0x265   : >> { %18158 = vmatmul.mubr.msk.bf16.gmra.mrb[20].mxu0 %vm404_vm1, %v19575_v26  ;;  %v6671_v26 = vsel %vm345_vm0, %v6666_v21, %v6670_v23  ;;  %v21735_v21 = vld [vmem:[%s19872_s28 + $0xec] sm:$0xff]  }
 0x266   : >> { %17780 = vmatmul.mubr.msk.bf16.gmra.mrb[20].mxu1 %vm404_vm1, %v19577_v2  ;;  %18163 = vmatprep.mubr.msk.bf16.mxu0 %vm404_vm1, %v11271_v60  ;;  %v11308_v2 = vshll.u32 %v21640_v61, 16  ;;  %v11306_v60 = vor.u32 %v11304_v19, %v11302_v25  ;;  %v21744_v25 = vld [vmem:[%s19872_s28 + $0x124] sm:$0xff]  }
 0x267   : >> { %17785 = vmatprep.mubr.msk.bf16.mxu1 %vm404_vm1, %v6639_v16  ;;  %v6678_v16 = vrot.slane %v6676_v50, 1  ;;  %v6986_v50 = vrot.slane %v21748_v5, 1 }
 0x268   : >> { %v11310_v45 = vrot.slane %v11308_v2, 1  ;;  %v21762_v2 = vld [vmem:[%s19872_s28 + $0xfc] sm:$0xff]  }
 0x269   : >> { %v6988_v31 = vrot.slane %v21762_v2, 1 }
 0x26a   : >> { %v11311_v51 = vsel %vm345_vm0, %v11306_v60, %v11310_v45  ;;  %v21782_v60 = vld [vmem:[%s25590_s2 + $0x70] sm:$0xff]  }
 0x26d   : >> { %18164 = vmatmul.mubr.msk.bf16.vlgmr.msra.gmra.mrb[12].mxu0 %vm404_vm1, %v11279_v11  ;;  %v16374_v11 = vld [vmem:[%s19872_s28 + $0x10c] sm:$0xe] }
 0x26e   : >> { %17786 = vmatmul.mubr.msk.bf16.vlgmr.msra.gmra.mrb[12].mxu1 %vm404_vm1, %v6647_v36  ;;  %18176 = vmatpush3.bf16.msra.mxu0 %v21542_v38  ;;  %v6672_v38 = vshrl.u32 %v21606_v20, 16  ;;  %v6812_v36 = vrot.slane %v21606_v20, 1  ;;  %v21718_v49 = vcombine.low %v16374_v11, %v21704_v32  ;;  %v11760_v11 = vrot.slane %v11758_v59, 1 }
 0x26f   : >> { %17798 = vmatpush3.bf16.msra.mxu1 %v21534_v7  ;;  %18167 = vmatprep.mubr.msk.bf16.mxu0 %vm404_vm1, %v11287_v24  ;;  %v16363_v7 = vld [vmem:[%s19872_s28 + $0x104] sm:$0xe]  ;;  %v11445_v24 = vsel %vm610_vm4, %v11442_v6, %v11444_v41  ;;  %v7165_v59 = vshll.u32 %v21768_v8, 16 }
 0x270   : >> { %17789 = vmatprep.mubr.msk.bf16.mxu1 %vm404_vm1, %v6655_v52  ;;  %17811 = vmatprep.subr.bf16.mxu1 %v21625_v22  ;;  %v16366_v29 = vcombine.low %v16363_v7, %v21522_v33  ;;  %v6674_v35 = vor.u32 %v6672_v38, %v6670_v23  ;;  %v6813_v20 = vsel %vm610_vm4, %v6810_v27, %v6812_v36  ;;  %v11446_v52 = vrot.slane %v21640_v61, 1  ;;  %v21757_v38 = vld [vmem:[%s19872_s28 + $0x12c] sm:$0xff]  }
 0x271   : >> { %18189 = vmatprep.subr.bf16.mxu0 %v19597_v12  ;;  %v11613_v46 = vrot.slane %v21718_v49, 1  ;;  %v6984_v7 = vrot.slane %v21735_v21, 1  ;;  %v11620_v45 = vrot.slane %v21757_v38, 1  ;;  %v11753_v63 = vshll.u32 %v21718_v49, 16 }
 0x272   : >> { %v11435_v57 = vrot.slane %v16366_v29, 1  ;;  %v6679_v33 = vsel %vm345_vm0, %v6674_v35, %v6678_v16  ;;  %v11447_v23 = vsel %vm610_vm4, %v11444_v41, %v11446_v52  ;;  %v21775_v35 = vld [vmem:[%s25590_s2 + $0x70] sm:$0xff]  }
 0x273   : >> { %v11615_v40 = vsel %vm610_vm4, %v11613_v46, %v11614_v44  ;;  %v6987_v16 = vsel %vm610_vm4, %v6984_v7, %v6986_v50  ;;  %v11755_v17 = vrot.slane %v11753_v63, 2  ;;  %v7162_v63 = vshrl.u32 %v21768_v8, 16 }
 0x274   : >> { %v11437_v53 = vsel %vm610_vm4, %v11435_v57, %v11436_v34  ;;  %v6990_v57 = vrot.slane %v21768_v8, 1  ;;  %v7118_v34 = vshrl.u32 %v21711_v58, 16 }
 0x275   : >> { %18168 = vmatmul.mubr.msk.bf16.gmra.mrb[16].mxu0 %vm404_vm1, %v11295_v56 }
 0x276   : >> { %17790 = vmatmul.mubr.msk.bf16.gmra.mrb[16].mxu1 %vm404_vm1, %v6663_v47  ;;  %18171 = vmatprep.mubr.msk.bf16.mxu0 %vm404_vm1, %v11303_v39  ;;  %v11618_v47 = vrot.slane %v21744_v25, 1 }
 0x277   : >> { %17793 = vmatprep.mubr.msk.bf16.mxu1 %vm404_vm1, %v6671_v26  ;;  %v21765_v26 = vld [vmem:[%s19872_s28 + $0x134] sm:$0xff]  }
 0x278   : >> { %v11622_v42 = vrot.slane %v21765_v26, 1  ;;  %v11621_v3 = vsel %vm610_vm4, %v11618_v47, %v11620_v45 }
 0x27d   : >> { %18172 = vmatmul.mubr.msk.bf16.gmra.mrb[20].mxu0 %vm404_vm1, %v11311_v51  ;;  %v7126_v51 = vshrl.u32 %v21714_v30, 16 }
 0x27e   : >> { %17794 = vmatmul.mubr.msk.bf16.gmra.mrb[20].mxu1 %vm404_vm1, %v6679_v33  ;;  %18177 = vmatprep.mubr.msk.bf16.mxu0 %vm404_vm1, %v11437_v53  ;;  %v7121_v33 = vshll.u32 %v21711_v58, 16  ;;  %v11750_v53 = vshrl.u32 %v21718_v49, 16  ;;  %v7135_v58 = vshrl.u32 %v21735_v21, 16 }
 0x27f   : >> { %17799 = vmatprep.mubr.msk.bf16.mxu1 %vm404_vm1, %v6805_v1  ;;  %v7129_v1 = vshll.u32 %v21714_v30, 16  ;;  %v7128_v6 = vrot.slane %v7126_v51, 1  ;;  %v7153_v51 = vshrl.u32 %v21762_v2, 16 }
 0x280   : >> { %v7123_v27 = vrot.slane %v7121_v33, 2  ;;  %v11752_v41 = vrot.slane %v11750_v53, 1 }
 0x285   : >> { %18178 = vmatmul.mubr.msk.bf16.vlgmr.msra.gmra.mrb[12].mxu0 %vm404_vm1, %v11439_v9  ;;  %v11623_v9 = vsel %vm610_vm4, %v11620_v45, %v11622_v42 }
 0x286   : >> { %17800 = vmatmul.mubr.msk.bf16.vlgmr.msra.gmra.mrb[12].mxu1 %vm404_vm1, %v6807_v48  ;;  %18190 = vmatpush3.bf16.msra.mxu0 %v19597_v12  ;;  %v6982_v12 = vrot.slane %v21714_v30, 1  ;;  %v6989_v48 = vsel %vm610_vm4, %v6986_v50, %v6988_v31 }
 0x287   : >> { %17812 = vmatpush3.bf16.msra.mxu1 %v21625_v22  ;;  %18181 = vmatprep.mubr.msk.bf16.mxu0 %vm404_vm1, %v11441_v28  ;;  %v6814_v22 = vrot.slane %v21635_v62, 1  ;;  %v21739_v62 = vld [vmem:[%s19872_s28 + $0x11c] sm:$0xff]  }
 0x288   : >> { %17803 = vmatprep.mubr.msk.bf16.mxu1 %vm404_vm1, %v6809_v55  ;;  %17825 = vmatprep.subr.bf16.mxu1 %v21680_v13  ;;  %v6983_v61 = vsel %vm610_vm4, %v6981_v54, %v6982_v12  ;;  %v11616_v56 = vrot.slane %v21739_v62, 1  ;;  %v6985_v19 = vsel %vm610_vm4, %v6982_v12, %v6984_v7  ;;  %v19611_v28 = vld [vmem:[%s19872_s28 + $0x13c] ss:$0 sps:$4 sm:$0x11]   ;;  %v11767_v49 = vshrl.u32 %v21739_v62, 16 }
 0x289   : >> { %18203 = vmatprep.subr.bf16.mxu0 %v21687_v10  ;;  %v6815_v18 = vsel %vm610_vm4, %v6812_v36, %v6814_v22  ;;  %v19613_v55 = vld [vmem:[%s19872_s28 + $0x10c] ss:$0 sps:$4 sm:$0x11]   ;;  %v7131_v36 = vrot.slane %v7129_v1, 2  ;;  %v11770_v22 = vshll.u32 %v21739_v62, 16  ;;  %v11756_v12 = vor.u32 %v11755_v17, %v11752_v41 }
 0x28a   : >> { %v11617_v39 = vsel %vm610_vm4, %v11614_v44, %v11616_v56  ;;  %v11619_v29 = vsel %vm610_vm4, %v11616_v56, %v11618_v47  ;;  %v11776_v44 = vshrl.u32 %v21744_v25, 16  ;;  %v7137_v7 = vrot.slane %v7135_v58, 1  ;;  %v21843_v41 = vld [vmem:[%s19872_s28 + $0x13c] ss:$0 sps:$4 sm:$0x33]  }
 0x28b   : >> { %v7132_v54 = vor.u32 %v7131_v36, %v7128_v6  ;;  %v11769_v50 = vrot.slane %v11767_v49, 1  ;;  %v7156_v1 = vshll.u32 %v21762_v2, 16  ;;  %v21839_v6 = vld [vmem:[%s19872_s28 + $0x10c] ss:$0 sps:$4 sm:$0x33]   ;;  %v7164_v17 = vrot.slane %v7162_v63, 1 }
 0x28c   : >> { %v19620_v58 = vld [vmem:[%s25590_s2 + $0x78] sm:$0xff]   ;;  %v7307_v63 = vrot.slane %v21748_v5, 2 }
 0x28d   : >> { %18182 = vmatmul.mubr.msk.bf16.gmra.mrb[16].mxu0 %vm404_vm1, %v11443_v43  ;;  %v11624_v43 = vrot.slane %v19611_v28, 1  ;;  %v19621_v49 = vld [vmem:[%s25590_s2 + $0x78] sm:$0xff]  }
 0x28e   : >> { %17804 = vmatmul.mubr.msk.bf16.gmra.mrb[16].mxu1 %vm404_vm1, %v6811_v37  ;;  %18185 = vmatprep.mubr.msk.bf16.mxu0 %vm404_vm1, %v11445_v24  ;;  %v11763_v37 = vrot.slane %v11761_v15, 2  ;;  %v7138_v24 = vshll.u32 %v21735_v21, 16 }
 0x28f   : >> { %17807 = vmatprep.mubr.msk.bf16.mxu1 %vm404_vm1, %v6813_v20  ;;  %v6992_v20 = vrot.slane %v19613_v55, 1  ;;  %v11625_v47 = vsel %vm610_vm4, %v11622_v42, %v11624_v43  ;;  %v11788_v42 = vshll.u32 %v21757_v38, 16 }
 0x290   : >> { %v11764_v46 = vor.u32 %v11763_v37, %v11760_v11  ;;  %v7140_v56 = vrot.slane %v7138_v24, 2  ;;  %v7167_v11 = vrot.slane %v7165_v59, 2 }
 0x291   : >> { %v11790_v55 = vrot.slane %v11788_v42, 2 }
 0x295   : >> { %18186 = vmatmul.mubr.msk.bf16.gmra.mrb[20].mxu0 %vm404_vm1, %v11447_v23  ;;  %v7144_v23 = vshrl.u32 %v21748_v5, 16 }
 0x296   : >> { %17808 = vmatmul.mubr.msk.bf16.gmra.mrb[20].mxu1 %vm404_vm1, %v6815_v18  ;;  %18191 = vmatprep.mubr.msk.bf16.mxu0 %vm404_vm1, %v11615_v40  ;;  %v11779_v18 = vshll.u32 %v21744_v25, 16  ;;  %v6993_v40 = vsel %vm610_vm4, %v6990_v57, %v6992_v20 }
 0x297   : >> { %17813 = vmatprep.mubr.msk.bf16.mxu1 %vm404_vm1, %v6983_v61  ;;  %v7147_v61 = vshll.u32 %v21748_v5, 16  ;;  %v7309_v5 = vrot.slane %v21762_v2, 2  ;;  %v21918_v2 = vld [vmem:[%s19872_s28 + $0x118] sm:$0xf] }
 0x298   : >> { %v11781_v45 = vrot.slane %v11779_v18, 2  ;;  %v7168_v18 = vor.u32 %v7167_v11, %v7164_v17 }
 0x299   : >> { %v7149_v33 = vrot.slane %v7147_v61, 2  ;;  %v15959_v61 = vld [vmem:[%s19872_s28 + $0xdc] sm:$0xc] }
 0x29d   : >> { %18192 = vmatmul.mubr.msk.bf16.vlgmr.msra.gmra.mrb[12].mxu0 %vm404_vm1, %v11617_v39 }
 0x29e   : >> { %17814 = vmatmul.mubr.msk.bf16.vlgmr.msra.gmra.mrb[12].mxu1 %vm404_vm1, %v6985_v19  ;;  %18204 = vmatpush3.bf16.msra.mxu0 %v21687_v10  ;;  %v7120_v10 = vrot.slane %v7118_v34, 1  ;;  %v11772_v19 = vrot.slane %v11770_v22, 2  ;;  %v7146_v34 = vrot.slane %v7144_v23, 1 }
 0x29f   : >> { %17826 = vmatpush3.bf16.msra.mxu1 %v21680_v13  ;;  %18195 = vmatprep.mubr.msk.bf16.mxu0 %vm404_vm1, %v11619_v29  ;;  %v6991_v13 = vsel %vm610_vm4, %v6988_v31, %v6990_v57  ;;  %v11765_v29 = vsel %vm927_vm2, %v11756_v12, %v11764_v46  ;;  %v11785_v31 = vshrl.u32 %v21757_v38, 16  ;;  %v7141_v57 = vor.u32 %v7140_v56, %v7137_v7 }
 0x2a0   : >> { %17817 = vmatprep.mubr.msk.bf16.mxu1 %vm404_vm1, %v6987_v16  ;;  %17839 = vmatprep.subr.bf16.mxu1 %v21775_v35  ;;  %v7124_v52 = vor.u32 %v7123_v27, %v7120_v10  ;;  %v11778_v16 = vrot.slane %v11776_v44, 1  ;;  %v11773_v53 = vor.u32 %v11772_v19, %v11769_v50  ;;  %v7150_v28 = vor.u32 %v7149_v33, %v7146_v34 }
 0x2a1   : >> { %18217 = vmatprep.subr.bf16.mxu0 %v21782_v60  ;;  %v7155_v10 = vrot.slane %v7153_v51, 1  ;;  %v7158_v27 = vrot.slane %v7156_v1, 2  ;;  %v7174_v12 = vshll.u32 %v21839_v6, 16  ;;  %v11806_v44 = vshll.u32 %v21843_v41, 16 }
 0x2a2   : >> { %v7133_v39 = vsel %vm927_vm2, %v7124_v52, %v7132_v54  ;;  %v11782_v15 = vor.u32 %v11781_v45, %v11778_v16  ;;  %v11774_v36 = vsel %vm927_vm2, %v11764_v46, %v11773_v53  ;;  %v7151_v24 = vsel %vm927_vm2, %v7141_v57, %v7150_v28 }
 0x2a3   : >> { %v7159_v52 = vor.u32 %v7158_v27, %v7155_v10  ;;  %v11803_v46 = vshrl.u32 %v21843_v41, 16  ;;  %v11808_v50 = vrot.slane %v11806_v44, 2  ;;  %v7303_v33 = vrot.slane %v21714_v30, 2  ;;  %v16425_v10 = vld [vmem:[%s19872_s28 + $0x114] sm:$0xc]  ;;  %v21958_v44 = vld [vmem:[%s19872_s28 + $0x12c] sm:$0xff]  }
 0x2a4   : >> { %v11783_v37 = vsel %vm927_vm2, %v11773_v53, %v11782_v15  ;;  %v7305_v53 = vrot.slane %v21735_v21, 2  ;;  %v11937_v30 = vrot.slane %v21739_v62, 2  ;;  %v21895_v21 = vld [vmem:[%s25590_s2 + $0x80] sm:$0xff]   ;;  %v7310_v27 = vsel %vm1114_vm3, %v7307_v63, %v7309_v5 }
 0x2a5   : >> { %18196 = vmatmul.mubr.msk.bf16.gmra.mrb[16].mxu0 %vm404_vm1, %v11621_v3  ;;  %v11794_v3 = vshrl.u32 %v21765_v26, 16  ;;  %v7160_v7 = vsel %vm927_vm2, %v7150_v28, %v7159_v52  ;;  %v7169_v19 = vsel %vm927_vm2, %v7159_v52, %v7168_v18  ;;  %v11943_v28 = vrot.slane %v21765_v26, 2 }
 0x2a6   : >> { %17818 = vmatmul.mubr.msk.bf16.gmra.mrb[16].mxu1 %vm404_vm1, %v6989_v48  ;;  %18199 = vmatprep.mubr.msk.bf16.mxu0 %vm404_vm1, %v11623_v9  ;;  %v11797_v48 = vshll.u32 %v21765_v26, 16  ;;  %v11787_v9 = vrot.slane %v11785_v31, 1  ;;  %v7306_v59 = vsel %vm1114_vm3, %v7303_v33, %v7305_v53  ;;  %v7308_v62 = vsel %vm1114_vm3, %v7305_v53, %v7307_v63  ;;  %v21928_v26 = vld [vmem:[%s19872_s28 + $0xec] sm:$0xff]  }
 0x2a7   : >> { %17821 = vmatprep.mubr.msk.bf16.mxu1 %vm404_vm1, %v6991_v13  ;;  %v7142_v13 = vsel %vm927_vm2, %v7132_v54, %v7141_v57  ;;  %v11796_v43 = vrot.slane %v11794_v3, 1  ;;  %v7171_v54 = vshrl.u32 %v21839_v6, 16  ;;  %v21932_v11 = vcombine.low %v16425_v10, %v21918_v2 }
 0x2a8   : >> { %v11799_v20 = vrot.slane %v11797_v48, 2  ;;  %v11791_v22 = vor.u32 %v11790_v55, %v11787_v9  ;;  %v11941_v48 = vrot.slane %v21757_v38, 2  ;;  %v7311_v9 = vrot.slane %v21768_v8, 2  ;;  %v21913_v55 = vld [vmem:[%s19872_s28 + $0xe8] sm:$0xf] }
 0x2a9   : >> { %v7173_v56 = vrot.slane %v7171_v54, 1  ;;  %v21949_v54 = vld [vmem:[%s19872_s28 + $0xf4] sm:$0xff]   ;;  %v12252_v53 = vshll.u32 %v21932_v11, 16 }
 0x2aa   : >> { %v11800_v23 = vor.u32 %v11799_v20, %v11796_v43  ;;  %v7312_v8 = vsel %vm1114_vm3, %v7309_v5, %v7311_v9  ;;  %v11944_v17 = vsel %vm1114_vm3, %v11941_v48, %v11943_v28  ;;  %v7313_v43 = vrot.slane %v21839_v6, 2  ;;  %v21953_v6 = vld [vmem:[%s19872_s28 + $0x124] sm:$0xff]  }
 0x2ab   : >> { %v11945_v20 = vrot.slane %v21843_v41, 2 }
 0x2ac   : >> { %v7314_v52 = vsel %vm1114_vm3, %v7311_v9, %v7313_v43  ;;  %v12269_v43 = vshll.u32 %v21953_v6, 16 }
 0x2ad   : >> { %18200 = vmatmul.mubr.msk.bf16.gmra.mrb[20].mxu0 %vm404_vm1, %v11625_v47  ;;  %v11805_v47 = vrot.slane %v11803_v46, 1 }
 0x2ae   : >> { %17822 = vmatmul.mubr.msk.bf16.gmra.mrb[20].mxu1 %vm404_vm1, %v6993_v40  ;;  %18205 = vmatprep.mubr.msk.bf16.mxu0 %vm404_vm1, %v11765_v29  ;;  %v11792_v40 = vsel %vm927_vm2, %v11782_v15, %v11791_v22  ;;  %v11801_v29 = vsel %vm927_vm2, %v11791_v22, %v11800_v23 }
 0x2af   : >> { %17827 = vmatprep.mubr.msk.bf16.mxu1 %vm404_vm1, %v7133_v39  ;;  %v15962_v39 = vcombine.low %v15959_v61, %v21699_v4  ;;  %v11809_v31 = vor.u32 %v11808_v50, %v11805_v47  ;;  %v11935_v4 = vrot.slane %v21721_v14, 2  ;;  %v11939_v14 = vrot.slane %v21744_v25, 2  ;;  %v21902_v25 = vld [vmem:[%s25590_s2 + $0x80] sm:$0xff]   ;;  %v21982_v50 = vld [vmem:[%s19872_s28 + $0x10c] sm:$0xff]  }
 0x2b0   : >> { %v12115_v61 = vrot.slane %v21953_v6, 2  ;;  %v21979_v47 = vld [vmem:[%s19872_s28 + $0x13c] sm:$0xff]  }
 0x2b1   : >> { %v7302_v34 = vrot.slane %v15962_v39, 2  ;;  %v11938_v15 = vsel %vm1114_vm3, %v11935_v4, %v11937_v30  ;;  %v11940_v3 = vsel %vm1114_vm3, %v11937_v30, %v11939_v14  ;;  %v11942_v38 = vsel %vm1114_vm3, %v11939_v14, %v11941_v48 }
 0x2b3   : >> { %v7304_v51 = vsel %vm1114_vm3, %v7302_v34, %v7303_v33  ;;  %v12121_v33 = vrot.slane %v21979_v47, 2 }
 0x2b5   : >> { %18206 = vmatmul.mubr.msk.bf16.vlgmr.msra.gmra.mrb[12].mxu0 %vm404_vm1, %v11774_v36 }
 0x2b6   : >> { %17828 = vmatmul.mubr.msk.bf16.vlgmr.msra.gmra.mrb[12].mxu1 %vm404_vm1, %v7142_v13  ;;  %18218 = vmatpush3.bf16.msra.mxu0 %v21782_v60  ;;  %v7176_v60 = vrot.slane %v7174_v12, 2  ;;  %v15970_v13 = vld [vmem:[%s19872_s28 + $0xe4] sm:$0xc]  ;;  %v11946_v12 = vsel %vm1114_vm3, %v11943_v28, %v11945_v20 }
 0x2b7   : >> { %17840 = vmatpush3.bf16.msra.mxu1 %v21775_v35  ;;  %18209 = vmatprep.mubr.msk.bf16.mxu0 %vm404_vm1, %v11783_v37  ;;  %v16414_v35 = vld [vmem:[%s19872_s28 + $0x10c] sm:$0xc]  ;;  %v21925_v36 = vcombine.low %v15970_v13, %v21913_v55  ;;  %v21935_v37 = vld [vmem:[%s19872_s28 + $0x11c] sm:$0xff]   ;;  %v12254_v13 = vrot.slane %v12252_v53, 3  ;;  %v7661_v53 = vshrl.u32 %v21982_v50, 16 }
 0x2b8   : >> { %17831 = vmatprep.mubr.msk.bf16.mxu1 %vm404_vm1, %v7151_v24  ;;  %17853 = vmatprep.subr.bf16.mxu1 %v19620_v58  ;;  %v16417_v16 = vcombine.low %v16414_v35, %v21704_v32  ;;  %v7177_v45 = vor.u32 %v7176_v60, %v7173_v56  ;;  %v11810_v32 = vsel %vm927_vm2, %v11800_v23, %v11809_v31  ;;  %v7481_v24 = vrot.slane %v21928_v26, 2  ;;  %v21976_v60 = vld [vmem:[%s19872_s28 + $0x104] sm:$0xff]  }
 0x2b9   : >> { %18231 = vmatprep.subr.bf16.mxu0 %v19621_v49  ;;  %v12113_v22 = vrot.slane %v21935_v37, 2  ;;  %v7483_v23 = vrot.slane %v21949_v54, 2  ;;  %v12117_v35 = vrot.slane %v21958_v44, 2  ;;  %v7487_v34 = vrot.slane %v21976_v60, 2 }
 0x2ba   : >> { %v11934_v57 = vrot.slane %v16417_v16, 2  ;;  %v7178_v42 = vsel %vm927_vm2, %v7168_v18, %v7177_v45  ;;  %v21962_v18 = vld [vmem:[%s19872_s28 + $0xfc] sm:$0xff]   ;;  %v21996_v45 = vld [vmem:[%s25590_s2 + $0x88] sm:$0xff]   ;;  %v12257_v30 = vshrl.u32 %v21935_v37, 16  ;;  %v12260_v14 = vshll.u32 %v21935_v37, 16 }
 0x2bb   : >> { %v7484_v56 = vsel %vm1114_vm3, %v7481_v24, %v7483_v23  ;;  %v12118_v39 = vsel %vm1114_vm3, %v12115_v61, %v12117_v35 }
 0x2bc   : >> { %v11936_v1 = vsel %vm1114_vm3, %v11934_v57, %v11935_v4  ;;  %v7489_v57 = vrot.slane %v21982_v50, 2  ;;  %v7617_v4 = vshrl.u32 %v21925_v36, 16  ;;  %v12259_v10 = vrot.slane %v12257_v30, 2 }
 0x2bd   : >> { %18210 = vmatmul.mubr.msk.bf16.gmra.mrb[16].mxu0 %vm404_vm1, %v11792_v40  ;;  %v21971_v40 = vld [vmem:[%s19872_s28 + $0x134] sm:$0xff]   ;;  %v7664_v30 = vshll.u32 %v21982_v50, 16 }
 0x2be   : >> { %17832 = vmatmul.mubr.msk.bf16.gmra.mrb[16].mxu1 %vm404_vm1, %v7160_v7  ;;  %18213 = vmatprep.mubr.msk.bf16.mxu0 %vm404_vm1, %v11801_v29  ;;  %v7485_v7 = vrot.slane %v21962_v18, 2  ;;  %v21989_v29 = vld [vmem:[%s25590_s2 + $0x88] sm:$0xff]   ;;  %v12119_v31 = vrot.slane %v21971_v40, 2 }
 0x2bf   : >> { %17835 = vmatprep.mubr.msk.bf16.mxu1 %vm404_vm1, %v7169_v19  ;;  %v12116_v19 = vsel %vm1114_vm3, %v12113_v22, %v12115_v61 }
 0x2c0   : >> { %v7486_v16 = vsel %vm1114_vm3, %v7483_v23, %v7485_v7  ;;  %v12120_v63 = vsel %vm1114_vm3, %v12117_v35, %v12119_v31 }
 0x2c5   : >> { %18214 = vmatmul.mubr.msk.bf16.gmra.mrb[20].mxu0 %vm404_vm1, %v11810_v32  ;;  %v7625_v32 = vshrl.u32 %v21928_v26, 16 }
 0x2c6   : >> { %17836 = vmatmul.mubr.msk.bf16.gmra.mrb[20].mxu1 %vm404_vm1, %v7178_v42  ;;  %18219 = vmatprep.mubr.msk.bf16.mxu0 %vm404_vm1, %v11936_v1  ;;  %v7620_v42 = vshll.u32 %v21925_v36, 16  ;;  %v12249_v1 = vshrl.u32 %v21932_v11, 16 }
 0x2c7   : >> { %17841 = vmatprep.mubr.msk.bf16.mxu1 %vm404_vm1, %v7304_v51  ;;  %v7628_v51 = vshll.u32 %v21928_v26, 16  ;;  %v7627_v48 = vrot.slane %v7625_v32, 2  ;;  %v7652_v32 = vshrl.u32 %v21976_v60, 16 }
 0x2c8   : >> { %v7622_v5 = vrot.slane %v7620_v42, 3  ;;  %v12251_v28 = vrot.slane %v12249_v1, 2 }
 0x2c9   : >> { %v7630_v9 = vrot.slane %v7628_v51, 3  ;;  %v7655_v51 = vshll.u32 %v21976_v60, 16 }
 0x2cd   : >> { %18220 = vmatmul.mubr.msk.bf16.vlgmr.msra.gmra.mrb[12].mxu0 %vm404_vm1, %v11938_v15  ;;  %v12122_v15 = vsel %vm1114_vm3, %v12119_v31, %v12121_v33 }
 0x2ce   : >> { %17842 = vmatmul.mubr.msk.bf16.vlgmr.msra.gmra.mrb[12].mxu1 %vm404_vm1, %v7306_v59  ;;  %18232 = vmatpush3.bf16.msra.mxu0 %v19621_v49  ;;  %v12112_v49 = vrot.slane %v21932_v11, 2  ;;  %v7488_v59 = vsel %vm1114_vm3, %v7485_v7, %v7487_v34  ;;  %v12266_v11 = vshrl.u32 %v21953_v6, 16 }
 0x2cf   : >> { %17854 = vmatpush3.bf16.msra.mxu1 %v19620_v58  ;;  %18223 = vmatprep.mubr.msk.bf16.mxu0 %vm404_vm1, %v11940_v3  ;;  %v7480_v58 = vrot.slane %v21925_v36, 2  ;;  %v19635_v3 = vld [vmem:[%s19872_s28 + $0x144] ss:$0 sps:$4 sm:$0x33]   ;;  %v7634_v36 = vshrl.u32 %v21949_v54, 16 }
 0x2d0   : >> { %17845 = vmatprep.mubr.msk.bf16.mxu1 %vm404_vm1, %v7308_v62  ;;  %17867 = vmatprep.subr.bf16.mxu1 %v21895_v21  ;;  %v12114_v46 = vsel %vm1114_vm3, %v12112_v49, %v12113_v22  ;;  %v19637_v62 = vld [vmem:[%s19872_s28 + $0x114] ss:$0 sps:$4 sm:$0x33]   ;;  %v12275_v22 = vshrl.u32 %v21958_v44, 16  ;;  %v12268_v7 = vrot.slane %v12266_v11, 2 }
 0x2d1   : >> { %18245 = vmatprep.subr.bf16.mxu0 %v21902_v25  ;;  %v7482_v41 = vsel %vm1114_vm3, %v7480_v58, %v7481_v24  ;;  %v7631_v58 = vor.u32 %v7630_v9, %v7627_v48  ;;  %v12255_v24 = vor.u32 %v12254_v13, %v12251_v28  ;;  %v7636_v23 = vrot.slane %v7634_v36, 2  ;;  %v22053_v48 = vld [vmem:[%s19872_s28 + $0x114] ss:$0 sps:$4 sm:$0x77]  }
 0x2d2   : >> { %v22057_v28 = vld [vmem:[%s19872_s28 + $0x144] ss:$0 sps:$4 sm:$0x77]   ;;  %v7663_v13 = vrot.slane %v7661_v53, 2  ;;  %v19644_v36 = vld [vmem:[%s25590_s2 + $0x90] sm:$0xff]   ;;  %v7806_v53 = vrot.slane %v21962_v18, 3 }
 0x2d3   : >> { %v19645_v11 = vld [vmem:[%s25590_s2 + $0x90] sm:$0xff]  }
 0x2d5   : >> { %18224 = vmatmul.mubr.msk.bf16.gmra.mrb[16].mxu0 %vm404_vm1, %v11942_v38  ;;  %v12123_v38 = vrot.slane %v19635_v3, 2 }
 0x2d6   : >> { %17846 = vmatmul.mubr.msk.bf16.gmra.mrb[16].mxu1 %vm404_vm1, %v7310_v27  ;;  %18227 = vmatprep.mubr.msk.bf16.mxu0 %vm404_vm1, %v11944_v17  ;;  %v12262_v27 = vrot.slane %v12260_v14, 3  ;;  %v7637_v17 = vshll.u32 %v21949_v54, 16 }
 0x2d7   : >> { %17849 = vmatprep.mubr.msk.bf16.mxu1 %vm404_vm1, %v7312_v8  ;;  %v7491_v8 = vrot.slane %v19637_v62, 2  ;;  %v12124_v35 = vsel %vm1114_vm3, %v12121_v33, %v12123_v38  ;;  %v12287_v33 = vshll.u32 %v21971_v40, 16 }
 0x2d8   : >> { %v12263_v49 = vor.u32 %v12262_v27, %v12259_v10  ;;  %v7639_v61 = vrot.slane %v7637_v17, 3  ;;  %v7666_v10 = vrot.slane %v7664_v30, 3 }
 0x2d9   : >> { %v12289_v62 = vrot.slane %v12287_v33, 3 }
 0x2dd   : >> { %18228 = vmatmul.mubr.msk.bf16.gmra.mrb[20].mxu0 %vm404_vm1, %v11946_v12  ;;  %v7643_v12 = vshrl.u32 %v21962_v18, 16 }
 0x2de   : >> { %17850 = vmatmul.mubr.msk.bf16.gmra.mrb[20].mxu1 %vm404_vm1, %v7314_v52  ;;  %18233 = vmatprep.mubr.msk.bf16.mxu0 %vm404_vm1, %v12114_v46  ;;  %v12278_v52 = vshll.u32 %v21958_v44, 16  ;;  %v7492_v46 = vsel %vm1114_vm3, %v7489_v57, %v7491_v8 }
 0x2df   : >> { %17855 = vmatprep.mubr.msk.bf16.mxu1 %vm404_vm1, %v7482_v41  ;;  %v7646_v41 = vshll.u32 %v21962_v18, 16  ;;  %v12440_v18 = vrot.slane %v21971_v40, 3 }
 0x2e0   : >> { %v12280_v31 = vrot.slane %v12278_v52, 3  ;;  %v7667_v52 = vor.u32 %v7666_v10, %v7663_v13  ;;  %v19646_v13 = vld [vmem:[%s19872_s28 + $0x1a8] sm:$0xff]   ;;  %v22141_v10 = vld [vmem:[%s19872_s28 + $0x17c] sm:$0xf] }
 0x2e1   : >> { %v7648_v42 = vrot.slane %v7646_v41, 3  ;;  %v16010_v41 = vld [vmem:[%s19872_s28 + $0xe4] sm:$0x8] }
 0x2e5   : >> { %18234 = vmatmul.mubr.msk.bf16.vlgmr.msra.gmra.mrb[12].mxu0 %vm404_vm1, %v12116_v19 }
 0x2e6   : >> { %17856 = vmatmul.mubr.msk.bf16.vlgmr.msra.gmra.mrb[12].mxu1 %vm404_vm1, %v7484_v56  ;;  %18246 = vmatpush3.bf16.msra.mxu0 %v21902_v25  ;;  %v7619_v25 = vrot.slane %v7617_v4, 2  ;;  %v12271_v56 = vrot.slane %v12269_v43, 3  ;;  %v7645_v4 = vrot.slane %v7643_v12, 2 }
 0x2e7   : >> { %17868 = vmatpush3.bf16.msra.mxu1 %v21895_v21  ;;  %18237 = vmatprep.mubr.msk.bf16.mxu0 %vm404_vm1, %v12118_v39  ;;  %v7490_v21 = vsel %vm1114_vm3, %v7487_v34, %v7489_v57  ;;  %v12264_v39 = vsel %vm1431_vm5, %v12255_v24, %v12263_v49  ;;  %v12284_v34 = vshrl.u32 %v21971_v40, 16  ;;  %v7640_v57 = vor.u32 %v7639_v61, %v7636_v23 }
 0x2e8   : >> { %17859 = vmatprep.mubr.msk.bf16.mxu1 %vm404_vm1, %v7486_v16  ;;  %17881 = vmatprep.subr.bf16.mxu1 %v21989_v29  ;;  %v7623_v20 = vor.u32 %v7622_v5, %v7619_v25  ;;  %v12277_v16 = vrot.slane %v12275_v22, 2  ;;  %v12272_v1 = vor.u32 %v12271_v56, %v12268_v7  ;;  %v7649_v3 = vor.u32 %v7648_v42, %v7645_v4 }
 0x2e9   : >> { %18259 = vmatprep.subr.bf16.mxu0 %v21996_v45  ;;  %v7654_v25 = vrot.slane %v7652_v32, 2  ;;  %v7657_v5 = vrot.slane %v7655_v51, 3  ;;  %v7673_v24 = vshll.u32 %v22053_v48, 16  ;;  %v12305_v22 = vshll.u32 %v22057_v28, 16 }
 0x2ea   : >> { %v7632_v19 = vsel %vm1431_vm5, %v7623_v20, %v7631_v58  ;;  %v12281_v14 = vor.u32 %v12280_v31, %v12277_v16  ;;  %v12273_v9 = vsel %vm1431_vm5, %v12263_v49, %v12272_v1  ;;  %v7650_v17 = vsel %vm1431_vm5, %v7640_v57, %v7649_v3 }
 0x2eb   : >> { %v7658_v20 = vor.u32 %v7657_v5, %v7654_v25  ;;  %v12302_v49 = vshrl.u32 %v22057_v28, 16  ;;  %v12307_v7 = vrot.slane %v12305_v22, 3  ;;  %v7802_v42 = vrot.slane %v21928_v26, 3  ;;  %v19648_v5 = vld [vmem:[%s19872_s28 + $0x178] sm:$0xff]   ;;  %v22171_v22 = vld [vmem:[%s19872_s28 + $0x1b0] sm:$0xff]  }
 0x2ec   : >> { %v12282_v27 = vsel %vm1431_vm5, %v12272_v1, %v12281_v14  ;;  %v7804_v1 = vrot.slane %v21949_v54, 3  ;;  %v12436_v26 = vrot.slane %v21953_v6, 3  ;;  %v19650_v6 = vld [vmem:[%s25590_s2 + $0x98] sm:$0xff]   ;;  %v7812_v40 = vrot.slane %v22053_v48, 3 }
 0x2ed   : >> { %18238 = vmatmul.mubr.msk.bf16.gmra.mrb[16].mxu0 %vm404_vm1, %v12120_v63  ;;  %v12293_v63 = vshrl.u32 %v21979_v47, 16  ;;  %v7659_v23 = vsel %vm1431_vm5, %v7649_v3, %v7658_v20  ;;  %v7668_v56 = vsel %vm1431_vm5, %v7658_v20, %v7667_v52  ;;  %v12442_v3 = vrot.slane %v21979_v47, 3  ;;  %v22156_v20 = vld [vmem:[%s25590_s2 + $0xa0] sm:$0xff]  }
 0x2ee   : >> { %17860 = vmatmul.mubr.msk.bf16.gmra.mrb[16].mxu1 %vm404_vm1, %v7488_v59  ;;  %18241 = vmatprep.mubr.msk.bf16.mxu0 %vm404_vm1, %v12122_v15  ;;  %v12296_v59 = vshll.u32 %v21979_v47, 16  ;;  %v12286_v15 = vrot.slane %v12284_v34, 2  ;;  %v7805_v30 = vsel %vm1618_vm6, %v7802_v42, %v7804_v1  ;;  %v7807_v54 = vsel %vm1618_vm6, %v7804_v1, %v7806_v53 }
 0x2ef   : >> { %17863 = vmatprep.mubr.msk.bf16.mxu1 %vm404_vm1, %v7490_v21  ;;  %v7641_v21 = vsel %vm1431_vm5, %v7631_v58, %v7640_v57  ;;  %v12295_v38 = vrot.slane %v12293_v63, 2  ;;  %v7670_v58 = vshrl.u32 %v22053_v48, 16  ;;  %v12443_v25 = vsel %vm1618_vm6, %v12440_v18, %v12442_v3  ;;  %v16048_v48 = vld [vmem:[%s19872_s28 + $0x178] sm:$0xf] }
 0x2f0   : >> { %v12298_v8 = vrot.slane %v12296_v59, 3  ;;  %v12290_v43 = vor.u32 %v12289_v62, %v12286_v15  ;;  %v19649_v59 = vld [vmem:[%s25590_s2 + $0x98] sm:$0xff]   ;;  %v7810_v15 = vrot.slane %v21982_v50, 3  ;;  %v12444_v47 = vrot.slane %v22057_v28, 3  ;;  %v19651_v28 = vld [vmem:[%s19872_s28 + $0x180] sm:$0xff]  }
 0x2f1   : >> { %v7672_v61 = vrot.slane %v7670_v58, 2  ;;  %v22162_v58 = vld [vmem:[%s25590_s2 + $0xa0] sm:$0xff]   ;;  %v12784_v1 = vshrl.u32 %v22171_v22, 16 }
 0x2f2   : >> { %v12299_v12 = vor.u32 %v12298_v8, %v12295_v38  ;;  %v7813_v50 = vsel %vm1618_vm6, %v7810_v15, %v7812_v40  ;;  %v22146_v38 = vld [vmem:[%s19872_s28 + $0x1ac] sm:$0xf]  ;;  %v19647_v8 = vld [vmem:[%s19872_s28 + $0x1b0] sm:$0xff]  }
 0x2f5   : >> { %18242 = vmatmul.mubr.msk.bf16.gmra.mrb[20].mxu0 %vm404_vm1, %v12124_v35  ;;  %v12304_v35 = vrot.slane %v12302_v49, 2 }
 0x2f6   : >> { %17864 = vmatmul.mubr.msk.bf16.gmra.mrb[20].mxu1 %vm404_vm1, %v7492_v46  ;;  %18247 = vmatprep.mubr.msk.bf16.mxu0 %vm404_vm1, %v12264_v39  ;;  %v12291_v46 = vsel %vm1431_vm5, %v12281_v14, %v12290_v43  ;;  %v12300_v39 = vsel %vm1431_vm5, %v12290_v43, %v12299_v12 }
 0x2f7   : >> { %17869 = vmatprep.mubr.msk.bf16.mxu1 %vm404_vm1, %v7632_v19  ;;  %v16013_v19 = vcombine.low %v16010_v41, %v21913_v55  ;;  %v12308_v34 = vor.u32 %v12307_v7, %v12304_v35  ;;  %v12434_v55 = vrot.slane %v21935_v37, 3  ;;  %v12438_v37 = vrot.slane %v21958_v44, 3  ;;  %v19653_v41 = vld [vmem:[%s19872_s28 + $0x1c0] sm:$0xff]  }
 0x2f8   : >> { %v7808_v44 = vrot.slane %v21976_v60, 3 }
 0x2f9   : >> { %v7801_v4 = vrot.slane %v16013_v19, 3  ;;  %v12437_v14 = vsel %vm1618_vm6, %v12434_v55, %v12436_v26  ;;  %v12439_v63 = vsel %vm1618_vm6, %v12436_v26, %v12438_v37  ;;  %v12441_v62 = vsel %vm1618_vm6, %v12438_v37, %v12440_v18  ;;  %v22185_v19 = vld [vmem:[%s19872_s28 + $0x1b8] sm:$0xff]   ;;  %v22216_v18 = vld [vmem:[%s19872_s28 + $0x1c8] sm:$0xff]  }
 0x2fa   : >> { %v7811_v60 = vsel %vm1618_vm6, %v7808_v44, %v7810_v15 }
 0x2fb   : >> { %v7803_v32 = vsel %vm1618_vm6, %v7801_v4, %v7802_v42  ;;  %v22192_v42 = vld [vmem:[%s19872_s28 + $0x1c0] sm:$0xff]  }
 0x2fd   : >> { %18248 = vmatmul.mubr.msk.bf16.vlgmr.msra.gmra.mrb[12].mxu0 %vm404_vm1, %v12273_v9  ;;  %v12445_v9 = vsel %vm1618_vm6, %v12442_v3, %v12444_v47  ;;  %v22220_v3 = vld [vmem:[%s19872_s28 + $0x1a0] sm:$0xff]  }
 0x2fe   : >> { %17870 = vmatmul.mubr.msk.bf16.vlgmr.msra.gmra.mrb[12].mxu1 %vm404_vm1, %v7641_v21  ;;  %18260 = vmatpush3.bf16.msra.mxu0 %v21996_v45  ;;  %v7675_v45 = vrot.slane %v7673_v24, 3  ;;  %v7809_v21 = vsel %vm1618_vm6, %v7806_v53, %v7808_v44  ;;  %v22167_v24 = vld [vmem:[%s19872_s28 + $0x180] sm:$0xff]   ;;  %v12792_v53 = vshrl.u32 %v22185_v19, 16 }
 0x2ff   : >> { %17882 = vmatpush3.bf16.msra.mxu1 %v21989_v29  ;;  %18251 = vmatprep.mubr.msk.bf16.mxu0 %vm404_vm1, %v12282_v27  ;;  %v16465_v29 = vld [vmem:[%s19872_s28 + $0x114] sm:$0x8]  ;;  %v16503_v27 = vld [vmem:[%s19872_s28 + $0x1a8] sm:$0xf] }
 0x300   : >> { %17873 = vmatprep.mubr.msk.bf16.mxu1 %vm404_vm1, %v7650_v17  ;;  %17895 = vmatprep.subr.bf16.mxu1 %v19644_v36  ;;  %v16468_v16 = vcombine.low %v16465_v29, %v21918_v2  ;;  %v7676_v31 = vor.u32 %v7675_v45, %v7672_v61  ;;  %v12309_v2 = vsel %vm1431_vm5, %v12299_v12, %v12308_v34  ;;  %v19655_v12 = vld [vmem:[%s19872_s28 + $0x190] sm:$0xff]   ;;  %v19658_v29 = vld [vmem:[%s19872_s28 + $0x198] sm:$0xff]   ;;  %v8148_v45 = vshll.u32 %v22167_v24, 16 }
 0x301   : >> { %18273 = vmatprep.subr.bf16.mxu0 %v19645_v11  ;;  %v16063_v17 = vcombine.low %v16048_v48, %v22141_v10  ;;  %v16518_v43 = vcombine.low %v16503_v27, %v22146_v38  ;;  %v8180_v27 = vshll.u32 %v22220_v3, 16 }
 0x302   : >> { %v12433_v57 = vrot.slane %v16468_v16, 3  ;;  %v7677_v33 = vsel %vm1431_vm5, %v7667_v52, %v7676_v31  ;;  %v8150_v31 = vrot.slane %v8148_v45, 1 }
 0x303   : >> { %v8143_v49 = vshll.u32 %v16063_v17, 16  ;;  %v12775_v52 = vshll.u32 %v16518_v43, 16  ;;  %v12773_v35 = vshrl.u32 %v16518_v43, 16  ;;  %v8182_v45 = vrot.slane %v8180_v27, 1  ;;  %v22328_v27 = vld [vmem:[%s19872_s28 + $0x188] sm:$0xff]  }
 0x304   : >> { %v12435_v51 = vsel %vm1618_vm6, %v12433_v57, %v12434_v55  ;;  %v19659_v57 = vld [vmem:[%s19872_s28 + $0x1a0] sm:$0xff]   ;;  %v22196_v55 = vld [vmem:[%s19872_s28 + $0x190] sm:$0xff]  }
 0x305   : >> { %18252 = vmatmul.mubr.msk.bf16.gmra.mrb[16].mxu0 %vm404_vm1, %v12291_v46  ;;  %v19656_v46 = vld [vmem:[%s19872_s28 + $0x1c8] sm:$0xff]   ;;  %v8145_v61 = vrot.slane %v8143_v49, 1  ;;  %v12777_v7 = vrot.slane %v12775_v52, 1 }
 0x306   : >> { %17874 = vmatmul.mubr.msk.bf16.gmra.mrb[16].mxu1 %vm404_vm1, %v7659_v23  ;;  %18255 = vmatprep.mubr.msk.bf16.mxu0 %vm404_vm1, %v12300_v39  ;;  %v8141_v23 = vshrl.u32 %v16063_v17, 16  ;;  %v22188_v39 = vld [vmem:[%s19872_s28 + $0x188] sm:$0xff]  }
 0x307   : >> { %17877 = vmatprep.mubr.msk.bf16.mxu1 %vm404_vm1, %v7668_v56  ;;  %v12780_v56 = vshll.u32 %v22171_v22, 16  ;;  %v12778_v34 = vor.u32 %v12777_v7, %v12773_v35  ;;  %v19679_v52 = vld [vmem:[%s25590_s2 + $0xa8] sm:$0xff]  }
 0x308   : >> { %v8146_v16 = vor.u32 %v8145_v61, %v8141_v23  ;;  %v22254_v23 = vld [vmem:[%s19872_s28 + $0x1d8] ss:$0 sps:$4 sm:$0x11]  }
 0x309   : >> { %v12782_v4 = vrot.slane %v12780_v56, 1  ;;  %v16077_v56 = vld [vmem:[%s19872_s28 + $0x178] sm:$0xe] }
 0x30a   : >> { %v8151_v26 = vsel %vm345_vm0, %v8146_v16, %v8150_v31 }
 0x30b   : >> { %v12783_v37 = vsel %vm345_vm0, %v12778_v34, %v12782_v4  ;;  %v12786_v15 = vor.u32 %v12784_v1, %v12782_v4 }
 0x30d   : >> { %18256 = vmatmul.mubr.msk.bf16.gmra.mrb[20].mxu0 %vm404_vm1, %v12309_v2  ;;  %v12788_v2 = vshll.u32 %v22185_v19, 16 }
 0x30e   : >> { %17878 = vmatmul.mubr.msk.bf16.gmra.mrb[20].mxu1 %vm404_vm1, %v7677_v33  ;;  %18261 = vmatprep.mubr.msk.bf16.mxu0 %vm404_vm1, %v12435_v51  ;;  %v19657_v33 = vld [vmem:[%s19872_s28 + $0x1d0] sm:$0xff]   ;;  %v8156_v51 = vshll.u32 %v22188_v39, 16 }
 0x30f   : >> { %17883 = vmatprep.mubr.msk.bf16.mxu1 %vm404_vm1, %v7803_v32  ;;  %v8152_v32 = vshrl.u32 %v22167_v24, 16 }
 0x310   : >> { %v8158_v44 = vrot.slane %v8156_v51, 1 }
 0x315   : >> { %18262 = vmatmul.mubr.msk.bf16.vlgmr.msra.gmra.mrb[12].mxu0 %vm404_vm1, %v12437_v14  ;;  %v8160_v14 = vshrl.u32 %v22188_v39, 16 }
 0x316   : >> { %17884 = vmatmul.mubr.msk.bf16.vlgmr.msra.gmra.mrb[12].mxu1 %vm404_vm1, %v7805_v30  ;;  %18274 = vmatpush3.bf16.msra.mxu0 %v19645_v11  ;;  %v19654_v11 = vld [vmem:[%s19872_s28 + $0x188] sm:$0xff]   ;;  %v12796_v30 = vshll.u32 %v22192_v42, 16 }
 0x317   : >> { %17896 = vmatpush3.bf16.msra.mxu1 %v19644_v36  ;;  %18265 = vmatprep.mubr.msk.bf16.mxu0 %vm404_vm1, %v12439_v63  ;;  %v19652_v36 = vld [vmem:[%s19872_s28 + $0x1b8] sm:$0xff]   ;;  %v8164_v63 = vshll.u32 %v22196_v55, 16 }
 0x318   : >> { %17887 = vmatprep.mubr.msk.bf16.mxu1 %vm404_vm1, %v7807_v54  ;;  %17909 = vmatprep.subr.bf16.mxu1 %v19649_v59  ;;  %v12790_v54 = vrot.slane %v12788_v2, 1  ;;  %v16080_v2 = vcombine.low %v16077_v56, %v22141_v10 }
 0x319   : >> { %18287 = vmatprep.subr.bf16.mxu0 %v19650_v6  ;;  %v8166_v40 = vrot.slane %v8164_v63, 1  ;;  %v12948_v63 = vrot.slane %v22171_v22, 1  ;;  %v12952_v22 = vrot.slane %v22192_v42, 1 }
 0x31a   : >> { %v12791_v48 = vsel %vm345_vm0, %v12786_v15, %v12790_v54  ;;  %v8318_v15 = vrot.slane %v22188_v39, 1  ;;  %v22294_v39 = vld [vmem:[%s25590_s2 + $0xb0] sm:$0xff]  }
 0x31d   : >> { %18266 = vmatmul.mubr.msk.bf16.gmra.mrb[16].mxu0 %vm404_vm1, %v12441_v62  ;;  %v12798_v62 = vrot.slane %v12796_v30, 1  ;;  %v8315_v30 = vrot.slane %v16080_v2, 1  ;;  %v22376_v2 = vld [vmem:[%s19872_s28 + $0x1d0] sm:$0xff]  }
 0x31e   : >> { %17888 = vmatmul.mubr.msk.bf16.gmra.mrb[16].mxu1 %vm404_vm1, %v7809_v21  ;;  %18269 = vmatprep.mubr.msk.bf16.mxu0 %vm404_vm1, %v12443_v25  ;;  %v12794_v21 = vor.u32 %v12792_v53, %v12790_v54  ;;  %v8162_v25 = vor.u32 %v8160_v14, %v8158_v44  ;;  %v8316_v14 = vrot.slane %v22167_v24, 1  ;;  %v12950_v24 = vrot.slane %v22185_v19, 1 }
 0x31f   : >> { %17891 = vmatprep.mubr.msk.bf16.mxu1 %vm404_vm1, %v7811_v60  ;;  %v22223_v60 = vld [vmem:[%s19872_s28 + $0x1d0] sm:$0xff]  }
 0x320   : >> { %v12812_v17 = vshll.u32 %v22223_v60, 16  ;;  %v8167_v43 = vsel %vm345_vm0, %v8162_v25, %v8166_v40  ;;  %v12816_v4 = vshrl.u32 %v22223_v60, 16  ;;  %v12951_v25 = vsel %vm610_vm4, %v12948_v63, %v12950_v24 }
 0x322   : >> { %v12814_v7 = vrot.slane %v12812_v17, 1  ;;  %v22335_v17 = vld [vmem:[%s19872_s28 + $0x1b8] sm:$0xff]  }
 0x325   : >> { %18270 = vmatmul.mubr.msk.bf16.gmra.mrb[20].mxu0 %vm404_vm1, %v12445_v9  ;;  %v12804_v9 = vshll.u32 %v22216_v18, 16 }
 0x326   : >> { %17892 = vmatmul.mubr.msk.bf16.gmra.mrb[20].mxu1 %vm404_vm1, %v7813_v50  ;;  %18275 = vmatprep.mubr.msk.bf16.mxu0 %vm404_vm1, %v19646_v13  ;;  %v8168_v13 = vshrl.u32 %v22196_v55, 16 }
 0x327   : >> { %17897 = vmatprep.mubr.msk.bf16.mxu1 %vm404_vm1, %v19648_v5  ;;  %v12800_v5 = vshrl.u32 %v22192_v42, 16  ;;  %v22301_v42 = vld [vmem:[%s25590_s2 + $0xb0] sm:$0xff]  }
 0x32d   : >> { %18276 = vmatmul.mubr.msk.bf16.vlgmr.msra.gmra.mrb[12].mxu0 %vm404_vm1, %v19647_v8  ;;  %v12799_v8 = vsel %vm345_vm0, %v12794_v21, %v12798_v62  ;;  %v8320_v21 = vrot.slane %v22196_v55, 1 }
 0x32e   : >> { %17898 = vmatmul.mubr.msk.bf16.vlgmr.msra.gmra.mrb[12].mxu1 %vm404_vm1, %v19651_v28  ;;  %18288 = vmatpush3.bf16.msra.mxu0 %v19650_v6  ;;  %v8154_v6 = vor.u32 %v8152_v32, %v8150_v31 }
 0x32f   : >> { %17910 = vmatpush3.bf16.msra.mxu1 %v19649_v59  ;;  %18279 = vmatprep.mubr.msk.bf16.mxu0 %vm404_vm1, %v19652_v36  ;;  %v22211_v59 = vld [vmem:[%s19872_s28 + $0x198] sm:$0xff]   ;;  %v12808_v36 = vshrl.u32 %v22216_v18, 16  ;;  %v8321_v19 = vsel %vm610_vm4, %v8318_v15, %v8320_v21 }
 0x330   : >> { %17901 = vmatprep.mubr.msk.bf16.mxu1 %vm404_vm1, %v19654_v11  ;;  %17923 = vmatprep.subr.bf16.mxu1 %v22156_v20  ;;  %v8172_v47 = vshll.u32 %v22211_v59, 16  ;;  %v8159_v50 = vsel %vm345_vm0, %v8154_v6, %v8158_v44  ;;  %v8176_v28 = vshrl.u32 %v22211_v59, 16  ;;  %v22239_v11 = vld [vmem:[%s25590_s2 + $0xa8] sm:$0xff]   ;;  %v8317_v6 = vsel %vm610_vm4, %v8315_v30, %v8316_v14 }
 0x331   : >> { %18301 = vmatprep.subr.bf16.mxu0 %v22162_v58  ;;  %v8322_v55 = vrot.slane %v22211_v59, 1  ;;  %v16543_v59 = vld [vmem:[%s19872_s28 + $0x1b0] sm:$0xe] }
 0x332   : >> { %v8174_v49 = vrot.slane %v8172_v47, 1  ;;  %v12954_v47 = vrot.slane %v22216_v18, 1 }
 0x333   : >> { %v8323_v18 = vsel %vm610_vm4, %v8320_v21, %v8322_v55 }
 0x334   : >> { %v8178_v61 = vor.u32 %v8176_v28, %v8174_v49 }
 0x335   : >> { %18280 = vmatmul.mubr.msk.bf16.gmra.mrb[16].mxu0 %vm404_vm1, %v19653_v41  ;;  %v12806_v41 = vrot.slane %v12804_v9, 1  ;;  %v16088_v9 = vld [vmem:[%s19872_s28 + $0x180] sm:$0xe] }
 0x336   : >> { %17902 = vmatmul.mubr.msk.bf16.gmra.mrb[16].mxu1 %vm404_vm1, %v19655_v12  ;;  %18283 = vmatprep.mubr.msk.bf16.mxu0 %vm404_vm1, %v19656_v46  ;;  %v12802_v12 = vor.u32 %v12800_v5, %v12798_v62  ;;  %v22249_v46 = vld [vmem:[%s19872_s28 + $0x1a8] ss:$0 sps:$4 sm:$0x11]   ;;  %v8319_v62 = vsel %vm610_vm4, %v8316_v14, %v8318_v15  ;;  %v12956_v5 = vrot.slane %v22223_v60, 1 }
 0x337   : >> { %17905 = vmatprep.mubr.msk.bf16.mxu1 %vm404_vm1, %v19658_v29  ;;  %v8170_v29 = vor.u32 %v8168_v13, %v8166_v40  ;;  %v12810_v35 = vor.u32 %v12808_v36, %v12806_v41  ;;  %v8188_v34 = vshll.u32 %v22249_v46, 16  ;;  %v12953_v40 = vsel %vm610_vm4, %v12950_v24, %v12952_v22  ;;  %v22313_v13 = vld [vmem:[%s19872_s28 + $0x184] sm:$0xf]  ;;  %v9474_v24 = vld [vmem:[%s20695_s23 + $0x98] sm:$0xff] }
 0x338   : >> { %v12807_v16 = vsel %vm345_vm0, %v12802_v12, %v12806_v41  ;;  %v22325_v60 = vcombine.low %v16088_v9, %v22313_v13  ;;  %v8494_v41 = vrot.slane %v22328_v27, 1 }
 0x339   : >> { %v8175_v31 = vsel %vm345_vm0, %v8170_v29, %v8174_v49  ;;  %v12815_v32 = vsel %vm345_vm0, %v12810_v35, %v12814_v7  ;;  %v9467_v49 = vld [vmem:[%s20695_s23 + $0x60] sm:$0xff] }
 0x33a   : >> { %v8493_v12 = vrot.slane %v22325_v60, 1  ;;  %9481 = vperm.xlu0 %19375, %v9467_v49   ;;  %v8633_v21 = vshll.u32 %v22325_v60, 16 }
 0x33d   : >> { %18284 = vmatmul.mubr.msk.bf16.gmra.mrb[20].mxu0 %vm404_vm1, %v19657_v33  ;;  %v8183_v33 = vsel %vm345_vm0, %v8178_v61, %v8182_v45  ;;  %v13126_v61 = vrot.slane %v22335_v17, 1 }
 0x33e   : >> { %17906 = vmatmul.mubr.msk.bf16.gmra.mrb[20].mxu1 %vm404_vm1, %v19659_v57  ;;  %18289 = vmatprep.mubr.msk.bf16.mxu0 %vm404_vm1, %v12783_v37  ;;  %v12820_v57 = vshll.u32 %v22254_v23, 16  ;;  %v12818_v37 = vor.u32 %v12816_v4, %v12814_v7  ;;  %v22355_v7 = vld [vmem:[%s19872_s28 + $0x1c0] sm:$0xff]  }
 0x33f   : >> { %17911 = vmatprep.mubr.msk.bf16.mxu1 %vm404_vm1, %v8151_v26  ;;  %v8190_v26 = vrot.slane %v8188_v34, 1  ;;  %v9469_v34 = vld [vmem:[%s20695_s23 + $0x70] sm:$0xff]  ;;  %v13128_v4 = vrot.slane %v22355_v7, 1 }
 0x340   : >> { %v12822_v53 = vrot.slane %v12820_v57, 1  ;;  %9491 = vperm.xlu0 %19375, %v9469_v34  }
 0x341   : >> { %v13129_v30 = vsel %vm610_vm4, %v13126_v61, %v13128_v4 }
 0x342   : >> { %v12823_v54 = vsel %vm345_vm0, %v12818_v37, %v12822_v53  ;;  %v22385_v37 = vld [vmem:[%s19872_s28 + $0x1d8] sm:$0xff]   ;;  %v22388_v53 = vld [vmem:[%s19872_s28 + $0x1a8] sm:$0xff]  }
 0x343   : >> { %v8502_v15 = vrot.slane %v22388_v53, 1 }
 0x345   : >> { %18290 = vmatmul.mubr.msk.bf16.vlgmr.msra.gmra.mrb[12].mxu0 %vm404_vm1, %v12791_v48  ;;  %v22318_v48 = vld [vmem:[%s19872_s28 + $0x1b4] sm:$0xf] }
 0x346   : >> { %17912 = vmatmul.mubr.msk.bf16.vlgmr.msra.gmra.mrb[12].mxu1 %vm404_vm1, %v8159_v50  ;;  %18302 = vmatpush3.bf16.msra.mxu0 %v22162_v58  ;;  %v8184_v58 = vshrl.u32 %v22220_v3, 16  ;;  %v8324_v50 = vrot.slane %v22220_v3, 1  ;;  %v12955_v3 = vsel %vm610_vm4, %v12952_v22, %v12954_v47  ;;  %v22332_v36 = vcombine.low %v16543_v59, %v22318_v48 }
 0x347   : >> { %17924 = vmatpush3.bf16.msra.mxu1 %v22156_v20  ;;  %18293 = vmatprep.mubr.msk.bf16.mxu0 %vm404_vm1, %v12799_v8  ;;  %v16532_v20 = vld [vmem:[%s19872_s28 + $0x1a8] sm:$0xe]  ;;  %v12957_v8 = vsel %vm610_vm4, %v12954_v47, %v12956_v5  ;;  %v8630_v22 = vshrl.u32 %v22325_v60, 16  ;;  %v19693_v47 = vld [vmem:[%s19872_s28 + $0x1e0] ss:$0 sps:$4 sm:$0x11]  }
 0x348   : >> { %17915 = vmatprep.mubr.msk.bf16.mxu1 %vm404_vm1, %v8167_v43  ;;  %17937 = vmatprep.subr.bf16.mxu1 %v22239_v11  ;;  %v16535_v51 = vcombine.low %v16532_v20, %v22146_v38  ;;  %v8186_v1 = vor.u32 %v8184_v58, %v8182_v45  ;;  %v8325_v28 = vsel %vm610_vm4, %v8322_v55, %v8324_v50  ;;  %v9468_v43 = vld [vmem:[%s20695_s23 + $0x68] sm:$0xff]  ;;  %v13125_v29 = vrot.slane %v22332_v36, 1  ;;  %v22351_v45 = vld [vmem:[%s19872_s28 + $0x190] sm:$0xff]   ;;  %v9470_v58 = vld [vmem:[%s20695_s23 + $0x78] sm:$0xff] }
 0x349   : >> { %18315 = vmatprep.subr.bf16.mxu0 %v19679_v52  ;;  %9486 = vperm.xlu1 %19376, %v9468_v43   ;;  %v22360_v20 = vld [vmem:[%s19872_s28 + $0x1c8] sm:$0xff]   ;;  %v13273_v55 = vshll.u32 %v22335_v17, 16  ;;  %v8635_v60 = vrot.slane %v8633_v21, 2 }
 0x34a   : >> { %v12947_v10 = vrot.slane %v16535_v51, 1  ;;  %v8191_v38 = vsel %vm345_vm0, %v8186_v1, %v8190_v26  ;;  %v13127_v56 = vsel %vm610_vm4, %v13125_v29, %v13126_v61  ;;  %v13130_v57 = vrot.slane %v22360_v20, 1  ;;  %v9471_v51 = vld [vmem:[%s20695_s23 + $0x80] sm:$0xff] }
 0x34b   : >> { %v22382_v26 = vld [vmem:[%s19872_s28 + $0x1a0] sm:$0xff]   ;;  %9501 = vperm.xlu0 %19375, %v9471_v51   ;;  %v8647_v61 = vshrl.u32 %v22351_v45, 16 }
 0x34c   : >> { %v12949_v44 = vsel %vm610_vm4, %v12947_v10, %v12948_v63  ;;  %v13131_v14 = vsel %vm610_vm4, %v13128_v4, %v13130_v57  ;;  %v22395_v10 = vld [vmem:[%s25590_s2 + $0xb8] sm:$0xff]  }
 0x34d   : >> { %18294 = vmatmul.mubr.msk.bf16.gmra.mrb[16].mxu0 %vm404_vm1, %v12807_v16  ;;  %v22364_v16 = vld [vmem:[%s19872_s28 + $0x198] sm:$0xff]   ;;  %9496 = vperm.xlu1 %19376, %v9470_v58  }
 0x34e   : >> { %17916 = vmatmul.mubr.msk.bf16.gmra.mrb[16].mxu1 %vm404_vm1, %v8175_v31  ;;  %18297 = vmatprep.mubr.msk.bf16.mxu0 %vm404_vm1, %v12815_v32  ;;  %v8496_v31 = vrot.slane %v22351_v45, 1  ;;  %v8498_v32 = vrot.slane %v22364_v16, 1  ;;  %v8656_v51 = vshrl.u32 %v22364_v16, 16 }
 0x34f   : >> { %17919 = vmatprep.mubr.msk.bf16.mxu1 %vm404_vm1, %v8183_v33  ;;  %v9472_v33 = vld [vmem:[%s20695_s23 + $0x88] sm:$0xff] }
 0x350   : >> { %v8497_v1 = vsel %vm610_vm4, %v8494_v41, %v8496_v31  ;;  %v8499_v63 = vsel %vm610_vm4, %v8496_v31, %v8498_v32 }
 0x351   : >> { %9506 = vperm.xlu1 %19376, %v9472_v33   ;;  %v13291_v33 = vshll.u32 %v22360_v20, 16 }
 0x355   : >> { %18298 = vmatmul.mubr.msk.bf16.gmra.mrb[20].mxu0 %vm404_vm1, %v12823_v54  ;;  %v13132_v54 = vrot.slane %v22376_v2, 1  ;;  %9516 = vperm.xlu1 %19376, %v9474_v24  }
 0x356   : >> { %17920 = vmatmul.mubr.msk.bf16.gmra.mrb[20].mxu1 %vm404_vm1, %v8191_v38  ;;  %18303 = vmatprep.mubr.msk.bf16.mxu0 %vm404_vm1, %v12949_v44  ;;  %v22402_v38 = vld [vmem:[%s25590_s2 + $0xb8] sm:$0xff]   ;;  %v13134_v44 = vrot.slane %v22385_v37, 1 }
 0x357   : >> { %17925 = vmatprep.mubr.msk.bf16.mxu1 %vm404_vm1, %v8317_v6  ;;  %v8500_v6 = vrot.slane %v22382_v26, 1 }
 0x358   : >> { %v13135_v9 = vsel %vm610_vm4, %v13132_v54, %v13134_v44 }
 0x359   : >> { %v8503_v59 = vsel %vm610_vm4, %v8500_v6, %v8502_v15 }
 0x35d   : >> { %18304 = vmatmul.mubr.msk.bf16.vlgmr.msra.gmra.mrb[12].mxu0 %vm404_vm1, %v12951_v25  ;;  %v8641_v25 = vshll.u32 %v22328_v27, 16 }
 0x35e   : >> { %17926 = vmatmul.mubr.msk.bf16.vlgmr.msra.gmra.mrb[12].mxu1 %vm404_vm1, %v8319_v62  ;;  %18316 = vmatpush3.bf16.msra.mxu0 %v19679_v52  ;;  %v12958_v52 = vrot.slane %v22254_v23, 1  ;;  %v8495_v23 = vsel %vm610_vm4, %v8493_v12, %v8494_v41  ;;  %v8638_v62 = vshrl.u32 %v22328_v27, 16  ;;  %v9475_v12 = vld [vmem:[%s20695_s23 + $0xa0] sm:$0xff]  ;;  %v13136_v41 = vrot.slane %v19693_v47, 1 }
 0x35f   : >> { %17938 = vmatpush3.bf16.msra.mxu1 %v22239_v11  ;;  %18307 = vmatprep.mubr.msk.bf16.mxu0 %vm404_vm1, %v12953_v40  ;;  %v8326_v11 = vrot.slane %v22249_v46, 1  ;;  %v9473_v40 = vld [vmem:[%s20695_s23 + $0x90] sm:$0xff]  ;;  %v8665_v47 = vshrl.u32 %v22382_v26, 16 }
 0x360   : >> { %17929 = vmatprep.mubr.msk.bf16.mxu1 %vm404_vm1, %v8321_v19  ;;  %17951 = vmatprep.subr.bf16.mxu1 %v22294_v39  ;;  %v12959_v35 = vsel %vm610_vm4, %v12956_v5, %v12958_v52  ;;  %v13265_v19 = vshll.u32 %v22332_v36, 16  ;;  %v8501_v5 = vsel %vm610_vm4, %v8498_v32, %v8500_v6  ;;  %v13275_v52 = vrot.slane %v13273_v55, 2  ;;  %v9477_v32 = vld [vmem:[%s20695_s23 + $0xb0] sm:$0xff] }
 0x361   : >> { %18329 = vmatprep.subr.bf16.mxu0 %v22301_v42  ;;  %v8327_v46 = vsel %vm610_vm4, %v8324_v50, %v8326_v11  ;;  %v13133_v50 = vsel %vm610_vm4, %v13130_v57, %v13132_v54  ;;  %9511 = vperm.xlu0 %19375, %v9473_v40   ;;  %v13288_v57 = vshrl.u32 %v22360_v20, 16  ;;  %v14100_v54 = vld [vmem:[%s20695_s23 + $0xc8] sm:$0xff]  ;;  %v13137_v6 = vsel %vm610_vm4, %v13134_v44, %v13136_v41  ;;  %v22473_v41 = vld [vmem:[%s19872_s28 + $0x1b0] ss:$0 sps:$4 sm:$0x33]  }
 0x362   : >> { %v13267_v43 = vrot.slane %v13265_v19, 2  ;;  %v13293_v40 = vrot.slane %v13291_v33, 2  ;;  %v13300_v19 = vshll.u32 %v22376_v2, 16 }
 0x365   : >> { %18308 = vmatmul.mubr.msk.bf16.gmra.mrb[16].mxu0 %vm404_vm1, %v12955_v3  ;;  %v9476_v3 = vld [vmem:[%s20695_s23 + $0xa8] sm:$0xff]  ;;  %9521 = vperm.xlu0 %19375, %v9475_v12  }
 0x366   : >> { %17930 = vmatmul.mubr.msk.bf16.gmra.mrb[16].mxu1 %vm404_vm1, %v8323_v18  ;;  %18311 = vmatprep.mubr.msk.bf16.mxu0 %vm404_vm1, %v12957_v8  ;;  %v19695_v18 = vld [vmem:[%s19872_s28 + $0x1b0] ss:$0 sps:$4 sm:$0x11]   ;;  %v8640_v8 = vrot.slane %v8638_v62, 1 }
 0x367   : >> { %17933 = vmatprep.mubr.msk.bf16.mxu1 %vm404_vm1, %v8325_v28  ;;  %v8632_v28 = vrot.slane %v8630_v22, 1  ;;  %9526 = vperm.xlu1 %19376, %v9476_v3   ;;  %v8504_v29 = vrot.slane %v19695_v18, 1  ;;  %v8677_v18 = vshll.u32 %v22388_v53, 16 }
 0x369   : >> { %v8636_v31 = vor.u32 %v8635_v60, %v8632_v28  ;;  %9531 = vperm.xlu0 %19375, %v9477_v32   ;;  %v13306_v28 = vshrl.u32 %v22385_v37, 16  ;;  %v13309_v60 = vshll.u32 %v22385_v37, 16 }
 0x36d   : >> { %18312 = vmatmul.mubr.msk.bf16.gmra.mrb[20].mxu0 %vm404_vm1, %v12959_v35  ;;  %v9478_v35 = vld [vmem:[%s20695_s23 + $0xb8] sm:$0xff] }
 0x36e   : >> { %17934 = vmatmul.mubr.msk.bf16.gmra.mrb[20].mxu1 %vm404_vm1, %v8327_v46  ;;  %18317 = vmatprep.mubr.msk.bf16.mxu0 %vm404_vm1, %v13127_v56  ;;  %v8650_v46 = vshll.u32 %v22351_v45, 16  ;;  %v13282_v56 = vshll.u32 %v22355_v7, 16 }
 0x36f   : >> { %17939 = vmatprep.mubr.msk.bf16.mxu1 %vm404_vm1, %v8495_v23  ;;  %v13279_v23 = vshrl.u32 %v22355_v7, 16  ;;  %9536 = vperm.xlu1 %19376, %v9478_v35  }
 0x370   : >> { %v13284_v22 = vrot.slane %v13282_v56, 2 }
 0x371   : >> { %v13281_v24 = vrot.slane %v13279_v23, 1  ;;  %v8679_v23 = vrot.slane %v8677_v18, 2 }
 0x373   : >> { %14118 = vperm.xlu1 %19376, %v14100_v54  }
 0x375   : >> { %18318 = vmatmul.mubr.msk.bf16.vlgmr.msra.gmra.mrb[12].mxu0 %vm404_vm1, %v13129_v30  ;;  %v8505_v30 = vsel %vm610_vm4, %v8502_v15, %v8504_v29  ;;  %v13297_v15 = vshrl.u32 %v22376_v2, 16  ;;  %v14104_v29 = vld [vmem:[%s20695_s23 + $0xe8] sm:$0xff] }
 0x376   : >> { %17940 = vmatmul.mubr.msk.bf16.vlgmr.msra.gmra.mrb[12].mxu1 %vm404_vm1, %v8497_v1  ;;  %18330 = vmatpush3.bf16.msra.mxu0 %v22301_v42  ;;  %v13270_v42 = vshrl.u32 %v22335_v17, 16  ;;  %v8659_v1 = vshll.u32 %v22364_v16, 16 }
 0x377   : >> { %17952 = vmatpush3.bf16.msra.mxu1 %v22294_v39  ;;  %18321 = vmatprep.mubr.msk.bf16.mxu0 %vm404_vm1, %v13131_v14  ;;  %v13262_v39 = vshrl.u32 %v22332_v36, 16  ;;  %v8643_v36 = vrot.slane %v8641_v25, 2  ;;  %v8649_v14 = vrot.slane %v8647_v61, 1  ;;  %v13290_v25 = vrot.slane %v13288_v57, 1  ;;  %v22491_v57 = vld [vmem:[%s25590_s2 + $0xc0] sm:$0xff]  }
 0x378   : >> { %17943 = vmatprep.mubr.msk.bf16.mxu1 %vm404_vm1, %v8499_v63  ;;  %17965 = vmatprep.subr.bf16.mxu1 %v22395_v10  ;;  %v13272_v49 = vrot.slane %v13270_v42, 1  ;;  %v8652_v63 = vrot.slane %v8650_v46, 2  ;;  %v8658_v42 = vrot.slane %v8656_v51, 1  ;;  %v8661_v55 = vrot.slane %v8659_v1, 2 }
 0x379   : >> { %18343 = vmatprep.subr.bf16.mxu0 %v22402_v38  ;;  %v13264_v11 = vrot.slane %v13262_v39, 1  ;;  %v8644_v58 = vor.u32 %v8643_v36, %v8640_v8  ;;  %v14099_v39 = vld [vmem:[%s20695_s23 + $0xc0] sm:$0xff]  ;;  %v13294_v3 = vor.u32 %v13293_v40, %v13290_v25  ;;  %v14101_v8 = vld [vmem:[%s20695_s23 + $0xd0] sm:$0xff]  ;;  %v13299_v36 = vrot.slane %v13297_v15, 1 }
 0x37a   : >> { %v13276_v4 = vor.u32 %v13275_v52, %v13272_v49  ;;  %v8653_v44 = vor.u32 %v8652_v63, %v8649_v14  ;;  %14113 = vperm.xlu0 %19375, %v14099_v39   ;;  %v8667_v52 = vrot.slane %v8665_v47, 1  ;;  %v22478_v46 = vld [vmem:[%s19872_s28 + $0x1e0] ss:$0 sps:$4 sm:$0x33]   ;;  %v8683_v51 = vshrl.u32 %v22473_v41, 16  ;;  %v14105_v40 = vld [vmem:[%s20695_s23 + $0xf0] sm:$0xff] }
 0x37b   : >> { %v13268_v34 = vor.u32 %v13267_v43, %v13264_v11  ;;  %v8645_v21 = vsel %vm927_vm2, %v8636_v31, %v8644_v58  ;;  %v13302_v11 = vrot.slane %v13300_v19, 2  ;;  %v8662_v43 = vor.u32 %v8661_v55, %v8658_v42  ;;  %v14108_v47 = vld [vmem:[%s20695_s23 + $0x108] sm:$0xff] }
 0x37c   : >> { %v8654_v49 = vsel %vm927_vm2, %v8644_v58, %v8653_v44  ;;  %v13308_v31 = vrot.slane %v13306_v28, 1  ;;  %v22484_v58 = vld [vmem:[%s25590_s2 + $0xc0] sm:$0xff]   ;;  %v8686_v1 = vshll.u32 %v22473_v41, 16  ;;  %v13315_v14 = vshrl.u32 %v22478_v46, 16 }
 0x37d   : >> { %18322 = vmatmul.mubr.msk.bf16.gmra.mrb[16].mxu0 %vm404_vm1, %v13133_v50  ;;  %v13277_v62 = vsel %vm927_vm2, %v13268_v34, %v13276_v4  ;;  %v8668_v50 = vshll.u32 %v22382_v26, 16  ;;  %v13311_v34 = vrot.slane %v13309_v60, 2  ;;  %v13303_v33 = vor.u32 %v13302_v11, %v13299_v36  ;;  %v14109_v60 = vld [vmem:[%s20695_s23 + $0x110] sm:$0xff] }
 0x37e   : >> { %17944 = vmatmul.mubr.msk.bf16.gmra.mrb[16].mxu1 %vm404_vm1, %v8501_v5  ;;  %18325 = vmatprep.mubr.msk.bf16.mxu0 %vm404_vm1, %v13135_v9  ;;  %v14102_v5 = vld [vmem:[%s20695_s23 + $0xd8] sm:$0xff]  ;;  %v13285_v9 = vor.u32 %v13284_v22, %v13281_v24  ;;  %v13318_v63 = vshll.u32 %v22478_v46, 16  ;;  %v16128_v24 = vld [vmem:[%s19872_s28 + $0x180] sm:$0xc]  ;;  %v16583_v22 = vld [vmem:[%s19872_s28 + $0x1b0] sm:$0xc] }
 0x37f   : >> { %17947 = vmatprep.mubr.msk.bf16.mxu1 %vm404_vm1, %v8503_v59  ;;  %v8674_v59 = vshrl.u32 %v22388_v53, 16  ;;  %14128 = vperm.xlu1 %19376, %v14102_v5   ;;  %v8670_v12 = vrot.slane %v8668_v50, 2  ;;  %v8688_v25 = vrot.slane %v8686_v1, 2  ;;  %v13317_v39 = vrot.slane %v13315_v14, 1  ;;  %v14107_v5 = vld [vmem:[%s20695_s23 + $0x100] sm:$0xff] }
 0x380   : >> { %v13286_v61 = vsel %vm927_vm2, %v13276_v4, %v13285_v9  ;;  %14123 = vperm.xlu0 %19375, %v14101_v8   ;;  %v13295_v56 = vsel %vm927_vm2, %v13285_v9, %v13294_v3  ;;  %v8663_v4 = vsel %vm927_vm2, %v8653_v44, %v8662_v43  ;;  %v13320_v15 = vrot.slane %v13318_v63, 2 }
 0x381   : >> { %v8676_v35 = vrot.slane %v8674_v59, 1  ;;  %v8671_v32 = vor.u32 %v8670_v12, %v8667_v52  ;;  %v16131_v42 = vcombine.low %v16128_v24, %v22313_v13  ;;  %v16586_v44 = vcombine.low %v16583_v22, %v22318_v48 }
 0x382   : >> { %v13321_v9 = vor.u32 %v13320_v15, %v13317_v39  ;;  %v8815_v59 = vrot.slane %v22328_v27, 2  ;;  %v13447_v48 = vrot.slane %v22335_v17, 2  ;;  %v8817_v27 = vrot.slane %v22351_v45, 2  ;;  %v22543_v45 = vld [vmem:[%s25590_s2 + $0xc8] sm:$0xff]   ;;  %v22621_v39 = vld [vmem:[%s19872_s28 + $0x1d8] sm:$0xff]  }
 0x383   : >> { %14138 = vperm.xlu1 %19376, %v14104_v29   ;;  %v8680_v54 = vor.u32 %v8679_v23, %v8676_v35  ;;  %v8814_v13 = vrot.slane %v16131_v42, 2  ;;  %v13446_v18 = vrot.slane %v16586_v44, 2  ;;  %v13449_v17 = vrot.slane %v22355_v7, 2  ;;  %v22626_v42 = vld [vmem:[%s19872_s28 + $0x1a8] sm:$0xff]   ;;  %v22632_v44 = vld [vmem:[%s19872_s28 + $0x1b0] sm:$0xff]  }
 0x384   : >> { %v8818_v52 = vsel %vm1114_vm3, %v8815_v59, %v8817_v27  ;;  %v8823_v35 = vrot.slane %v22388_v53, 2  ;;  %v13455_v23 = vrot.slane %v22385_v37, 2  ;;  %v22578_v37 = vld [vmem:[%s19872_s28 + $0x190] sm:$0xff]   ;;  %v13457_v1 = vrot.slane %v22478_v46, 2 }
 0x385   : >> { %18326 = vmatmul.mubr.msk.bf16.gmra.mrb[20].mxu0 %vm404_vm1, %v13137_v6  ;;  %v14106_v6 = vld [vmem:[%s20695_s23 + $0xf8] sm:$0xff]  ;;  %v8681_v19 = vsel %vm927_vm2, %v8671_v32, %v8680_v54  ;;  %v8816_v36 = vsel %vm1114_vm3, %v8814_v13, %v8815_v59  ;;  %v13448_v11 = vsel %vm1114_vm3, %v13446_v18, %v13447_v48  ;;  %v13450_v12 = vsel %vm1114_vm3, %v13447_v48, %v13449_v17  ;;  %v22646_v13 = vld [vmem:[%s25590_s2 + $0xd0] sm:$0xff]  }
 0x386   : >> { %17948 = vmatmul.mubr.msk.bf16.gmra.mrb[20].mxu1 %vm404_vm1, %v8505_v30  ;;  %18331 = vmatprep.mubr.msk.bf16.mxu0 %vm404_vm1, %v13277_v62  ;;  %v14103_v30 = vld [vmem:[%s20695_s23 + $0xe0] sm:$0xff]  ;;  %v8685_v62 = vrot.slane %v8683_v51, 1  ;;  %v8825_v51 = vrot.slane %v22473_v41, 2  ;;  %v8993_v14 = vrot.slane %v22578_v37, 2  ;;  %v13458_v24 = vsel %vm1114_vm3, %v13455_v23, %v13457_v1  ;;  %v22603_v41 = vld [vmem:[%s19872_s28 + $0x1c8] sm:$0xff]  }
 0x387   : >> { %17953 = vmatprep.mubr.msk.bf16.mxu1 %vm404_vm1, %v8645_v21  ;;  %14133 = vperm.xlu0 %19375, %v14103_v30   ;;  %v8672_v21 = vsel %vm927_vm2, %v8662_v43, %v8671_v32  ;;  %v13451_v43 = vrot.slane %v22360_v20, 2  ;;  %v22550_v20 = vld [vmem:[%s25590_s2 + $0xc8] sm:$0xff]   ;;  %v22585_v32 = vld [vmem:[%s19872_s28 + $0x1c0] sm:$0xff]   ;;  %v13631_v59 = vrot.slane %v22621_v39, 2  ;;  %v8999_v18 = vrot.slane %v22626_v42, 2 }
 0x388   : >> { %14148 = vperm.xlu1 %19376, %v14106_v6   ;;  %v8689_v50 = vor.u32 %v8688_v25, %v8685_v62  ;;  %v8826_v6 = vsel %vm1114_vm3, %v8823_v35, %v8825_v51  ;;  %v13627_v25 = vrot.slane %v22603_v41, 2  ;;  %v13781_v51 = vshll.u32 %v22603_v41, 16 }
 0x389   : >> { %v13452_v29 = vsel %vm1114_vm3, %v13449_v17, %v13451_v43  ;;  %v13769_v17 = vshrl.u32 %v22585_v32, 16 }
 0x38a   : >> { %v8690_v28 = vsel %vm927_vm2, %v8680_v54, %v8689_v50  ;;  %v13625_v54 = vrot.slane %v22585_v32, 2 }
 0x38b   : >> { %14143 = vperm.xlu0 %19375, %v14105_v40  }
 0x38c   : >> { %14158 = vperm.xlu1 %19376, %v14108_v47   ;;  %v13628_v47 = vsel %vm1114_vm3, %v13625_v54, %v13627_v25 }
 0x38d   : >> { %18332 = vmatmul.mubr.msk.bf16.vlgmr.msra.gmra.mrb[12].mxu0 %vm404_vm1, %v13286_v61  ;;  %v13453_v61 = vrot.slane %v22376_v2, 2 }
 0x38e   : >> { %17954 = vmatmul.mubr.msk.bf16.vlgmr.msra.gmra.mrb[12].mxu1 %vm404_vm1, %v8654_v49  ;;  %18344 = vmatpush3.bf16.msra.mxu0 %v22402_v38  ;;  %v13304_v38 = vsel %vm927_vm2, %v13294_v3, %v13303_v33  ;;  %v14110_v3 = vld [vmem:[%s20695_s23 + $0x118] sm:$0xff]  ;;  %v8819_v49 = vrot.slane %v22364_v16, 2  ;;  %v8821_v16 = vrot.slane %v22382_v26, 2 }
 0x38f   : >> { %17966 = vmatpush3.bf16.msra.mxu1 %v22395_v10  ;;  %18335 = vmatprep.mubr.msk.bf16.mxu0 %vm404_vm1, %v13295_v56  ;;  %v13312_v10 = vor.u32 %v13311_v34, %v13308_v31  ;;  %v16139_v56 = vld [vmem:[%s19872_s28 + $0x188] sm:$0xc]  ;;  %v22563_v31 = vld [vmem:[%s19872_s28 + $0x18c] sm:$0xf]  ;;  %v16594_v26 = vld [vmem:[%s19872_s28 + $0x1b8] sm:$0xc]  ;;  %v13454_v2 = vsel %vm1114_vm3, %v13451_v43, %v13453_v61 }
 0x390   : >> { %17957 = vmatprep.mubr.msk.bf16.mxu1 %vm404_vm1, %v8663_v4  ;;  %17979 = vmatprep.subr.bf16.mxu1 %v22484_v58  ;;  %v8820_v7 = vsel %vm1114_vm3, %v8817_v27, %v8819_v49  ;;  %v22568_v34 = vld [vmem:[%s19872_s28 + $0x1bc] sm:$0xf]  ;;  %v8824_v53 = vsel %vm1114_vm3, %v8821_v16, %v8823_v35  ;;  %v22575_v4 = vcombine.low %v16139_v56, %v22563_v31  ;;  %v13772_v43 = vshll.u32 %v22585_v32, 16 }
 0x391   : >> { %18357 = vmatprep.subr.bf16.mxu0 %v22491_v57  ;;  %v13313_v55 = vsel %vm927_vm2, %v13303_v33, %v13312_v10  ;;  %14153 = vperm.xlu0 %19375, %v14107_v5   ;;  %v13322_v8 = vsel %vm927_vm2, %v13312_v10, %v13321_v9  ;;  %v22582_v33 = vcombine.low %v16594_v26, %v22568_v34  ;;  %v22599_v10 = vld [vmem:[%s19872_s28 + $0x198] sm:$0xff]   ;;  %v22639_v5 = vld [vmem:[%s25590_s2 + $0xd0] sm:$0xff]   ;;  %v13771_v26 = vrot.slane %v13769_v17, 2 }
 0x392   : >> { %14168 = vperm.xlu1 %19376, %v14110_v3   ;;  %v8992_v30 = vrot.slane %v22575_v4, 2  ;;  %v8995_v62 = vrot.slane %v22599_v10, 2  ;;  %v9001_v3 = vrot.slane %v22632_v44, 2  ;;  %v9176_v17 = vshll.u32 %v22632_v44, 16 }
 0x393   : >> { %v13624_v63 = vrot.slane %v22582_v33, 2  ;;  %v13764_v27 = vshll.u32 %v22582_v33, 16 }
 0x394   : >> { %v8994_v46 = vsel %vm1114_vm3, %v8992_v30, %v8993_v14 }
 0x395   : >> { %18336 = vmatmul.mubr.msk.bf16.gmra.mrb[16].mxu0 %vm404_vm1, %v13304_v38  ;;  %14163 = vperm.xlu0 %19375, %v14109_v60   ;;  %v13626_v22 = vsel %vm1114_vm3, %v13624_v63, %v13625_v54  ;;  %v22608_v38 = vld [vmem:[%s19872_s28 + $0x1d0] sm:$0xff]   ;;  %v9132_v60 = vshll.u32 %v22575_v4, 16  ;;  %v13766_v56 = vrot.slane %v13764_v27, 3  ;;  %v9173_v27 = vshrl.u32 %v22632_v44, 16 }
 0x396   : >> { %17958 = vmatmul.mubr.msk.bf16.gmra.mrb[16].mxu1 %vm404_vm1, %v8672_v21  ;;  %18339 = vmatprep.mubr.msk.bf16.mxu0 %vm404_vm1, %v13313_v55  ;;  %v22612_v21 = vld [vmem:[%s19872_s28 + $0x1a0] sm:$0xff]   ;;  %v13629_v40 = vrot.slane %v22608_v38, 2  ;;  %v13787_v54 = vshrl.u32 %v22608_v38, 16 }
 0x397   : >> { %17961 = vmatprep.mubr.msk.bf16.mxu1 %vm404_vm1, %v8681_v19  ;;  %v8997_v15 = vrot.slane %v22612_v21, 2  ;;  %v8996_v19 = vsel %vm1114_vm3, %v8993_v14, %v8995_v62  ;;  %v22629_v55 = vld [vmem:[%s19872_s28 + $0x1e0] sm:$0xff]  }
 0x398   : >> { %v13630_v50 = vsel %vm1114_vm3, %v13627_v25, %v13629_v40  ;;  %v13633_v48 = vrot.slane %v22629_v55, 2 }
 0x399   : >> { %v8998_v9 = vsel %vm1114_vm3, %v8995_v62, %v8997_v15 }
 0x39d   : >> { %18340 = vmatmul.mubr.msk.bf16.gmra.mrb[20].mxu0 %vm404_vm1, %v13322_v8  ;;  %v9137_v8 = vshrl.u32 %v22578_v37, 16 }
 0x39e   : >> { %17962 = vmatmul.mubr.msk.bf16.gmra.mrb[20].mxu1 %vm404_vm1, %v8690_v28  ;;  %18345 = vmatprep.mubr.msk.bf16.mxu0 %vm404_vm1, %v13448_v11  ;;  %v9129_v28 = vshrl.u32 %v22575_v4, 16  ;;  %v13761_v11 = vshrl.u32 %v22582_v33, 16  ;;  %v9146_v4 = vshrl.u32 %v22599_v10, 16  ;;  %v13778_v33 = vshrl.u32 %v22603_v41, 16 }
 0x39f   : >> { %17967 = vmatprep.mubr.msk.bf16.mxu1 %vm404_vm1, %v8816_v36  ;;  %v9140_v36 = vshll.u32 %v22578_v37, 16 }
 0x3a0   : >> { %v9148_v62 = vrot.slane %v9146_v4, 2 }
 0x3a1   : >> { %v9142_v35 = vrot.slane %v9140_v36, 3  ;;  %v9167_v36 = vshll.u32 %v22626_v42, 16 }
 0x3a5   : >> { %18346 = vmatmul.mubr.msk.bf16.vlgmr.msra.gmra.mrb[12].mxu0 %vm404_vm1, %v13450_v12  ;;  %v13634_v12 = vsel %vm1114_vm3, %v13631_v59, %v13633_v48 }
 0x3a6   : >> { %17968 = vmatmul.mubr.msk.bf16.vlgmr.msra.gmra.mrb[12].mxu1 %vm404_vm1, %v8818_v52  ;;  %18358 = vmatpush3.bf16.msra.mxu0 %v22491_v57  ;;  %v13456_v57 = vsel %vm1114_vm3, %v13453_v61, %v13455_v23  ;;  %v9000_v52 = vsel %vm1114_vm3, %v8997_v15, %v8999_v18  ;;  %v9139_v61 = vrot.slane %v9137_v8, 2  ;;  %v13763_v23 = vrot.slane %v13761_v11, 2 }
 0x3a7   : >> { %17980 = vmatpush3.bf16.msra.mxu1 %v22484_v58  ;;  %18349 = vmatprep.mubr.msk.bf16.mxu0 %vm404_vm1, %v13452_v29  ;;  %v8822_v58 = vsel %vm1114_vm3, %v8819_v49, %v8821_v16  ;;  %v13632_v49 = vsel %vm1114_vm3, %v13629_v40, %v13631_v59  ;;  %v19717_v29 = vld [vmem:[%s19872_s28 + $0x1e8] ss:$0 sps:$4 sm:$0x33]   ;;  %v9134_v16 = vrot.slane %v9132_v60, 3  ;;  %v13780_v15 = vrot.slane %v13778_v33, 2 }
 0x3a8   : >> { %17971 = vmatprep.mubr.msk.bf16.mxu1 %vm404_vm1, %v8820_v7  ;;  %17993 = vmatprep.subr.bf16.mxu1 %v22543_v45  ;;  %v19719_v7 = vld [vmem:[%s19872_s28 + $0x1b8] ss:$0 sps:$4 sm:$0x33]   ;;  %v9143_v30 = vor.u32 %v9142_v35, %v9139_v61  ;;  %v13767_v14 = vor.u32 %v13766_v56, %v13763_v23  ;;  %v9164_v8 = vshrl.u32 %v22626_v42, 16  ;;  %v9175_v56 = vrot.slane %v9173_v27, 2 }
 0x3a9   : >> { %18371 = vmatprep.subr.bf16.mxu0 %v22550_v20  ;;  %v22703_v61 = vld [vmem:[%s19872_s28 + $0x1b8] ss:$0 sps:$4 sm:$0x77]   ;;  %v22707_v23 = vld [vmem:[%s19872_s28 + $0x1e8] ss:$0 sps:$4 sm:$0x77]  }
 0x3ad   : >> { %18350 = vmatmul.mubr.msk.bf16.gmra.mrb[16].mxu0 %vm404_vm1, %v13454_v2  ;;  %v13635_v2 = vrot.slane %v19717_v29, 2 }
 0x3ae   : >> { %17972 = vmatmul.mubr.msk.bf16.gmra.mrb[16].mxu1 %vm404_vm1, %v8822_v58  ;;  %18353 = vmatprep.mubr.msk.bf16.mxu0 %vm404_vm1, %v13456_v57  ;;  %v13774_v58 = vrot.slane %v13772_v43, 3  ;;  %v9149_v57 = vshll.u32 %v22599_v10, 16 }
 0x3af   : >> { %17975 = vmatprep.mubr.msk.bf16.mxu1 %vm404_vm1, %v8824_v53  ;;  %v9003_v53 = vrot.slane %v19719_v7, 2  ;;  %v13636_v40 = vsel %vm1114_vm3, %v13633_v48, %v13635_v2  ;;  %v13799_v48 = vshll.u32 %v22621_v39, 16 }
 0x3b0   : >> { %v13775_v63 = vor.u32 %v13774_v58, %v13771_v26  ;;  %v9151_v25 = vrot.slane %v9149_v57, 3  ;;  %v9178_v26 = vrot.slane %v9176_v17, 3 }
 0x3b1   : >> { %v13801_v7 = vrot.slane %v13799_v48, 3 }
 0x3b5   : >> { %18354 = vmatmul.mubr.msk.bf16.gmra.mrb[20].mxu0 %vm404_vm1, %v13458_v24  ;;  %v9155_v24 = vshrl.u32 %v22612_v21, 16 }
 0x3b6   : >> { %17976 = vmatmul.mubr.msk.bf16.gmra.mrb[20].mxu1 %vm404_vm1, %v8826_v6  ;;  %18359 = vmatprep.mubr.msk.bf16.mxu0 %vm404_vm1, %v13626_v22  ;;  %v13790_v6 = vshll.u32 %v22608_v38, 16  ;;  %v9004_v22 = vsel %vm1114_vm3, %v9001_v3, %v9003_v53 }
 0x3b7   : >> { %17981 = vmatprep.mubr.msk.bf16.mxu1 %vm404_vm1, %v8994_v46  ;;  %v9158_v46 = vshll.u32 %v22612_v21, 16 }
 0x3b8   : >> { %v13792_v59 = vrot.slane %v13790_v6, 3  ;;  %v16179_v6 = vld [vmem:[%s19872_s28 + $0x188] sm:$0x8] }
 0x3b9   : >> { %v9160_v60 = vrot.slane %v9158_v46, 3 }
 0x3bd   : >> { %18360 = vmatmul.mubr.msk.bf16.vlgmr.msra.gmra.mrb[12].mxu0 %vm404_vm1, %v13628_v47 }
 0x3be   : >> { %17982 = vmatmul.mubr.msk.bf16.vlgmr.msra.gmra.mrb[12].mxu1 %vm404_vm1, %v8996_v19  ;;  %18372 = vmatpush3.bf16.msra.mxu0 %v22550_v20  ;;  %v9131_v20 = vrot.slane %v9129_v28, 2  ;;  %v13783_v19 = vrot.slane %v13781_v51, 3  ;;  %v9157_v28 = vrot.slane %v9155_v24, 2  ;;  %v9182_v51 = vshrl.u32 %v22703_v61, 16 }
 0x3bf   : >> { %17994 = vmatpush3.bf16.msra.mxu1 %v22543_v45  ;;  %18363 = vmatprep.mubr.msk.bf16.mxu0 %vm404_vm1, %v13630_v50  ;;  %v9002_v45 = vsel %vm1114_vm3, %v8999_v18, %v9001_v3  ;;  %v13776_v50 = vsel %vm1431_vm5, %v13767_v14, %v13775_v63  ;;  %v13796_v18 = vshrl.u32 %v22621_v39, 16  ;;  %v9152_v3 = vor.u32 %v9151_v25, %v9148_v62 }
 0x3c0   : >> { %17985 = vmatprep.mubr.msk.bf16.mxu1 %vm404_vm1, %v8998_v9  ;;  %18007 = vmatprep.subr.bf16.mxu1 %v22639_v5  ;;  %v9135_v1 = vor.u32 %v9134_v16, %v9131_v20  ;;  %v13789_v9 = vrot.slane %v13787_v54, 2  ;;  %v13784_v11 = vor.u32 %v13783_v19, %v13780_v15  ;;  %v9161_v29 = vor.u32 %v9160_v60, %v9157_v28 }
 0x3c1   : >> { %18385 = vmatprep.subr.bf16.mxu0 %v22646_v13  ;;  %v9166_v20 = vrot.slane %v9164_v8, 2  ;;  %v9169_v16 = vrot.slane %v9167_v36, 3  ;;  %v13817_v14 = vshll.u32 %v22707_v23, 16  ;;  %v16182_v15 = vcombine.low %v16179_v6, %v22563_v31 }
 0x3c2   : >> { %v9144_v47 = vsel %vm1431_vm5, %v9135_v1, %v9143_v30  ;;  %v13793_v43 = vor.u32 %v13792_v59, %v13789_v9  ;;  %v13785_v35 = vsel %vm1431_vm5, %v13775_v63, %v13784_v11  ;;  %v9162_v4 = vsel %vm1431_vm5, %v9152_v3, %v9161_v29 }
 0x3c3   : >> { %v9170_v33 = vor.u32 %v9169_v16, %v9166_v20  ;;  %v9185_v1 = vshll.u32 %v22703_v61, 16  ;;  %v9179_v63 = vor.u32 %v9178_v26, %v9175_v56  ;;  %v9313_v59 = vrot.slane %v16182_v15, 3 }
 0x3c4   : >> { %v13794_v58 = vsel %vm1431_vm5, %v13784_v11, %v13793_v43  ;;  %v13946_v31 = vrot.slane %v22585_v32, 3  ;;  %v9316_v8 = vrot.slane %v22599_v10, 3  ;;  %v9318_v32 = vrot.slane %v22612_v21, 3 }
 0x3c5   : >> { %18364 = vmatmul.mubr.msk.bf16.gmra.mrb[16].mxu0 %vm404_vm1, %v13632_v49  ;;  %v13805_v49 = vshrl.u32 %v22629_v55, 16  ;;  %v9171_v46 = vsel %vm1431_vm5, %v9161_v29, %v9170_v33  ;;  %v9187_v62 = vrot.slane %v9185_v1, 3  ;;  %v13950_v36 = vrot.slane %v22608_v38, 3 }
 0x3c6   : >> { %17986 = vmatmul.mubr.msk.bf16.gmra.mrb[16].mxu1 %vm404_vm1, %v9000_v52  ;;  %18367 = vmatprep.mubr.msk.bf16.mxu0 %vm404_vm1, %v13634_v12  ;;  %v13808_v52 = vshll.u32 %v22629_v55, 16  ;;  %v13798_v12 = vrot.slane %v13796_v18, 2  ;;  %v9314_v18 = vrot.slane %v22578_v37, 3  ;;  %v13948_v37 = vrot.slane %v22603_v41, 3 }
 0x3c7   : >> { %17989 = vmatprep.mubr.msk.bf16.mxu1 %vm404_vm1, %v9002_v45  ;;  %v9153_v45 = vsel %vm1431_vm5, %v9143_v30, %v9152_v3  ;;  %v13807_v2 = vrot.slane %v13805_v49, 2  ;;  %v13814_v30 = vshrl.u32 %v22707_v23, 16  ;;  %v9319_v17 = vsel %vm1618_vm6, %v9316_v8, %v9318_v32 }
 0x3c8   : >> { %v13810_v53 = vrot.slane %v13808_v52, 3  ;;  %v13802_v57 = vor.u32 %v13801_v7, %v13798_v12  ;;  %v9315_v3 = vsel %vm1618_vm6, %v9313_v59, %v9314_v18  ;;  %v9317_v11 = vsel %vm1618_vm6, %v9314_v18, %v9316_v8  ;;  %v9482_v7 = vpop.permute.xlu0 %9481 }
 0x3c9   : >> { %v13816_v25 = vrot.slane %v13814_v30, 2  ;;  %v13949_v27 = vsel %vm1618_vm6, %v13946_v31, %v13948_v37  ;;  %v9320_v10 = vrot.slane %v22626_v42, 3  ;;  %v13952_v41 = vrot.slane %v22621_v39, 3 }
 0x3ca   : >> { %v13811_v54 = vor.u32 %v13810_v53, %v13807_v2  ;;  %v13803_v24 = vsel %vm1431_vm5, %v13793_v43, %v13802_v57  ;;  %v13951_v43 = vsel %vm1618_vm6, %v13948_v37, %v13950_v36  ;;  %v9322_v38 = vrot.slane %v22632_v44, 3 }
 0x3cb   : >> { %v13954_v21 = vrot.slane %v22629_v55, 3  ;;  %v9321_v49 = vsel %vm1618_vm6, %v9318_v32, %v9320_v10  ;;  %v13953_v52 = vsel %vm1618_vm6, %v13950_v36, %v13952_v41  ;;  %v9324_v39 = vrot.slane %v22703_v61, 3 }
 0x3cc   : >> { %v13812_v19 = vsel %vm1431_vm5, %v13802_v57, %v13811_v54  ;;  %v9323_v12 = vsel %vm1618_vm6, %v9320_v10, %v9322_v38  ;;  %v13956_v42 = vrot.slane %v22707_v23, 3  ;;  %v9492_v16 = vpop.permute.xlu0 %9491 }
 0x3cd   : >> { %18368 = vmatmul.mubr.msk.bf16.gmra.mrb[20].mxu0 %vm404_vm1, %v13636_v40  ;;  %v9180_v40 = vsel %vm1431_vm5, %v9170_v33, %v9179_v63  ;;  %v13955_v29 = vsel %vm1618_vm6, %v13952_v41, %v13954_v21  ;;  %v9325_v55 = vsel %vm1618_vm6, %v9322_v38, %v9324_v39 }
 0x3ce   : >> { %17990 = vmatmul.mubr.msk.bf16.gmra.mrb[20].mxu1 %vm404_vm1, %v9004_v22  ;;  %18373 = vmatprep.mubr.msk.bf16.mxu0 %vm404_vm1, %v13776_v50  ;;  %v9184_v22 = vrot.slane %v9182_v51, 2  ;;  %v13957_v44 = vsel %vm1618_vm6, %v13954_v21, %v13956_v42 }
 0x3cf   : >> { %17995 = vmatprep.mubr.msk.bf16.mxu1 %vm404_vm1, %v9144_v47 }
 0x3d0   : >> { %v9188_v50 = vor.u32 %v9187_v62, %v9184_v22  ;;  %v22775_v56 = vpop.permute.xlu0 %9501 }
 0x3d2   : >> { %v9189_v60 = vsel %vm1431_vm5, %v9179_v63, %v9188_v50 }
 0x3d5   : >> { %18374 = vmatmul.mubr.msk.bf16.vlgmr.msra.gmra.mrb[12].mxu0 %vm404_vm1, %v13785_v35 }
 0x3d6   : >> { %17996 = vmatmul.mubr.msk.bf16.vlgmr.msra.gmra.mrb[12].mxu1 %vm404_vm1, %v9153_v45  ;;  %18386 = vmatpush3.bf16.msra.mxu0 %v22646_v13  ;;  %v13819_v13 = vrot.slane %v13817_v14, 3  ;;  %v9487_v45 = vpop.permute.xlu1 %9486 }
 0x3d7   : >> { %18008 = vmatpush3.bf16.msra.mxu1 %v22639_v5  ;;  %18377 = vmatprep.mubr.msk.bf16.mxu0 %vm404_vm1, %v13794_v58  ;;  %v16634_v5 = vld [vmem:[%s19872_s28 + $0x1b8] sm:$0x8] }
 0x3d8   : >> { %17999 = vmatprep.mubr.msk.bf16.mxu1 %vm404_vm1, %v9162_v4  ;;  %v16637_v47 = vcombine.low %v16634_v5, %v22568_v34  ;;  %v13820_v9 = vor.u32 %v13819_v13, %v13816_v25 }
 0x3da   : >> { %v13945_v28 = vrot.slane %v16637_v47, 3  ;;  %v13821_v34 = vsel %vm1431_vm5, %v13811_v54, %v13820_v9  ;;  %v9497_v20 = vpop.permute.xlu1 %9496 }
 0x3dc   : >> { %v13947_v48 = vsel %vm1618_vm6, %v13945_v28, %v13946_v31 }
 0x3dd   : >> { %18378 = vmatmul.mubr.msk.bf16.gmra.mrb[16].mxu0 %vm404_vm1, %v13803_v24 }
 0x3de   : >> { %18000 = vmatmul.mubr.msk.bf16.gmra.mrb[16].mxu1 %vm404_vm1, %v9171_v46  ;;  %18381 = vmatprep.mubr.msk.bf16.mxu0 %vm404_vm1, %v13812_v19  ;;  %v22773_v35 = vpop.permute.xlu1 %9506 }
 0x3df   : >> { %18003 = vmatprep.mubr.msk.bf16.mxu1 %vm404_vm1, %v9180_v40 }
 0x3e0   : >> { %v22779_v26 = vpop.permute.xlu0 %9511 }
 0x3e2   : >> { %v22777_v61 = vpop.permute.xlu1 %9516 }
 0x3e4   : >> { %v22783_v58 = vpop.permute.xlu0 %9521 }
 0x3e5   : >> { %18382 = vmatmul.mubr.msk.bf16.gmra.mrb[20].mxu0 %vm404_vm1, %v13821_v34 }
 0x3e6   : >> { %18004 = vmatmul.mubr.msk.bf16.gmra.mrb[20].mxu1 %vm404_vm1, %v9189_v60  ;;  %18387 = vmatprep.mubr.msk.bf16.mxu0 %vm404_vm1, %v13947_v48  ;;  %v22781_v23 = vpop.permute.xlu1 %9526 }
 0x3e7   : >> { %18009 = vmatprep.mubr.msk.bf16.mxu1 %vm404_vm1, %v9315_v3 }
 0x3e8   : >> { %v22787_v53 = vpop.permute.xlu0 %9531 }
 0x3ed   : >> { %18388 = vmatmul.mubr.msk.bf16.vlgmr.msra.gmra.mrb[12].mxu0 %vm404_vm1, %v13949_v27 }
 0x3ee   : >> { %18010 = vmatmul.mubr.msk.bf16.vlgmr.msra.gmra.mrb[12].mxu1 %vm404_vm1, %v9317_v11  ;;  %18391 = vmatprep.mubr.msk.bf16.mxu0 %vm404_vm1, %v13951_v43  ;;  %v22785_v2 = vpop.permute.xlu1 %9536 }
 0x3ef   : >> { %18013 = vmatprep.mubr.msk.bf16.mxu1 %vm404_vm1, %v9319_v17 }
 0x3f2   : >> { %v14119_v4 = vpop.permute.xlu1 %14118 }
 0x3f5   : >> { %18392 = vmatmul.mubr.msk.bf16.gmra.mrb[16].mxu0 %vm404_vm1, %v13953_v52 }
 0x3f6   : >> { %18014 = vmatmul.mubr.msk.bf16.gmra.mrb[16].mxu1 %vm404_vm1, %v9321_v49  ;;  %18395 = vmatprep.mubr.msk.bf16.mxu0 %vm404_vm1, %v13955_v29 }
 0x3f7   : >> { %18017 = vmatprep.mubr.msk.bf16.mxu1 %vm404_vm1, %v9323_v12 }
 0x3f9   : >> { %v14114_v57 = vpop.permute.xlu0 %14113 }
 0x3fd   : >> { %18396 = vmatmul.mubr.msk.bf16.gmra.mrb[20].mxu0 %vm404_vm1, %v13957_v44 }
 0x3fe   : >> { %18018 = vmatmul.mubr.msk.bf16.gmra.mrb[20].mxu1 %vm404_vm1, %v9325_v55  ;;  %v14129_v33 = vpop.permute.xlu1 %14128 }
 0x3ff   : >> { %v14124_v51 = vpop.permute.xlu0 %14123 }
 0x402   : >> { %v22789_v1 = vpop.permute.xlu1 %14138 }
 0x406   : >> { %v22791_v30 = vpop.permute.xlu0 %14133 }
 0x407   : >> { %v14149_v37 = vpop.permute.xlu1 %14148 }
 0x40a   : >> { %v14144_v17 = vpop.permute.xlu0 %14143 }
 0x4c0   : >> { %v18389_v63 = vpop.f32.mrb[12].mxu0 }
 0x4c1   : >> { %v18011_v14 = vpop.f32.mrb[12].mxu1  ;;  %v14077_v5 = vadd.f32 %v18389_v63, %v19854_v0  ;;  %v14016_v24 = vpop.f32.mrb[13].mxu0 }
 0x4c2   : >> { %v9445_v54 = vadd.f32 %v18011_v14, %v19854_v0  ;;  %v9384_v6 = vpop.f32.mrb[13].mxu1  ;;  %v14075_v62 = vadd.f32 %v19854_v0, %v14016_v24  ;;  %v18390_v25 = vpop.f32.mrb[14].mxu0 }
 0x4c3   : >> { %v9443_v46 = vadd.f32 %v19854_v0, %v9384_v6  ;;  %v18012_v22 = vpop.f32.mrb[14].mxu1  ;;  %v14089_v19 = vmax.f32 %v14077_v5, 0.0  ;;  %v14078_v47 = vadd.f32 %v18390_v25, %v19854_v0  ;;  %v14019_v50 = vpop.f32.mrb[15].mxu0 }
 0x4c4   : >> { %v9457_v13 = vmax.f32 %v9445_v54, 0.0  ;;  %v9446_v40 = vadd.f32 %v18012_v22, %v19854_v0  ;;  %v9387_v15 = vpop.f32.mrb[15].mxu1  ;;  %v14087_v18 = vmax.f32 %v14075_v62, 0.0  ;;  %v14076_v28 = vadd.f32 %v19854_v0, %v14019_v50  ;;  %v14154_v50 = vpop.permute.xlu0 %14153 }
 0x4c5   : >> { %v9455_v9 = vmax.f32 %v9443_v46, 0.0  ;;  %v9444_v59 = vadd.f32 %v19854_v0, %v9387_v15  ;;  %v14173_v34 = vmul.f32 %v14124_v51, %v14089_v19  ;;  %v14090_v3 = vmax.f32 %v14078_v47, 0.0 }
 0x4c6   : >> { %v9541_v31 = vmul.f32 %v9492_v16, %v9457_v13  ;;  %v9458_v60 = vmax.f32 %v9446_v40, 0.0  ;;  %v14171_v32 = vmul.f32 %v14114_v57, %v14087_v18  ;;  %v14088_v36 = vmax.f32 %v14076_v28, 0.0 }
 0x4c7   : >> { %v9539_v48 = vmul.f32 %v9482_v7, %v9455_v9  ;;  %v9456_v8 = vmax.f32 %v9444_v59, 0.0  ;;  %v16688_v43 = vpack.c.bf16 %v14173_v34, %v14173_v34  ;;  %v14174_v10 = vmul.f32 %v14129_v33, %v14090_v3 }
 0x4c8   : >> { %v16676_v11 = vpack.c.bf16 %v9541_v31, %v9541_v31  ;;  %v9542_v27 = vmul.f32 %v9497_v20, %v9458_v60  ;;  %v16686_v49 = vpack.c.bf16 %v14171_v32, %v14171_v32  ;;  %v14172_v52 = vmul.f32 %v14119_v4, %v14088_v36  ;;  %v18393_v29 = vpop.f32.mrb[16].mxu0  ;;  %v14159_v31 = vpop.permute.xlu1 %14158 }
 0x4c9   : >> { %v16674_v41 = vpack.c.bf16 %v9539_v48, %v9539_v48  ;;  %v9540_v38 = vmul.f32 %v9487_v45, %v9456_v8  ;;  %v18015_v21 = vpop.f32.mrb[16].mxu1  ;;  %14233 = vst.msk [vmem:[%s21458_s22 + $0x68] sm:$0xf] %vm4966_vm7, %v16688_v43  ;;  %v16689_v55 = vpack.c.bf16 %v14174_v10, %v14174_v10  ;;  %v14081_v45 = vadd.f32 %v18393_v29, %v19854_v0  ;;  %v14032_v7 = vpop.f32.mrb[17].mxu0 }
 0x4ca   : >> { %9601 = vst.msk [vmem:[%s21458_s22 + $0x38] sm:$0xf] %vm4966_vm7, %v16676_v11  ;;  %v16677_v12 = vpack.c.bf16 %v9542_v27, %v9542_v27  ;;  %v9449_v39 = vadd.f32 %v18015_v21, %v19854_v0  ;;  %v9400_v42 = vpop.f32.mrb[17].mxu1  ;;  %14231 = vst.msk [vmem:[%s21458_s22 + $0x60] sm:$0xf] %vm4966_vm7, %v16686_v49  ;;  %v16687_v4 = vpack.c.bf16 %v14172_v52, %v14172_v52  ;;  %v18394_v33 = vpop.f32.mrb[18].mxu0 }
 0x4cb   : >> { %9599 = vst.msk [vmem:[%s21458_s22 + $0x30] sm:$0xf] %vm4966_vm7, %v16674_v41  ;;  %v16675_v44 = vpack.c.bf16 %v9540_v38, %v9540_v38  ;;  %v9447_v20 = vadd.f32 %v19854_v0, %v9400_v42  ;;  %v18016_v16 = vpop.f32.mrb[18].mxu1  ;;  %v14079_v57 = vadd.f32 %v19854_v0, %v14032_v7  ;;  %14234 = vst.msk [vmem:[%s21458_s22 + $0x6c] sm:$0xf] %vm4966_vm7, %v16689_v55  ;;  %v14093_v54 = vmax.f32 %v14081_v45, 0.0  ;;  %v14164_v55 = vpop.permute.xlu0 %14163 }
 0x4cc   : >> { %9602 = vst.msk [vmem:[%s21458_s22 + $0x3c] sm:$0xf] %vm4966_vm7, %v16677_v12  ;;  %v9461_v51 = vmax.f32 %v9449_v39, 0.0  ;;  %v9450_v14 = vadd.f32 %v18016_v16, %v19854_v0  ;;  %v9403_v63 = vpop.f32.mrb[19].mxu1  ;;  %v14082_v6 = vadd.f32 %v18394_v33, %v19854_v0  ;;  %v14035_v5 = vpop.f32.mrb[19].mxu0 }
 0x4cd   : >> { %9600 = vst.msk [vmem:[%s21458_s22 + $0x34] sm:$0xf] %vm4966_vm7, %v16675_v44  ;;  %v9459_v24 = vmax.f32 %v9447_v20, 0.0  ;;  %v9448_v46 = vadd.f32 %v19854_v0, %v9403_v63  ;;  %14232 = vst.msk [vmem:[%s21458_s22 + $0x64] sm:$0xf] %vm4966_vm7, %v16687_v4  ;;  %v14091_v22 = vmax.f32 %v14079_v57, 0.0  ;;  %v14080_v62 = vadd.f32 %v19854_v0, %v14035_v5 }
 0x4ce   : >> { %v9545_v25 = vmul.f32 %v22779_v26, %v9461_v51  ;;  %v9462_v13 = vmax.f32 %v9450_v14, 0.0  ;;  %v14177_v40 = vmul.f32 %v14144_v17, %v14093_v54  ;;  %v14094_v15 = vmax.f32 %v14082_v6, 0.0  ;;  %v14169_v51 = vpop.permute.xlu1 %14168 }
 0x4cf   : >> { %v9543_v19 = vmul.f32 %v22775_v56, %v9459_v24  ;;  %v9460_v47 = vmax.f32 %v9448_v46, 0.0  ;;  %v14175_v9 = vmul.f32 %v22791_v30, %v14091_v22  ;;  %v14092_v59 = vmax.f32 %v14080_v62, 0.0 }
 0x4d0   : >> { %v16680_v18 = vpack.c.bf16 %v9545_v25, %v9545_v25  ;;  %v9546_v28 = vmul.f32 %v22777_v61, %v9462_v13  ;;  %v16692_v60 = vpack.c.bf16 %v14177_v40, %v14177_v40  ;;  %v14178_v34 = vmul.f32 %v14149_v37, %v14094_v15  ;;  %v18397_v32 = vpop.f32.mrb[20].mxu0 }
 0x4d1   : >> { %v16678_v26 = vpack.c.bf16 %v9543_v19, %v9543_v19  ;;  %v9544_v3 = vmul.f32 %v22773_v35, %v9460_v47  ;;  %v18019_v48 = vpop.f32.mrb[20].mxu1  ;;  %v16690_v8 = vpack.c.bf16 %v14175_v9, %v14175_v9  ;;  %v14176_v56 = vmul.f32 %v22789_v1, %v14092_v59  ;;  %v14048_v27 = vpop.f32.mrb[21].mxu0 }
 0x4d2   : >> { %9605 = vst.msk [vmem:[%s21458_s22 + $0x48] sm:$0xf] %vm4966_vm7, %v16680_v18  ;;  %v16681_v30 = vpack.c.bf16 %v9546_v28, %v9546_v28  ;;  %v9453_v36 = vadd.f32 %v18019_v48, %v19854_v0  ;;  %v9416_v61 = vpop.f32.mrb[21].mxu1  ;;  %14237 = vst.msk [vmem:[%s21458_s22 + $0x78] sm:$0xf] %vm4966_vm7, %v16692_v60  ;;  %v16693_v37 = vpack.c.bf16 %v14178_v34, %v14178_v34  ;;  %v18398_v41 = vpop.f32.mrb[22].mxu0 }
 0x4d3   : >> { %9603 = vst.msk [vmem:[%s21458_s22 + $0x40] sm:$0xf] %vm4966_vm7, %v16678_v26  ;;  %v16679_v35 = vpack.c.bf16 %v9544_v3, %v9544_v3  ;;  %v14085_v11 = vadd.f32 %v18397_v32, %v19854_v0  ;;  %v9451_v1 = vadd.f32 %v19854_v0, %v9416_v61  ;;  %v18020_v17 = vpop.f32.mrb[22].mxu1  ;;  %14235 = vst.msk [vmem:[%s21458_s22 + $0x70] sm:$0xf] %vm4966_vm7, %v16690_v8  ;;  %v14051_v29 = vpop.f32.mrb[23].mxu0 }
 0x4d4   : >> { %v16691_v43 = vpack.c.bf16 %v14176_v56, %v14176_v56  ;;  %9606 = vst.msk [vmem:[%s21458_s22 + $0x4c] sm:$0xf] %vm4966_vm7, %v16681_v30  ;;  %v14083_v10 = vadd.f32 %v19854_v0, %v14048_v27  ;;  %v9465_v38 = vmax.f32 %v9453_v36, 0.0  ;;  %v9454_v21 = vadd.f32 %v18020_v17, %v19854_v0  ;;  %v9419_v49 = vpop.f32.mrb[23].mxu1  ;;  %14238 = vst.msk [vmem:[%s21458_s22 + $0x7c] sm:$0xf] %vm4966_vm7, %v16693_v37 }
 0x4d5   : >> { %9604 = vst.msk [vmem:[%s21458_s22 + $0x44] sm:$0xf] %vm4966_vm7, %v16679_v35  ;;  %v14097_v52 = vmax.f32 %v14085_v11, 0.0  ;;  %v14086_v12 = vadd.f32 %v18398_v41, %v19854_v0  ;;  %v9463_v39 = vmax.f32 %v9451_v1, 0.0  ;;  %v9452_v42 = vadd.f32 %v19854_v0, %v9419_v49 }
 0x4d6   : >> { %14236 = vst.msk [vmem:[%s21458_s22 + $0x74] sm:$0xf] %vm4966_vm7, %v16691_v43  ;;  %v14095_v44 = vmax.f32 %v14083_v10, 0.0  ;;  %v14084_v45 = vadd.f32 %v19854_v0, %v14051_v29  ;;  %v9549_v7 = vmul.f32 %v22787_v53, %v9465_v38  ;;  %v9466_v20 = vmax.f32 %v9454_v21, 0.0 }
 0x4d7   : >> { %v14181_v16 = vmul.f32 %v14164_v55, %v14097_v52  ;;  %v14098_v4 = vmax.f32 %v14086_v12, 0.0  ;;  %v9547_v57 = vmul.f32 %v22783_v58, %v9463_v39  ;;  %v9464_v33 = vmax.f32 %v9452_v42, 0.0 }
 0x4d8   : >> { %v14179_v14 = vmul.f32 %v14154_v50, %v14095_v44  ;;  %v14096_v63 = vmax.f32 %v14084_v45, 0.0  ;;  %v16684_v54 = vpack.c.bf16 %v9549_v7, %v9549_v7  ;;  %v9550_v6 = vmul.f32 %v22785_v2, %v9466_v20  ;;  %287 = sbr.rel (!%p285_p11) target bundleno = 40 (0x28), region = 115 }
 0x4d9   : >> { %v16696_v5 = vpack.c.bf16 %v14181_v16, %v14181_v16  ;;  %v14182_v53 = vmul.f32 %v14169_v51, %v14098_v4  ;;  %v16682_v24 = vpack.c.bf16 %v9547_v57, %v9547_v57  ;;  %v9548_v46 = vmul.f32 %v22781_v23, %v9464_v33 }
 0x4da   : >> { %v16694_v22 = vpack.c.bf16 %v14179_v14, %v14179_v14  ;;  %v14180_v58 = vmul.f32 %v14159_v31, %v14096_v63  ;;  %9609 = vst.msk [vmem:[%s21458_s22 + $0x58] sm:$0xf] %vm4966_vm7, %v16684_v54  ;;  %v16685_v62 = vpack.c.bf16 %v9550_v6, %v9550_v6 }
 0x4db   : >> { %14241 = vst.msk [vmem:[%s21458_s22 + $0x88] sm:$0xf] %vm4966_vm7, %v16696_v5  ;;  %v16697_v25 = vpack.c.bf16 %v14182_v53, %v14182_v53  ;;  %9607 = vst.msk [vmem:[%s21458_s22 + $0x50] sm:$0xf] %vm4966_vm7, %v16682_v24  ;;  %v16683_v13 = vpack.c.bf16 %v9548_v46, %v9548_v46 }
 0x4dc   : >> { %14239 = vst.msk [vmem:[%s21458_s22 + $0x80] sm:$0xf] %vm4966_vm7, %v16694_v22  ;;  %v16695_v2 = vpack.c.bf16 %v14180_v58, %v14180_v58  ;;  %9610 = vst.msk [vmem:[%s21458_s22 + $0x5c] sm:$0xf] %vm4966_vm7, %v16685_v62 }
 0x4dd   : >> { %14242 = vst.msk [vmem:[%s21458_s22 + $0x8c] sm:$0xf] %vm4966_vm7, %v16697_v25  ;;  %9608 = vst.msk [vmem:[%s21458_s22 + $0x54] sm:$0xf] %vm4966_vm7, %v16683_v13 }
 0x4de   : >> { %14240 = vst.msk [vmem:[%s21458_s22 + $0x84] sm:$0xf] %vm4966_vm7, %v16695_v2 }
 0x4df PF: > { %p16657_p12 = scmp.gt.s32.totalorder %s19833_s27, 0 }
 0x4e0   : > { %vm14247_vm8 = vcmask (!%p16657_p12), 125952   ;;  %v19781_v0 = vmov (!%p16657_p12), 0  }
 0x4e1   : > { %14246 = sbr.rel (%p16657_p12) target bundleno = 1699 (0x6a3), region = 51  ;;  %14248 = vst.msk [vmem:[%s19848_s14] sm:$0xf] (!%p16657_p12), %vm14247_vm8, %v19781_v0  ;;  %14249 = vst.msk [vmem:[%s19848_s14 + $0x4] sm:$0xf] (!%p16657_p12), %vm14247_vm8, %v19781_v0 }
 0x4e2   : > { %14250 = vst.msk [vmem:[%s19848_s14 + $0x8] sm:$0xf] (!%p16657_p12), %vm14247_vm8, %v19781_v0  ;;  %14251 = vst.msk [vmem:[%s19848_s14 + $0xc] sm:$0xf] (!%p16657_p12), %vm14247_vm8, %v19781_v0 }
 0x4e3   : > { %14252 = vst.msk [vmem:[%s19848_s14 + $0x10] sm:$0xf] (!%p16657_p12), %vm14247_vm8, %v19781_v0  ;;  %14253 = vst.msk [vmem:[%s19848_s14 + $0x14] sm:$0xf] (!%p16657_p12), %vm14247_vm8, %v19781_v0 }
 0x4e4   : > { %14254 = vst.msk [vmem:[%s19848_s14 + $0x18] sm:$0xf] (!%p16657_p12), %vm14247_vm8, %v19781_v0  ;;  %14255 = vst.msk [vmem:[%s19848_s14 + $0x1c] sm:$0xf] (!%p16657_p12), %vm14247_vm8, %v19781_v0 }
 0x4e5   : > { %14256 = vst.msk [vmem:[%s19848_s14 + $0x20] sm:$0xf] (!%p16657_p12), %vm14247_vm8, %v19781_v0  ;;  %14257 = vst.msk [vmem:[%s19848_s14 + $0x24] sm:$0xf] (!%p16657_p12), %vm14247_vm8, %v19781_v0 }
 0x4e6   : > { %14258 = vst.msk [vmem:[%s19848_s14 + $0x28] sm:$0xf] (!%p16657_p12), %vm14247_vm8, %v19781_v0  ;;  %14259 = vst.msk [vmem:[%s19848_s14 + $0x2c] sm:$0xf] (!%p16657_p12), %vm14247_vm8, %v19781_v0 }
 0x4e7   : > { %14260 = vst.msk [vmem:[%s19848_s14 + $0x30] sm:$0xf] (!%p16657_p12), %vm14247_vm8, %v19781_v0  ;;  %14261 = vst.msk [vmem:[%s19848_s14 + $0x34] sm:$0xf] (!%p16657_p12), %vm14247_vm8, %v19781_v0 }
 0x4e8   : > { %14262 = vst.msk [vmem:[%s19848_s14 + $0x38] sm:$0xf] %vm14247_vm8, %v19781_v0  ;;  %14263 = vst.msk [vmem:[%s19848_s14 + $0x3c] sm:$0xf] %vm14247_vm8, %v19781_v0 }
 0x4e9   : > { %14264 = vst.msk [vmem:[%s19848_s14 + $0x40] sm:$0xf] %vm14247_vm8, %v19781_v0  ;;  %14265 = vst.msk [vmem:[%s19848_s14 + $0x44] sm:$0xf] %vm14247_vm8, %v19781_v0 }
 0x4ea   : > { %14266 = vst.msk [vmem:[%s19848_s14 + $0x48] sm:$0xf] %vm14247_vm8, %v19781_v0  ;;  %14267 = vst.msk [vmem:[%s19848_s14 + $0x4c] sm:$0xf] %vm14247_vm8, %v19781_v0 }
 0x4eb   : > { %14268 = vst.msk [vmem:[%s19848_s14 + $0x50] sm:$0xf] %vm14247_vm8, %v19781_v0  ;;  %14269 = vst.msk [vmem:[%s19848_s14 + $0x54] sm:$0xf] %vm14247_vm8, %v19781_v0 }
 0x4ec   : > { %14270 = vst.msk [vmem:[%s19848_s14 + $0x58] sm:$0xf] %vm14247_vm8, %v19781_v0  ;;  %14271 = vst.msk [vmem:[%s19848_s14 + $0x5c] sm:$0xf] %vm14247_vm8, %v19781_v0 }
 0x4ed   : > { %14272 = vst.msk [vmem:[%s19848_s14 + $0x60] sm:$0xf] %vm14247_vm8, %v19781_v0  ;;  %14273 = vst.msk [vmem:[%s19848_s14 + $0x64] sm:$0xf] %vm14247_vm8, %v19781_v0 }
 0x4ee   : > { %14274 = vst.msk [vmem:[%s19848_s14 + $0x68] sm:$0xf] %vm14247_vm8, %v19781_v0  ;;  %14275 = vst.msk [vmem:[%s19848_s14 + $0x6c] sm:$0xf] %vm14247_vm8, %v19781_v0 }
 0x4ef   : > { %14276 = vst.msk [vmem:[%s19848_s14 + $0x70] sm:$0xf] %vm14247_vm8, %v19781_v0  ;;  %14277 = vst.msk [vmem:[%s19848_s14 + $0x74] sm:$0xf] %vm14247_vm8, %v19781_v0 }
 0x4f0   : > { %14278 = vst.msk [vmem:[%s19848_s14 + $0x78] sm:$0xf] %vm14247_vm8, %v19781_v0  ;;  %14279 = vst.msk [vmem:[%s19848_s14 + $0x7c] sm:$0xf] %vm14247_vm8, %v19781_v0 }
 0x4f1   : > { %14280 = vst.msk [vmem:[%s19848_s14 + $0x80] sm:$0xf] %vm14247_vm8, %v19781_v0  ;;  %14281 = vst.msk [vmem:[%s19848_s14 + $0x84] sm:$0xf] %vm14247_vm8, %v19781_v0 }
 0x4f2   : > { %14282 = vst.msk [vmem:[%s19848_s14 + $0x88] sm:$0xf] %vm14247_vm8, %v19781_v0  ;;  %14283 = vst.msk [vmem:[%s19848_s14 + $0x8c] sm:$0xf] %vm14247_vm8, %v19781_v0 }
 0x4f3   : > { %14284 = vst.msk [vmem:[%s19848_s14 + $0x90] sm:$0xf] %vm14247_vm8, %v19781_v0  ;;  %14285 = vst.msk [vmem:[%s19848_s14 + $0x94] sm:$0xf] %vm14247_vm8, %v19781_v0 }
 0x4f4   : > { %14286 = vst.msk [vmem:[%s19848_s14 + $0x98] sm:$0xf] %vm14247_vm8, %v19781_v0  ;;  %14287 = vst.msk [vmem:[%s19848_s14 + $0x9c] sm:$0xf] %vm14247_vm8, %v19781_v0 }
 0x4f5   : > { %14288 = vst.msk [vmem:[%s19848_s14 + $0xa0] sm:$0xf] %vm14247_vm8, %v19781_v0  ;;  %14289 = vst.msk [vmem:[%s19848_s14 + $0xa4] sm:$0xf] %vm14247_vm8, %v19781_v0 }
 0x4f6   : > { %14290 = vst.msk [vmem:[%s19848_s14 + $0xa8] sm:$0xf] %vm14247_vm8, %v19781_v0  ;;  %14291 = vst.msk [vmem:[%s19848_s14 + $0xac] sm:$0xf] %vm14247_vm8, %v19781_v0 }
 0x4f7   : > { %14292 = vst.msk [vmem:[%s19848_s14 + $0xb0] sm:$0xf] %vm14247_vm8, %v19781_v0  ;;  %14293 = vst.msk [vmem:[%s19848_s14 + $0xb4] sm:$0xf] %vm14247_vm8, %v19781_v0 }
 0x4f8   : > { %14294 = vst.msk [vmem:[%s19848_s14 + $0xb8] sm:$0xf] %vm14247_vm8, %v19781_v0  ;;  %14295 = vst.msk [vmem:[%s19848_s14 + $0xbc] sm:$0xf] %vm14247_vm8, %v19781_v0 }
 0x4f9   : > { %14296 = vst.msk [vmem:[%s19848_s14 + $0xc0] sm:$0xf] %vm14247_vm8, %v19781_v0  ;;  %14297 = vst.msk [vmem:[%s19848_s14 + $0xc4] sm:$0xf] %vm14247_vm8, %v19781_v0 }
 0x4fa   : > { %14298 = vst.msk [vmem:[%s19848_s14 + $0xc8] sm:$0xf] %vm14247_vm8, %v19781_v0  ;;  %14299 = vst.msk [vmem:[%s19848_s14 + $0xcc] sm:$0xf] %vm14247_vm8, %v19781_v0 }
 0x4fb   : > { %14300 = vst.msk [vmem:[%s19848_s14 + $0xd0] sm:$0xf] %vm14247_vm8, %v19781_v0  ;;  %14301 = vst.msk [vmem:[%s19848_s14 + $0xd4] sm:$0xf] %vm14247_vm8, %v19781_v0 }
 0x4fc   : > { %14302 = vst.msk [vmem:[%s19848_s14 + $0xd8] sm:$0xf] %vm14247_vm8, %v19781_v0  ;;  %14303 = vst.msk [vmem:[%s19848_s14 + $0xdc] sm:$0xf] %vm14247_vm8, %v19781_v0 }
 0x4fd   : > { %14304 = vst.msk [vmem:[%s19848_s14 + $0xe0] sm:$0xf] %vm14247_vm8, %v19781_v0  ;;  %14305 = vst.msk [vmem:[%s19848_s14 + $0xe4] sm:$0xf] %vm14247_vm8, %v19781_v0 }
 0x4fe   : > { %14306 = vst.msk [vmem:[%s19848_s14 + $0xe8] sm:$0xf] %vm14247_vm8, %v19781_v0  ;;  %14307 = vst.msk [vmem:[%s19848_s14 + $0xec] sm:$0xf] %vm14247_vm8, %v19781_v0 }
 0x4ff   : > { %14308 = vst.msk [vmem:[%s19848_s14 + $0xf0] sm:$0xf] %vm14247_vm8, %v19781_v0  ;;  %14309 = vst.msk [vmem:[%s19848_s14 + $0xf4] sm:$0xf] %vm14247_vm8, %v19781_v0 }
 0x500   : > { %14310 = vst.msk [vmem:[%s19848_s14 + $0xf8] sm:$0xf] %vm14247_vm8, %v19781_v0  ;;  %14311 = vst.msk [vmem:[%s19848_s14 + $0xfc] sm:$0xf] %vm14247_vm8, %v19781_v0 }
 0x501   : > { %14312 = vst.msk [vmem:[%s19848_s14 + $0x100] sm:$0xf] %vm14247_vm8, %v19781_v0  ;;  %14313 = vst.msk [vmem:[%s19848_s14 + $0x104] sm:$0xf] %vm14247_vm8, %v19781_v0 }
 0x502   : > { %14314 = vst.msk [vmem:[%s19848_s14 + $0x108] sm:$0xf] %vm14247_vm8, %v19781_v0  ;;  %14315 = vst.msk [vmem:[%s19848_s14 + $0x10c] sm:$0xf] %vm14247_vm8, %v19781_v0 }
 0x503   : > { %14316 = vst.msk [vmem:[%s19848_s14 + $0x110] sm:$0xf] %vm14247_vm8, %v19781_v0  ;;  %14317 = vst.msk [vmem:[%s19848_s14 + $0x114] sm:$0xf] %vm14247_vm8, %v19781_v0 }
 0x504   : > { %14318 = vst.msk [vmem:[%s19848_s14 + $0x118] sm:$0xf] %vm14247_vm8, %v19781_v0  ;;  %14319 = vst.msk [vmem:[%s19848_s14 + $0x11c] sm:$0xf] %vm14247_vm8, %v19781_v0 }
 0x505   : > { %14320 = vst.msk [vmem:[%s19848_s14 + $0x120] sm:$0xf] %vm14247_vm8, %v19781_v0  ;;  %14321 = vst.msk [vmem:[%s19848_s14 + $0x124] sm:$0xf] %vm14247_vm8, %v19781_v0 }
 0x506   : > { %14322 = vst.msk [vmem:[%s19848_s14 + $0x128] sm:$0xf] %vm14247_vm8, %v19781_v0  ;;  %14323 = vst.msk [vmem:[%s19848_s14 + $0x12c] sm:$0xf] %vm14247_vm8, %v19781_v0 }
 0x507   : > { %14324 = vst.msk [vmem:[%s19848_s14 + $0x130] sm:$0xf] %vm14247_vm8, %v19781_v0  ;;  %14325 = vst.msk [vmem:[%s19848_s14 + $0x134] sm:$0xf] %vm14247_vm8, %v19781_v0 }
 0x508   : > { %14326 = vst.msk [vmem:[%s19848_s14 + $0x138] sm:$0xf] %vm14247_vm8, %v19781_v0  ;;  %14327 = vst.msk [vmem:[%s19848_s14 + $0x13c] sm:$0xf] %vm14247_vm8, %v19781_v0 }
 0x509   : > { %14328 = vst.msk [vmem:[%s19848_s14 + $0x140] sm:$0xf] %vm14247_vm8, %v19781_v0  ;;  %14329 = vst.msk [vmem:[%s19848_s14 + $0x144] sm:$0xf] %vm14247_vm8, %v19781_v0 }
 0x50a   : > { %14330 = vst.msk [vmem:[%s19848_s14 + $0x148] sm:$0xf] %vm14247_vm8, %v19781_v0  ;;  %14331 = vst.msk [vmem:[%s19848_s14 + $0x14c] sm:$0xf] %vm14247_vm8, %v19781_v0 }
 0x50b   : > { %14332 = vst.msk [vmem:[%s19848_s14 + $0x150] sm:$0xf] %vm14247_vm8, %v19781_v0  ;;  %14333 = vst.msk [vmem:[%s19848_s14 + $0x154] sm:$0xf] %vm14247_vm8, %v19781_v0 }
 0x50c   : > { %14334 = vst.msk [vmem:[%s19848_s14 + $0x158] sm:$0xf] %vm14247_vm8, %v19781_v0  ;;  %14335 = vst.msk [vmem:[%s19848_s14 + $0x15c] sm:$0xf] %vm14247_vm8, %v19781_v0 }
 0x50d   : > { %14336 = vst.msk [vmem:[%s19848_s14 + $0x160] sm:$0xf] %vm14247_vm8, %v19781_v0  ;;  %14337 = vst.msk [vmem:[%s19848_s14 + $0x164] sm:$0xf] %vm14247_vm8, %v19781_v0 }
 0x50e   : > { %14338 = vst.msk [vmem:[%s19848_s14 + $0x168] sm:$0xf] %vm14247_vm8, %v19781_v0  ;;  %14339 = vst.msk [vmem:[%s19848_s14 + $0x16c] sm:$0xf] %vm14247_vm8, %v19781_v0 }
 0x50f   : > { %14340 = vst.msk [vmem:[%s19848_s14 + $0x170] sm:$0xf] %vm14247_vm8, %v19781_v0  ;;  %14341 = vst.msk [vmem:[%s19848_s14 + $0x174] sm:$0xf] %vm14247_vm8, %v19781_v0 }
 0x510   : > { %14342 = vst.msk [vmem:[%s19848_s14 + $0x178] sm:$0xf] %vm14247_vm8, %v19781_v0  ;;  %14343 = vst.msk [vmem:[%s19848_s14 + $0x17c] sm:$0xf] %vm14247_vm8, %v19781_v0 }
 0x511   : > { %14344 = vst.msk [vmem:[%s19848_s14 + $0x180] sm:$0xf] %vm14247_vm8, %v19781_v0  ;;  %14345 = vst.msk [vmem:[%s19848_s14 + $0x184] sm:$0xf] %vm14247_vm8, %v19781_v0 }
 0x512   : > { %14346 = vst.msk [vmem:[%s19848_s14 + $0x188] sm:$0xf] %vm14247_vm8, %v19781_v0  ;;  %14347 = vst.msk [vmem:[%s19848_s14 + $0x18c] sm:$0xf] %vm14247_vm8, %v19781_v0 }
 0x513   : > { %14348 = vst.msk [vmem:[%s19848_s14 + $0x190] sm:$0xf] %vm14247_vm8, %v19781_v0  ;;  %14349 = vst.msk [vmem:[%s19848_s14 + $0x194] sm:$0xf] %vm14247_vm8, %v19781_v0 }
 0x514   : > { %14350 = vst.msk [vmem:[%s19848_s14 + $0x198] sm:$0xf] %vm14247_vm8, %v19781_v0  ;;  %14351 = vst.msk [vmem:[%s19848_s14 + $0x19c] sm:$0xf] %vm14247_vm8, %v19781_v0 }
 0x515   : > { %14352 = vst.msk [vmem:[%s19848_s14 + $0x1a0] sm:$0xf] %vm14247_vm8, %v19781_v0  ;;  %14353 = vst.msk [vmem:[%s19848_s14 + $0x1a4] sm:$0xf] %vm14247_vm8, %v19781_v0 }
 0x516   : > { %14354 = vst.msk [vmem:[%s19848_s14 + $0x1a8] sm:$0xf] %vm14247_vm8, %v19781_v0  ;;  %14355 = vst.msk [vmem:[%s19848_s14 + $0x1ac] sm:$0xf] %vm14247_vm8, %v19781_v0 }
 0x517   : > { %14356 = vst.msk [vmem:[%s19848_s14 + $0x1b0] sm:$0xf] %vm14247_vm8, %v19781_v0  ;;  %14357 = vst.msk [vmem:[%s19848_s14 + $0x1b4] sm:$0xf] %vm14247_vm8, %v19781_v0 }
 0x518   : > { %14358 = vst.msk [vmem:[%s19848_s14 + $0x1b8] sm:$0xf] %vm14247_vm8, %v19781_v0  ;;  %14359 = vst.msk [vmem:[%s19848_s14 + $0x1bc] sm:$0xf] %vm14247_vm8, %v19781_v0 }
 0x519   : > { %14360 = vst.msk [vmem:[%s19848_s14 + $0x1c0] sm:$0xf] %vm14247_vm8, %v19781_v0  ;;  %14361 = vst.msk [vmem:[%s19848_s14 + $0x1c4] sm:$0xf] %vm14247_vm8, %v19781_v0 }
 0x51a   : > { %14362 = vst.msk [vmem:[%s19848_s14 + $0x1c8] sm:$0xf] %vm14247_vm8, %v19781_v0  ;;  %14363 = vst.msk [vmem:[%s19848_s14 + $0x1cc] sm:$0xf] %vm14247_vm8, %v19781_v0 }
 0x51b   : > { %14364 = vst.msk [vmem:[%s19848_s14 + $0x1d0] sm:$0xf] %vm14247_vm8, %v19781_v0  ;;  %14365 = vst.msk [vmem:[%s19848_s14 + $0x1d4] sm:$0xf] %vm14247_vm8, %v19781_v0 }
 0x51c   : > { %14366 = vst.msk [vmem:[%s19848_s14 + $0x1d8] sm:$0xf] %vm14247_vm8, %v19781_v0  ;;  %14367 = vst.msk [vmem:[%s19848_s14 + $0x1dc] sm:$0xf] %vm14247_vm8, %v19781_v0 }
 0x51d   : > { %14368 = vst.msk [vmem:[%s19848_s14 + $0x1e0] sm:$0xf] %vm14247_vm8, %v19781_v0  ;;  %14369 = vst.msk [vmem:[%s19848_s14 + $0x1e4] sm:$0xf] %vm14247_vm8, %v19781_v0 }
 0x51e   : > { %14370 = vst.msk [vmem:[%s19848_s14 + $0x1e8] sm:$0xf] %vm14247_vm8, %v19781_v0  ;;  %14371 = vst.msk [vmem:[%s19848_s14 + $0x1ec] sm:$0xf] %vm14247_vm8, %v19781_v0 }
 0x51f   : > { %14372 = vst.msk [vmem:[%s19848_s14 + $0x1f0] sm:$0xf] %vm14247_vm8, %v19781_v0  ;;  %14373 = vst.msk [vmem:[%s19848_s14 + $0x1f4] sm:$0xf] %vm14247_vm8, %v19781_v0 }
 0x520   : > { %14374 = vst.msk [vmem:[%s19848_s14 + $0x1f8] sm:$0xf] %vm14247_vm8, %v19781_v0  ;;  %14375 = vst.msk [vmem:[%s19848_s14 + $0x1fc] sm:$0xf] %vm14247_vm8, %v19781_v0 }
 0x521   : > { %14376 = vst.msk [vmem:[%s19848_s14 + $0x200] sm:$0xf] %vm14247_vm8, %v19781_v0  ;;  %14377 = vst.msk [vmem:[%s19848_s14 + $0x204] sm:$0xf] %vm14247_vm8, %v19781_v0 }
 0x522   : > { %14378 = vst.msk [vmem:[%s19848_s14 + $0x208] sm:$0xf] %vm14247_vm8, %v19781_v0  ;;  %14379 = vst.msk [vmem:[%s19848_s14 + $0x20c] sm:$0xf] %vm14247_vm8, %v19781_v0 }
 0x523   : > { %14380 = vst.msk [vmem:[%s19848_s14 + $0x210] sm:$0xf] %vm14247_vm8, %v19781_v0  ;;  %14381 = vst.msk [vmem:[%s19848_s14 + $0x214] sm:$0xf] %vm14247_vm8, %v19781_v0 }
 0x524   : > { %14382 = vst.msk [vmem:[%s19848_s14 + $0x218] sm:$0xf] %vm14247_vm8, %v19781_v0  ;;  %14383 = vst.msk [vmem:[%s19848_s14 + $0x21c] sm:$0xf] %vm14247_vm8, %v19781_v0 }
 0x525   : > { %14384 = vst.msk [vmem:[%s19848_s14 + $0x220] sm:$0xf] %vm14247_vm8, %v19781_v0  ;;  %14385 = vst.msk [vmem:[%s19848_s14 + $0x224] sm:$0xf] %vm14247_vm8, %v19781_v0 }
 0x526   : > { %14386 = vst.msk [vmem:[%s19848_s14 + $0x228] sm:$0xf] %vm14247_vm8, %v19781_v0  ;;  %14387 = vst.msk [vmem:[%s19848_s14 + $0x22c] sm:$0xf] %vm14247_vm8, %v19781_v0 }
 0x527   : > { %14388 = vst.msk [vmem:[%s19848_s14 + $0x230] sm:$0xf] %vm14247_vm8, %v19781_v0  ;;  %14389 = vst.msk [vmem:[%s19848_s14 + $0x234] sm:$0xf] %vm14247_vm8, %v19781_v0 }
 0x528   : > { %14390 = vst.msk [vmem:[%s19848_s14 + $0x238] sm:$0xf] %vm14247_vm8, %v19781_v0  ;;  %14391 = vst.msk [vmem:[%s19848_s14 + $0x23c] sm:$0xf] %vm14247_vm8, %v19781_v0 }
 0x529   : > { %14392 = vst.msk [vmem:[%s19848_s14 + $0x240] sm:$0xf] %vm14247_vm8, %v19781_v0  ;;  %14393 = vst.msk [vmem:[%s19848_s14 + $0x244] sm:$0xf] %vm14247_vm8, %v19781_v0 }
 0x52a   : > { %14394 = vst.msk [vmem:[%s19848_s14 + $0x248] sm:$0xf] %vm14247_vm8, %v19781_v0  ;;  %14395 = vst.msk [vmem:[%s19848_s14 + $0x24c] sm:$0xf] %vm14247_vm8, %v19781_v0 }
 0x52b   : > { %14396 = vst.msk [vmem:[%s19848_s14 + $0x250] sm:$0xf] %vm14247_vm8, %v19781_v0  ;;  %14397 = vst.msk [vmem:[%s19848_s14 + $0x254] sm:$0xf] %vm14247_vm8, %v19781_v0 }
 0x52c   : > { %14398 = vst.msk [vmem:[%s19848_s14 + $0x258] sm:$0xf] %vm14247_vm8, %v19781_v0  ;;  %14399 = vst.msk [vmem:[%s19848_s14 + $0x25c] sm:$0xf] %vm14247_vm8, %v19781_v0 }
 0x52d   : > { %14400 = vst.msk [vmem:[%s19848_s14 + $0x260] sm:$0xf] %vm14247_vm8, %v19781_v0  ;;  %14401 = vst.msk [vmem:[%s19848_s14 + $0x264] sm:$0xf] %vm14247_vm8, %v19781_v0 }
 0x52e   : > { %14402 = vst.msk [vmem:[%s19848_s14 + $0x268] sm:$0xf] %vm14247_vm8, %v19781_v0  ;;  %14403 = vst.msk [vmem:[%s19848_s14 + $0x26c] sm:$0xf] %vm14247_vm8, %v19781_v0 }
 0x52f   : > { %14404 = vst.msk [vmem:[%s19848_s14 + $0x270] sm:$0xf] %vm14247_vm8, %v19781_v0  ;;  %14405 = vst.msk [vmem:[%s19848_s14 + $0x274] sm:$0xf] %vm14247_vm8, %v19781_v0 }
 0x530   : > { %14406 = vst.msk [vmem:[%s19848_s14 + $0x278] sm:$0xf] %vm14247_vm8, %v19781_v0  ;;  %14407 = vst.msk [vmem:[%s19848_s14 + $0x27c] sm:$0xf] %vm14247_vm8, %v19781_v0 }
 0x531   : > { %14408 = vst.msk [vmem:[%s19848_s14 + $0x280] sm:$0xf] %vm14247_vm8, %v19781_v0  ;;  %14409 = vst.msk [vmem:[%s19848_s14 + $0x284] sm:$0xf] %vm14247_vm8, %v19781_v0 }
 0x532   : > { %14410 = vst.msk [vmem:[%s19848_s14 + $0x288] sm:$0xf] %vm14247_vm8, %v19781_v0  ;;  %14411 = vst.msk [vmem:[%s19848_s14 + $0x28c] sm:$0xf] %vm14247_vm8, %v19781_v0 }
 0x533   : > { %14412 = vst.msk [vmem:[%s19848_s14 + $0x290] sm:$0xf] %vm14247_vm8, %v19781_v0  ;;  %14413 = vst.msk [vmem:[%s19848_s14 + $0x294] sm:$0xf] %vm14247_vm8, %v19781_v0 }
 0x534   : > { %14414 = vst.msk [vmem:[%s19848_s14 + $0x298] sm:$0xf] %vm14247_vm8, %v19781_v0  ;;  %14415 = vst.msk [vmem:[%s19848_s14 + $0x29c] sm:$0xf] %vm14247_vm8, %v19781_v0 }
 0x535   : > { %14416 = vst.msk [vmem:[%s19848_s14 + $0x2a0] sm:$0xf] %vm14247_vm8, %v19781_v0  ;;  %14417 = vst.msk [vmem:[%s19848_s14 + $0x2a4] sm:$0xf] %vm14247_vm8, %v19781_v0 }
 0x536   : > { %14418 = vst.msk [vmem:[%s19848_s14 + $0x2a8] sm:$0xf] %vm14247_vm8, %v19781_v0  ;;  %14419 = vst.msk [vmem:[%s19848_s14 + $0x2ac] sm:$0xf] %vm14247_vm8, %v19781_v0 }
 0x537   : > { %14420 = vst.msk [vmem:[%s19848_s14 + $0x2b0] sm:$0xf] %vm14247_vm8, %v19781_v0  ;;  %14421 = vst.msk [vmem:[%s19848_s14 + $0x2b4] sm:$0xf] %vm14247_vm8, %v19781_v0 }
 0x538   : > { %14422 = vst.msk [vmem:[%s19848_s14 + $0x2b8] sm:$0xf] %vm14247_vm8, %v19781_v0  ;;  %14423 = vst.msk [vmem:[%s19848_s14 + $0x2bc] sm:$0xf] %vm14247_vm8, %v19781_v0 }
 0x539   : > { %14424 = vst.msk [vmem:[%s19848_s14 + $0x2c0] sm:$0xf] %vm14247_vm8, %v19781_v0  ;;  %14425 = vst.msk [vmem:[%s19848_s14 + $0x2c4] sm:$0xf] %vm14247_vm8, %v19781_v0 }
 0x53a   : > { %14426 = vst.msk [vmem:[%s19848_s14 + $0x2c8] sm:$0xf] %vm14247_vm8, %v19781_v0  ;;  %14427 = vst.msk [vmem:[%s19848_s14 + $0x2cc] sm:$0xf] %vm14247_vm8, %v19781_v0 }
 0x53b   : > { %14428 = vst.msk [vmem:[%s19848_s14 + $0x2d0] sm:$0xf] %vm14247_vm8, %v19781_v0  ;;  %14429 = vst.msk [vmem:[%s19848_s14 + $0x2d4] sm:$0xf] %vm14247_vm8, %v19781_v0 }
 0x53c   : > { %14430 = vst.msk [vmem:[%s19848_s14 + $0x2d8] sm:$0xf] %vm14247_vm8, %v19781_v0  ;;  %14431 = vst.msk [vmem:[%s19848_s14 + $0x2dc] sm:$0xf] %vm14247_vm8, %v19781_v0 }
 0x53d   : > { %14432 = vst.msk [vmem:[%s19848_s14 + $0x2e0] sm:$0xf] %vm14247_vm8, %v19781_v0  ;;  %14433 = vst.msk [vmem:[%s19848_s14 + $0x2e4] sm:$0xf] %vm14247_vm8, %v19781_v0 }
 0x53e   : > { %14434 = vst.msk [vmem:[%s19848_s14 + $0x2e8] sm:$0xf] %vm14247_vm8, %v19781_v0  ;;  %14435 = vst.msk [vmem:[%s19848_s14 + $0x2ec] sm:$0xf] %vm14247_vm8, %v19781_v0 }
 0x53f   : > { %14436 = vst.msk [vmem:[%s19848_s14 + $0x2f0] sm:$0xf] %vm14247_vm8, %v19781_v0  ;;  %14437 = vst.msk [vmem:[%s19848_s14 + $0x2f4] sm:$0xf] %vm14247_vm8, %v19781_v0 }
 0x540   : > { %14438 = vst.msk [vmem:[%s19848_s14 + $0x2f8] sm:$0xf] %vm14247_vm8, %v19781_v0  ;;  %14439 = vst.msk [vmem:[%s19848_s14 + $0x2fc] sm:$0xf] %vm14247_vm8, %v19781_v0 }
 0x541   : > { %14440 = vst.msk [vmem:[%s19848_s14 + $0x300] sm:$0xf] %vm14247_vm8, %v19781_v0  ;;  %14441 = vst.msk [vmem:[%s19848_s14 + $0x304] sm:$0xf] %vm14247_vm8, %v19781_v0 }
 0x542   : > { %14442 = vst.msk [vmem:[%s19848_s14 + $0x308] sm:$0xf] %vm14247_vm8, %v19781_v0  ;;  %14443 = vst.msk [vmem:[%s19848_s14 + $0x30c] sm:$0xf] %vm14247_vm8, %v19781_v0 }
 0x543   : > { %14444 = vst.msk [vmem:[%s19848_s14 + $0x310] sm:$0xf] %vm14247_vm8, %v19781_v0  ;;  %14445 = vst.msk [vmem:[%s19848_s14 + $0x314] sm:$0xf] %vm14247_vm8, %v19781_v0 }
 0x544   : > { %14446 = vst.msk [vmem:[%s19848_s14 + $0x318] sm:$0xf] %vm14247_vm8, %v19781_v0  ;;  %14447 = vst.msk [vmem:[%s19848_s14 + $0x31c] sm:$0xf] %vm14247_vm8, %v19781_v0 }
 0x545   : > { %14448 = vst.msk [vmem:[%s19848_s14 + $0x320] sm:$0xf] %vm14247_vm8, %v19781_v0  ;;  %14449 = vst.msk [vmem:[%s19848_s14 + $0x324] sm:$0xf] %vm14247_vm8, %v19781_v0 }
 0x546   : > { %14450 = vst.msk [vmem:[%s19848_s14 + $0x328] sm:$0xf] %vm14247_vm8, %v19781_v0  ;;  %14451 = vst.msk [vmem:[%s19848_s14 + $0x32c] sm:$0xf] %vm14247_vm8, %v19781_v0 }
 0x547   : > { %14452 = vst.msk [vmem:[%s19848_s14 + $0x330] sm:$0xf] %vm14247_vm8, %v19781_v0  ;;  %14453 = vst.msk [vmem:[%s19848_s14 + $0x334] sm:$0xf] %vm14247_vm8, %v19781_v0 }
 0x548   : > { %14454 = vst.msk [vmem:[%s19848_s14 + $0x338] sm:$0xf] %vm14247_vm8, %v19781_v0  ;;  %14455 = vst.msk [vmem:[%s19848_s14 + $0x33c] sm:$0xf] %vm14247_vm8, %v19781_v0 }
 0x549   : > { %14456 = vst.msk [vmem:[%s19848_s14 + $0x340] sm:$0xf] %vm14247_vm8, %v19781_v0  ;;  %14457 = vst.msk [vmem:[%s19848_s14 + $0x344] sm:$0xf] %vm14247_vm8, %v19781_v0 }
 0x54a   : > { %14458 = vst.msk [vmem:[%s19848_s14 + $0x348] sm:$0xf] %vm14247_vm8, %v19781_v0  ;;  %14459 = vst.msk [vmem:[%s19848_s14 + $0x34c] sm:$0xf] %vm14247_vm8, %v19781_v0 }
 0x54b   : > { %14460 = vst.msk [vmem:[%s19848_s14 + $0x350] sm:$0xf] %vm14247_vm8, %v19781_v0  ;;  %14461 = vst.msk [vmem:[%s19848_s14 + $0x354] sm:$0xf] %vm14247_vm8, %v19781_v0 }
 0x54c   : > { %14462 = vst.msk [vmem:[%s19848_s14 + $0x358] sm:$0xf] %vm14247_vm8, %v19781_v0  ;;  %14463 = vst.msk [vmem:[%s19848_s14 + $0x35c] sm:$0xf] %vm14247_vm8, %v19781_v0 }
 0x54d   : > { %14464 = vst.msk [vmem:[%s19848_s14 + $0x360] sm:$0xf] %vm14247_vm8, %v19781_v0  ;;  %14465 = vst.msk [vmem:[%s19848_s14 + $0x364] sm:$0xf] %vm14247_vm8, %v19781_v0 }
 0x54e   : > { %14466 = vst.msk [vmem:[%s19848_s14 + $0x368] sm:$0xf] %vm14247_vm8, %v19781_v0  ;;  %14467 = vst.msk [vmem:[%s19848_s14 + $0x36c] sm:$0xf] %vm14247_vm8, %v19781_v0 }
 0x54f   : > { %14468 = vst.msk [vmem:[%s19848_s14 + $0x370] sm:$0xf] %vm14247_vm8, %v19781_v0  ;;  %14469 = vst.msk [vmem:[%s19848_s14 + $0x374] sm:$0xf] %vm14247_vm8, %v19781_v0 }
 0x550   : > { %14470 = vst.msk [vmem:[%s19848_s14 + $0x378] sm:$0xf] %vm14247_vm8, %v19781_v0  ;;  %14471 = vst.msk [vmem:[%s19848_s14 + $0x37c] sm:$0xf] %vm14247_vm8, %v19781_v0 }
 0x551   : > { %14472 = vst.msk [vmem:[%s19848_s14 + $0x380] sm:$0xf] %vm14247_vm8, %v19781_v0  ;;  %14473 = vst.msk [vmem:[%s19848_s14 + $0x384] sm:$0xf] %vm14247_vm8, %v19781_v0 }
 0x552   : > { %14474 = vst.msk [vmem:[%s19848_s14 + $0x388] sm:$0xf] %vm14247_vm8, %v19781_v0  ;;  %14475 = vst.msk [vmem:[%s19848_s14 + $0x38c] sm:$0xf] %vm14247_vm8, %v19781_v0 }
 0x553   : > { %14476 = vst.msk [vmem:[%s19848_s14 + $0x390] sm:$0xf] %vm14247_vm8, %v19781_v0  ;;  %14477 = vst.msk [vmem:[%s19848_s14 + $0x394] sm:$0xf] %vm14247_vm8, %v19781_v0 }
 0x554   : > { %14478 = vst.msk [vmem:[%s19848_s14 + $0x398] sm:$0xf] %vm14247_vm8, %v19781_v0  ;;  %14479 = vst.msk [vmem:[%s19848_s14 + $0x39c] sm:$0xf] %vm14247_vm8, %v19781_v0 }
 0x555   : > { %14480 = vst.msk [vmem:[%s19848_s14 + $0x3a0] sm:$0xf] %vm14247_vm8, %v19781_v0  ;;  %14481 = vst.msk [vmem:[%s19848_s14 + $0x3a4] sm:$0xf] %vm14247_vm8, %v19781_v0 }
 0x556   : > { %14482 = vst.msk [vmem:[%s19848_s14 + $0x3a8] sm:$0xf] %vm14247_vm8, %v19781_v0  ;;  %14483 = vst.msk [vmem:[%s19848_s14 + $0x3ac] sm:$0xf] %vm14247_vm8, %v19781_v0 }
 0x557   : > { %14484 = vst.msk [vmem:[%s19848_s14 + $0x3b0] sm:$0xf] %vm14247_vm8, %v19781_v0  ;;  %14485 = vst.msk [vmem:[%s19848_s14 + $0x3b4] sm:$0xf] %vm14247_vm8, %v19781_v0 }
 0x558   : > { %14486 = vst.msk [vmem:[%s19848_s14 + $0x3b8] sm:$0xf] %vm14247_vm8, %v19781_v0  ;;  %14487 = vst.msk [vmem:[%s19848_s14 + $0x3bc] sm:$0xf] %vm14247_vm8, %v19781_v0 }
 0x559   : > { %14488 = vst.msk [vmem:[%s19848_s14 + $0x3c0] sm:$0xf] %vm14247_vm8, %v19781_v0  ;;  %14489 = vst.msk [vmem:[%s19848_s14 + $0x3c4] sm:$0xf] %vm14247_vm8, %v19781_v0 }
 0x55a   : > { %14490 = vst.msk [vmem:[%s19848_s14 + $0x3c8] sm:$0xf] %vm14247_vm8, %v19781_v0  ;;  %14491 = vst.msk [vmem:[%s19848_s14 + $0x3cc] sm:$0xf] %vm14247_vm8, %v19781_v0 }
 0x55b   : > { %14492 = vst.msk [vmem:[%s19848_s14 + $0x3d0] sm:$0xf] %vm14247_vm8, %v19781_v0  ;;  %14493 = vst.msk [vmem:[%s19848_s14 + $0x3d4] sm:$0xf] %vm14247_vm8, %v19781_v0 }
 0x55c   : > { %14494 = vst.msk [vmem:[%s19848_s14 + $0x3d8] sm:$0xf] %vm14247_vm8, %v19781_v0  ;;  %14495 = vst.msk [vmem:[%s19848_s14 + $0x3dc] sm:$0xf] %vm14247_vm8, %v19781_v0 }
 0x55d   : > { %14496 = vst.msk [vmem:[%s19848_s14 + $0x3e0] sm:$0xf] %vm14247_vm8, %v19781_v0  ;;  %14497 = vst.msk [vmem:[%s19848_s14 + $0x3e4] sm:$0xf] %vm14247_vm8, %v19781_v0 }
 0x55e   : > { %14498 = vst.msk [vmem:[%s19848_s14 + $0x3e8] sm:$0xf] %vm14247_vm8, %v19781_v0  ;;  %14499 = vst.msk [vmem:[%s19848_s14 + $0x3ec] sm:$0xf] %vm14247_vm8, %v19781_v0 }
 0x55f   : > { %14500 = vst.msk [vmem:[%s19848_s14 + $0x3f0] sm:$0xf] %vm14247_vm8, %v19781_v0  ;;  %14501 = vst.msk [vmem:[%s19848_s14 + $0x3f4] sm:$0xf] %vm14247_vm8, %v19781_v0 }
 0x560   : > { %14502 = vst.msk [vmem:[%s19848_s14 + $0x3f8] sm:$0xf] %vm14247_vm8, %v19781_v0  ;;  %14503 = vst.msk [vmem:[%s19848_s14 + $0x3fc] sm:$0xf] %vm14247_vm8, %v19781_v0 }
 0x561   : > { %14504 = vst.msk [vmem:[%s19848_s14 + $0x400] sm:$0xf] %vm14247_vm8, %v19781_v0  ;;  %14505 = vst.msk [vmem:[%s19848_s14 + $0x404] sm:$0xf] %vm14247_vm8, %v19781_v0 }
 0x562   : > { %14506 = vst.msk [vmem:[%s19848_s14 + $0x408] sm:$0xf] %vm14247_vm8, %v19781_v0  ;;  %14507 = vst.msk [vmem:[%s19848_s14 + $0x40c] sm:$0xf] %vm14247_vm8, %v19781_v0 }
 0x563   : > { %14508 = vst.msk [vmem:[%s19848_s14 + $0x410] sm:$0xf] %vm14247_vm8, %v19781_v0  ;;  %14509 = vst.msk [vmem:[%s19848_s14 + $0x414] sm:$0xf] %vm14247_vm8, %v19781_v0 }
 0x564   : > { %14510 = vst.msk [vmem:[%s19848_s14 + $0x418] sm:$0xf] %vm14247_vm8, %v19781_v0  ;;  %14511 = vst.msk [vmem:[%s19848_s14 + $0x41c] sm:$0xf] %vm14247_vm8, %v19781_v0 }
 0x565   : > { %14512 = vst.msk [vmem:[%s19848_s14 + $0x420] sm:$0xf] %vm14247_vm8, %v19781_v0  ;;  %14513 = vst.msk [vmem:[%s19848_s14 + $0x424] sm:$0xf] %vm14247_vm8, %v19781_v0 }
 0x566   : > { %14514 = vst.msk [vmem:[%s19848_s14 + $0x428] sm:$0xf] %vm14247_vm8, %v19781_v0  ;;  %14515 = vst.msk [vmem:[%s19848_s14 + $0x42c] sm:$0xf] %vm14247_vm8, %v19781_v0 }
 0x567   : > { %14516 = vst.msk [vmem:[%s19848_s14 + $0x430] sm:$0xf] %vm14247_vm8, %v19781_v0  ;;  %14517 = vst.msk [vmem:[%s19848_s14 + $0x434] sm:$0xf] %vm14247_vm8, %v19781_v0 }
 0x568   : > { %14518 = vst.msk [vmem:[%s19848_s14 + $0x438] sm:$0xf] %vm14247_vm8, %v19781_v0  ;;  %14519 = vst.msk [vmem:[%s19848_s14 + $0x43c] sm:$0xf] %vm14247_vm8, %v19781_v0 }
 0x569   : > { %14520 = vst.msk [vmem:[%s19848_s14 + $0x440] sm:$0xf] %vm14247_vm8, %v19781_v0  ;;  %14521 = vst.msk [vmem:[%s19848_s14 + $0x444] sm:$0xf] %vm14247_vm8, %v19781_v0 }
 0x56a   : > { %14522 = vst.msk [vmem:[%s19848_s14 + $0x448] sm:$0xf] %vm14247_vm8, %v19781_v0  ;;  %14523 = vst.msk [vmem:[%s19848_s14 + $0x44c] sm:$0xf] %vm14247_vm8, %v19781_v0 }
 0x56b   : > { %14524 = vst.msk [vmem:[%s19848_s14 + $0x450] sm:$0xf] %vm14247_vm8, %v19781_v0  ;;  %14525 = vst.msk [vmem:[%s19848_s14 + $0x454] sm:$0xf] %vm14247_vm8, %v19781_v0 }
 0x56c   : > { %14526 = vst.msk [vmem:[%s19848_s14 + $0x458] sm:$0xf] %vm14247_vm8, %v19781_v0  ;;  %14527 = vst.msk [vmem:[%s19848_s14 + $0x45c] sm:$0xf] %vm14247_vm8, %v19781_v0 }
 0x56d   : > { %14528 = vst.msk [vmem:[%s19848_s14 + $0x460] sm:$0xf] %vm14247_vm8, %v19781_v0  ;;  %14529 = vst.msk [vmem:[%s19848_s14 + $0x464] sm:$0xf] %vm14247_vm8, %v19781_v0 }
 0x56e   : > { %14530 = vst.msk [vmem:[%s19848_s14 + $0x468] sm:$0xf] %vm14247_vm8, %v19781_v0  ;;  %14531 = vst.msk [vmem:[%s19848_s14 + $0x46c] sm:$0xf] %vm14247_vm8, %v19781_v0 }
 0x56f   : > { %14532 = vst.msk [vmem:[%s19848_s14 + $0x470] sm:$0xf] %vm14247_vm8, %v19781_v0  ;;  %14533 = vst.msk [vmem:[%s19848_s14 + $0x474] sm:$0xf] %vm14247_vm8, %v19781_v0 }
 0x570   : > { %14534 = vst.msk [vmem:[%s19848_s14 + $0x478] sm:$0xf] %vm14247_vm8, %v19781_v0  ;;  %14535 = vst.msk [vmem:[%s19848_s14 + $0x47c] sm:$0xf] %vm14247_vm8, %v19781_v0 }
 0x571   : > { %14536 = vst.msk [vmem:[%s19848_s14 + $0x480] sm:$0xf] %vm14247_vm8, %v19781_v0  ;;  %14537 = vst.msk [vmem:[%s19848_s14 + $0x484] sm:$0xf] %vm14247_vm8, %v19781_v0 }
 0x572   : > { %14538 = vst.msk [vmem:[%s19848_s14 + $0x488] sm:$0xf] %vm14247_vm8, %v19781_v0  ;;  %14539 = vst.msk [vmem:[%s19848_s14 + $0x48c] sm:$0xf] %vm14247_vm8, %v19781_v0 }
 0x573   : > { %14540 = vst.msk [vmem:[%s19848_s14 + $0x490] sm:$0xf] %vm14247_vm8, %v19781_v0  ;;  %14541 = vst.msk [vmem:[%s19848_s14 + $0x494] sm:$0xf] %vm14247_vm8, %v19781_v0 }
 0x574   : > { %14542 = vst.msk [vmem:[%s19848_s14 + $0x498] sm:$0xf] %vm14247_vm8, %v19781_v0  ;;  %14543 = vst.msk [vmem:[%s19848_s14 + $0x49c] sm:$0xf] %vm14247_vm8, %v19781_v0 }
 0x575   : > { %14544 = vst.msk [vmem:[%s19848_s14 + $0x4a0] sm:$0xf] %vm14247_vm8, %v19781_v0  ;;  %14545 = vst.msk [vmem:[%s19848_s14 + $0x4a4] sm:$0xf] %vm14247_vm8, %v19781_v0 }
 0x576   : > { %14546 = vst.msk [vmem:[%s19848_s14 + $0x4a8] sm:$0xf] %vm14247_vm8, %v19781_v0  ;;  %14547 = vst.msk [vmem:[%s19848_s14 + $0x4ac] sm:$0xf] %vm14247_vm8, %v19781_v0 }
 0x577   : > { %14548 = vst.msk [vmem:[%s19848_s14 + $0x4b0] sm:$0xf] %vm14247_vm8, %v19781_v0  ;;  %14549 = vst.msk [vmem:[%s19848_s14 + $0x4b4] sm:$0xf] %vm14247_vm8, %v19781_v0 }
 0x578   : > { %14550 = vst.msk [vmem:[%s19848_s14 + $0x4b8] sm:$0xf] %vm14247_vm8, %v19781_v0  ;;  %14551 = vst.msk [vmem:[%s19848_s14 + $0x4bc] sm:$0xf] %vm14247_vm8, %v19781_v0 }
 0x579   : > { %14552 = vst.msk [vmem:[%s19848_s14 + $0x4c0] sm:$0xf] %vm14247_vm8, %v19781_v0  ;;  %14553 = vst.msk [vmem:[%s19848_s14 + $0x4c4] sm:$0xf] %vm14247_vm8, %v19781_v0 }
 0x57a   : > { %14554 = vst.msk [vmem:[%s19848_s14 + $0x4c8] sm:$0xf] %vm14247_vm8, %v19781_v0  ;;  %14555 = vst.msk [vmem:[%s19848_s14 + $0x4cc] sm:$0xf] %vm14247_vm8, %v19781_v0 }
 0x57b   : > { %14556 = vst.msk [vmem:[%s19848_s14 + $0x4d0] sm:$0xf] %vm14247_vm8, %v19781_v0  ;;  %14557 = vst.msk [vmem:[%s19848_s14 + $0x4d4] sm:$0xf] %vm14247_vm8, %v19781_v0 }
 0x57c   : > { %14558 = vst.msk [vmem:[%s19848_s14 + $0x4d8] sm:$0xf] %vm14247_vm8, %v19781_v0  ;;  %14559 = vst.msk [vmem:[%s19848_s14 + $0x4dc] sm:$0xf] %vm14247_vm8, %v19781_v0 }
 0x57d   : > { %14560 = vst.msk [vmem:[%s19848_s14 + $0x4e0] sm:$0xf] %vm14247_vm8, %v19781_v0  ;;  %14561 = vst.msk [vmem:[%s19848_s14 + $0x4e4] sm:$0xf] %vm14247_vm8, %v19781_v0 }
 0x57e   : > { %14562 = vst.msk [vmem:[%s19848_s14 + $0x4e8] sm:$0xf] %vm14247_vm8, %v19781_v0  ;;  %14563 = vst.msk [vmem:[%s19848_s14 + $0x4ec] sm:$0xf] %vm14247_vm8, %v19781_v0 }
 0x57f   : > { %14564 = vst.msk [vmem:[%s19848_s14 + $0x4f0] sm:$0xf] %vm14247_vm8, %v19781_v0  ;;  %14565 = vst.msk [vmem:[%s19848_s14 + $0x4f4] sm:$0xf] %vm14247_vm8, %v19781_v0 }
 0x580   : > { %14566 = vst.msk [vmem:[%s19848_s14 + $0x4f8] sm:$0xf] %vm14247_vm8, %v19781_v0  ;;  %14567 = vst.msk [vmem:[%s19848_s14 + $0x4fc] sm:$0xf] %vm14247_vm8, %v19781_v0 }
 0x581   : > { %14568 = vst.msk [vmem:[%s19848_s14 + $0x500] sm:$0xf] %vm14247_vm8, %v19781_v0  ;;  %14569 = vst.msk [vmem:[%s19848_s14 + $0x504] sm:$0xf] %vm14247_vm8, %v19781_v0 }
 0x582   : > { %14570 = vst.msk [vmem:[%s19848_s14 + $0x508] sm:$0xf] %vm14247_vm8, %v19781_v0  ;;  %14571 = vst.msk [vmem:[%s19848_s14 + $0x50c] sm:$0xf] %vm14247_vm8, %v19781_v0 }
 0x583   : > { %14572 = vst.msk [vmem:[%s19848_s14 + $0x510] sm:$0xf] %vm14247_vm8, %v19781_v0  ;;  %14573 = vst.msk [vmem:[%s19848_s14 + $0x514] sm:$0xf] %vm14247_vm8, %v19781_v0 }
 0x584   : > { %14574 = vst.msk [vmem:[%s19848_s14 + $0x518] sm:$0xf] %vm14247_vm8, %v19781_v0  ;;  %14575 = vst.msk [vmem:[%s19848_s14 + $0x51c] sm:$0xf] %vm14247_vm8, %v19781_v0 }
 0x585   : > { %14576 = vst.msk [vmem:[%s19848_s14 + $0x520] sm:$0xf] %vm14247_vm8, %v19781_v0  ;;  %14577 = vst.msk [vmem:[%s19848_s14 + $0x524] sm:$0xf] %vm14247_vm8, %v19781_v0 }
 0x586   : > { %14578 = vst.msk [vmem:[%s19848_s14 + $0x528] sm:$0xf] %vm14247_vm8, %v19781_v0  ;;  %14579 = vst.msk [vmem:[%s19848_s14 + $0x52c] sm:$0xf] %vm14247_vm8, %v19781_v0 }
 0x587   : > { %14580 = vst.msk [vmem:[%s19848_s14 + $0x530] sm:$0xf] %vm14247_vm8, %v19781_v0  ;;  %14581 = vst.msk [vmem:[%s19848_s14 + $0x534] sm:$0xf] %vm14247_vm8, %v19781_v0 }
 0x588   : > { %14582 = vst.msk [vmem:[%s19848_s14 + $0x538] sm:$0xf] %vm14247_vm8, %v19781_v0  ;;  %14583 = vst.msk [vmem:[%s19848_s14 + $0x53c] sm:$0xf] %vm14247_vm8, %v19781_v0 }
 0x589   : > { %14584 = vst.msk [vmem:[%s19848_s14 + $0x540] sm:$0xf] %vm14247_vm8, %v19781_v0  ;;  %14585 = vst.msk [vmem:[%s19848_s14 + $0x544] sm:$0xf] %vm14247_vm8, %v19781_v0 }
 0x58a   : > { %14586 = vst.msk [vmem:[%s19848_s14 + $0x548] sm:$0xf] %vm14247_vm8, %v19781_v0  ;;  %14587 = vst.msk [vmem:[%s19848_s14 + $0x54c] sm:$0xf] %vm14247_vm8, %v19781_v0 }
 0x58b   : > { %14588 = vst.msk [vmem:[%s19848_s14 + $0x550] sm:$0xf] %vm14247_vm8, %v19781_v0  ;;  %14589 = vst.msk [vmem:[%s19848_s14 + $0x554] sm:$0xf] %vm14247_vm8, %v19781_v0 }
 0x58c   : > { %14590 = vst.msk [vmem:[%s19848_s14 + $0x558] sm:$0xf] %vm14247_vm8, %v19781_v0  ;;  %14591 = vst.msk [vmem:[%s19848_s14 + $0x55c] sm:$0xf] %vm14247_vm8, %v19781_v0 }
 0x58d   : > { %14592 = vst.msk [vmem:[%s19848_s14 + $0x560] sm:$0xf] %vm14247_vm8, %v19781_v0  ;;  %14593 = vst.msk [vmem:[%s19848_s14 + $0x564] sm:$0xf] %vm14247_vm8, %v19781_v0 }
 0x58e   : > { %14594 = vst.msk [vmem:[%s19848_s14 + $0x568] sm:$0xf] %vm14247_vm8, %v19781_v0  ;;  %14595 = vst.msk [vmem:[%s19848_s14 + $0x56c] sm:$0xf] %vm14247_vm8, %v19781_v0 }
 0x58f   : > { %14596 = vst.msk [vmem:[%s19848_s14 + $0x570] sm:$0xf] %vm14247_vm8, %v19781_v0  ;;  %14597 = vst.msk [vmem:[%s19848_s14 + $0x574] sm:$0xf] %vm14247_vm8, %v19781_v0 }
 0x590   : > { %14598 = vst.msk [vmem:[%s19848_s14 + $0x578] sm:$0xf] %vm14247_vm8, %v19781_v0  ;;  %14599 = vst.msk [vmem:[%s19848_s14 + $0x57c] sm:$0xf] %vm14247_vm8, %v19781_v0 }
 0x591   : > { %14600 = vst.msk [vmem:[%s19848_s14 + $0x580] sm:$0xf] %vm14247_vm8, %v19781_v0  ;;  %14601 = vst.msk [vmem:[%s19848_s14 + $0x584] sm:$0xf] %vm14247_vm8, %v19781_v0 }
 0x592   : > { %14602 = vst.msk [vmem:[%s19848_s14 + $0x588] sm:$0xf] %vm14247_vm8, %v19781_v0  ;;  %14603 = vst.msk [vmem:[%s19848_s14 + $0x58c] sm:$0xf] %vm14247_vm8, %v19781_v0 }
 0x593   : > { %14604 = vst.msk [vmem:[%s19848_s14 + $0x590] sm:$0xf] %vm14247_vm8, %v19781_v0  ;;  %14605 = vst.msk [vmem:[%s19848_s14 + $0x594] sm:$0xf] %vm14247_vm8, %v19781_v0 }
 0x594   : > { %14606 = vst.msk [vmem:[%s19848_s14 + $0x598] sm:$0xf] %vm14247_vm8, %v19781_v0  ;;  %14607 = vst.msk [vmem:[%s19848_s14 + $0x59c] sm:$0xf] %vm14247_vm8, %v19781_v0 }
 0x595   : > { %14608 = vst.msk [vmem:[%s19848_s14 + $0x5a0] sm:$0xf] %vm14247_vm8, %v19781_v0  ;;  %14609 = vst.msk [vmem:[%s19848_s14 + $0x5a4] sm:$0xf] %vm14247_vm8, %v19781_v0 }
 0x596   : > { %14610 = vst.msk [vmem:[%s19848_s14 + $0x5a8] sm:$0xf] %vm14247_vm8, %v19781_v0  ;;  %14611 = vst.msk [vmem:[%s19848_s14 + $0x5ac] sm:$0xf] %vm14247_vm8, %v19781_v0 }
 0x597   : > { %14612 = vst.msk [vmem:[%s19848_s14 + $0x5b0] sm:$0xf] %vm14247_vm8, %v19781_v0  ;;  %14613 = vst.msk [vmem:[%s19848_s14 + $0x5b4] sm:$0xf] %vm14247_vm8, %v19781_v0 }
 0x598   : > { %14614 = vst.msk [vmem:[%s19848_s14 + $0x5b8] sm:$0xf] %vm14247_vm8, %v19781_v0  ;;  %14615 = vst.msk [vmem:[%s19848_s14 + $0x5bc] sm:$0xf] %vm14247_vm8, %v19781_v0 }
 0x599   : > { %14616 = vst.msk [vmem:[%s19848_s14 + $0x5c0] sm:$0xf] %vm14247_vm8, %v19781_v0  ;;  %14617 = vst.msk [vmem:[%s19848_s14 + $0x5c4] sm:$0xf] %vm14247_vm8, %v19781_v0 }
 0x59a   : > { %14618 = vst.msk [vmem:[%s19848_s14 + $0x5c8] sm:$0xf] %vm14247_vm8, %v19781_v0  ;;  %14619 = vst.msk [vmem:[%s19848_s14 + $0x5cc] sm:$0xf] %vm14247_vm8, %v19781_v0 }
 0x59b   : > { %14620 = vst.msk [vmem:[%s19848_s14 + $0x5d0] sm:$0xf] %vm14247_vm8, %v19781_v0  ;;  %14621 = vst.msk [vmem:[%s19848_s14 + $0x5d4] sm:$0xf] %vm14247_vm8, %v19781_v0 }
 0x59c   : > { %14622 = vst.msk [vmem:[%s19848_s14 + $0x5d8] sm:$0xf] %vm14247_vm8, %v19781_v0  ;;  %14623 = vst.msk [vmem:[%s19848_s14 + $0x5dc] sm:$0xf] %vm14247_vm8, %v19781_v0 }
 0x59d   : > { %14624 = vst.msk [vmem:[%s19848_s14 + $0x5e0] sm:$0xf] %vm14247_vm8, %v19781_v0  ;;  %14625 = vst.msk [vmem:[%s19848_s14 + $0x5e4] sm:$0xf] %vm14247_vm8, %v19781_v0 }
 0x59e   : > { %14626 = vst.msk [vmem:[%s19848_s14 + $0x5e8] sm:$0xf] %vm14247_vm8, %v19781_v0  ;;  %14627 = vst.msk [vmem:[%s19848_s14 + $0x5ec] sm:$0xf] %vm14247_vm8, %v19781_v0 }
 0x59f   : > { %14628 = vst.msk [vmem:[%s19848_s14 + $0x5f0] sm:$0xf] %vm14247_vm8, %v19781_v0  ;;  %14629 = vst.msk [vmem:[%s19848_s14 + $0x5f4] sm:$0xf] %vm14247_vm8, %v19781_v0 }
 0x5a0   : > { %14630 = vst.msk [vmem:[%s19848_s14 + $0x5f8] sm:$0xf] %vm14247_vm8, %v19781_v0  ;;  %14631 = vst.msk [vmem:[%s19848_s14 + $0x5fc] sm:$0xf] %vm14247_vm8, %v19781_v0 }
 0x5a1   : > { %14632 = vst.msk [vmem:[%s19848_s14 + $0x600] sm:$0xf] %vm14247_vm8, %v19781_v0  ;;  %14633 = vst.msk [vmem:[%s19848_s14 + $0x604] sm:$0xf] %vm14247_vm8, %v19781_v0 }
 0x5a2   : > { %14634 = vst.msk [vmem:[%s19848_s14 + $0x608] sm:$0xf] %vm14247_vm8, %v19781_v0  ;;  %14635 = vst.msk [vmem:[%s19848_s14 + $0x60c] sm:$0xf] %vm14247_vm8, %v19781_v0 }
 0x5a3   : > { %14636 = vst.msk [vmem:[%s19848_s14 + $0x610] sm:$0xf] %vm14247_vm8, %v19781_v0  ;;  %14637 = vst.msk [vmem:[%s19848_s14 + $0x614] sm:$0xf] %vm14247_vm8, %v19781_v0 }
 0x5a4   : > { %14638 = vst.msk [vmem:[%s19848_s14 + $0x618] sm:$0xf] %vm14247_vm8, %v19781_v0  ;;  %14639 = vst.msk [vmem:[%s19848_s14 + $0x61c] sm:$0xf] %vm14247_vm8, %v19781_v0 }
 0x5a5   : > { %14640 = vst.msk [vmem:[%s19848_s14 + $0x620] sm:$0xf] %vm14247_vm8, %v19781_v0  ;;  %14641 = vst.msk [vmem:[%s19848_s14 + $0x624] sm:$0xf] %vm14247_vm8, %v19781_v0 }
 0x5a6   : > { %14642 = vst.msk [vmem:[%s19848_s14 + $0x628] sm:$0xf] %vm14247_vm8, %v19781_v0  ;;  %14643 = vst.msk [vmem:[%s19848_s14 + $0x62c] sm:$0xf] %vm14247_vm8, %v19781_v0 }
 0x5a7   : > { %14644 = vst.msk [vmem:[%s19848_s14 + $0x630] sm:$0xf] %vm14247_vm8, %v19781_v0  ;;  %14645 = vst.msk [vmem:[%s19848_s14 + $0x634] sm:$0xf] %vm14247_vm8, %v19781_v0 }
 0x5a8   : > { %14646 = vst.msk [vmem:[%s19848_s14 + $0x638] sm:$0xf] %vm14247_vm8, %v19781_v0  ;;  %14647 = vst.msk [vmem:[%s19848_s14 + $0x63c] sm:$0xf] %vm14247_vm8, %v19781_v0 }
 0x5a9   : > { %14648 = vst.msk [vmem:[%s19848_s14 + $0x640] sm:$0xf] %vm14247_vm8, %v19781_v0  ;;  %14649 = vst.msk [vmem:[%s19848_s14 + $0x644] sm:$0xf] %vm14247_vm8, %v19781_v0 }
 0x5aa   : > { %14650 = vst.msk [vmem:[%s19848_s14 + $0x648] sm:$0xf] %vm14247_vm8, %v19781_v0  ;;  %14651 = vst.msk [vmem:[%s19848_s14 + $0x64c] sm:$0xf] %vm14247_vm8, %v19781_v0 }
 0x5ab   : > { %14652 = vst.msk [vmem:[%s19848_s14 + $0x650] sm:$0xf] %vm14247_vm8, %v19781_v0  ;;  %14653 = vst.msk [vmem:[%s19848_s14 + $0x654] sm:$0xf] %vm14247_vm8, %v19781_v0 }
 0x5ac   : > { %14654 = vst.msk [vmem:[%s19848_s14 + $0x658] sm:$0xf] %vm14247_vm8, %v19781_v0  ;;  %14655 = vst.msk [vmem:[%s19848_s14 + $0x65c] sm:$0xf] %vm14247_vm8, %v19781_v0 }
 0x5ad   : > { %14656 = vst.msk [vmem:[%s19848_s14 + $0x660] sm:$0xf] %vm14247_vm8, %v19781_v0  ;;  %14657 = vst.msk [vmem:[%s19848_s14 + $0x664] sm:$0xf] %vm14247_vm8, %v19781_v0 }
 0x5ae   : > { %14658 = vst.msk [vmem:[%s19848_s14 + $0x668] sm:$0xf] %vm14247_vm8, %v19781_v0  ;;  %14659 = vst.msk [vmem:[%s19848_s14 + $0x66c] sm:$0xf] %vm14247_vm8, %v19781_v0 }
 0x5af   : > { %14660 = vst.msk [vmem:[%s19848_s14 + $0x670] sm:$0xf] %vm14247_vm8, %v19781_v0  ;;  %14661 = vst.msk [vmem:[%s19848_s14 + $0x674] sm:$0xf] %vm14247_vm8, %v19781_v0 }
 0x5b0   : > { %14662 = vst.msk [vmem:[%s19848_s14 + $0x678] sm:$0xf] %vm14247_vm8, %v19781_v0  ;;  %14663 = vst.msk [vmem:[%s19848_s14 + $0x67c] sm:$0xf] %vm14247_vm8, %v19781_v0 }
 0x5b1   : > { %14664 = vst.msk [vmem:[%s19848_s14 + $0x680] sm:$0xf] %vm14247_vm8, %v19781_v0  ;;  %14665 = vst.msk [vmem:[%s19848_s14 + $0x684] sm:$0xf] %vm14247_vm8, %v19781_v0 }
 0x5b2   : > { %14666 = vst.msk [vmem:[%s19848_s14 + $0x688] sm:$0xf] %vm14247_vm8, %v19781_v0  ;;  %14667 = vst.msk [vmem:[%s19848_s14 + $0x68c] sm:$0xf] %vm14247_vm8, %v19781_v0 }
 0x5b3   : > { %14668 = vst.msk [vmem:[%s19848_s14 + $0x690] sm:$0xf] %vm14247_vm8, %v19781_v0  ;;  %14669 = vst.msk [vmem:[%s19848_s14 + $0x694] sm:$0xf] %vm14247_vm8, %v19781_v0 }
 0x5b4   : > { %14670 = vst.msk [vmem:[%s19848_s14 + $0x698] sm:$0xf] %vm14247_vm8, %v19781_v0  ;;  %14671 = vst.msk [vmem:[%s19848_s14 + $0x69c] sm:$0xf] %vm14247_vm8, %v19781_v0 }
 0x5b5   : > { %14672 = vst.msk [vmem:[%s19848_s14 + $0x6a0] sm:$0xf] %vm14247_vm8, %v19781_v0  ;;  %14673 = vst.msk [vmem:[%s19848_s14 + $0x6a4] sm:$0xf] %vm14247_vm8, %v19781_v0 }
 0x5b6   : > { %14674 = vst.msk [vmem:[%s19848_s14 + $0x6a8] sm:$0xf] %vm14247_vm8, %v19781_v0  ;;  %14675 = vst.msk [vmem:[%s19848_s14 + $0x6ac] sm:$0xf] %vm14247_vm8, %v19781_v0 }
 0x5b7   : > { %14676 = vst.msk [vmem:[%s19848_s14 + $0x6b0] sm:$0xf] %vm14247_vm8, %v19781_v0  ;;  %14677 = vst.msk [vmem:[%s19848_s14 + $0x6b4] sm:$0xf] %vm14247_vm8, %v19781_v0 }
 0x5b8   : > { %14678 = vst.msk [vmem:[%s19848_s14 + $0x6b8] sm:$0xf] %vm14247_vm8, %v19781_v0  ;;  %14679 = vst.msk [vmem:[%s19848_s14 + $0x6bc] sm:$0xf] %vm14247_vm8, %v19781_v0 }
 0x5b9   : > { %14680 = vst.msk [vmem:[%s19848_s14 + $0x6c0] sm:$0xf] %vm14247_vm8, %v19781_v0  ;;  %14681 = vst.msk [vmem:[%s19848_s14 + $0x6c4] sm:$0xf] %vm14247_vm8, %v19781_v0 }
 0x5ba   : > { %14682 = vst.msk [vmem:[%s19848_s14 + $0x6c8] sm:$0xf] %vm14247_vm8, %v19781_v0  ;;  %14683 = vst.msk [vmem:[%s19848_s14 + $0x6cc] sm:$0xf] %vm14247_vm8, %v19781_v0 }
 0x5bb   : > { %14684 = vst.msk [vmem:[%s19848_s14 + $0x6d0] sm:$0xf] %vm14247_vm8, %v19781_v0  ;;  %14685 = vst.msk [vmem:[%s19848_s14 + $0x6d4] sm:$0xf] %vm14247_vm8, %v19781_v0 }
 0x5bc   : > { %14686 = vst.msk [vmem:[%s19848_s14 + $0x6d8] sm:$0xf] %vm14247_vm8, %v19781_v0  ;;  %14687 = vst.msk [vmem:[%s19848_s14 + $0x6dc] sm:$0xf] %vm14247_vm8, %v19781_v0 }
 0x5bd   : > { %14688 = vst.msk [vmem:[%s19848_s14 + $0x6e0] sm:$0xf] %vm14247_vm8, %v19781_v0  ;;  %14689 = vst.msk [vmem:[%s19848_s14 + $0x6e4] sm:$0xf] %vm14247_vm8, %v19781_v0 }
 0x5be   : > { %14690 = vst.msk [vmem:[%s19848_s14 + $0x6e8] sm:$0xf] %vm14247_vm8, %v19781_v0  ;;  %14691 = vst.msk [vmem:[%s19848_s14 + $0x6ec] sm:$0xf] %vm14247_vm8, %v19781_v0 }
 0x5bf   : > { %14692 = vst.msk [vmem:[%s19848_s14 + $0x6f0] sm:$0xf] %vm14247_vm8, %v19781_v0  ;;  %14693 = vst.msk [vmem:[%s19848_s14 + $0x6f4] sm:$0xf] %vm14247_vm8, %v19781_v0 }
 0x5c0   : > { %14694 = vst.msk [vmem:[%s19848_s14 + $0x6f8] sm:$0xf] %vm14247_vm8, %v19781_v0  ;;  %14695 = vst.msk [vmem:[%s19848_s14 + $0x6fc] sm:$0xf] %vm14247_vm8, %v19781_v0 }
 0x5c1   : > { %14696 = vst.msk [vmem:[%s19848_s14 + $0x700] sm:$0xf] %vm14247_vm8, %v19781_v0  ;;  %14697 = vst.msk [vmem:[%s19848_s14 + $0x704] sm:$0xf] %vm14247_vm8, %v19781_v0 }
 0x5c2   : > { %14698 = vst.msk [vmem:[%s19848_s14 + $0x708] sm:$0xf] %vm14247_vm8, %v19781_v0  ;;  %14699 = vst.msk [vmem:[%s19848_s14 + $0x70c] sm:$0xf] %vm14247_vm8, %v19781_v0 }
 0x5c3   : > { %14700 = vst.msk [vmem:[%s19848_s14 + $0x710] sm:$0xf] %vm14247_vm8, %v19781_v0  ;;  %14701 = vst.msk [vmem:[%s19848_s14 + $0x714] sm:$0xf] %vm14247_vm8, %v19781_v0 }
 0x5c4   : > { %14702 = vst.msk [vmem:[%s19848_s14 + $0x718] sm:$0xf] %vm14247_vm8, %v19781_v0  ;;  %14703 = vst.msk [vmem:[%s19848_s14 + $0x71c] sm:$0xf] %vm14247_vm8, %v19781_v0 }
 0x5c5   : > { %14704 = vst.msk [vmem:[%s19848_s14 + $0x720] sm:$0xf] %vm14247_vm8, %v19781_v0  ;;  %14705 = vst.msk [vmem:[%s19848_s14 + $0x724] sm:$0xf] %vm14247_vm8, %v19781_v0 }
 0x5c6   : > { %14706 = vst.msk [vmem:[%s19848_s14 + $0x728] sm:$0xf] %vm14247_vm8, %v19781_v0  ;;  %14707 = vst.msk [vmem:[%s19848_s14 + $0x72c] sm:$0xf] %vm14247_vm8, %v19781_v0 }
 0x5c7   : > { %14708 = vst.msk [vmem:[%s19848_s14 + $0x730] sm:$0xf] %vm14247_vm8, %v19781_v0  ;;  %14709 = vst.msk [vmem:[%s19848_s14 + $0x734] sm:$0xf] %vm14247_vm8, %v19781_v0 }
 0x5c8   : > { %14710 = vst.msk [vmem:[%s19848_s14 + $0x738] sm:$0xf] %vm14247_vm8, %v19781_v0  ;;  %14711 = vst.msk [vmem:[%s19848_s14 + $0x73c] sm:$0xf] %vm14247_vm8, %v19781_v0 }
 0x5c9   : > { %14712 = vst.msk [vmem:[%s19848_s14 + $0x740] sm:$0xf] %vm14247_vm8, %v19781_v0  ;;  %14713 = vst.msk [vmem:[%s19848_s14 + $0x744] sm:$0xf] %vm14247_vm8, %v19781_v0 }
 0x5ca   : > { %14714 = vst.msk [vmem:[%s19848_s14 + $0x748] sm:$0xf] %vm14247_vm8, %v19781_v0  ;;  %14715 = vst.msk [vmem:[%s19848_s14 + $0x74c] sm:$0xf] %vm14247_vm8, %v19781_v0 }
 0x5cb   : > { %14716 = vst.msk [vmem:[%s19848_s14 + $0x750] sm:$0xf] %vm14247_vm8, %v19781_v0  ;;  %14717 = vst.msk [vmem:[%s19848_s14 + $0x754] sm:$0xf] %vm14247_vm8, %v19781_v0 }
 0x5cc   : > { %14718 = vst.msk [vmem:[%s19848_s14 + $0x758] sm:$0xf] %vm14247_vm8, %v19781_v0  ;;  %14719 = vst.msk [vmem:[%s19848_s14 + $0x75c] sm:$0xf] %vm14247_vm8, %v19781_v0 }
 0x5cd   : > { %14720 = vst.msk [vmem:[%s19848_s14 + $0x760] sm:$0xf] %vm14247_vm8, %v19781_v0  ;;  %14721 = vst.msk [vmem:[%s19848_s14 + $0x764] sm:$0xf] %vm14247_vm8, %v19781_v0 }
 0x5ce   : > { %14722 = vst.msk [vmem:[%s19848_s14 + $0x768] sm:$0xf] %vm14247_vm8, %v19781_v0  ;;  %14723 = vst.msk [vmem:[%s19848_s14 + $0x76c] sm:$0xf] %vm14247_vm8, %v19781_v0 }
 0x5cf   : > { %14724 = vst.msk [vmem:[%s19848_s14 + $0x770] sm:$0xf] %vm14247_vm8, %v19781_v0  ;;  %14725 = vst.msk [vmem:[%s19848_s14 + $0x774] sm:$0xf] %vm14247_vm8, %v19781_v0 }
 0x5d0   : > { %14726 = vst.msk [vmem:[%s19848_s14 + $0x778] sm:$0xf] %vm14247_vm8, %v19781_v0  ;;  %14727 = vst.msk [vmem:[%s19848_s14 + $0x77c] sm:$0xf] %vm14247_vm8, %v19781_v0 }
 0x5d1   : > { %14728 = vst.msk [vmem:[%s19848_s14 + $0x780] sm:$0xf] %vm14247_vm8, %v19781_v0  ;;  %14729 = vst.msk [vmem:[%s19848_s14 + $0x784] sm:$0xf] %vm14247_vm8, %v19781_v0 }
 0x5d2   : > { %14730 = vst.msk [vmem:[%s19848_s14 + $0x788] sm:$0xf] %vm14247_vm8, %v19781_v0  ;;  %14731 = vst.msk [vmem:[%s19848_s14 + $0x78c] sm:$0xf] %vm14247_vm8, %v19781_v0 }
 0x5d3   : > { %14732 = vst.msk [vmem:[%s19848_s14 + $0x790] sm:$0xf] %vm14247_vm8, %v19781_v0  ;;  %14733 = vst.msk [vmem:[%s19848_s14 + $0x794] sm:$0xf] %vm14247_vm8, %v19781_v0 }
 0x5d4   : > { %14734 = vst.msk [vmem:[%s19848_s14 + $0x798] sm:$0xf] %vm14247_vm8, %v19781_v0  ;;  %14735 = vst.msk [vmem:[%s19848_s14 + $0x79c] sm:$0xf] %vm14247_vm8, %v19781_v0 }
 0x5d5   : > { %14736 = vst.msk [vmem:[%s19848_s14 + $0x7a0] sm:$0xf] %vm14247_vm8, %v19781_v0  ;;  %14737 = vst.msk [vmem:[%s19848_s14 + $0x7a4] sm:$0xf] %vm14247_vm8, %v19781_v0 }
 0x5d6   : > { %14738 = vst.msk [vmem:[%s19848_s14 + $0x7a8] sm:$0xf] %vm14247_vm8, %v19781_v0  ;;  %14739 = vst.msk [vmem:[%s19848_s14 + $0x7ac] sm:$0xf] %vm14247_vm8, %v19781_v0 }
 0x5d7   : > { %14740 = vst.msk [vmem:[%s19848_s14 + $0x7b0] sm:$0xf] %vm14247_vm8, %v19781_v0  ;;  %14741 = vst.msk [vmem:[%s19848_s14 + $0x7b4] sm:$0xf] %vm14247_vm8, %v19781_v0 }
 0x5d8   : > { %14742 = vst.msk [vmem:[%s19848_s14 + $0x7b8] sm:$0xf] %vm14247_vm8, %v19781_v0  ;;  %14743 = vst.msk [vmem:[%s19848_s14 + $0x7bc] sm:$0xf] %vm14247_vm8, %v19781_v0 }
 0x5d9   : > { %14744 = vst.msk [vmem:[%s19848_s14 + $0x7c0] sm:$0xf] %vm14247_vm8, %v19781_v0  ;;  %14745 = vst.msk [vmem:[%s19848_s14 + $0x7c4] sm:$0xf] %vm14247_vm8, %v19781_v0 }
 0x5da   : > { %14746 = vst.msk [vmem:[%s19848_s14 + $0x7c8] sm:$0xf] %vm14247_vm8, %v19781_v0  ;;  %14747 = vst.msk [vmem:[%s19848_s14 + $0x7cc] sm:$0xf] %vm14247_vm8, %v19781_v0 }
 0x5db   : > { %14748 = vst.msk [vmem:[%s19848_s14 + $0x7d0] sm:$0xf] %vm14247_vm8, %v19781_v0  ;;  %14749 = vst.msk [vmem:[%s19848_s14 + $0x7d4] sm:$0xf] %vm14247_vm8, %v19781_v0 }
 0x5dc   : > { %14750 = vst.msk [vmem:[%s19848_s14 + $0x7d8] sm:$0xf] %vm14247_vm8, %v19781_v0  ;;  %14751 = vst.msk [vmem:[%s19848_s14 + $0x7dc] sm:$0xf] %vm14247_vm8, %v19781_v0 }
 0x5dd   : > { %14752 = vst.msk [vmem:[%s19848_s14 + $0x7e0] sm:$0xf] %vm14247_vm8, %v19781_v0  ;;  %14753 = vst.msk [vmem:[%s19848_s14 + $0x7e4] sm:$0xf] %vm14247_vm8, %v19781_v0 }
 0x5de   : > { %14754 = vst.msk [vmem:[%s19848_s14 + $0x7e8] sm:$0xf] %vm14247_vm8, %v19781_v0  ;;  %14755 = vst.msk [vmem:[%s19848_s14 + $0x7ec] sm:$0xf] %vm14247_vm8, %v19781_v0 }
 0x5df   : > { %14756 = vst.msk [vmem:[%s19848_s14 + $0x7f0] sm:$0xf] %vm14247_vm8, %v19781_v0  ;;  %14757 = vst.msk [vmem:[%s19848_s14 + $0x7f4] sm:$0xf] %vm14247_vm8, %v19781_v0 }
 0x5e0   : > { %14758 = vst.msk [vmem:[%s19848_s14 + $0x7f8] sm:$0xf] %vm14247_vm8, %v19781_v0  ;;  %14759 = vst.msk [vmem:[%s19848_s14 + $0x7fc] sm:$0xf] %vm14247_vm8, %v19781_v0 }
 0x5e1   : > { %14760 = vst.msk [vmem:[%s19848_s14 + $0x800] sm:$0xf] %vm14247_vm8, %v19781_v0  ;;  %14761 = vst.msk [vmem:[%s19848_s14 + $0x804] sm:$0xf] %vm14247_vm8, %v19781_v0 }
 0x5e2   : > { %14762 = vst.msk [vmem:[%s19848_s14 + $0x808] sm:$0xf] %vm14247_vm8, %v19781_v0  ;;  %14763 = vst.msk [vmem:[%s19848_s14 + $0x80c] sm:$0xf] %vm14247_vm8, %v19781_v0 }
 0x5e3   : > { %14764 = vst.msk [vmem:[%s19848_s14 + $0x810] sm:$0xf] %vm14247_vm8, %v19781_v0  ;;  %14765 = vst.msk [vmem:[%s19848_s14 + $0x814] sm:$0xf] %vm14247_vm8, %v19781_v0 }
 0x5e4   : > { %14766 = vst.msk [vmem:[%s19848_s14 + $0x818] sm:$0xf] %vm14247_vm8, %v19781_v0  ;;  %14767 = vst.msk [vmem:[%s19848_s14 + $0x81c] sm:$0xf] %vm14247_vm8, %v19781_v0 }
 0x5e5   : > { %14768 = vst.msk [vmem:[%s19848_s14 + $0x820] sm:$0xf] %vm14247_vm8, %v19781_v0  ;;  %14769 = vst.msk [vmem:[%s19848_s14 + $0x824] sm:$0xf] %vm14247_vm8, %v19781_v0 }
 0x5e6   : > { %14770 = vst.msk [vmem:[%s19848_s14 + $0x828] sm:$0xf] %vm14247_vm8, %v19781_v0  ;;  %14771 = vst.msk [vmem:[%s19848_s14 + $0x82c] sm:$0xf] %vm14247_vm8, %v19781_v0 }
 0x5e7   : > { %14772 = vst.msk [vmem:[%s19848_s14 + $0x830] sm:$0xf] %vm14247_vm8, %v19781_v0  ;;  %14773 = vst.msk [vmem:[%s19848_s14 + $0x834] sm:$0xf] %vm14247_vm8, %v19781_v0 }
 0x5e8   : > { %14774 = vst.msk [vmem:[%s19848_s14 + $0x838] sm:$0xf] %vm14247_vm8, %v19781_v0  ;;  %14775 = vst.msk [vmem:[%s19848_s14 + $0x83c] sm:$0xf] %vm14247_vm8, %v19781_v0 }
 0x5e9   : > { %14776 = vst.msk [vmem:[%s19848_s14 + $0x840] sm:$0xf] %vm14247_vm8, %v19781_v0  ;;  %14777 = vst.msk [vmem:[%s19848_s14 + $0x844] sm:$0xf] %vm14247_vm8, %v19781_v0 }
 0x5ea   : > { %14778 = vst.msk [vmem:[%s19848_s14 + $0x848] sm:$0xf] %vm14247_vm8, %v19781_v0  ;;  %14779 = vst.msk [vmem:[%s19848_s14 + $0x84c] sm:$0xf] %vm14247_vm8, %v19781_v0 }
 0x5eb   : > { %14780 = vst.msk [vmem:[%s19848_s14 + $0x850] sm:$0xf] %vm14247_vm8, %v19781_v0  ;;  %14781 = vst.msk [vmem:[%s19848_s14 + $0x854] sm:$0xf] %vm14247_vm8, %v19781_v0 }
 0x5ec   : > { %14782 = vst.msk [vmem:[%s19848_s14 + $0x858] sm:$0xf] %vm14247_vm8, %v19781_v0  ;;  %14783 = vst.msk [vmem:[%s19848_s14 + $0x85c] sm:$0xf] %vm14247_vm8, %v19781_v0 }
 0x5ed   : > { %14784 = vst.msk [vmem:[%s19848_s14 + $0x860] sm:$0xf] %vm14247_vm8, %v19781_v0  ;;  %14785 = vst.msk [vmem:[%s19848_s14 + $0x864] sm:$0xf] %vm14247_vm8, %v19781_v0 }
 0x5ee   : > { %14786 = vst.msk [vmem:[%s19848_s14 + $0x868] sm:$0xf] %vm14247_vm8, %v19781_v0  ;;  %14787 = vst.msk [vmem:[%s19848_s14 + $0x86c] sm:$0xf] %vm14247_vm8, %v19781_v0 }
 0x5ef   : > { %14788 = vst.msk [vmem:[%s19848_s14 + $0x870] sm:$0xf] %vm14247_vm8, %v19781_v0  ;;  %14789 = vst.msk [vmem:[%s19848_s14 + $0x874] sm:$0xf] %vm14247_vm8, %v19781_v0 }
 0x5f0   : > { %14790 = vst.msk [vmem:[%s19848_s14 + $0x878] sm:$0xf] %vm14247_vm8, %v19781_v0  ;;  %14791 = vst.msk [vmem:[%s19848_s14 + $0x87c] sm:$0xf] %vm14247_vm8, %v19781_v0 }
 0x5f1   : > { %14792 = vst.msk [vmem:[%s19848_s14 + $0x880] sm:$0xf] %vm14247_vm8, %v19781_v0  ;;  %14793 = vst.msk [vmem:[%s19848_s14 + $0x884] sm:$0xf] %vm14247_vm8, %v19781_v0 }
 0x5f2   : > { %14794 = vst.msk [vmem:[%s19848_s14 + $0x888] sm:$0xf] %vm14247_vm8, %v19781_v0  ;;  %14795 = vst.msk [vmem:[%s19848_s14 + $0x88c] sm:$0xf] %vm14247_vm8, %v19781_v0 }
 0x5f3   : > { %14796 = vst.msk [vmem:[%s19848_s14 + $0x890] sm:$0xf] %vm14247_vm8, %v19781_v0  ;;  %14797 = vst.msk [vmem:[%s19848_s14 + $0x894] sm:$0xf] %vm14247_vm8, %v19781_v0 }
 0x5f4   : > { %14798 = vst.msk [vmem:[%s19848_s14 + $0x898] sm:$0xf] %vm14247_vm8, %v19781_v0  ;;  %14799 = vst.msk [vmem:[%s19848_s14 + $0x89c] sm:$0xf] %vm14247_vm8, %v19781_v0 }
 0x5f5   : > { %14800 = vst.msk [vmem:[%s19848_s14 + $0x8a0] sm:$0xf] %vm14247_vm8, %v19781_v0  ;;  %14801 = vst.msk [vmem:[%s19848_s14 + $0x8a4] sm:$0xf] %vm14247_vm8, %v19781_v0 }
 0x5f6   : > { %14802 = vst.msk [vmem:[%s19848_s14 + $0x8a8] sm:$0xf] %vm14247_vm8, %v19781_v0  ;;  %14803 = vst.msk [vmem:[%s19848_s14 + $0x8ac] sm:$0xf] %vm14247_vm8, %v19781_v0 }
 0x5f7   : > { %14804 = vst.msk [vmem:[%s19848_s14 + $0x8b0] sm:$0xf] %vm14247_vm8, %v19781_v0  ;;  %14805 = vst.msk [vmem:[%s19848_s14 + $0x8b4] sm:$0xf] %vm14247_vm8, %v19781_v0 }
 0x5f8   : > { %14806 = vst.msk [vmem:[%s19848_s14 + $0x8b8] sm:$0xf] %vm14247_vm8, %v19781_v0  ;;  %14807 = vst.msk [vmem:[%s19848_s14 + $0x8bc] sm:$0xf] %vm14247_vm8, %v19781_v0 }
 0x5f9   : > { %14808 = vst.msk [vmem:[%s19848_s14 + $0x8c0] sm:$0xf] %vm14247_vm8, %v19781_v0  ;;  %14809 = vst.msk [vmem:[%s19848_s14 + $0x8c4] sm:$0xf] %vm14247_vm8, %v19781_v0 }
 0x5fa   : > { %14810 = vst.msk [vmem:[%s19848_s14 + $0x8c8] sm:$0xf] %vm14247_vm8, %v19781_v0  ;;  %14811 = vst.msk [vmem:[%s19848_s14 + $0x8cc] sm:$0xf] %vm14247_vm8, %v19781_v0 }
 0x5fb   : > { %14812 = vst.msk [vmem:[%s19848_s14 + $0x8d0] sm:$0xf] %vm14247_vm8, %v19781_v0  ;;  %14813 = vst.msk [vmem:[%s19848_s14 + $0x8d4] sm:$0xf] %vm14247_vm8, %v19781_v0 }
 0x5fc   : > { %14814 = vst.msk [vmem:[%s19848_s14 + $0x8d8] sm:$0xf] %vm14247_vm8, %v19781_v0  ;;  %14815 = vst.msk [vmem:[%s19848_s14 + $0x8dc] sm:$0xf] %vm14247_vm8, %v19781_v0 }
 0x5fd   : > { %14816 = vst.msk [vmem:[%s19848_s14 + $0x8e0] sm:$0xf] %vm14247_vm8, %v19781_v0  ;;  %14817 = vst.msk [vmem:[%s19848_s14 + $0x8e4] sm:$0xf] %vm14247_vm8, %v19781_v0 }
 0x5fe   : > { %14818 = vst.msk [vmem:[%s19848_s14 + $0x8e8] sm:$0xf] %vm14247_vm8, %v19781_v0  ;;  %14819 = vst.msk [vmem:[%s19848_s14 + $0x8ec] sm:$0xf] %vm14247_vm8, %v19781_v0 }
 0x5ff   : > { %14820 = vst.msk [vmem:[%s19848_s14 + $0x8f0] sm:$0xf] %vm14247_vm8, %v19781_v0  ;;  %14821 = vst.msk [vmem:[%s19848_s14 + $0x8f4] sm:$0xf] %vm14247_vm8, %v19781_v0 }
 0x600   : > { %14822 = vst.msk [vmem:[%s19848_s14 + $0x8f8] sm:$0xf] %vm14247_vm8, %v19781_v0  ;;  %14823 = vst.msk [vmem:[%s19848_s14 + $0x8fc] sm:$0xf] %vm14247_vm8, %v19781_v0 }
 0x601   : > { %14824 = vst.msk [vmem:[%s19848_s14 + $0x900] sm:$0xf] %vm14247_vm8, %v19781_v0  ;;  %14825 = vst.msk [vmem:[%s19848_s14 + $0x904] sm:$0xf] %vm14247_vm8, %v19781_v0 }
 0x602   : > { %14826 = vst.msk [vmem:[%s19848_s14 + $0x908] sm:$0xf] %vm14247_vm8, %v19781_v0  ;;  %14827 = vst.msk [vmem:[%s19848_s14 + $0x90c] sm:$0xf] %vm14247_vm8, %v19781_v0 }
 0x603   : > { %14828 = vst.msk [vmem:[%s19848_s14 + $0x910] sm:$0xf] %vm14247_vm8, %v19781_v0  ;;  %14829 = vst.msk [vmem:[%s19848_s14 + $0x914] sm:$0xf] %vm14247_vm8, %v19781_v0 }
 0x604   : > { %14830 = vst.msk [vmem:[%s19848_s14 + $0x918] sm:$0xf] %vm14247_vm8, %v19781_v0  ;;  %14831 = vst.msk [vmem:[%s19848_s14 + $0x91c] sm:$0xf] %vm14247_vm8, %v19781_v0 }
 0x605   : > { %14832 = vst.msk [vmem:[%s19848_s14 + $0x920] sm:$0xf] %vm14247_vm8, %v19781_v0  ;;  %14833 = vst.msk [vmem:[%s19848_s14 + $0x924] sm:$0xf] %vm14247_vm8, %v19781_v0 }
 0x606   : > { %14834 = vst.msk [vmem:[%s19848_s14 + $0x928] sm:$0xf] %vm14247_vm8, %v19781_v0  ;;  %14835 = vst.msk [vmem:[%s19848_s14 + $0x92c] sm:$0xf] %vm14247_vm8, %v19781_v0 }
 0x607   : > { %14836 = vst.msk [vmem:[%s19848_s14 + $0x930] sm:$0xf] %vm14247_vm8, %v19781_v0  ;;  %14837 = vst.msk [vmem:[%s19848_s14 + $0x934] sm:$0xf] %vm14247_vm8, %v19781_v0 }
 0x608   : > { %14838 = vst.msk [vmem:[%s19848_s14 + $0x938] sm:$0xf] %vm14247_vm8, %v19781_v0  ;;  %14839 = vst.msk [vmem:[%s19848_s14 + $0x93c] sm:$0xf] %vm14247_vm8, %v19781_v0 }
 0x609   : > { %14840 = vst.msk [vmem:[%s19848_s14 + $0x940] sm:$0xf] %vm14247_vm8, %v19781_v0  ;;  %14841 = vst.msk [vmem:[%s19848_s14 + $0x944] sm:$0xf] %vm14247_vm8, %v19781_v0 }
 0x60a   : > { %14842 = vst.msk [vmem:[%s19848_s14 + $0x948] sm:$0xf] %vm14247_vm8, %v19781_v0  ;;  %14843 = vst.msk [vmem:[%s19848_s14 + $0x94c] sm:$0xf] %vm14247_vm8, %v19781_v0 }
 0x60b   : > { %14844 = vst.msk [vmem:[%s19848_s14 + $0x950] sm:$0xf] %vm14247_vm8, %v19781_v0  ;;  %14845 = vst.msk [vmem:[%s19848_s14 + $0x954] sm:$0xf] %vm14247_vm8, %v19781_v0 }
 0x60c   : > { %14846 = vst.msk [vmem:[%s19848_s14 + $0x958] sm:$0xf] %vm14247_vm8, %v19781_v0  ;;  %14847 = vst.msk [vmem:[%s19848_s14 + $0x95c] sm:$0xf] %vm14247_vm8, %v19781_v0 }
 0x60d   : > { %14848 = vst.msk [vmem:[%s19848_s14 + $0x960] sm:$0xf] %vm14247_vm8, %v19781_v0  ;;  %14849 = vst.msk [vmem:[%s19848_s14 + $0x964] sm:$0xf] %vm14247_vm8, %v19781_v0 }
 0x60e   : > { %14850 = vst.msk [vmem:[%s19848_s14 + $0x968] sm:$0xf] %vm14247_vm8, %v19781_v0  ;;  %14851 = vst.msk [vmem:[%s19848_s14 + $0x96c] sm:$0xf] %vm14247_vm8, %v19781_v0 }
 0x60f   : > { %14852 = vst.msk [vmem:[%s19848_s14 + $0x970] sm:$0xf] %vm14247_vm8, %v19781_v0  ;;  %14853 = vst.msk [vmem:[%s19848_s14 + $0x974] sm:$0xf] %vm14247_vm8, %v19781_v0 }
 0x610   : > { %14854 = vst.msk [vmem:[%s19848_s14 + $0x978] sm:$0xf] %vm14247_vm8, %v19781_v0  ;;  %14855 = vst.msk [vmem:[%s19848_s14 + $0x97c] sm:$0xf] %vm14247_vm8, %v19781_v0 }
 0x611   : > { %14856 = vst.msk [vmem:[%s19848_s14 + $0x980] sm:$0xf] %vm14247_vm8, %v19781_v0  ;;  %14857 = vst.msk [vmem:[%s19848_s14 + $0x984] sm:$0xf] %vm14247_vm8, %v19781_v0 }
 0x612   : > { %14858 = vst.msk [vmem:[%s19848_s14 + $0x988] sm:$0xf] %vm14247_vm8, %v19781_v0  ;;  %14859 = vst.msk [vmem:[%s19848_s14 + $0x98c] sm:$0xf] %vm14247_vm8, %v19781_v0 }
 0x613   : > { %14860 = vst.msk [vmem:[%s19848_s14 + $0x990] sm:$0xf] %vm14247_vm8, %v19781_v0  ;;  %14861 = vst.msk [vmem:[%s19848_s14 + $0x994] sm:$0xf] %vm14247_vm8, %v19781_v0 }
 0x614   : > { %14862 = vst.msk [vmem:[%s19848_s14 + $0x998] sm:$0xf] %vm14247_vm8, %v19781_v0  ;;  %14863 = vst.msk [vmem:[%s19848_s14 + $0x99c] sm:$0xf] %vm14247_vm8, %v19781_v0 }
 0x615   : > { %14864 = vst.msk [vmem:[%s19848_s14 + $0x9a0] sm:$0xf] %vm14247_vm8, %v19781_v0  ;;  %14865 = vst.msk [vmem:[%s19848_s14 + $0x9a4] sm:$0xf] %vm14247_vm8, %v19781_v0 }
 0x616   : > { %14866 = vst.msk [vmem:[%s19848_s14 + $0x9a8] sm:$0xf] %vm14247_vm8, %v19781_v0  ;;  %14867 = vst.msk [vmem:[%s19848_s14 + $0x9ac] sm:$0xf] %vm14247_vm8, %v19781_v0 }
 0x617   : > { %14868 = vst.msk [vmem:[%s19848_s14 + $0x9b0] sm:$0xf] %vm14247_vm8, %v19781_v0  ;;  %14869 = vst.msk [vmem:[%s19848_s14 + $0x9b4] sm:$0xf] %vm14247_vm8, %v19781_v0 }
 0x618   : > { %14870 = vst.msk [vmem:[%s19848_s14 + $0x9b8] sm:$0xf] %vm14247_vm8, %v19781_v0  ;;  %14871 = vst.msk [vmem:[%s19848_s14 + $0x9bc] sm:$0xf] %vm14247_vm8, %v19781_v0 }
 0x619   : > { %14872 = vst.msk [vmem:[%s19848_s14 + $0x9c0] sm:$0xf] %vm14247_vm8, %v19781_v0  ;;  %14873 = vst.msk [vmem:[%s19848_s14 + $0x9c4] sm:$0xf] %vm14247_vm8, %v19781_v0 }
 0x61a   : > { %14874 = vst.msk [vmem:[%s19848_s14 + $0x9c8] sm:$0xf] %vm14247_vm8, %v19781_v0  ;;  %14875 = vst.msk [vmem:[%s19848_s14 + $0x9cc] sm:$0xf] %vm14247_vm8, %v19781_v0 }
 0x61b   : > { %14876 = vst.msk [vmem:[%s19848_s14 + $0x9d0] sm:$0xf] %vm14247_vm8, %v19781_v0  ;;  %14877 = vst.msk [vmem:[%s19848_s14 + $0x9d4] sm:$0xf] %vm14247_vm8, %v19781_v0 }
 0x61c   : > { %14878 = vst.msk [vmem:[%s19848_s14 + $0x9d8] sm:$0xf] %vm14247_vm8, %v19781_v0  ;;  %14879 = vst.msk [vmem:[%s19848_s14 + $0x9dc] sm:$0xf] %vm14247_vm8, %v19781_v0 }
 0x61d   : > { %14880 = vst.msk [vmem:[%s19848_s14 + $0x9e0] sm:$0xf] %vm14247_vm8, %v19781_v0  ;;  %14881 = vst.msk [vmem:[%s19848_s14 + $0x9e4] sm:$0xf] %vm14247_vm8, %v19781_v0 }
 0x61e   : > { %14882 = vst.msk [vmem:[%s19848_s14 + $0x9e8] sm:$0xf] %vm14247_vm8, %v19781_v0  ;;  %14883 = vst.msk [vmem:[%s19848_s14 + $0x9ec] sm:$0xf] %vm14247_vm8, %v19781_v0 }
 0x61f   : > { %14884 = vst.msk [vmem:[%s19848_s14 + $0x9f0] sm:$0xf] %vm14247_vm8, %v19781_v0  ;;  %14885 = vst.msk [vmem:[%s19848_s14 + $0x9f4] sm:$0xf] %vm14247_vm8, %v19781_v0 }
 0x620   : > { %14886 = vst.msk [vmem:[%s19848_s14 + $0x9f8] sm:$0xf] %vm14247_vm8, %v19781_v0  ;;  %14887 = vst.msk [vmem:[%s19848_s14 + $0x9fc] sm:$0xf] %vm14247_vm8, %v19781_v0 }
 0x621   : > { %14888 = vst.msk [vmem:[%s19848_s14 + $0xa00] sm:$0xf] %vm14247_vm8, %v19781_v0  ;;  %14889 = vst.msk [vmem:[%s19848_s14 + $0xa04] sm:$0xf] %vm14247_vm8, %v19781_v0 }
 0x622   : > { %14890 = vst.msk [vmem:[%s19848_s14 + $0xa08] sm:$0xf] %vm14247_vm8, %v19781_v0  ;;  %14891 = vst.msk [vmem:[%s19848_s14 + $0xa0c] sm:$0xf] %vm14247_vm8, %v19781_v0 }
 0x623   : > { %14892 = vst.msk [vmem:[%s19848_s14 + $0xa10] sm:$0xf] %vm14247_vm8, %v19781_v0  ;;  %14893 = vst.msk [vmem:[%s19848_s14 + $0xa14] sm:$0xf] %vm14247_vm8, %v19781_v0 }
 0x624   : > { %14894 = vst.msk [vmem:[%s19848_s14 + $0xa18] sm:$0xf] %vm14247_vm8, %v19781_v0  ;;  %14895 = vst.msk [vmem:[%s19848_s14 + $0xa1c] sm:$0xf] %vm14247_vm8, %v19781_v0 }
 0x625   : > { %14896 = vst.msk [vmem:[%s19848_s14 + $0xa20] sm:$0xf] %vm14247_vm8, %v19781_v0  ;;  %14897 = vst.msk [vmem:[%s19848_s14 + $0xa24] sm:$0xf] %vm14247_vm8, %v19781_v0 }
 0x626   : > { %14898 = vst.msk [vmem:[%s19848_s14 + $0xa28] sm:$0xf] %vm14247_vm8, %v19781_v0  ;;  %14899 = vst.msk [vmem:[%s19848_s14 + $0xa2c] sm:$0xf] %vm14247_vm8, %v19781_v0 }
 0x627   : > { %14900 = vst.msk [vmem:[%s19848_s14 + $0xa30] sm:$0xf] %vm14247_vm8, %v19781_v0  ;;  %14901 = vst.msk [vmem:[%s19848_s14 + $0xa34] sm:$0xf] %vm14247_vm8, %v19781_v0 }
 0x628   : > { %14902 = vst.msk [vmem:[%s19848_s14 + $0xa38] sm:$0xf] %vm14247_vm8, %v19781_v0  ;;  %14903 = vst.msk [vmem:[%s19848_s14 + $0xa3c] sm:$0xf] %vm14247_vm8, %v19781_v0 }
 0x629   : > { %14904 = vst.msk [vmem:[%s19848_s14 + $0xa40] sm:$0xf] %vm14247_vm8, %v19781_v0  ;;  %14905 = vst.msk [vmem:[%s19848_s14 + $0xa44] sm:$0xf] %vm14247_vm8, %v19781_v0 }
 0x62a   : > { %14906 = vst.msk [vmem:[%s19848_s14 + $0xa48] sm:$0xf] %vm14247_vm8, %v19781_v0  ;;  %14907 = vst.msk [vmem:[%s19848_s14 + $0xa4c] sm:$0xf] %vm14247_vm8, %v19781_v0 }
 0x62b   : > { %14908 = vst.msk [vmem:[%s19848_s14 + $0xa50] sm:$0xf] %vm14247_vm8, %v19781_v0  ;;  %14909 = vst.msk [vmem:[%s19848_s14 + $0xa54] sm:$0xf] %vm14247_vm8, %v19781_v0 }
 0x62c   : > { %14910 = vst.msk [vmem:[%s19848_s14 + $0xa58] sm:$0xf] %vm14247_vm8, %v19781_v0  ;;  %14911 = vst.msk [vmem:[%s19848_s14 + $0xa5c] sm:$0xf] %vm14247_vm8, %v19781_v0 }
 0x62d   : > { %14912 = vst.msk [vmem:[%s19848_s14 + $0xa60] sm:$0xf] %vm14247_vm8, %v19781_v0  ;;  %14913 = vst.msk [vmem:[%s19848_s14 + $0xa64] sm:$0xf] %vm14247_vm8, %v19781_v0 }
 0x62e   : > { %14914 = vst.msk [vmem:[%s19848_s14 + $0xa68] sm:$0xf] %vm14247_vm8, %v19781_v0  ;;  %14915 = vst.msk [vmem:[%s19848_s14 + $0xa6c] sm:$0xf] %vm14247_vm8, %v19781_v0 }
 0x62f   : > { %14916 = vst.msk [vmem:[%s19848_s14 + $0xa70] sm:$0xf] %vm14247_vm8, %v19781_v0  ;;  %14917 = vst.msk [vmem:[%s19848_s14 + $0xa74] sm:$0xf] %vm14247_vm8, %v19781_v0 }
 0x630   : > { %14918 = vst.msk [vmem:[%s19848_s14 + $0xa78] sm:$0xf] %vm14247_vm8, %v19781_v0  ;;  %14919 = vst.msk [vmem:[%s19848_s14 + $0xa7c] sm:$0xf] %vm14247_vm8, %v19781_v0 }
 0x631   : > { %14920 = vst.msk [vmem:[%s19848_s14 + $0xa80] sm:$0xf] %vm14247_vm8, %v19781_v0  ;;  %14921 = vst.msk [vmem:[%s19848_s14 + $0xa84] sm:$0xf] %vm14247_vm8, %v19781_v0 }
 0x632   : > { %14922 = vst.msk [vmem:[%s19848_s14 + $0xa88] sm:$0xf] %vm14247_vm8, %v19781_v0  ;;  %14923 = vst.msk [vmem:[%s19848_s14 + $0xa8c] sm:$0xf] %vm14247_vm8, %v19781_v0 }
 0x633   : > { %14924 = vst.msk [vmem:[%s19848_s14 + $0xa90] sm:$0xf] %vm14247_vm8, %v19781_v0  ;;  %14925 = vst.msk [vmem:[%s19848_s14 + $0xa94] sm:$0xf] %vm14247_vm8, %v19781_v0 }
 0x634   : > { %14926 = vst.msk [vmem:[%s19848_s14 + $0xa98] sm:$0xf] %vm14247_vm8, %v19781_v0  ;;  %14927 = vst.msk [vmem:[%s19848_s14 + $0xa9c] sm:$0xf] %vm14247_vm8, %v19781_v0 }
 0x635   : > { %14928 = vst.msk [vmem:[%s19848_s14 + $0xaa0] sm:$0xf] %vm14247_vm8, %v19781_v0  ;;  %14929 = vst.msk [vmem:[%s19848_s14 + $0xaa4] sm:$0xf] %vm14247_vm8, %v19781_v0 }
 0x636   : > { %14930 = vst.msk [vmem:[%s19848_s14 + $0xaa8] sm:$0xf] %vm14247_vm8, %v19781_v0  ;;  %14931 = vst.msk [vmem:[%s19848_s14 + $0xaac] sm:$0xf] %vm14247_vm8, %v19781_v0 }
 0x637   : > { %14932 = vst.msk [vmem:[%s19848_s14 + $0xab0] sm:$0xf] %vm14247_vm8, %v19781_v0  ;;  %14933 = vst.msk [vmem:[%s19848_s14 + $0xab4] sm:$0xf] %vm14247_vm8, %v19781_v0 }
 0x638   : > { %14934 = vst.msk [vmem:[%s19848_s14 + $0xab8] sm:$0xf] %vm14247_vm8, %v19781_v0  ;;  %14935 = vst.msk [vmem:[%s19848_s14 + $0xabc] sm:$0xf] %vm14247_vm8, %v19781_v0 }
 0x639   : > { %14936 = vst.msk [vmem:[%s19848_s14 + $0xac0] sm:$0xf] %vm14247_vm8, %v19781_v0  ;;  %14937 = vst.msk [vmem:[%s19848_s14 + $0xac4] sm:$0xf] %vm14247_vm8, %v19781_v0 }
 0x63a   : > { %14938 = vst.msk [vmem:[%s19848_s14 + $0xac8] sm:$0xf] %vm14247_vm8, %v19781_v0  ;;  %14939 = vst.msk [vmem:[%s19848_s14 + $0xacc] sm:$0xf] %vm14247_vm8, %v19781_v0 }
 0x63b   : > { %14940 = vst.msk [vmem:[%s19848_s14 + $0xad0] sm:$0xf] %vm14247_vm8, %v19781_v0  ;;  %14941 = vst.msk [vmem:[%s19848_s14 + $0xad4] sm:$0xf] %vm14247_vm8, %v19781_v0 }
 0x63c   : > { %14942 = vst.msk [vmem:[%s19848_s14 + $0xad8] sm:$0xf] %vm14247_vm8, %v19781_v0  ;;  %14943 = vst.msk [vmem:[%s19848_s14 + $0xadc] sm:$0xf] %vm14247_vm8, %v19781_v0 }
 0x63d   : > { %14944 = vst.msk [vmem:[%s19848_s14 + $0xae0] sm:$0xf] %vm14247_vm8, %v19781_v0  ;;  %14945 = vst.msk [vmem:[%s19848_s14 + $0xae4] sm:$0xf] %vm14247_vm8, %v19781_v0 }
 0x63e   : > { %14946 = vst.msk [vmem:[%s19848_s14 + $0xae8] sm:$0xf] %vm14247_vm8, %v19781_v0  ;;  %14947 = vst.msk [vmem:[%s19848_s14 + $0xaec] sm:$0xf] %vm14247_vm8, %v19781_v0 }
 0x63f   : > { %14948 = vst.msk [vmem:[%s19848_s14 + $0xaf0] sm:$0xf] %vm14247_vm8, %v19781_v0  ;;  %14949 = vst.msk [vmem:[%s19848_s14 + $0xaf4] sm:$0xf] %vm14247_vm8, %v19781_v0 }
 0x640   : > { %14950 = vst.msk [vmem:[%s19848_s14 + $0xaf8] sm:$0xf] %vm14247_vm8, %v19781_v0  ;;  %14951 = vst.msk [vmem:[%s19848_s14 + $0xafc] sm:$0xf] %vm14247_vm8, %v19781_v0 }
 0x641   : > { %14952 = vst.msk [vmem:[%s19848_s14 + $0xb00] sm:$0xf] %vm14247_vm8, %v19781_v0  ;;  %14953 = vst.msk [vmem:[%s19848_s14 + $0xb04] sm:$0xf] %vm14247_vm8, %v19781_v0 }
 0x642   : > { %14954 = vst.msk [vmem:[%s19848_s14 + $0xb08] sm:$0xf] %vm14247_vm8, %v19781_v0  ;;  %14955 = vst.msk [vmem:[%s19848_s14 + $0xb0c] sm:$0xf] %vm14247_vm8, %v19781_v0 }
 0x643   : > { %14956 = vst.msk [vmem:[%s19848_s14 + $0xb10] sm:$0xf] %vm14247_vm8, %v19781_v0  ;;  %14957 = vst.msk [vmem:[%s19848_s14 + $0xb14] sm:$0xf] %vm14247_vm8, %v19781_v0 }
 0x644   : > { %14958 = vst.msk [vmem:[%s19848_s14 + $0xb18] sm:$0xf] %vm14247_vm8, %v19781_v0  ;;  %14959 = vst.msk [vmem:[%s19848_s14 + $0xb1c] sm:$0xf] %vm14247_vm8, %v19781_v0 }
 0x645   : > { %14960 = vst.msk [vmem:[%s19848_s14 + $0xb20] sm:$0xf] %vm14247_vm8, %v19781_v0  ;;  %14961 = vst.msk [vmem:[%s19848_s14 + $0xb24] sm:$0xf] %vm14247_vm8, %v19781_v0 }
 0x646   : > { %14962 = vst.msk [vmem:[%s19848_s14 + $0xb28] sm:$0xf] %vm14247_vm8, %v19781_v0  ;;  %14963 = vst.msk [vmem:[%s19848_s14 + $0xb2c] sm:$0xf] %vm14247_vm8, %v19781_v0 }
 0x647   : > { %14964 = vst.msk [vmem:[%s19848_s14 + $0xb30] sm:$0xf] %vm14247_vm8, %v19781_v0  ;;  %14965 = vst.msk [vmem:[%s19848_s14 + $0xb34] sm:$0xf] %vm14247_vm8, %v19781_v0 }
 0x648   : > { %14966 = vst.msk [vmem:[%s19848_s14 + $0xb38] sm:$0xf] %vm14247_vm8, %v19781_v0  ;;  %14967 = vst.msk [vmem:[%s19848_s14 + $0xb3c] sm:$0xf] %vm14247_vm8, %v19781_v0 }
 0x649   : > { %14968 = vst.msk [vmem:[%s19848_s14 + $0xb40] sm:$0xf] %vm14247_vm8, %v19781_v0  ;;  %14969 = vst.msk [vmem:[%s19848_s14 + $0xb44] sm:$0xf] %vm14247_vm8, %v19781_v0 }
 0x64a   : > { %14970 = vst.msk [vmem:[%s19848_s14 + $0xb48] sm:$0xf] %vm14247_vm8, %v19781_v0  ;;  %14971 = vst.msk [vmem:[%s19848_s14 + $0xb4c] sm:$0xf] %vm14247_vm8, %v19781_v0 }
 0x64b   : > { %14972 = vst.msk [vmem:[%s19848_s14 + $0xb50] sm:$0xf] %vm14247_vm8, %v19781_v0  ;;  %14973 = vst.msk [vmem:[%s19848_s14 + $0xb54] sm:$0xf] %vm14247_vm8, %v19781_v0 }
 0x64c   : > { %14974 = vst.msk [vmem:[%s19848_s14 + $0xb58] sm:$0xf] %vm14247_vm8, %v19781_v0  ;;  %14975 = vst.msk [vmem:[%s19848_s14 + $0xb5c] sm:$0xf] %vm14247_vm8, %v19781_v0 }
 0x64d   : > { %14976 = vst.msk [vmem:[%s19848_s14 + $0xb60] sm:$0xf] %vm14247_vm8, %v19781_v0  ;;  %14977 = vst.msk [vmem:[%s19848_s14 + $0xb64] sm:$0xf] %vm14247_vm8, %v19781_v0 }
 0x64e   : > { %14978 = vst.msk [vmem:[%s19848_s14 + $0xb68] sm:$0xf] %vm14247_vm8, %v19781_v0  ;;  %14979 = vst.msk [vmem:[%s19848_s14 + $0xb6c] sm:$0xf] %vm14247_vm8, %v19781_v0 }
 0x64f   : > { %14980 = vst.msk [vmem:[%s19848_s14 + $0xb70] sm:$0xf] %vm14247_vm8, %v19781_v0  ;;  %14981 = vst.msk [vmem:[%s19848_s14 + $0xb74] sm:$0xf] %vm14247_vm8, %v19781_v0 }
 0x650   : > { %14982 = vst.msk [vmem:[%s19848_s14 + $0xb78] sm:$0xf] %vm14247_vm8, %v19781_v0  ;;  %14983 = vst.msk [vmem:[%s19848_s14 + $0xb7c] sm:$0xf] %vm14247_vm8, %v19781_v0 }
 0x651   : > { %14984 = vst.msk [vmem:[%s19848_s14 + $0xb80] sm:$0xf] %vm14247_vm8, %v19781_v0  ;;  %14985 = vst.msk [vmem:[%s19848_s14 + $0xb84] sm:$0xf] %vm14247_vm8, %v19781_v0 }
 0x652   : > { %14986 = vst.msk [vmem:[%s19848_s14 + $0xb88] sm:$0xf] %vm14247_vm8, %v19781_v0  ;;  %14987 = vst.msk [vmem:[%s19848_s14 + $0xb8c] sm:$0xf] %vm14247_vm8, %v19781_v0 }
 0x653   : > { %14988 = vst.msk [vmem:[%s19848_s14 + $0xb90] sm:$0xf] %vm14247_vm8, %v19781_v0  ;;  %14989 = vst.msk [vmem:[%s19848_s14 + $0xb94] sm:$0xf] %vm14247_vm8, %v19781_v0 }
 0x654   : > { %14990 = vst.msk [vmem:[%s19848_s14 + $0xb98] sm:$0xf] %vm14247_vm8, %v19781_v0  ;;  %14991 = vst.msk [vmem:[%s19848_s14 + $0xb9c] sm:$0xf] %vm14247_vm8, %v19781_v0 }
 0x655   : > { %14992 = vst.msk [vmem:[%s19848_s14 + $0xba0] sm:$0xf] %vm14247_vm8, %v19781_v0  ;;  %14993 = vst.msk [vmem:[%s19848_s14 + $0xba4] sm:$0xf] %vm14247_vm8, %v19781_v0 }
 0x656   : > { %14994 = vst.msk [vmem:[%s19848_s14 + $0xba8] sm:$0xf] %vm14247_vm8, %v19781_v0  ;;  %14995 = vst.msk [vmem:[%s19848_s14 + $0xbac] sm:$0xf] %vm14247_vm8, %v19781_v0 }
 0x657   : > { %14996 = vst.msk [vmem:[%s19848_s14 + $0xbb0] sm:$0xf] %vm14247_vm8, %v19781_v0  ;;  %14997 = vst.msk [vmem:[%s19848_s14 + $0xbb4] sm:$0xf] %vm14247_vm8, %v19781_v0 }
 0x658   : > { %14998 = vst.msk [vmem:[%s19848_s14 + $0xbb8] sm:$0xf] %vm14247_vm8, %v19781_v0  ;;  %14999 = vst.msk [vmem:[%s19848_s14 + $0xbbc] sm:$0xf] %vm14247_vm8, %v19781_v0 }
 0x659   : > { %15000 = vst.msk [vmem:[%s19848_s14 + $0xbc0] sm:$0xf] %vm14247_vm8, %v19781_v0  ;;  %15001 = vst.msk [vmem:[%s19848_s14 + $0xbc4] sm:$0xf] %vm14247_vm8, %v19781_v0 }
 0x65a   : > { %15002 = vst.msk [vmem:[%s19848_s14 + $0xbc8] sm:$0xf] %vm14247_vm8, %v19781_v0  ;;  %15003 = vst.msk [vmem:[%s19848_s14 + $0xbcc] sm:$0xf] %vm14247_vm8, %v19781_v0 }
 0x65b   : > { %15004 = vst.msk [vmem:[%s19848_s14 + $0xbd0] sm:$0xf] %vm14247_vm8, %v19781_v0  ;;  %15005 = vst.msk [vmem:[%s19848_s14 + $0xbd4] sm:$0xf] %vm14247_vm8, %v19781_v0 }
 0x65c   : > { %15006 = vst.msk [vmem:[%s19848_s14 + $0xbd8] sm:$0xf] %vm14247_vm8, %v19781_v0  ;;  %15007 = vst.msk [vmem:[%s19848_s14 + $0xbdc] sm:$0xf] %vm14247_vm8, %v19781_v0 }
 0x65d   : > { %15008 = vst.msk [vmem:[%s19848_s14 + $0xbe0] sm:$0xf] %vm14247_vm8, %v19781_v0  ;;  %15009 = vst.msk [vmem:[%s19848_s14 + $0xbe4] sm:$0xf] %vm14247_vm8, %v19781_v0 }
 0x65e   : > { %15010 = vst.msk [vmem:[%s19848_s14 + $0xbe8] sm:$0xf] %vm14247_vm8, %v19781_v0  ;;  %15011 = vst.msk [vmem:[%s19848_s14 + $0xbec] sm:$0xf] %vm14247_vm8, %v19781_v0 }
 0x65f   : > { %15012 = vst.msk [vmem:[%s19848_s14 + $0xbf0] sm:$0xf] %vm14247_vm8, %v19781_v0  ;;  %15013 = vst.msk [vmem:[%s19848_s14 + $0xbf4] sm:$0xf] %vm14247_vm8, %v19781_v0 }
 0x660   : > { %15014 = vst.msk [vmem:[%s19848_s14 + $0xbf8] sm:$0xf] %vm14247_vm8, %v19781_v0  ;;  %15015 = vst.msk [vmem:[%s19848_s14 + $0xbfc] sm:$0xf] %vm14247_vm8, %v19781_v0 }
 0x661   : > { %15016 = vst.msk [vmem:[%s19848_s14 + $0xc00] sm:$0xf] %vm14247_vm8, %v19781_v0  ;;  %15017 = vst.msk [vmem:[%s19848_s14 + $0xc04] sm:$0xf] %vm14247_vm8, %v19781_v0 }
 0x662   : > { %15018 = vst.msk [vmem:[%s19848_s14 + $0xc08] sm:$0xf] %vm14247_vm8, %v19781_v0  ;;  %15019 = vst.msk [vmem:[%s19848_s14 + $0xc0c] sm:$0xf] %vm14247_vm8, %v19781_v0 }
 0x663   : > { %15020 = vst.msk [vmem:[%s19848_s14 + $0xc10] sm:$0xf] %vm14247_vm8, %v19781_v0  ;;  %15021 = vst.msk [vmem:[%s19848_s14 + $0xc14] sm:$0xf] %vm14247_vm8, %v19781_v0 }
 0x664   : > { %15022 = vst.msk [vmem:[%s19848_s14 + $0xc18] sm:$0xf] %vm14247_vm8, %v19781_v0  ;;  %15023 = vst.msk [vmem:[%s19848_s14 + $0xc1c] sm:$0xf] %vm14247_vm8, %v19781_v0 }
 0x665   : > { %15024 = vst.msk [vmem:[%s19848_s14 + $0xc20] sm:$0xf] %vm14247_vm8, %v19781_v0  ;;  %15025 = vst.msk [vmem:[%s19848_s14 + $0xc24] sm:$0xf] %vm14247_vm8, %v19781_v0 }
 0x666   : > { %15026 = vst.msk [vmem:[%s19848_s14 + $0xc28] sm:$0xf] %vm14247_vm8, %v19781_v0  ;;  %15027 = vst.msk [vmem:[%s19848_s14 + $0xc2c] sm:$0xf] %vm14247_vm8, %v19781_v0 }
 0x667   : > { %15028 = vst.msk [vmem:[%s19848_s14 + $0xc30] sm:$0xf] %vm14247_vm8, %v19781_v0  ;;  %15029 = vst.msk [vmem:[%s19848_s14 + $0xc34] sm:$0xf] %vm14247_vm8, %v19781_v0 }
 0x668   : > { %15030 = vst.msk [vmem:[%s19848_s14 + $0xc38] sm:$0xf] %vm14247_vm8, %v19781_v0  ;;  %15031 = vst.msk [vmem:[%s19848_s14 + $0xc3c] sm:$0xf] %vm14247_vm8, %v19781_v0 }
 0x669   : > { %15032 = vst.msk [vmem:[%s19848_s14 + $0xc40] sm:$0xf] %vm14247_vm8, %v19781_v0  ;;  %15033 = vst.msk [vmem:[%s19848_s14 + $0xc44] sm:$0xf] %vm14247_vm8, %v19781_v0 }
 0x66a   : > { %15034 = vst.msk [vmem:[%s19848_s14 + $0xc48] sm:$0xf] %vm14247_vm8, %v19781_v0  ;;  %15035 = vst.msk [vmem:[%s19848_s14 + $0xc4c] sm:$0xf] %vm14247_vm8, %v19781_v0 }
 0x66b   : > { %15036 = vst.msk [vmem:[%s19848_s14 + $0xc50] sm:$0xf] %vm14247_vm8, %v19781_v0  ;;  %15037 = vst.msk [vmem:[%s19848_s14 + $0xc54] sm:$0xf] %vm14247_vm8, %v19781_v0 }
 0x66c   : > { %15038 = vst.msk [vmem:[%s19848_s14 + $0xc58] sm:$0xf] %vm14247_vm8, %v19781_v0  ;;  %15039 = vst.msk [vmem:[%s19848_s14 + $0xc5c] sm:$0xf] %vm14247_vm8, %v19781_v0 }
 0x66d   : > { %15040 = vst.msk [vmem:[%s19848_s14 + $0xc60] sm:$0xf] %vm14247_vm8, %v19781_v0  ;;  %15041 = vst.msk [vmem:[%s19848_s14 + $0xc64] sm:$0xf] %vm14247_vm8, %v19781_v0 }
 0x66e   : > { %15042 = vst.msk [vmem:[%s19848_s14 + $0xc68] sm:$0xf] %vm14247_vm8, %v19781_v0  ;;  %15043 = vst.msk [vmem:[%s19848_s14 + $0xc6c] sm:$0xf] %vm14247_vm8, %v19781_v0 }
 0x66f   : > { %15044 = vst.msk [vmem:[%s19848_s14 + $0xc70] sm:$0xf] %vm14247_vm8, %v19781_v0  ;;  %15045 = vst.msk [vmem:[%s19848_s14 + $0xc74] sm:$0xf] %vm14247_vm8, %v19781_v0 }
 0x670   : > { %15046 = vst.msk [vmem:[%s19848_s14 + $0xc78] sm:$0xf] %vm14247_vm8, %v19781_v0  ;;  %15047 = vst.msk [vmem:[%s19848_s14 + $0xc7c] sm:$0xf] %vm14247_vm8, %v19781_v0 }
 0x671   : > { %15048 = vst.msk [vmem:[%s19848_s14 + $0xc80] sm:$0xf] %vm14247_vm8, %v19781_v0  ;;  %15049 = vst.msk [vmem:[%s19848_s14 + $0xc84] sm:$0xf] %vm14247_vm8, %v19781_v0 }
 0x672   : > { %15050 = vst.msk [vmem:[%s19848_s14 + $0xc88] sm:$0xf] %vm14247_vm8, %v19781_v0  ;;  %15051 = vst.msk [vmem:[%s19848_s14 + $0xc8c] sm:$0xf] %vm14247_vm8, %v19781_v0 }
 0x673   : > { %15052 = vst.msk [vmem:[%s19848_s14 + $0xc90] sm:$0xf] %vm14247_vm8, %v19781_v0  ;;  %15053 = vst.msk [vmem:[%s19848_s14 + $0xc94] sm:$0xf] %vm14247_vm8, %v19781_v0 }
 0x674   : > { %15054 = vst.msk [vmem:[%s19848_s14 + $0xc98] sm:$0xf] %vm14247_vm8, %v19781_v0  ;;  %15055 = vst.msk [vmem:[%s19848_s14 + $0xc9c] sm:$0xf] %vm14247_vm8, %v19781_v0 }
 0x675   : > { %15056 = vst.msk [vmem:[%s19848_s14 + $0xca0] sm:$0xf] %vm14247_vm8, %v19781_v0  ;;  %15057 = vst.msk [vmem:[%s19848_s14 + $0xca4] sm:$0xf] %vm14247_vm8, %v19781_v0 }
 0x676   : > { %15058 = vst.msk [vmem:[%s19848_s14 + $0xca8] sm:$0xf] %vm14247_vm8, %v19781_v0  ;;  %15059 = vst.msk [vmem:[%s19848_s14 + $0xcac] sm:$0xf] %vm14247_vm8, %v19781_v0 }
 0x677   : > { %15060 = vst.msk [vmem:[%s19848_s14 + $0xcb0] sm:$0xf] %vm14247_vm8, %v19781_v0  ;;  %15061 = vst.msk [vmem:[%s19848_s14 + $0xcb4] sm:$0xf] %vm14247_vm8, %v19781_v0 }
 0x678   : > { %15062 = vst.msk [vmem:[%s19848_s14 + $0xcb8] sm:$0xf] %vm14247_vm8, %v19781_v0  ;;  %15063 = vst.msk [vmem:[%s19848_s14 + $0xcbc] sm:$0xf] %vm14247_vm8, %v19781_v0 }
 0x679   : > { %15064 = vst.msk [vmem:[%s19848_s14 + $0xcc0] sm:$0xf] %vm14247_vm8, %v19781_v0  ;;  %15065 = vst.msk [vmem:[%s19848_s14 + $0xcc4] sm:$0xf] %vm14247_vm8, %v19781_v0 }
 0x67a   : > { %15066 = vst.msk [vmem:[%s19848_s14 + $0xcc8] sm:$0xf] %vm14247_vm8, %v19781_v0  ;;  %15067 = vst.msk [vmem:[%s19848_s14 + $0xccc] sm:$0xf] %vm14247_vm8, %v19781_v0 }
 0x67b   : > { %15068 = vst.msk [vmem:[%s19848_s14 + $0xcd0] sm:$0xf] %vm14247_vm8, %v19781_v0  ;;  %15069 = vst.msk [vmem:[%s19848_s14 + $0xcd4] sm:$0xf] %vm14247_vm8, %v19781_v0 }
 0x67c   : > { %15070 = vst.msk [vmem:[%s19848_s14 + $0xcd8] sm:$0xf] %vm14247_vm8, %v19781_v0  ;;  %15071 = vst.msk [vmem:[%s19848_s14 + $0xcdc] sm:$0xf] %vm14247_vm8, %v19781_v0 }
 0x67d   : > { %15072 = vst.msk [vmem:[%s19848_s14 + $0xce0] sm:$0xf] %vm14247_vm8, %v19781_v0  ;;  %15073 = vst.msk [vmem:[%s19848_s14 + $0xce4] sm:$0xf] %vm14247_vm8, %v19781_v0 }
 0x67e   : > { %15074 = vst.msk [vmem:[%s19848_s14 + $0xce8] sm:$0xf] %vm14247_vm8, %v19781_v0  ;;  %15075 = vst.msk [vmem:[%s19848_s14 + $0xcec] sm:$0xf] %vm14247_vm8, %v19781_v0 }
 0x67f   : > { %15076 = vst.msk [vmem:[%s19848_s14 + $0xcf0] sm:$0xf] %vm14247_vm8, %v19781_v0  ;;  %15077 = vst.msk [vmem:[%s19848_s14 + $0xcf4] sm:$0xf] %vm14247_vm8, %v19781_v0 }
 0x680   : > { %15078 = vst.msk [vmem:[%s19848_s14 + $0xcf8] sm:$0xf] %vm14247_vm8, %v19781_v0  ;;  %15079 = vst.msk [vmem:[%s19848_s14 + $0xcfc] sm:$0xf] %vm14247_vm8, %v19781_v0 }
 0x681   : > { %15080 = vst.msk [vmem:[%s19848_s14 + $0xd00] sm:$0xf] %vm14247_vm8, %v19781_v0  ;;  %15081 = vst.msk [vmem:[%s19848_s14 + $0xd04] sm:$0xf] %vm14247_vm8, %v19781_v0 }
 0x682   : > { %15082 = vst.msk [vmem:[%s19848_s14 + $0xd08] sm:$0xf] %vm14247_vm8, %v19781_v0  ;;  %15083 = vst.msk [vmem:[%s19848_s14 + $0xd0c] sm:$0xf] %vm14247_vm8, %v19781_v0 }
 0x683   : > { %15084 = vst.msk [vmem:[%s19848_s14 + $0xd10] sm:$0xf] %vm14247_vm8, %v19781_v0  ;;  %15085 = vst.msk [vmem:[%s19848_s14 + $0xd14] sm:$0xf] %vm14247_vm8, %v19781_v0 }
 0x684   : > { %15086 = vst.msk [vmem:[%s19848_s14 + $0xd18] sm:$0xf] %vm14247_vm8, %v19781_v0  ;;  %15087 = vst.msk [vmem:[%s19848_s14 + $0xd1c] sm:$0xf] %vm14247_vm8, %v19781_v0 }
 0x685   : > { %15088 = vst.msk [vmem:[%s19848_s14 + $0xd20] sm:$0xf] %vm14247_vm8, %v19781_v0  ;;  %15089 = vst.msk [vmem:[%s19848_s14 + $0xd24] sm:$0xf] %vm14247_vm8, %v19781_v0 }
 0x686   : > { %15090 = vst.msk [vmem:[%s19848_s14 + $0xd28] sm:$0xf] %vm14247_vm8, %v19781_v0  ;;  %15091 = vst.msk [vmem:[%s19848_s14 + $0xd2c] sm:$0xf] %vm14247_vm8, %v19781_v0 }
 0x687   : > { %15092 = vst.msk [vmem:[%s19848_s14 + $0xd30] sm:$0xf] %vm14247_vm8, %v19781_v0  ;;  %15093 = vst.msk [vmem:[%s19848_s14 + $0xd34] sm:$0xf] %vm14247_vm8, %v19781_v0 }
 0x688   : > { %15094 = vst.msk [vmem:[%s19848_s14 + $0xd38] sm:$0xf] %vm14247_vm8, %v19781_v0  ;;  %15095 = vst.msk [vmem:[%s19848_s14 + $0xd3c] sm:$0xf] %vm14247_vm8, %v19781_v0 }
 0x689   : > { %15096 = vst.msk [vmem:[%s19848_s14 + $0xd40] sm:$0xf] %vm14247_vm8, %v19781_v0  ;;  %15097 = vst.msk [vmem:[%s19848_s14 + $0xd44] sm:$0xf] %vm14247_vm8, %v19781_v0 }
 0x68a   : > { %15098 = vst.msk [vmem:[%s19848_s14 + $0xd48] sm:$0xf] %vm14247_vm8, %v19781_v0  ;;  %15099 = vst.msk [vmem:[%s19848_s14 + $0xd4c] sm:$0xf] %vm14247_vm8, %v19781_v0 }
 0x68b   : > { %15100 = vst.msk [vmem:[%s19848_s14 + $0xd50] sm:$0xf] %vm14247_vm8, %v19781_v0  ;;  %15101 = vst.msk [vmem:[%s19848_s14 + $0xd54] sm:$0xf] %vm14247_vm8, %v19781_v0 }
 0x68c   : > { %15102 = vst.msk [vmem:[%s19848_s14 + $0xd58] sm:$0xf] %vm14247_vm8, %v19781_v0  ;;  %15103 = vst.msk [vmem:[%s19848_s14 + $0xd5c] sm:$0xf] %vm14247_vm8, %v19781_v0 }
 0x68d   : > { %15104 = vst.msk [vmem:[%s19848_s14 + $0xd60] sm:$0xf] %vm14247_vm8, %v19781_v0  ;;  %15105 = vst.msk [vmem:[%s19848_s14 + $0xd64] sm:$0xf] %vm14247_vm8, %v19781_v0 }
 0x68e   : > { %15106 = vst.msk [vmem:[%s19848_s14 + $0xd68] sm:$0xf] %vm14247_vm8, %v19781_v0  ;;  %15107 = vst.msk [vmem:[%s19848_s14 + $0xd6c] sm:$0xf] %vm14247_vm8, %v19781_v0 }
 0x68f   : > { %15108 = vst.msk [vmem:[%s19848_s14 + $0xd70] sm:$0xf] %vm14247_vm8, %v19781_v0  ;;  %15109 = vst.msk [vmem:[%s19848_s14 + $0xd74] sm:$0xf] %vm14247_vm8, %v19781_v0 }
 0x690   : > { %15110 = vst.msk [vmem:[%s19848_s14 + $0xd78] sm:$0xf] %vm14247_vm8, %v19781_v0  ;;  %15111 = vst.msk [vmem:[%s19848_s14 + $0xd7c] sm:$0xf] %vm14247_vm8, %v19781_v0 }
 0x691   : > { %15112 = vst.msk [vmem:[%s19848_s14 + $0xd80] sm:$0xf] %vm14247_vm8, %v19781_v0  ;;  %15113 = vst.msk [vmem:[%s19848_s14 + $0xd84] sm:$0xf] %vm14247_vm8, %v19781_v0 }
 0x692   : > { %15114 = vst.msk [vmem:[%s19848_s14 + $0xd88] sm:$0xf] %vm14247_vm8, %v19781_v0  ;;  %15115 = vst.msk [vmem:[%s19848_s14 + $0xd8c] sm:$0xf] %vm14247_vm8, %v19781_v0 }
 0x693   : > { %15116 = vst.msk [vmem:[%s19848_s14 + $0xd90] sm:$0xf] %vm14247_vm8, %v19781_v0  ;;  %15117 = vst.msk [vmem:[%s19848_s14 + $0xd94] sm:$0xf] %vm14247_vm8, %v19781_v0 }
 0x694   : > { %15118 = vst.msk [vmem:[%s19848_s14 + $0xd98] sm:$0xf] %vm14247_vm8, %v19781_v0  ;;  %15119 = vst.msk [vmem:[%s19848_s14 + $0xd9c] sm:$0xf] %vm14247_vm8, %v19781_v0 }
 0x695   : > { %15120 = vst.msk [vmem:[%s19848_s14 + $0xda0] sm:$0xf] %vm14247_vm8, %v19781_v0  ;;  %15121 = vst.msk [vmem:[%s19848_s14 + $0xda4] sm:$0xf] %vm14247_vm8, %v19781_v0 }
 0x696   : > { %15122 = vst.msk [vmem:[%s19848_s14 + $0xda8] sm:$0xf] %vm14247_vm8, %v19781_v0  ;;  %15123 = vst.msk [vmem:[%s19848_s14 + $0xdac] sm:$0xf] %vm14247_vm8, %v19781_v0 }
 0x697   : > { %15124 = vst.msk [vmem:[%s19848_s14 + $0xdb0] sm:$0xf] %vm14247_vm8, %v19781_v0  ;;  %15125 = vst.msk [vmem:[%s19848_s14 + $0xdb4] sm:$0xf] %vm14247_vm8, %v19781_v0 }
 0x698   : > { %15126 = vst.msk [vmem:[%s19848_s14 + $0xdb8] sm:$0xf] %vm14247_vm8, %v19781_v0  ;;  %15127 = vst.msk [vmem:[%s19848_s14 + $0xdbc] sm:$0xf] %vm14247_vm8, %v19781_v0 }
 0x699   : > { %15128 = vst.msk [vmem:[%s19848_s14 + $0xdc0] sm:$0xf] %vm14247_vm8, %v19781_v0  ;;  %15129 = vst.msk [vmem:[%s19848_s14 + $0xdc4] sm:$0xf] %vm14247_vm8, %v19781_v0 }
 0x69a   : > { %15130 = vst.msk [vmem:[%s19848_s14 + $0xdc8] sm:$0xf] %vm14247_vm8, %v19781_v0  ;;  %15131 = vst.msk [vmem:[%s19848_s14 + $0xdcc] sm:$0xf] %vm14247_vm8, %v19781_v0 }
 0x69b   : > { %15132 = vst.msk [vmem:[%s19848_s14 + $0xdd0] sm:$0xf] %vm14247_vm8, %v19781_v0  ;;  %15133 = vst.msk [vmem:[%s19848_s14 + $0xdd4] sm:$0xf] %vm14247_vm8, %v19781_v0 }
 0x69c   : > { %15134 = vst.msk [vmem:[%s19848_s14 + $0xdd8] sm:$0xf] %vm14247_vm8, %v19781_v0  ;;  %15135 = vst.msk [vmem:[%s19848_s14 + $0xddc] sm:$0xf] %vm14247_vm8, %v19781_v0 }
 0x69d   : > { %15136 = vst.msk [vmem:[%s19848_s14 + $0xde0] sm:$0xf] %vm14247_vm8, %v19781_v0  ;;  %15137 = vst.msk [vmem:[%s19848_s14 + $0xde4] sm:$0xf] %vm14247_vm8, %v19781_v0 }
 0x69e   : > { %15138 = vst.msk [vmem:[%s19848_s14 + $0xde8] sm:$0xf] %vm14247_vm8, %v19781_v0  ;;  %15139 = vst.msk [vmem:[%s19848_s14 + $0xdec] sm:$0xf] %vm14247_vm8, %v19781_v0 }
 0x69f   : > { %15140 = vst.msk [vmem:[%s19848_s14 + $0xdf0] sm:$0xf] %vm14247_vm8, %v19781_v0  ;;  %15141 = vst.msk [vmem:[%s19848_s14 + $0xdf4] sm:$0xf] %vm14247_vm8, %v19781_v0 }
 0x6a0   : > { %15142 = vst.msk [vmem:[%s19848_s14 + $0xdf8] sm:$0xf] %vm14247_vm8, %v19781_v0  ;;  %15143 = vst.msk [vmem:[%s19848_s14 + $0xdfc] sm:$0xf] %vm14247_vm8, %v19781_v0 }
 0x6a1   : > { %15144 = vst.msk [vmem:[%s19848_s14 + $0xe00] sm:$0xf] %vm14247_vm8, %v19781_v0  ;;  %15145 = vst.msk [vmem:[%s19848_s14 + $0xe04] sm:$0xf] %vm14247_vm8, %v19781_v0 }
 0x6a2   : > { %15146 = vst.msk [vmem:[%s19848_s14 + $0xe08] sm:$0xf] %vm14247_vm8, %v19781_v0  ;;  %15147 = vst.msk [vmem:[%s19848_s14 + $0xe0c] sm:$0xf] %vm14247_vm8, %v19781_v0 }
 0x6a3 PF: > { %s21_s25 = sadd.s32 1, %s19773_s25   ;;  %s25594_s23 = smov %s19769_s24 }
 0x6a4   : > { %p18_p13 = scmp.ge.s32.totalorder %s21_s25, 4   ;;  %s25595_s24 = smov %s25597_s0 }
 0x6a6   :  { %20 = sbr.rel (!%p18_p13) target bundleno = 17 (0x11), region = 126 }

</bundles_post_ra>
